<compile_context>
chip_gen: v7x
topology: tpu7x:2x2x1
jax: 0.10.0
libtpu: 0.0.40
codegen_flags: <defaults>
</compile_context>

<pallas_src>
import jax
import jax.numpy as jnp
from jax import lax
from jax.experimental import pallas as pl
from jax.experimental.pallas import tpu as pltpu


def _criss_cross(x, wq, bq, wk, bk, wv, bv, gamma):
    """One CrissCrossAttention layer on a single (H, W, C) image (values)."""
    H, W, C = x.shape
    xf = x.reshape(H * W, C)

    # 1x1 convs == per-pixel channel matmuls (MXU)
    q = (jnp.dot(xf, wq, preferred_element_type=jnp.float32) + bq).reshape(H, W, -1)
    k = (jnp.dot(xf, wk, preferred_element_type=jnp.float32) + bk).reshape(H, W, -1)
    v = (jnp.dot(xf, wv, preferred_element_type=jnp.float32) + bv).reshape(H, W, C)

    # W-major views for the column (vertical) branch; stays W-major throughout.
    q_w = jnp.transpose(q, (1, 0, 2))              # (W, H, Cq)   tiny
    k_w = jnp.transpose(k, (1, 0, 2))              # (W, H, Cq)   tiny
    v_w = jnp.transpose(v, (1, 0, 2))              # (W, H, C)

    # vertical energies, kept W-major: e_h_w[w,h,g] = <q[h,w,:], k[g,w,:]>
    e_h_w = jnp.einsum('whc,wgc->whg', q_w, k_w,
                       preferred_element_type=jnp.float32)       # (W, H, H)
    # PyTorch INF(): -inf on the h == g diagonal
    diag = (lax.broadcasted_iota(jnp.int32, (W, H, H), 1) ==
            lax.broadcasted_iota(jnp.int32, (W, H, H), 2))
    e_h_w = jnp.where(diag, -jnp.inf, e_h_w)

    # horizontal energies: e_w[h,w,v'] = <q[h,w,:], k[h,v',:]>
    e_w = jnp.einsum('hwc,hvc->hwv', q, k,
                     preferred_element_type=jnp.float32)         # (H, W, W)

    # ---- joint softmax over the concatenated (H' ++ W') axis, no concat ----
    m_h_w = jnp.max(e_h_w, axis=-1, keepdims=True)               # (W, H, 1)
    m_row = jnp.max(e_w, axis=-1, keepdims=True)                 # (H, W, 1)
    m = jnp.maximum(jnp.transpose(m_h_w, (1, 0, 2)), m_row)      # (H, W, 1)
    m_wmaj = jnp.transpose(m, (1, 0, 2))                         # (W, H, 1)

    p_h_w = jnp.exp(e_h_w - m_wmaj)                              # (W, H, H)
    p_w = jnp.exp(e_w - m)                                       # (H, W, W)

    denom = (jnp.transpose(jnp.sum(p_h_w, axis=-1, keepdims=True), (1, 0, 2))
             + jnp.sum(p_w, axis=-1, keepdims=True))             # (H, W, 1)
    inv_l = pl.reciprocal(denom, approx=True)                    # EUP slot

    # aggregation with unnormalized weights; 1/denom folded into the output
    out_h = jnp.transpose(
        jnp.einsum('whg,wgc->whc', p_h_w, v_w,
                   preferred_element_type=jnp.float32),
        (1, 0, 2))                                               # (H, W, C)
    out_w = jnp.einsum('hwv,hvc->hwc', p_w, v,
                       preferred_element_type=jnp.float32)       # (H, W, C)

    return gamma * ((out_h + out_w) * inv_l) + x


def fused_attention_kernel(x_ref,
                           wq1_ref, bq1_ref, wk1_ref, bk1_ref, wv1_ref, bv1_ref,
                           wq2_ref, bq2_ref, wk2_ref, bk2_ref, wv2_ref, bv2_ref,
                           gamma_ref, o_ref):
    # x_ref block: (1, H, W, C) -- one batch element, NHWC
    x = x_ref[0]

    # TODO(synk): WindowAttention class is not provided in the reference
    # source; treated as identity.
    out1 = _criss_cross(x,
                        wq1_ref[...], bq1_ref[...], wk1_ref[...], bk1_ref[...],
                        wv1_ref[...], bv1_ref[...], gamma_ref[0])
    out2 = _criss_cross(out1,
                        wq2_ref[...], bq2_ref[...], wk2_ref[...], bk2_ref[...],
                        wv2_ref[...], bv2_ref[...], gamma_ref[1])

    o_ref[0] = (out2 + x).astype(o_ref.dtype)     # FusedAttention residual


def fused_attention(x_nchw, cc1_params, cc2_params):
    """FusedAttention.forward.  x_nchw: (B, C, H, W) like the PyTorch module."""
    wq1, bq1, wk1, bk1, wv1, bv1, g1 = cc1_params
    wq2, bq2, wk2, bk2, wv2, bv2, g2 = cc2_params

    x = jnp.transpose(x_nchw, (0, 2, 3, 1))       # NCHW -> NHWC for the kernel
    B, H, W, C = x.shape
    Cq = wq1.shape[1]
    gammas = jnp.concatenate([g1.reshape(1), g2.reshape(1)]).astype(jnp.float32)

    rep2 = lambda b: (0, 0)
    out = pl.pallas_call(
        fused_attention_kernel,
        out_shape=jax.ShapeDtypeStruct((B, H, W, C), x.dtype),
        grid=(B,),
        in_specs=[
            pl.BlockSpec((1, H, W, C), lambda b: (b, 0, 0, 0)),
            # layer 1 params
            pl.BlockSpec((C, Cq), rep2), pl.BlockSpec((1, Cq), rep2),
            pl.BlockSpec((C, Cq), rep2), pl.BlockSpec((1, Cq), rep2),
            pl.BlockSpec((C, C), rep2), pl.BlockSpec((1, C), rep2),
            # layer 2 params
            pl.BlockSpec((C, Cq), rep2), pl.BlockSpec((1, Cq), rep2),
            pl.BlockSpec((C, Cq), rep2), pl.BlockSpec((1, Cq), rep2),
            pl.BlockSpec((C, C), rep2), pl.BlockSpec((1, C), rep2),
            # both gamma scalars in SMEM
            pl.BlockSpec(memory_space=pltpu.MemorySpace.SMEM),
        ],
        out_specs=pl.BlockSpec((1, H, W, C), lambda b: (b, 0, 0, 0)),
        compiler_params=pltpu.CompilerParams(
            dimension_semantics=("parallel",)),
    )(x, wq1, bq1, wk1, bk1, wv1, bv1,
      wq2, bq2, wk2, bk2, wv2, bv2, gammas)

    return jnp.transpose(out, (0, 3, 1, 2))       # NHWC -> NCHW


# ---------------- pure-JAX reference for verification ----------------
def criss_cross_ref(x, wq, bq, wk, bk, wv, bv, gamma):
    q = jnp.einsum('bhwc,cd->bhwd', x, wq) + bq[0]
    k = jnp.einsum('bhwc,cd->bhwd', x, wk) + bk[0]
    v = jnp.einsum('bhwc,cd->bhwd', x, wv) + bv[0]
    B, H, W, C = x.shape
    eH = jnp.einsum('bhwd,bgwd->bhwg', q, k)
    mask = jnp.eye(H, dtype=bool)[:, None, :]
    eH = jnp.where(mask[None], -jnp.inf, eH)
    eW = jnp.einsum('bhwd,bhvd->bhwv', q, k)
    att = jax.nn.softmax(jnp.concatenate([eH, eW], axis=-1), axis=-1)
    out_H = jnp.einsum('bhwg,bgwc->bhwc', att[..., :H], v)
    out_W = jnp.einsum('bhwv,bhvc->bhwc', att[..., H:], v)
    return gamma[0, 0] * (out_H + out_W) + x


def fused_attention_ref(x_nchw, cc1_params, cc2_params):
    x = jnp.transpose(x_nchw, (0, 2, 3, 1))
    out1 = criss_cross_ref(x, *cc1_params)
    out = criss_cross_ref(out1, *cc2_params)
    return jnp.transpose(out + x, (0, 3, 1, 2))


def make_cc_params(key, in_dim):
    """Deterministic parameter init for one CrissCrossAttention(in_dim)."""
    cq = in_dim // 8
    ks = jax.random.split(key, 6)
    wq = 0.1 * jax.random.normal(ks[0], (in_dim, cq), jnp.float32)
    bq = 0.1 * jax.random.normal(ks[1], (1, cq), jnp.float32)
    wk = 0.1 * jax.random.normal(ks[2], (in_dim, cq), jnp.float32)
    bk = 0.1 * jax.random.normal(ks[3], (1, cq), jnp.float32)
    wv = 0.1 * jax.random.normal(ks[4], (in_dim, in_dim), jnp.float32)
    bv = 0.1 * jax.random.normal(ks[5], (1, in_dim), jnp.float32)
    # PyTorch inits gamma = 0 (layer == identity); use a nonzero value so the
    # attention path is actually exercised.
    gamma = jnp.full((1, 1), 0.5, jnp.float32)
    return (wq, bq, wk, bk, wv, bv, gamma)


if __name__ == "__main__":
    B, C, H, W = 2, 16, 16, 16          # in_dim=16 -> q/k channels = 2
    key = jax.random.PRNGKey(0)
    kx, k1, k2 = jax.random.split(key, 3)
    x = jax.random.normal(kx, (B, C, H, W), jnp.float32)
    cc1 = make_cc_params(k1, C)
    cc2 = make_cc_params(k2, C)

    fused = jax.jit(fused_attention)
    out = fused(x, cc1, cc2)
    out = jax.block_until_ready(out)

    ref = fused_attention_ref(x, cc1, cc2)
    assert out.shape == (B, C, H, W)
    # Tolerance covers pl.reciprocal(approx=True) in the softmax normalization.
    assert jnp.allclose(out, ref, atol=2e-3, rtol=2e-3), "mismatch vs reference"

    print("KERNEL_OK")
</pallas_src>

<mosaic_0001>
module attributes {stable_mosaic.version = 11 : i64} {
  func.func @fused_attention_kernel(%arg0: i32, %arg1: memref<1x16x16x16xf32, #tpu.memory_space<vmem>>, %arg2: memref<16x2xf32, #tpu.memory_space<vmem>>, %arg3: memref<1x2xf32, #tpu.memory_space<vmem>>, %arg4: memref<16x2xf32, #tpu.memory_space<vmem>>, %arg5: memref<1x2xf32, #tpu.memory_space<vmem>>, %arg6: memref<16x16xf32, #tpu.memory_space<vmem>>, %arg7: memref<1x16xf32, #tpu.memory_space<vmem>>, %arg8: memref<16x2xf32, #tpu.memory_space<vmem>>, %arg9: memref<1x2xf32, #tpu.memory_space<vmem>>, %arg10: memref<16x2xf32, #tpu.memory_space<vmem>>, %arg11: memref<1x2xf32, #tpu.memory_space<vmem>>, %arg12: memref<16x16xf32, #tpu.memory_space<vmem>>, %arg13: memref<1x16xf32, #tpu.memory_space<vmem>>, %arg14: memref<2xf32, #tpu.memory_space<smem>>, %arg15: memref<1x16x16x16xf32, #tpu.memory_space<vmem>>) attributes {dimension_semantics = [#tpu.dimension_semantics<parallel>], iteration_bounds = array<i64: 2>, scalar_prefetch = 0 : i64, scratch_operands = 0 : i64, tpu.core_type = #tpu.core_type<tc>, window_params = [{transform_indices = @transform_0, window_bounds = array<i64: 1, 16, 16, 16>}, {pipeline_mode = #tpu.pipeline_mode<synchronous>, transform_indices = @transform_1, window_bounds = array<i64: 16, 2>}, {pipeline_mode = #tpu.pipeline_mode<synchronous>, transform_indices = @transform_2, window_bounds = array<i64: 1, 2>}, {pipeline_mode = #tpu.pipeline_mode<synchronous>, transform_indices = @transform_3, window_bounds = array<i64: 16, 2>}, {pipeline_mode = #tpu.pipeline_mode<synchronous>, transform_indices = @transform_4, window_bounds = array<i64: 1, 2>}, {pipeline_mode = #tpu.pipeline_mode<synchronous>, transform_indices = @transform_5, window_bounds = array<i64: 16, 16>}, {pipeline_mode = #tpu.pipeline_mode<synchronous>, transform_indices = @transform_6, window_bounds = array<i64: 1, 16>}, {pipeline_mode = #tpu.pipeline_mode<synchronous>, transform_indices = @transform_7, window_bounds = array<i64: 16, 2>}, {pipeline_mode = #tpu.pipeline_mode<synchronous>, transform_indices = @transform_8, window_bounds = array<i64: 1, 2>}, {pipeline_mode = #tpu.pipeline_mode<synchronous>, transform_indices = @transform_9, window_bounds = array<i64: 16, 2>}, {pipeline_mode = #tpu.pipeline_mode<synchronous>, transform_indices = @transform_10, window_bounds = array<i64: 1, 2>}, {pipeline_mode = #tpu.pipeline_mode<synchronous>, transform_indices = @transform_11, window_bounds = array<i64: 16, 16>}, {pipeline_mode = #tpu.pipeline_mode<synchronous>, transform_indices = @transform_12, window_bounds = array<i64: 1, 16>}, {transform_indices = @transform_13, window_bounds = array<i64: 2>}, {transform_indices = @transform_14, window_bounds = array<i64: 1, 16, 16, 16>}]} {
    %c0 = arith.constant 0 : index
    %c0_0 = arith.constant 0 : index
    %c0_1 = arith.constant 0 : index
    %c0_2 = arith.constant 0 : index
    %0 = vector.load %arg1[%c0, %c0_0, %c0_1, %c0_2] : memref<1x16x16x16xf32, #tpu.memory_space<vmem>>, vector<1x16x16x16xf32>
    %1 = vector.shape_cast %0 : vector<1x16x16x16xf32> to vector<16x16x16xf32>
    %c0_3 = arith.constant 0 : index
    %c0_4 = arith.constant 0 : index
    %2 = vector.load %arg2[%c0_3, %c0_4] : memref<16x2xf32, #tpu.memory_space<vmem>>, vector<16x2xf32>
    %c0_5 = arith.constant 0 : index
    %c0_6 = arith.constant 0 : index
    %3 = vector.load %arg3[%c0_5, %c0_6] : memref<1x2xf32, #tpu.memory_space<vmem>>, vector<1x2xf32>
    %c0_7 = arith.constant 0 : index
    %c0_8 = arith.constant 0 : index
    %4 = vector.load %arg4[%c0_7, %c0_8] : memref<16x2xf32, #tpu.memory_space<vmem>>, vector<16x2xf32>
    %c0_9 = arith.constant 0 : index
    %c0_10 = arith.constant 0 : index
    %5 = vector.load %arg5[%c0_9, %c0_10] : memref<1x2xf32, #tpu.memory_space<vmem>>, vector<1x2xf32>
    %c0_11 = arith.constant 0 : index
    %c0_12 = arith.constant 0 : index
    %6 = vector.load %arg6[%c0_11, %c0_12] : memref<16x16xf32, #tpu.memory_space<vmem>>, vector<16x16xf32>
    %c0_13 = arith.constant 0 : index
    %c0_14 = arith.constant 0 : index
    %7 = vector.load %arg7[%c0_13, %c0_14] : memref<1x16xf32, #tpu.memory_space<vmem>>, vector<1x16xf32>
    %c0_15 = arith.constant 0 : index
    %8 = memref.load %arg14[%c0_15] : memref<2xf32, #tpu.memory_space<smem>>
    %9 = vector.shape_cast %1 : vector<16x16x16xf32> to vector<256x16xf32>
    %cst = arith.constant dense<0.000000e+00> : vector<256x2xf32>
    %10 = tpu.matmul %9, %2, %cst {dimension_numbers = #tpu.dot_dimension_numbers<[1], [0], [0], [1], [0, 0, 1, 1], [], []>} : vector<256x16xf32>, vector<16x2xf32>, vector<256x2xf32> -> vector<256x2xf32>
    %11 = vector.broadcast %3 : vector<1x2xf32> to vector<256x2xf32>
    %12 = arith.addf %10, %11 : vector<256x2xf32>
    %13 = vector.shape_cast %12 : vector<256x2xf32> to vector<16x16x2xf32>
    %cst_16 = arith.constant dense<0.000000e+00> : vector<256x2xf32>
    %14 = tpu.matmul %9, %4, %cst_16 {dimension_numbers = #tpu.dot_dimension_numbers<[1], [0], [0], [1], [0, 0, 1, 1], [], []>} : vector<256x16xf32>, vector<16x2xf32>, vector<256x2xf32> -> vector<256x2xf32>
    %15 = vector.broadcast %5 : vector<1x2xf32> to vector<256x2xf32>
    %16 = arith.addf %14, %15 : vector<256x2xf32>
    %17 = vector.shape_cast %16 : vector<256x2xf32> to vector<16x16x2xf32>
    %cst_17 = arith.constant dense<0.000000e+00> : vector<256x16xf32>
    %18 = tpu.matmul %9, %6, %cst_17 {dimension_numbers = #tpu.dot_dimension_numbers<[1], [0], [0], [1], [0, 0, 1, 1], [], []>} : vector<256x16xf32>, vector<16x16xf32>, vector<256x16xf32> -> vector<256x16xf32>
    %19 = vector.broadcast %7 : vector<1x16xf32> to vector<256x16xf32>
    %20 = arith.addf %18, %19 : vector<256x16xf32>
    %21 = vector.shape_cast %20 : vector<256x16xf32> to vector<16x16x16xf32>
    %22 = tpu.transpose %13, [1, 0, 2] : vector<16x16x2xf32> -> vector<16x16x2xf32>
    %23 = tpu.transpose %17, [1, 0, 2] : vector<16x16x2xf32> -> vector<16x16x2xf32>
    %24 = tpu.transpose %21, [1, 0, 2] : vector<16x16x16xf32> -> vector<16x16x16xf32>
    "tpu.trace_start"() <{level = 10 : i32, message = "whc,wgc->whg"}> : () -> ()
    %cst_18 = arith.constant dense<0.000000e+00> : vector<16x16x16xf32>
    %25 = tpu.matmul %22, %23, %cst_18 {dimension_numbers = #tpu.dot_dimension_numbers<[2], [2], [1], [1], [0, 0, 0, 1, 1, 1], [0], [0]>} : vector<16x16x2xf32>, vector<16x16x2xf32>, vector<16x16x16xf32> -> vector<16x16x16xf32>
    "tpu.trace_stop"() : () -> ()
    %26 = tpu.iota {dimensions = array<i32: 1>} : vector<16x16x16xi32>
    %27 = tpu.iota {dimensions = array<i32: 2>} : vector<16x16x16xi32>
    %28 = arith.cmpi eq, %26, %27 : vector<16x16x16xi32>
    %cst_19 = arith.constant 0xFF800000 : f32
    %29 = vector.broadcast %cst_19 : f32 to vector<16x16x16xf32>
    %30 = arith.select %28, %29, %25 : vector<16x16x16xi1>, vector<16x16x16xf32>
    "tpu.trace_start"() <{level = 10 : i32, message = "hwc,hvc->hwv"}> : () -> ()
    %cst_20 = arith.constant dense<0.000000e+00> : vector<16x16x16xf32>
    %31 = tpu.matmul %13, %17, %cst_20 {dimension_numbers = #tpu.dot_dimension_numbers<[2], [2], [1], [1], [0, 0, 0, 1, 1, 1], [0], [0]>} : vector<16x16x2xf32>, vector<16x16x2xf32>, vector<16x16x16xf32> -> vector<16x16x16xf32>
    "tpu.trace_stop"() : () -> ()
    %cst_21 = arith.constant dense<0xFF800000> : vector<16x16xf32>
    %32 = vector.multi_reduction <maximumf>, %30, %cst_21 [2] : vector<16x16x16xf32> to vector<16x16xf32>
    %33 = vector.shape_cast %32 : vector<16x16xf32> to vector<16x16x1xf32>
    %cst_22 = arith.constant dense<0xFF800000> : vector<16x16xf32>
    %34 = vector.multi_reduction <maximumf>, %31, %cst_22 [2] : vector<16x16x16xf32> to vector<16x16xf32>
    %35 = vector.shape_cast %34 : vector<16x16xf32> to vector<16x16x1xf32>
    %36 = tpu.transpose %33, [1, 0, 2] : vector<16x16x1xf32> -> vector<16x16x1xf32>
    %37 = arith.maximumf %36, %35 : vector<16x16x1xf32>
    %38 = tpu.transpose %37, [1, 0, 2] : vector<16x16x1xf32> -> vector<16x16x1xf32>
    %39 = vector.broadcast %38 : vector<16x16x1xf32> to vector<16x16x16xf32>
    %40 = arith.subf %30, %39 : vector<16x16x16xf32>
    %41 = math.exp %40 : vector<16x16x16xf32>
    %42 = vector.broadcast %37 : vector<16x16x1xf32> to vector<16x16x16xf32>
    %43 = arith.subf %31, %42 : vector<16x16x16xf32>
    %44 = math.exp %43 : vector<16x16x16xf32>
    %cst_23 = arith.constant dense<0.000000e+00> : vector<16x16xf32>
    %45 = vector.multi_reduction <add>, %41, %cst_23 [2] : vector<16x16x16xf32> to vector<16x16xf32>
    %46 = vector.shape_cast %45 : vector<16x16xf32> to vector<16x16x1xf32>
    %47 = tpu.transpose %46, [1, 0, 2] : vector<16x16x1xf32> -> vector<16x16x1xf32>
    %cst_24 = arith.constant dense<0.000000e+00> : vector<16x16xf32>
    %48 = vector.multi_reduction <add>, %44, %cst_24 [2] : vector<16x16x16xf32> to vector<16x16xf32>
    %49 = vector.shape_cast %48 : vector<16x16xf32> to vector<16x16x1xf32>
    %50 = arith.addf %47, %49 : vector<16x16x1xf32>
    %51 = tpu.reciprocal %50 {approx = true} : vector<16x16x1xf32> -> vector<16x16x1xf32>
    "tpu.trace_start"() <{level = 10 : i32, message = "whg,wgc->whc"}> : () -> ()
    %cst_25 = arith.constant dense<0.000000e+00> : vector<16x16x16xf32>
    %52 = tpu.matmul %41, %24, %cst_25 {dimension_numbers = #tpu.dot_dimension_numbers<[2], [1], [1], [2], [0, 0, 0, 1, 1, 2], [0], [0]>} : vector<16x16x16xf32>, vector<16x16x16xf32>, vector<16x16x16xf32> -> vector<16x16x16xf32>
    "tpu.trace_stop"() : () -> ()
    %53 = tpu.transpose %52, [1, 0, 2] : vector<16x16x16xf32> -> vector<16x16x16xf32>
    "tpu.trace_start"() <{level = 10 : i32, message = "hwv,hvc->hwc"}> : () -> ()
    %cst_26 = arith.constant dense<0.000000e+00> : vector<16x16x16xf32>
    %54 = tpu.matmul %44, %21, %cst_26 {dimension_numbers = #tpu.dot_dimension_numbers<[2], [1], [1], [2], [0, 0, 0, 1, 1, 2], [0], [0]>} : vector<16x16x16xf32>, vector<16x16x16xf32>, vector<16x16x16xf32> -> vector<16x16x16xf32>
    "tpu.trace_stop"() : () -> ()
    %55 = arith.addf %53, %54 : vector<16x16x16xf32>
    %56 = vector.broadcast %51 : vector<16x16x1xf32> to vector<16x16x16xf32>
    %57 = arith.mulf %55, %56 : vector<16x16x16xf32>
    %58 = vector.broadcast %8 : f32 to vector<16x16x16xf32>
    %59 = arith.mulf %58, %57 : vector<16x16x16xf32>
    %60 = arith.addf %59, %1 : vector<16x16x16xf32>
    %c0_27 = arith.constant 0 : index
    %c0_28 = arith.constant 0 : index
    %61 = vector.load %arg8[%c0_27, %c0_28] : memref<16x2xf32, #tpu.memory_space<vmem>>, vector<16x2xf32>
    %c0_29 = arith.constant 0 : index
    %c0_30 = arith.constant 0 : index
    %62 = vector.load %arg9[%c0_29, %c0_30] : memref<1x2xf32, #tpu.memory_space<vmem>>, vector<1x2xf32>
    %c0_31 = arith.constant 0 : index
    %c0_32 = arith.constant 0 : index
    %63 = vector.load %arg10[%c0_31, %c0_32] : memref<16x2xf32, #tpu.memory_space<vmem>>, vector<16x2xf32>
    %c0_33 = arith.constant 0 : index
    %c0_34 = arith.constant 0 : index
    %64 = vector.load %arg11[%c0_33, %c0_34] : memref<1x2xf32, #tpu.memory_space<vmem>>, vector<1x2xf32>
    %c0_35 = arith.constant 0 : index
    %c0_36 = arith.constant 0 : index
    %65 = vector.load %arg12[%c0_35, %c0_36] : memref<16x16xf32, #tpu.memory_space<vmem>>, vector<16x16xf32>
    %c0_37 = arith.constant 0 : index
    %c0_38 = arith.constant 0 : index
    %66 = vector.load %arg13[%c0_37, %c0_38] : memref<1x16xf32, #tpu.memory_space<vmem>>, vector<1x16xf32>
    %c1 = arith.constant 1 : index
    %67 = memref.load %arg14[%c1] : memref<2xf32, #tpu.memory_space<smem>>
    %68 = vector.shape_cast %60 : vector<16x16x16xf32> to vector<256x16xf32>
    %cst_39 = arith.constant dense<0.000000e+00> : vector<256x2xf32>
    %69 = tpu.matmul %68, %61, %cst_39 {dimension_numbers = #tpu.dot_dimension_numbers<[1], [0], [0], [1], [0, 0, 1, 1], [], []>} : vector<256x16xf32>, vector<16x2xf32>, vector<256x2xf32> -> vector<256x2xf32>
    %70 = vector.broadcast %62 : vector<1x2xf32> to vector<256x2xf32>
    %71 = arith.addf %69, %70 : vector<256x2xf32>
    %72 = vector.shape_cast %71 : vector<256x2xf32> to vector<16x16x2xf32>
    %cst_40 = arith.constant dense<0.000000e+00> : vector<256x2xf32>
    %73 = tpu.matmul %68, %63, %cst_40 {dimension_numbers = #tpu.dot_dimension_numbers<[1], [0], [0], [1], [0, 0, 1, 1], [], []>} : vector<256x16xf32>, vector<16x2xf32>, vector<256x2xf32> -> vector<256x2xf32>
    %74 = vector.broadcast %64 : vector<1x2xf32> to vector<256x2xf32>
    %75 = arith.addf %73, %74 : vector<256x2xf32>
    %76 = vector.shape_cast %75 : vector<256x2xf32> to vector<16x16x2xf32>
    %cst_41 = arith.constant dense<0.000000e+00> : vector<256x16xf32>
    %77 = tpu.matmul %68, %65, %cst_41 {dimension_numbers = #tpu.dot_dimension_numbers<[1], [0], [0], [1], [0, 0, 1, 1], [], []>} : vector<256x16xf32>, vector<16x16xf32>, vector<256x16xf32> -> vector<256x16xf32>
    %78 = vector.broadcast %66 : vector<1x16xf32> to vector<256x16xf32>
    %79 = arith.addf %77, %78 : vector<256x16xf32>
    %80 = vector.shape_cast %79 : vector<256x16xf32> to vector<16x16x16xf32>
    %81 = tpu.transpose %72, [1, 0, 2] : vector<16x16x2xf32> -> vector<16x16x2xf32>
    %82 = tpu.transpose %76, [1, 0, 2] : vector<16x16x2xf32> -> vector<16x16x2xf32>
    %83 = tpu.transpose %80, [1, 0, 2] : vector<16x16x16xf32> -> vector<16x16x16xf32>
    "tpu.trace_start"() <{level = 10 : i32, message = "whc,wgc->whg"}> : () -> ()
    %cst_42 = arith.constant dense<0.000000e+00> : vector<16x16x16xf32>
    %84 = tpu.matmul %81, %82, %cst_42 {dimension_numbers = #tpu.dot_dimension_numbers<[2], [2], [1], [1], [0, 0, 0, 1, 1, 1], [0], [0]>} : vector<16x16x2xf32>, vector<16x16x2xf32>, vector<16x16x16xf32> -> vector<16x16x16xf32>
    "tpu.trace_stop"() : () -> ()
    %85 = tpu.iota {dimensions = array<i32: 1>} : vector<16x16x16xi32>
    %86 = tpu.iota {dimensions = array<i32: 2>} : vector<16x16x16xi32>
    %87 = arith.cmpi eq, %85, %86 : vector<16x16x16xi32>
    %cst_43 = arith.constant 0xFF800000 : f32
    %88 = vector.broadcast %cst_43 : f32 to vector<16x16x16xf32>
    %89 = arith.select %87, %88, %84 : vector<16x16x16xi1>, vector<16x16x16xf32>
    "tpu.trace_start"() <{level = 10 : i32, message = "hwc,hvc->hwv"}> : () -> ()
    %cst_44 = arith.constant dense<0.000000e+00> : vector<16x16x16xf32>
    %90 = tpu.matmul %72, %76, %cst_44 {dimension_numbers = #tpu.dot_dimension_numbers<[2], [2], [1], [1], [0, 0, 0, 1, 1, 1], [0], [0]>} : vector<16x16x2xf32>, vector<16x16x2xf32>, vector<16x16x16xf32> -> vector<16x16x16xf32>
    "tpu.trace_stop"() : () -> ()
    %cst_45 = arith.constant dense<0xFF800000> : vector<16x16xf32>
    %91 = vector.multi_reduction <maximumf>, %89, %cst_45 [2] : vector<16x16x16xf32> to vector<16x16xf32>
    %92 = vector.shape_cast %91 : vector<16x16xf32> to vector<16x16x1xf32>
    %cst_46 = arith.constant dense<0xFF800000> : vector<16x16xf32>
    %93 = vector.multi_reduction <maximumf>, %90, %cst_46 [2] : vector<16x16x16xf32> to vector<16x16xf32>
    %94 = vector.shape_cast %93 : vector<16x16xf32> to vector<16x16x1xf32>
    %95 = tpu.transpose %92, [1, 0, 2] : vector<16x16x1xf32> -> vector<16x16x1xf32>
    %96 = arith.maximumf %95, %94 : vector<16x16x1xf32>
    %97 = tpu.transpose %96, [1, 0, 2] : vector<16x16x1xf32> -> vector<16x16x1xf32>
    %98 = vector.broadcast %97 : vector<16x16x1xf32> to vector<16x16x16xf32>
    %99 = arith.subf %89, %98 : vector<16x16x16xf32>
    %100 = math.exp %99 : vector<16x16x16xf32>
    %101 = vector.broadcast %96 : vector<16x16x1xf32> to vector<16x16x16xf32>
    %102 = arith.subf %90, %101 : vector<16x16x16xf32>
    %103 = math.exp %102 : vector<16x16x16xf32>
    %cst_47 = arith.constant dense<0.000000e+00> : vector<16x16xf32>
    %104 = vector.multi_reduction <add>, %100, %cst_47 [2] : vector<16x16x16xf32> to vector<16x16xf32>
    %105 = vector.shape_cast %104 : vector<16x16xf32> to vector<16x16x1xf32>
    %106 = tpu.transpose %105, [1, 0, 2] : vector<16x16x1xf32> -> vector<16x16x1xf32>
    %cst_48 = arith.constant dense<0.000000e+00> : vector<16x16xf32>
    %107 = vector.multi_reduction <add>, %103, %cst_48 [2] : vector<16x16x16xf32> to vector<16x16xf32>
    %108 = vector.shape_cast %107 : vector<16x16xf32> to vector<16x16x1xf32>
    %109 = arith.addf %106, %108 : vector<16x16x1xf32>
    %110 = tpu.reciprocal %109 {approx = true} : vector<16x16x1xf32> -> vector<16x16x1xf32>
    "tpu.trace_start"() <{level = 10 : i32, message = "whg,wgc->whc"}> : () -> ()
    %cst_49 = arith.constant dense<0.000000e+00> : vector<16x16x16xf32>
    %111 = tpu.matmul %100, %83, %cst_49 {dimension_numbers = #tpu.dot_dimension_numbers<[2], [1], [1], [2], [0, 0, 0, 1, 1, 2], [0], [0]>} : vector<16x16x16xf32>, vector<16x16x16xf32>, vector<16x16x16xf32> -> vector<16x16x16xf32>
    "tpu.trace_stop"() : () -> ()
    %112 = tpu.transpose %111, [1, 0, 2] : vector<16x16x16xf32> -> vector<16x16x16xf32>
    "tpu.trace_start"() <{level = 10 : i32, message = "hwv,hvc->hwc"}> : () -> ()
    %cst_50 = arith.constant dense<0.000000e+00> : vector<16x16x16xf32>
    %113 = tpu.matmul %103, %80, %cst_50 {dimension_numbers = #tpu.dot_dimension_numbers<[2], [1], [1], [2], [0, 0, 0, 1, 1, 2], [0], [0]>} : vector<16x16x16xf32>, vector<16x16x16xf32>, vector<16x16x16xf32> -> vector<16x16x16xf32>
    "tpu.trace_stop"() : () -> ()
    %114 = arith.addf %112, %113 : vector<16x16x16xf32>
    %115 = vector.broadcast %110 : vector<16x16x1xf32> to vector<16x16x16xf32>
    %116 = arith.mulf %114, %115 : vector<16x16x16xf32>
    %117 = vector.broadcast %67 : f32 to vector<16x16x16xf32>
    %118 = arith.mulf %117, %116 : vector<16x16x16xf32>
    %119 = arith.addf %118, %60 : vector<16x16x16xf32>
    %120 = arith.addf %119, %1 : vector<16x16x16xf32>
    %c0_51 = arith.constant 0 : index
    %c0_52 = arith.constant 0 : index
    %c0_53 = arith.constant 0 : index
    %c0_54 = arith.constant 0 : index
    %121 = vector.load %arg15[%c0_51, %c0_52, %c0_53, %c0_54] : memref<1x16x16x16xf32, #tpu.memory_space<vmem>>, vector<1x16x16x16xf32>
    %122 = vector.shape_cast %121 : vector<1x16x16x16xf32> to vector<16x16x16xf32>
    %123 = vector.shape_cast %120 : vector<16x16x16xf32> to vector<1x16x16x16xf32>
    tpu.vector_store %arg15[%c0_51, %c0_52, %c0_53, %c0_54], %123 {strides = array<i32>} : memref<1x16x16x16xf32, #tpu.memory_space<vmem>>, vector<1x16x16x16xf32>,
    return
  }
  func.func @transform_0(%arg0: i32) -> (i32, i32, i32, i32) {
    %c0_i32 = arith.constant 0 : i32
    %c0_i32_0 = arith.constant 0 : i32
    %c0_i32_1 = arith.constant 0 : i32
    %c0_i32_2 = arith.constant 0 : i32
    return %arg0, %c0_i32, %c0_i32_0, %c0_i32_1 : i32, i32, i32, i32
  }
  func.func @transform_1(%arg0: i32) -> (i32, i32) {
    %c0_i32 = arith.constant 0 : i32
    %c0_i32_0 = arith.constant 0 : i32
    %c0_i32_1 = arith.constant 0 : i32
    return %c0_i32, %c0_i32_0 : i32, i32
  }
  func.func @transform_2(%arg0: i32) -> (i32, i32) {
    %c0_i32 = arith.constant 0 : i32
    %c0_i32_0 = arith.constant 0 : i32
    %c0_i32_1 = arith.constant 0 : i32
    return %c0_i32, %c0_i32_0 : i32, i32
  }
  func.func @transform_3(%arg0: i32) -> (i32, i32) {
    %c0_i32 = arith.constant 0 : i32
    %c0_i32_0 = arith.constant 0 : i32
    %c0_i32_1 = arith.constant 0 : i32
    return %c0_i32, %c0_i32_0 : i32, i32
  }
  func.func @transform_4(%arg0: i32) -> (i32, i32) {
    %c0_i32 = arith.constant 0 : i32
    %c0_i32_0 = arith.constant 0 : i32
    %c0_i32_1 = arith.constant 0 : i32
    return %c0_i32, %c0_i32_0 : i32, i32
  }
  func.func @transform_5(%arg0: i32) -> (i32, i32) {
    %c0_i32 = arith.constant 0 : i32
    %c0_i32_0 = arith.constant 0 : i32
    %c0_i32_1 = arith.constant 0 : i32
    return %c0_i32, %c0_i32_0 : i32, i32
  }
  func.func @transform_6(%arg0: i32) -> (i32, i32) {
    %c0_i32 = arith.constant 0 : i32
    %c0_i32_0 = arith.constant 0 : i32
    %c0_i32_1 = arith.constant 0 : i32
    return %c0_i32, %c0_i32_0 : i32, i32
  }
  func.func @transform_7(%arg0: i32) -> (i32, i32) {
    %c0_i32 = arith.constant 0 : i32
    %c0_i32_0 = arith.constant 0 : i32
    %c0_i32_1 = arith.constant 0 : i32
    return %c0_i32, %c0_i32_0 : i32, i32
  }
  func.func @transform_8(%arg0: i32) -> (i32, i32) {
    %c0_i32 = arith.constant 0 : i32
    %c0_i32_0 = arith.constant 0 : i32
    %c0_i32_1 = arith.constant 0 : i32
    return %c0_i32, %c0_i32_0 : i32, i32
  }
  func.func @transform_9(%arg0: i32) -> (i32, i32) {
    %c0_i32 = arith.constant 0 : i32
    %c0_i32_0 = arith.constant 0 : i32
    %c0_i32_1 = arith.constant 0 : i32
    return %c0_i32, %c0_i32_0 : i32, i32
  }
  func.func @transform_10(%arg0: i32) -> (i32, i32) {
    %c0_i32 = arith.constant 0 : i32
    %c0_i32_0 = arith.constant 0 : i32
    %c0_i32_1 = arith.constant 0 : i32
    return %c0_i32, %c0_i32_0 : i32, i32
  }
  func.func @transform_11(%arg0: i32) -> (i32, i32) {
    %c0_i32 = arith.constant 0 : i32
    %c0_i32_0 = arith.constant 0 : i32
    %c0_i32_1 = arith.constant 0 : i32
    return %c0_i32, %c0_i32_0 : i32, i32
  }
  func.func @transform_12(%arg0: i32) -> (i32, i32) {
    %c0_i32 = arith.constant 0 : i32
    %c0_i32_0 = arith.constant 0 : i32
    %c0_i32_1 = arith.constant 0 : i32
    return %c0_i32, %c0_i32_0 : i32, i32
  }
  func.func @transform_13(%arg0: i32) -> i32 {
    %c0_i32 = arith.constant 0 : i32
    %c0_i32_0 = arith.constant 0 : i32
    return %c0_i32 : i32
  }
  func.func @transform_14(%arg0: i32) -> (i32, i32, i32, i32) {
    %c0_i32 = arith.constant 0 : i32
    %c0_i32_0 = arith.constant 0 : i32
    %c0_i32_1 = arith.constant 0 : i32
    %c0_i32_2 = arith.constant 0 : i32
    return %arg0, %c0_i32, %c0_i32_0, %c0_i32_1 : i32, i32, i32, i32
  }
}

</mosaic_0001>

<bundles_post_ra>
// kernel: fused_attention.1
= control target key start
LH: loop header
LB: loop body
LE: loop exit
PB: predicated region body
PF: predicated region fallthrough
CT: control target
= control target key end

     0   :  { %19 = vsyncpa [#allocation3], 0  ;;  %s27010_s29 = smov 0   ;;  %s35840_s0 = inlined_call_operand.vmem [shape: f32[2,16,16,16], index: 0, kind: input, shape index: {}]   ;;  %s35841_s1 = inlined_call_operand.vmem [shape: f32[16,2], index: 1, kind: input, shape index: {}]   ;;  %s35842_s2 = inlined_call_operand.vmem [shape: f32[1,2], index: 2, kind: input, shape index: {}]   ;;  %s35843_s3 = inlined_call_operand.vmem [shape: f32[16,2], index: 3, kind: input, shape index: {}]   ;;  %s35844_s4 = inlined_call_operand.vmem [shape: f32[1,2], index: 4, kind: input, shape index: {}]   ;;  %s35845_s5 = inlined_call_operand.vmem [shape: f32[16,16], index: 5, kind: input, shape index: {}]   ;;  %s35846_s6 = inlined_call_operand.vmem [shape: f32[1,16], index: 6, kind: input, shape index: {}]   ;;  %s35847_s7 = inlined_call_operand.vmem [shape: f32[16,2], index: 7, kind: input, shape index: {}]   ;;  %s35848_s8 = inlined_call_operand.vmem [shape: f32[1,2], index: 8, kind: input, shape index: {}]   ;;  %s35849_s9 = inlined_call_operand.vmem [shape: f32[16,2], index: 9, kind: input, shape index: {}]   ;;  %s35850_s10 = inlined_call_operand.vmem [shape: f32[1,2], index: 10, kind: input, shape index: {}]   ;;  %s35851_s11 = inlined_call_operand.vmem [shape: f32[16,16], index: 11, kind: input, shape index: {}]   ;;  %s35852_s12 = inlined_call_operand.vmem [shape: f32[1,16], index: 12, kind: input, shape index: {}]   ;;  %s35853_s13 = inlined_call_operand.vmem [shape: f32[2], index: 13, kind: input, shape index: {}]   ;;  %s35854_s14 = inlined_call_operand.vmem [shape: f32[2,16,16,16], index: 14, kind: output, shape index: {}]  }
   0x1 LB: > { %s27016_s30 = sadd.s32 4294967295, %s26929_s29   ;;  %p23248_p0 = scmp.ge.s32.totalorder %s26929_s29, 1  ;;  %s26929_s29 = sphi %s27010_s29, %s25_s29  }
   0x2   : > { %p355_p1 = scmp.lt.s32.totalorder %s26929_s29, 3  ;;  %s404_s17 = sshll.u32 %s35853_s13, 4  ;;  %s405_s17 = int_to_ptr.vmem [resolvable:$true] %s404_s17 }
   0x3   : > { %p26440_p3 = scmp.eq.s32.totalorder %s27016_s30, 0  ;;  %s26904_s19 = scalar_lea.vmem %s405_s17, 16 }
   0x4   : > { %p27023_p2 = pnand %p23248_p0, %p355_p1  ;;  %p26905_p6 = scmp.ne.s32.totalorder %s405_s17, %s26904_s19 }
   0x5   : > { %p26912_p10 = scmp.lt.s32.totalorder %s405_s17, %s405_s17  ;;  %p26913_p11 = scmp.lt.s32.totalorder %s26904_s19, %s26904_s19 }
   0x6   : > { %p26436_p4 = pneg %p27023_p2 }
   0x7   : > { %p26914_p12 = por %p26913_p11, %p26912_p10 }
   0x8   : > { %p26437_p5 = pnand %p26440_p3, %p26436_p4 }
   0xa   : > { %p26906_p7 = pneg %p26437_p5 }
   0xc   : > { %p26907_p8 = pnand %p26906_p7, %p26905_p6 }
   0xe   : > { %p26908_p9 = pneg %p26907_p8 }
  0x10   : > { %p26915_p13 = pnand %p26914_p12, %p26908_p9 }
  0x12   : > { %26918 = shalt.err (!%p26915_p13)
}
  0x13   : > { %s26931_s20 = smov [#allocation2]   ;;  %425 = sbr.rel (%p27023_p2) target bundleno = 3006 (0xbbe), region = 76 }
  0x14   : > { %26439 = dma.vmem_to_smem (!%p26437_p5), %s405_s17, 16, %s26931_s20, [#allocation3]  }
  0x1a   : > { %26924 = dma.done.wait (%p26440_p3), [#allocation3], 16  }
  0x1b   : > { %26926 = vsyncadd (%p26440_p3), [#allocation3], 4294967280 }
  0x1c   : > { %431 = sfence }
  0x1d   : > { %v514_v0 = vld [vmem:[%s35841_s1] sm:$0xff]  ;;  %v515_v1 = vld [vmem:[%s35841_s1 + $0x8] sm:$0xff]  ;;  %p472_p0 = scmp.lt.s32.totalorder %s27016_s30, 1  ;;  %vm530_vm0 = vcmask 130048   ;;  %v26932_v55 = vmov 1983009808   ;;  %v35855_v59 = vlaneseq }
  0x1e   : > { %v517_v2 = vld [vmem:[%s35843_s3] sm:$0xff]  ;;  %v25768_v3 = vpack.c.bf16 %v515_v1, %v514_v0  ;;  %v518_v4 = vld [vmem:[%s35843_s3 + $0x8] sm:$0xff]  ;;  %v1317_v56 = vunpack.c.l.s4 %v26932_v55  ;;  %vm2946_vm1 = vcmask 15360   ;;  %s523_s15 = sld [smem:[#allocation2]]  ;;  %s23548_s24 = sld [smem:[#allocation2 + $0x1]] }
  0x1f   : > { %v520_v5 = vld [vmem:[%s35845_s5] sm:$0xff]  ;;  %v521_v6 = vld [vmem:[%s35845_s5 + $0x8] sm:$0xff]  ;;  %v25772_v7 = vpack.c.bf16 %v518_v4, %v517_v2  ;;  %s37711_s30 = smov (!%p472_p0, %s27016_s30), 1  ;;  %v27307_v4 = vshrl.u32 %v35855_v59, 7  ;;  %vm28039_vm2 = vmpackc.low %vm2946_vm1, %vm2946_vm1 }
  0x20   : > { %v25776_v8 = vpack.c.bf16 %v521_v6, %v520_v5  ;;  %25769 = vmatprep.subr.bf16.mxu0 %v25768_v3  ;;  %s23842_s19 = sshll.u32 %s37711_s30, 8  ;;  %v27284_v41 = vld [vmem:[%s35844_s4] ss:$0 sm:$0xff]  ;;  %v1318_v1 = vunpack.c.0.s8 %v1317_v56 }
  0x21   : > { %25773 = vmatprep.subr.bf16.mxu1 %v25772_v7  ;;  %25771 = vmatpush3.bf16.msra.mxu0 %v25768_v3  ;;  %s27066_s22 = scalar_lea.vmem %s35840_s0, %s23842_s19  ;;  %36446 = vst [vmem:[#allocation7_spill] sm:$0xff] %v27307_v4  ;;  %s35648_s27 = scalar_lea.vmem %s35854_s14, %s23842_s19 }
  0x22   : > { %25775 = vmatpush3.bf16.msra.mxu1 %v25772_v7  ;;  %25777 = vmatprep.subr.bf16.mxu0 %v25776_v8  ;;  %v27069_v9 = vld [vmem:[%s27066_s22] sm:$0xff]  ;;  %v27072_v10 = vld [vmem:[%s27066_s22 + $0x8] sm:$0xff]  ;;  %v27075_v11 = vld [vmem:[%s27066_s22 + $0x10] sm:$0xff] }
  0x23   : > { %24564 = vmatprep.mubr.msk.f32.mxu0 %vm530_vm0, %v27069_v9  ;;  %24616 = vmatprep.mubr.msk.f32.mxu1 %vm530_vm0, %v27069_v9  ;;  %v27090_v12 = vld [vmem:[%s27066_s22 + $0x18] sm:$0xff]  ;;  %v27093_v13 = vld [vmem:[%s27066_s22 + $0x20] sm:$0xff]  ;;  %v27104_v14 = vld [vmem:[%s27066_s22 + $0x28] sm:$0xff] }
  0x24   : > { %24565 = vmatmul.mubr.msk.f32.vlgmr.msra.gmra.mrb[0].mxu0 %vm530_vm0, %v27072_v10  ;;  %v27107_v15 = vld [vmem:[%s27066_s22 + $0x30] sm:$0xff]  ;;  %v27118_v16 = vld [vmem:[%s27066_s22 + $0x38] sm:$0xff]  ;;  %v27121_v17 = vld [vmem:[%s27066_s22 + $0x40] sm:$0xff] }
  0x25   : > { %24617 = vmatmul.mubr.msk.f32.vlgmr.msra.gmra.mrb[0].mxu1 %vm530_vm0, %v27072_v10  ;;  %24567 = vmatprep.mubr.msk.f32.mxu0 %vm530_vm0, %v27075_v11  ;;  %v27132_v18 = vld [vmem:[%s27066_s22 + $0x48] sm:$0xff]  ;;  %v27135_v19 = vld [vmem:[%s27066_s22 + $0x50] sm:$0xff]  ;;  %v27146_v20 = vld [vmem:[%s27066_s22 + $0x58] sm:$0xff] }
  0x26   : > { %24619 = vmatprep.mubr.msk.f32.mxu1 %vm530_vm0, %v27075_v11  ;;  %25779 = vmatpush3.bf16.msra.mxu0 %v25776_v8  ;;  %v27149_v21 = vld [vmem:[%s27066_s22 + $0x60] sm:$0xff]  ;;  %v27160_v22 = vld [vmem:[%s27066_s22 + $0x68] sm:$0xff]  ;;  %v27163_v23 = vld [vmem:[%s27066_s22 + $0x70] sm:$0xff] }
  0x27   : > { %v27174_v24 = vld [vmem:[%s27066_s22 + $0x78] sm:$0xff]  ;;  %v27177_v25 = vld [vmem:[%s27066_s22 + $0x80] sm:$0xff]  ;;  %v499_v26 = vld [vmem:[%s27066_s22 + $0x88] sm:$0xff] }
  0x28   : > { %24568 = vmatmul.mubr.msk.f32.gmra.mrb[2].mxu0 %vm530_vm0, %v27090_v12  ;;  %v500_v27 = vld [vmem:[%s27066_s22 + $0x90] sm:$0xff]  ;;  %v501_v28 = vld [vmem:[%s27066_s22 + $0x98] sm:$0xff]  ;;  %v502_v29 = vld [vmem:[%s27066_s22 + $0xa0] sm:$0xff] }
  0x29   : > { %24620 = vmatmul.mubr.msk.f32.gmra.mrb[2].mxu1 %vm530_vm0, %v27090_v12  ;;  %24570 = vmatprep.mubr.msk.f32.mxu0 %vm530_vm0, %v27093_v13  ;;  %v503_v30 = vld [vmem:[%s27066_s22 + $0xa8] sm:$0xff]  ;;  %v504_v31 = vld [vmem:[%s27066_s22 + $0xb0] sm:$0xff]  ;;  %v505_v32 = vld [vmem:[%s27066_s22 + $0xb8] sm:$0xff] }
  0x2a   : > { %24622 = vmatprep.mubr.msk.f32.mxu1 %vm530_vm0, %v27093_v13  ;;  %v506_v33 = vld [vmem:[%s27066_s22 + $0xc0] sm:$0xff]  ;;  %v507_v34 = vld [vmem:[%s27066_s22 + $0xc8] sm:$0xff]  ;;  %v508_v35 = vld [vmem:[%s27066_s22 + $0xd0] sm:$0xff] }
  0x2b   : > { %v509_v36 = vld [vmem:[%s27066_s22 + $0xd8] sm:$0xff]  ;;  %v510_v37 = vld [vmem:[%s27066_s22 + $0xe0] sm:$0xff]  ;;  %v511_v38 = vld [vmem:[%s27066_s22 + $0xe8] sm:$0xff] }
  0x2c   : > { %24571 = vmatmul.mubr.msk.f32.gmra.mrb[4].mxu0 %vm530_vm0, %v27104_v14  ;;  %v512_v39 = vld [vmem:[%s27066_s22 + $0xf0] sm:$0xff]  ;;  %v513_v40 = vld [vmem:[%s27066_s22 + $0xf8] sm:$0xff] }
  0x2d   : > { %24623 = vmatmul.mubr.msk.f32.gmra.mrb[4].mxu1 %vm530_vm0, %v27104_v14  ;;  %24573 = vmatprep.mubr.msk.f32.mxu0 %vm530_vm0, %v27107_v15 }
  0x2e   : > { %24625 = vmatprep.mubr.msk.f32.mxu1 %vm530_vm0, %v27107_v15 }
  0x30   : > { %24574 = vmatmul.mubr.msk.f32.gmra.mrb[6].mxu0 %vm530_vm0, %v27118_v16 }
  0x31   : > { %24626 = vmatmul.mubr.msk.f32.gmra.mrb[6].mxu1 %vm530_vm0, %v27118_v16  ;;  %24576 = vmatprep.mubr.msk.f32.mxu0 %vm530_vm0, %v27121_v17 }
  0x32   : > { %24628 = vmatprep.mubr.msk.f32.mxu1 %vm530_vm0, %v27121_v17 }
  0x34   : > { %24577 = vmatmul.mubr.msk.f32.gmra.mrb[8].mxu0 %vm530_vm0, %v27132_v18 }
  0x35   : > { %24629 = vmatmul.mubr.msk.f32.gmra.mrb[8].mxu1 %vm530_vm0, %v27132_v18  ;;  %24579 = vmatprep.mubr.msk.f32.mxu0 %vm530_vm0, %v27135_v19 }
  0x36   : > { %24631 = vmatprep.mubr.msk.f32.mxu1 %vm530_vm0, %v27135_v19 }
  0x38   : > { %24580 = vmatmul.mubr.msk.f32.gmra.mrb[10].mxu0 %vm530_vm0, %v27146_v20 }
  0x39   : > { %24632 = vmatmul.mubr.msk.f32.gmra.mrb[10].mxu1 %vm530_vm0, %v27146_v20  ;;  %24582 = vmatprep.mubr.msk.f32.mxu0 %vm530_vm0, %v27149_v21 }
  0x3a   : > { %24634 = vmatprep.mubr.msk.f32.mxu1 %vm530_vm0, %v27149_v21 }
  0x3c   : > { %24583 = vmatmul.mubr.msk.f32.gmra.mrb[12].mxu0 %vm530_vm0, %v27160_v22 }
  0x3d   : > { %24635 = vmatmul.mubr.msk.f32.gmra.mrb[12].mxu1 %vm530_vm0, %v27160_v22  ;;  %24585 = vmatprep.mubr.msk.f32.mxu0 %vm530_vm0, %v27163_v23 }
  0x3e   : > { %24637 = vmatprep.mubr.msk.f32.mxu1 %vm530_vm0, %v27163_v23 }
  0x40   : > { %24586 = vmatmul.mubr.msk.f32.gmra.mrb[14].mxu0 %vm530_vm0, %v27174_v24 }
  0x41   : > { %24638 = vmatmul.mubr.msk.f32.gmra.mrb[14].mxu1 %vm530_vm0, %v27174_v24  ;;  %24588 = vmatprep.mubr.msk.f32.mxu0 %vm530_vm0, %v27177_v25 }
  0x42   : > { %24640 = vmatprep.mubr.msk.f32.mxu1 %vm530_vm0, %v27177_v25 }
  0x44   : > { %24589 = vmatmul.mubr.msk.f32.gmra.mrb[16].mxu0 %vm530_vm0, %v499_v26 }
  0x45   : > { %24641 = vmatmul.mubr.msk.f32.gmra.mrb[16].mxu1 %vm530_vm0, %v499_v26  ;;  %24591 = vmatprep.mubr.msk.f32.mxu0 %vm530_vm0, %v500_v27 }
  0x46   : > { %24643 = vmatprep.mubr.msk.f32.mxu1 %vm530_vm0, %v500_v27 }
  0x48   : > { %24592 = vmatmul.mubr.msk.f32.gmra.mrb[18].mxu0 %vm530_vm0, %v501_v28 }
  0x49   : > { %24644 = vmatmul.mubr.msk.f32.gmra.mrb[18].mxu1 %vm530_vm0, %v501_v28  ;;  %24594 = vmatprep.mubr.msk.f32.mxu0 %vm530_vm0, %v502_v29 }
  0x4a   : > { %24646 = vmatprep.mubr.msk.f32.mxu1 %vm530_vm0, %v502_v29 }
  0x4c   : > { %24595 = vmatmul.mubr.msk.f32.gmra.mrb[20].mxu0 %vm530_vm0, %v503_v30 }
  0x4d   : > { %24647 = vmatmul.mubr.msk.f32.gmra.mrb[20].mxu1 %vm530_vm0, %v503_v30  ;;  %24597 = vmatprep.mubr.msk.f32.mxu0 %vm530_vm0, %v504_v31 }
  0x4e   : > { %24649 = vmatprep.mubr.msk.f32.mxu1 %vm530_vm0, %v504_v31 }
  0x50   : > { %24598 = vmatmul.mubr.msk.f32.gmra.mrb[22].mxu0 %vm530_vm0, %v505_v32 }
  0x51   : > { %24650 = vmatmul.mubr.msk.f32.gmra.mrb[22].mxu1 %vm530_vm0, %v505_v32  ;;  %24600 = vmatprep.mubr.msk.f32.mxu0 %vm530_vm0, %v506_v33 }
  0x52   : > { %24652 = vmatprep.mubr.msk.f32.mxu1 %vm530_vm0, %v506_v33 }
  0x54   : > { %24601 = vmatmul.mubr.msk.f32.gmra.mrb[24].mxu0 %vm530_vm0, %v507_v34 }
  0x55   : > { %24653 = vmatmul.mubr.msk.f32.gmra.mrb[24].mxu1 %vm530_vm0, %v507_v34  ;;  %24603 = vmatprep.mubr.msk.f32.mxu0 %vm530_vm0, %v508_v35 }
  0x56   : > { %24655 = vmatprep.mubr.msk.f32.mxu1 %vm530_vm0, %v508_v35 }
  0x58   : > { %24604 = vmatmul.mubr.msk.f32.gmra.mrb[26].mxu0 %vm530_vm0, %v509_v36 }
  0x59   : > { %24656 = vmatmul.mubr.msk.f32.gmra.mrb[26].mxu1 %vm530_vm0, %v509_v36  ;;  %24606 = vmatprep.mubr.msk.f32.mxu0 %vm530_vm0, %v510_v37 }
  0x5a   : > { %24658 = vmatprep.mubr.msk.f32.mxu1 %vm530_vm0, %v510_v37 }
  0x5c   : > { %24607 = vmatmul.mubr.msk.f32.gmra.mrb[28].mxu0 %vm530_vm0, %v511_v38 }
  0x5d   : > { %24659 = vmatmul.mubr.msk.f32.gmra.mrb[28].mxu1 %vm530_vm0, %v511_v38  ;;  %24609 = vmatprep.mubr.msk.f32.mxu0 %vm530_vm0, %v512_v39 }
  0x5e   : > { %24661 = vmatprep.mubr.msk.f32.mxu1 %vm530_vm0, %v512_v39 }
  0x60   : > { %24610 = vmatmul.mubr.msk.f32.gmra.mrb[30].mxu0 %vm530_vm0, %v513_v40 }
  0x61   : > { %24662 = vmatmul.mubr.msk.f32.gmra.mrb[30].mxu1 %vm530_vm0, %v513_v40  ;;  %24668 = vmatprep.mubr.msk.f32.mxu0 %vm530_vm0, %v27069_v9 }
  0x64   : > { %24669 = vmatmul.mubr.msk.f32.vlgmr.msra.gmra.mrb[32].mxu0 %vm530_vm0, %v27072_v10 }
  0x65   : > { %24671 = vmatprep.mubr.msk.f32.mxu0 %vm530_vm0, %v27075_v11 }
  0x68   : > { %24672 = vmatmul.mubr.msk.f32.gmra.mrb[34].mxu0 %vm530_vm0, %v27090_v12 }
  0x69   : > { %24674 = vmatprep.mubr.msk.f32.mxu0 %vm530_vm0, %v27093_v13 }
  0x6c   : > { %24675 = vmatmul.mubr.msk.f32.gmra.mrb[36].mxu0 %vm530_vm0, %v27104_v14  ;;  %v27314_v14 = vsub.s32 %v1318_v1, %v27307_v4 }
  0x6d   : > { %24677 = vmatprep.mubr.msk.f32.mxu0 %vm530_vm0, %v27107_v15 }
  0x6e   : > { %36448 = vst [vmem:[#allocation9_spill] sm:$0xff] %v27314_v14 }
  0x70   : > { %24678 = vmatmul.mubr.msk.f32.gmra.mrb[38].mxu0 %vm530_vm0, %v27118_v16 }
  0x71   : > { %24680 = vmatprep.mubr.msk.f32.mxu0 %vm530_vm0, %v27121_v17 }
  0x74   : > { %24681 = vmatmul.mubr.msk.f32.gmra.mrb[40].mxu0 %vm530_vm0, %v27132_v18 }
  0x75   : > { %24683 = vmatprep.mubr.msk.f32.mxu0 %vm530_vm0, %v27135_v19 }
  0x78   : > { %24684 = vmatmul.mubr.msk.f32.gmra.mrb[42].mxu0 %vm530_vm0, %v27146_v20 }
  0x79   : > { %24686 = vmatprep.mubr.msk.f32.mxu0 %vm530_vm0, %v27149_v21 }
  0x7c   : > { %24687 = vmatmul.mubr.msk.f32.gmra.mrb[44].mxu0 %vm530_vm0, %v27160_v22 }
  0x7d   : > { %24689 = vmatprep.mubr.msk.f32.mxu0 %vm530_vm0, %v27163_v23 }
  0x80   : > { %24690 = vmatmul.mubr.msk.f32.gmra.mrb[46].mxu0 %vm530_vm0, %v27174_v24 }
  0x81   : > { %24692 = vmatprep.mubr.msk.f32.mxu0 %vm530_vm0, %v27177_v25 }
  0x84   : > { %24693 = vmatmul.mubr.msk.f32.gmra.mrb[48].mxu0 %vm530_vm0, %v499_v26 }
  0x85   : > { %24695 = vmatprep.mubr.msk.f32.mxu0 %vm530_vm0, %v500_v27 }
  0x88   : > { %24696 = vmatmul.mubr.msk.f32.gmra.mrb[50].mxu0 %vm530_vm0, %v501_v28 }
  0x89   : > { %24698 = vmatprep.mubr.msk.f32.mxu0 %vm530_vm0, %v502_v29  ;;  %v27333_v29 = vld [vmem:[%s35842_s2] ss:$0 sm:$0xff] }
  0x8c   : > { %24699 = vmatmul.mubr.msk.f32.gmra.mrb[52].mxu0 %vm530_vm0, %v503_v30 }
  0x8d   : > { %24701 = vmatprep.mubr.msk.f32.mxu0 %vm530_vm0, %v504_v31 }
  0x90   : > { %24702 = vmatmul.mubr.msk.f32.gmra.mrb[54].mxu0 %vm530_vm0, %v505_v32 }
  0x91   : > { %24704 = vmatprep.mubr.msk.f32.mxu0 %vm530_vm0, %v506_v33 }
  0x94   : > { %24705 = vmatmul.mubr.msk.f32.gmra.mrb[56].mxu0 %vm530_vm0, %v507_v34 }
  0x95   : > { %24707 = vmatprep.mubr.msk.f32.mxu0 %vm530_vm0, %v508_v35 }
  0x98   : > { %24708 = vmatmul.mubr.msk.f32.gmra.mrb[58].mxu0 %vm530_vm0, %v509_v36 }
  0x99   : > { %24710 = vmatprep.mubr.msk.f32.mxu0 %vm530_vm0, %v510_v37 }
  0x9c   : > { %24711 = vmatmul.mubr.msk.f32.gmra.mrb[60].mxu0 %vm530_vm0, %v511_v38 }
  0x9d   : > { %24713 = vmatprep.mubr.msk.f32.mxu0 %vm530_vm0, %v512_v39 }
  0xa0   : > { %24714 = vmatmul.mubr.msk.f32.gmra.mrb[62].mxu0 %vm530_vm0, %v513_v40  ;;  %v26933_v40 = vmov 1934713408  }
  0xf7   : > { %v27286_v43 = vpop.f32.mrb[0].mxu0 }
  0xf8   : > { %v24618_v42 = vpop.f32.mrb[0].mxu1  ;;  %v27289_v46 = vpop.f32.mrb[1].mxu0 }
  0xf9   : > { %v930_v44 = vadd.f32 %v24618_v42, %v27284_v41  ;;  %v924_v45 = vpop.f32.mrb[1].mxu1  ;;  %v1381_v42 = vunpack.c.l.s4 %v26933_v40 }
  0xfa   : > { %v925_v47 = vadd.f32 %v27284_v41, %v924_v45 }
  0xfb   : > { %v27294_v50 = vpop.f32.mrb[2].mxu0 }
  0xfc   : > { %v27292_v48 = vpack.c.bf16 %v930_v44, %v925_v47  ;;  %v24621_v49 = vpop.f32.mrb[2].mxu1  ;;  %v27297_v53 = vpop.f32.mrb[3].mxu0  ;;  %v27385_v1 = vadd.f32 %v27294_v50, %v27333_v29 }
  0xfd   : > { %v940_v51 = vadd.f32 %v24621_v49, %v27284_v41  ;;  %v934_v52 = vpop.f32.mrb[3].mxu1 }
  0xfe   : > { %36444 = vst [vmem:[#allocation5_spill] sm:$0xff] %v27292_v48  ;;  %v935_v54 = vadd.f32 %v27284_v41, %v934_v52  ;;  %36453 = vst [vmem:[#allocation14_spill] sm:$0xff] %v27385_v1 }
  0xff   : > { %v24572_v60 = vpop.f32.mrb[4].mxu0 }
 0x100   : > { %v27300_v57 = vpack.c.bf16 %v940_v51, %v935_v54  ;;  %v24624_v58 = vpop.f32.mrb[4].mxu1  ;;  %v27303_v63 = vpop.f32.mrb[5].mxu0  ;;  %v27360_v45 = vadd.f32 %v24572_v60, %v27333_v29 }
 0x101   : > { %v950_v61 = vadd.f32 %v24624_v58, %v27284_v41  ;;  %v944_v62 = vpop.f32.mrb[5].mxu1  ;;  %v27402_v50 = vadd.f32 %v27333_v29, %v27303_v63 }
 0x102   : > { %36445 = vst [vmem:[#allocation6_spill] sm:$0xff] %v27300_v57  ;;  %v945_v0 = vadd.f32 %v27284_v41, %v944_v62  ;;  %36450 = vst [vmem:[#allocation11_spill] sm:$0xff] %v27360_v45 }
 0x103   : > { %v2130_v2 = vcombine.low %v930_v44, %v950_v61  ;;  %v2131_v3 = vcombine.high %v930_v44, %v950_v61  ;;  %v24575_v8 = vpop.f32.mrb[6].mxu0  ;;  %v27357_v44 = vadd.f32 %v27286_v43, %v27333_v29  ;;  %36457 = vst [vmem:[#allocation18_spill] sm:$0xff] %v27402_v50 }
 0x104   : > { %v1858_v5 = vcombine.low %v925_v47, %v945_v0  ;;  %v1859_v6 = vcombine.high %v925_v47, %v945_v0  ;;  %v27309_v7 = vpack.c.bf16 %v950_v61, %v945_v0  ;;  %v24627_v9 = vpop.f32.mrb[6].mxu1  ;;  %v723_v10 = vpop.f32.mrb[7].mxu0  ;;  %v27381_v0 = vadd.f32 %v27333_v29, %v27289_v46 }
 0x105   : > { %v954_v11 = vpop.f32.mrb[7].mxu1  ;;  %v960_v12 = vadd.f32 %v24627_v9, %v27284_v41  ;;  %v27325_v25 = vrot.slane %v2130_v2, %v27314_v14  ;;  %v27328_v26 = vrot.slane %v2131_v3, %v27314_v14  ;;  %36449 = vst [vmem:[#allocation10_spill] sm:$0xff] %v27357_v44  ;;  %v1382_v2 = vunpack.c.0.s8 %v1381_v42 }
 0x106   : > { %36447 = vst [vmem:[#allocation8_spill] sm:$0xff] %v27309_v7  ;;  %v955_v13 = vadd.f32 %v27284_v41, %v954_v11  ;;  %v27350_v38 = vrot.slane %v1858_v5, %v27314_v14  ;;  %v27353_v39 = vrot.slane %v1859_v6, %v27314_v14  ;;  %36452 = vst [vmem:[#allocation13_spill] sm:$0xff] %v27381_v0 }
 0x107   : > { %v24578_v16 = vpop.f32.mrb[8].mxu0  ;;  %v2146_v17 = vcombine.low %v940_v51, %v960_v12  ;;  %v2147_v18 = vcombine.high %v940_v51, %v960_v12  ;;  %v27389_v3 = vadd.f32 %v27333_v29, %v27297_v53  ;;  %v27392_v5 = vadd.f32 %v24575_v8, %v27333_v29 }
 0x108   : > { %v24630_v15 = vpop.f32.mrb[8].mxu1  ;;  %v27316_v20 = vpop.f32.mrb[9].mxu0  ;;  %v1874_v21 = vcombine.low %v935_v54, %v955_v13  ;;  %v1875_v22 = vcombine.high %v935_v54, %v955_v13  ;;  %v27370_v58 = vpack.c.bf16 %v960_v12, %v955_v13  ;;  %v1586_v12 = vcombine.low %v27357_v44, %v27360_v45 }
 0x109   : > { %v964_v19 = vpop.f32.mrb[9].mxu1  ;;  %v27319_v23 = vrot.slane %v2146_v17, %v27314_v14  ;;  %v27322_v24 = vrot.slane %v2147_v18, %v27314_v14  ;;  %v970_v60 = vadd.f32 %v24630_v15, %v27284_v41  ;;  %36454 = vst [vmem:[#allocation15_spill] sm:$0xff] %v27389_v3  ;;  %36455 = vst [vmem:[#allocation16_spill] sm:$0xff] %v27392_v5 }
 0x10a   : > { %v27336_v30 = vrot.slane %v1874_v21, %v27314_v14  ;;  %v27339_v31 = vrot.slane %v1875_v22, %v27314_v14  ;;  %36451 = vst [vmem:[#allocation12_spill] sm:$0xff] %v27370_v58  ;;  %v27374_v61 = vadd.f32 %v27284_v41, %v964_v19  ;;  %v27409_v17 = vadd.f32 %v27333_v29, %v723_v10 }
 0x10b   : > { %v24581_v28 = vpop.f32.mrb[10].mxu0  ;;  %v27415_v19 = vadd.f32 %v24578_v16, %v27333_v29  ;;  %v1602_v10 = vcombine.low %v27385_v1, %v27392_v5  ;;  %v1314_v59 = vcombine.low %v27381_v0, %v27402_v50  ;;  %v27463_v52 = vrot.slane %v1586_v12, %v27314_v14 }
 0x10c   : > { %v24633_v27 = vpop.f32.mrb[10].mxu1  ;;  %v743_v33 = vpop.f32.mrb[11].mxu0  ;;  %v27395_v6 = vpack.c.bf16 %v970_v60, %v27374_v61  ;;  %36458 = vst [vmem:[#allocation19_spill] sm:$0xff] %v27409_v17  ;;  %v27427_v40 = vadd.f32 %v24581_v28, %v27333_v29  ;;  %v1330_v28 = vcombine.low %v27389_v3, %v27409_v17  ;;  %v1603_v48 = vcombine.high %v27385_v1, %v27392_v5 }
 0x10d   : > { %v974_v32 = vpop.f32.mrb[11].mxu1  ;;  %v27377_v62 = vadd.f32 %v24633_v27, %v27284_v41  ;;  %36460 = vst [vmem:[#allocation21_spill] sm:$0xff] %v27415_v19 }
 0x10e   : > { %36456 = vst [vmem:[#allocation17_spill] sm:$0xff] %v27395_v6  ;;  %v975_v9 = vadd.f32 %v27284_v41, %v974_v32  ;;  %36462 = vst [vmem:[#allocation23_spill] sm:$0xff] %v27427_v40  ;;  %v27484_v34 = vrot.slane %v1330_v28, %v27314_v14  ;;  %v27587_v17 = vrot.slane %v1603_v48, %v27314_v14 }
 0x10f   : > { %v24584_v49 = vpop.f32.mrb[12].mxu0 }
 0x110   : > { %v24636_v47 = vpop.f32.mrb[12].mxu1  ;;  %v753_v43 = vpop.f32.mrb[13].mxu0  ;;  %v27412_v18 = vpack.c.bf16 %v27377_v62, %v975_v9  ;;  %v27418_v21 = vadd.f32 %v24584_v49, %v27333_v29  ;;  %36470 = vst [vmem:[#allocation31_spill] sm:$0xff] %v27484_v34  ;;  %36482 = vst [vmem:[#allocation43_spill] sm:$0xff] %v27587_v17 }
 0x111   : > { %v984_v56 = vpop.f32.mrb[13].mxu1  ;;  %v990_v53 = vadd.f32 %v24636_v47, %v27284_v41 }
 0x112   : > { %v27406_v13 = vadd.f32 %v27284_v41, %v984_v56  ;;  %36459 = vst [vmem:[#allocation20_spill] sm:$0xff] %v27412_v18  ;;  %36461 = vst [vmem:[#allocation22_spill] sm:$0xff] %v27418_v21  ;;  %v27438_v56 = vsub.s32 %v1382_v2, %v27307_v4  ;;  %v1618_v2 = vcombine.low %v27415_v19, %v27418_v21 }
 0x113   : > { %v24587_v11 = vpop.f32.mrb[14].mxu0  ;;  %v2162_v63 = vcombine.low %v970_v60, %v990_v53  ;;  %v2163_v22 = vcombine.high %v970_v60, %v990_v53 }
 0x114   : > { %v24639_v46 = vpop.f32.mrb[14].mxu1  ;;  %v763_v8 = vpop.f32.mrb[15].mxu0  ;;  %v1890_v27 = vcombine.low %v27374_v61, %v27406_v13  ;;  %v1891_v32 = vcombine.high %v27374_v61, %v27406_v13  ;;  %v27430_v16 = vpack.c.bf16 %v990_v53, %v27406_v13  ;;  %v27433_v42 = vadd.f32 %v24587_v11, %v27333_v29  ;;  %36465 = vst [vmem:[#allocation26_spill] sm:$0xff] %v27438_v56 }
 0x115   : > { %v994_v15 = vpop.f32.mrb[15].mxu1  ;;  %v27448_v53 = vadd.f32 %v27333_v29, %v27316_v20  ;;  %v27451_v11 = vadd.f32 %v27333_v29, %v743_v33  ;;  %v27456_v13 = vadd.f32 %v27333_v29, %v753_v43  ;;  %v1000_v55 = vadd.f32 %v24639_v46, %v27284_v41 }
 0x116   : > { %36463 = vst [vmem:[#allocation24_spill] sm:$0xff] %v27430_v16  ;;  %36464 = vst [vmem:[#allocation25_spill] sm:$0xff] %v27433_v42  ;;  %v27460_v54 = vadd.f32 %v27333_v29, %v763_v8  ;;  %v27466_v20 = vrot.slane %v1602_v10, %v27314_v14  ;;  %v1634_v33 = vcombine.low %v27427_v40, %v27433_v42 }
 0x117   : > { %v27435_v49 = vpop.f32.mrb[16].mxu0  ;;  %36466 = vst [vmem:[#allocation27_spill] sm:$0xff] %v27448_v53  ;;  %36467 = vst [vmem:[#allocation28_spill] sm:$0xff] %v27451_v11  ;;  %v995_v51 = vadd.f32 %v27284_v41, %v994_v15  ;;  %v2178_v43 = vcombine.low %v27377_v62, %v1000_v55  ;;  %v2179_v46 = vcombine.high %v27377_v62, %v1000_v55 }
 0x118   : > { %v24642_v47 = vpop.f32.mrb[16].mxu1  ;;  %v27440_v61 = vpop.f32.mrb[17].mxu0  ;;  %36468 = vst [vmem:[#allocation29_spill] sm:$0xff] %v27456_v13  ;;  %36469 = vst [vmem:[#allocation30_spill] sm:$0xff] %v27460_v54  ;;  %v1362_v15 = vcombine.low %v27451_v11, %v27460_v54  ;;  %v27489_v58 = vrot.slane %v2162_v63, %v27314_v14  ;;  %v27492_v62 = vrot.slane %v2163_v22, %v27314_v14 }
 0x119   : > { %v1004_v60 = vpop.f32.mrb[17].mxu1  ;;  %v27476_v8 = vadd.f32 %v24642_v47, %v27284_v41  ;;  %v1906_v4 = vcombine.low %v975_v9, %v995_v51  ;;  %v1907_v18 = vcombine.high %v975_v9, %v995_v51  ;;  %v27495_v47 = vrot.slane %v1618_v2, %v27314_v14 }
 0x11a   : > { %v27479_v12 = vadd.f32 %v27284_v41, %v1004_v60  ;;  %v1346_v60 = vcombine.low %v27448_v53, %v27456_v13  ;;  %v27500_v28 = vrot.slane %v1634_v33, %v27314_v14  ;;  %v27503_v57 = vrot.slane %v2178_v43, %v27314_v14 }
 0x11b   : > { %v27471_v36 = vpop.f32.mrb[18].mxu0  ;;  %v27506_v9 = vrot.slane %v2179_v46, %v27314_v14  ;;  %v27509_v63 = vrot.slane %v1362_v15, %v27314_v14  ;;  %v27514_v2 = vrot.slane %v1906_v4, %v27314_v14  ;;  %v27517_v6 = vrot.slane %v1907_v18, %v27314_v14 }
 0x11c   : > { %v24645_v37 = vpop.f32.mrb[18].mxu1  ;;  %v27481_v35 = vpop.f32.mrb[19].mxu0  ;;  %v27519_v33 = vpack.c.bf16 %v1000_v55, %v995_v51  ;;  %v27523_v43 = vpack.c.bf16 %v27476_v8, %v27479_v12  ;;  %v1587_v55 = vcombine.high %v27357_v44, %v27360_v45  ;;  %v27538_v18 = vrot.slane %v1314_v59, %v27314_v14 }
 0x11d   : > { %v1014_v10 = vpop.f32.mrb[19].mxu1  ;;  %36471 = vst [vmem:[#allocation32_spill] sm:$0xff] %v27509_v63  ;;  %36472 = vst [vmem:[#allocation33_spill] sm:$0xff] %v27514_v2  ;;  %v27544_v15 = vrot.slane %v1891_v32, %v27314_v14  ;;  %v1650_v4 = vcombine.low %v27463_v52, %v27466_v20  ;;  %v27551_v51 = vrot.slane %v1346_v60, %v27314_v14 }
 0x11e   : > { %36473 = vst [vmem:[#allocation34_spill] sm:$0xff] %v27517_v6  ;;  %36474 = vst [vmem:[#allocation35_spill] sm:$0xff] %v27519_v33  ;;  %v27541_v33 = vrot.slane %v1890_v27, %v27314_v14  ;;  %v1378_v0 = vcombine.low %v27538_v18, %v27484_v34  ;;  %v1020_v27 = vadd.f32 %v24645_v37, %v27284_v41 }
 0x11f   : > { %v27511_v16 = vpop.f32.mrb[20].mxu0  ;;  %36475 = vst [vmem:[#allocation36_spill] sm:$0xff] %v27523_v43  ;;  %36476 = vst [vmem:[#allocation37_spill] sm:$0xff] %v27538_v18  ;;  %v1682_v43 = vcombine.low %v27495_v47, %v27500_v28  ;;  %v1410_v50 = vcombine.low %v27551_v51, %v27509_v63  ;;  %v27573_v53 = vadd.f32 %v27284_v41, %v1014_v10 }
 0x120   : > { %v24648_v22 = vpop.f32.mrb[20].mxu1  ;;  %v27525_v7 = vpop.f32.mrb[21].mxu0  ;;  %36477 = vst [vmem:[#allocation38_spill] sm:$0xff] %v27544_v15  ;;  %36478 = vst [vmem:[#allocation39_spill] sm:$0xff] %v27551_v51  ;;  %v27576_v32 = vrot.slane %v1587_v55, %v27314_v14  ;;  %v27593_v10 = vrot.slane %v1650_v4, %v27438_v56  ;;  %v27605_v48 = vrot.slane %v1378_v0, %v27438_v56 }
 0x121   : > { %v1024_v46 = vpop.f32.mrb[21].mxu1  ;;  %v27579_v5 = vpack.c.bf16 %v1020_v27, %v27573_v53  ;;  %v1030_v1 = vadd.f32 %v24648_v22, %v27284_v41  ;;  %v27596_v55 = vrot.slane %v1682_v43, %v27438_v56  ;;  %v1619_v4 = vcombine.high %v27415_v19, %v27418_v21 }
 0x122   : > { %36479 = vst [vmem:[#allocation40_spill] sm:$0xff] %v27576_v32  ;;  %v27590_v37 = vadd.f32 %v27284_v41, %v1024_v46  ;;  %36483 = vst [vmem:[#allocation44_spill] sm:$0xff] %v27593_v10  ;;  %v27608_v46 = vrot.slane %v1410_v50, %v27438_v56  ;;  %v36489_v50 = vcombine.low %v27325_v25, %v27319_v23 }
 0x123   : > { %v27555_v59 = vpop.f32.mrb[22].mxu0  ;;  %36480 = vst [vmem:[#allocation41_spill] sm:$0xff] %v27579_v5  ;;  %36484 = vst [vmem:[#allocation45_spill] sm:$0xff] %v27596_v55  ;;  %v2266_v6 = vcombine.low %v27476_v8, %v1030_v1  ;;  %v27703_v18 = vadd.f32 %v27471_v36, %v27333_v29  ;;  %v27771_v54 = vadd.f32 %v27333_v29, %v27481_v35 }
 0x124   : > { %v24651_v45 = vpop.f32.mrb[22].mxu1  ;;  %v27565_v60 = vpop.f32.mrb[23].mxu0  ;;  %36486 = vst [vmem:[#allocation47_spill] sm:$0xff] %v27605_v48  ;;  %36487 = vst [vmem:[#allocation48_spill] sm:$0xff] %v27608_v46  ;;  %v27615_v15 = vpack.c.bf16 %v1030_v1, %v27590_v37  ;;  %v1442_v43 = vcombine.low %v27605_v48, %v27608_v46  ;;  %v27644_v21 = vrot.slane %v36489_v50, %v27438_v56 }
 0x125   : > { %v1034_v44 = vpop.f32.mrb[23].mxu1  ;;  %v36492_v50 = vcombine.high %v27328_v26, %v27322_v24  ;;  %36498 = vst [vmem:[#allocation53_spill] sm:$0xff] %v27703_v18  ;;  %36504 = vst [vmem:[#allocation57_spill] sm:$0xff] %v27771_v54  ;;  %v36505_v11 = vcombine.low %v27479_v12, %v27590_v37 }
 0x126   : > { %36488 = vst [vmem:[#allocation49_spill] sm:$0xff] %v27615_v15  ;;  %24720 = vmatprep.mubr.msk.f32.mxu1 %vm2946_vm1, %v1442_v43 }
 0x127   : > { %v27584_v3 = vpop.f32.mrb[24].mxu0  ;;  %v27665_v17 = vrot.slane %v36492_v50, %v27438_v56 }
 0x128   : > { %v27582_v13 = vpop.f32.mrb[24].mxu1  ;;  %36481 = vst [vmem:[#allocation42_spill] sm:$0xff] %v27584_v3  ;;  %v27600_v22 = vpop.f32.mrb[25].mxu0  ;;  %v2267_v3 = vcombine.high %v27476_v8, %v1030_v1  ;;  %v1635_v1 = vcombine.high %v27427_v40, %v27433_v42  ;;  %v36490_v40 = vcombine.high %v27325_v25, %v27319_v23  ;;  %v27671_v23 = vadd.f32 %v27435_v49, %v27333_v29 }
 0x129   : > { %v27598_v5 = vpop.f32.mrb[25].mxu1  ;;  %36485 = vst [vmem:[#allocation46_spill] sm:$0xff] %v27600_v22  ;;  %v1714_v22 = vcombine.low %v27593_v10, %v27596_v55  ;;  %v36491_v10 = vcombine.low %v27328_v26, %v27322_v24  ;;  %v27675_v25 = vadd.f32 %v27511_v16, %v27333_v29  ;;  %v36495_v24 = vcombine.low %v27350_v38, %v27336_v30 }
 0x12a   : > { %v27653_v19 = vrot.slane %v36490_v40, %v27438_v56  ;;  %36493 = vst [vmem:[#allocation50_spill] sm:$0xff] %v27671_v23  ;;  %v27694_v16 = vrot.slane %v1619_v4, %v27314_v14  ;;  %v27716_v4 = vrot.slane %v2266_v6, %v27314_v14 }
 0x12b   : > { %v27623_v2 = vpop.f32.mrb[26].mxu0  ;;  %24776 = vmatprep.mubr.msk.f32.mxu0 %vm2946_vm1, %v1714_v22  ;;  %v1040_v22 = vadd.f32 %v24651_v45, %v27284_v41  ;;  %v27659_v55 = vrot.slane %v36491_v10, %v27438_v56  ;;  %v1035_v45 = vadd.f32 %v27284_v41, %v1034_v44  ;;  %36494 = vst [vmem:[#allocation51_spill] sm:$0xff] %v27675_v25 }
 0x12c   : > { %v27621_v0 = vpop.f32.mrb[26].mxu1  ;;  %v27636_v8 = vpop.f32.mrb[27].mxu0  ;;  %v27685_v26 = vrot.slane %v36495_v24, %v27438_v56  ;;  %v36496_v44 = vcombine.high %v27350_v38, %v27336_v30  ;;  %v27707_v24 = vadd.f32 %v27555_v59, %v27333_v29  ;;  %v36500_v59 = vcombine.low %v27353_v39, %v27339_v31 }
 0x12d   : > { %v27634_v15 = vpop.f32.mrb[27].mxu1  ;;  %v2282_v40 = vcombine.low %v1020_v27, %v1040_v22  ;;  %v2283_v10 = vcombine.high %v1020_v27, %v1040_v22  ;;  %v27697_v27 = vrot.slane %v1635_v1, %v27314_v14  ;;  %v27719_v1 = vrot.slane %v2267_v3, %v27314_v14 }
 0x12e   : > { %v27691_v49 = vrot.slane %v36496_v44, %v27438_v56  ;;  %36499 = vst [vmem:[#allocation54_spill] sm:$0xff] %v27707_v24  ;;  %v2010_v44 = vcombine.low %v27573_v53, %v1035_v45  ;;  %v2011_v36 = vcombine.high %v27573_v53, %v1035_v45  ;;  %v27727_v32 = vrot.slane %v36500_v59, %v27438_v56 }
 0x12f   : > { %v27679_v34 = vpop.f32.mrb[28].mxu0  ;;  %36497 = vst [vmem:[#allocation52_spill] sm:$0xff] %v27697_v27  ;;  %v27710_v30 = vrot.slane %v2282_v40, %v27314_v14  ;;  %v27713_v38 = vrot.slane %v2283_v10, %v27314_v14  ;;  %v36501_v40 = vcombine.high %v27353_v39, %v27339_v31  ;;  %v1722_v6 = vcombine.low %v27671_v23, %v27675_v25 }
 0x130   : > { %v27677_v42 = vpop.f32.mrb[28].mxu1  ;;  %v27699_v50 = vpop.f32.mrb[29].mxu0  ;;  %v1723_v46 = vcombine.high %v27671_v23, %v27675_v25  ;;  %v1738_v59 = vcombine.low %v27703_v18, %v27707_v24  ;;  %v27777_v25 = vrot.slane %v36505_v11, %v27314_v14  ;;  %v36506_v31 = vcombine.high %v27479_v12, %v27590_v37 }
 0x131   : > { %v1064_v43 = vpop.f32.mrb[29].mxu1  ;;  %v27733_v10 = vrot.slane %v36501_v40, %v27438_v56  ;;  %v1739_v35 = vcombine.high %v27703_v18, %v27707_v24  ;;  %v1730_v39 = vrot.slane %v1722_v6, %v27314_v14  ;;  %v27793_v63 = vrot.slane %v2010_v44, %v27314_v14 }
 0x132   : > { %v27783_v23 = vrot.slane %v36506_v31, %v27314_v14  ;;  %v27796_v11 = vrot.slane %v2011_v36, %v27314_v14  ;;  %v27798_v51 = vpack.c.bf16 %v1040_v22, %v1035_v45  ;;  %v1737_v12 = vrot.slane %v1723_v46, %v27314_v14 }
 0x133   : > { %36502 = vst [vmem:[#allocation55_spill] sm:$0xff] %v27733_v10  ;;  %v27739_v48 = vpop.f32.mrb[30].mxu0  ;;  %v27767_v10 = vadd.f32 %v27333_v29, %v27440_v61  ;;  %v27787_v61 = vadd.f32 %v27333_v29, %v27525_v7  ;;  %v1746_v37 = vrot.slane %v1738_v59, %v27314_v14  ;;  %v27804_v7 = vadd.f32 %v27333_v29, %v27565_v60 }
 0x134   : > { %v24663_v53 = vpop.f32.mrb[30].mxu1  ;;  %v27749_v40 = vpop.f32.mrb[31].mxu0  ;;  %36508 = vst [vmem:[#allocation59_spill] sm:$0xff] %v27798_v51  ;;  %v1050_v31 = vadd.f32 %v27582_v13, %v27284_v41  ;;  %v1753_v45 = vrot.slane %v1739_v35, %v27314_v14  ;;  %v27819_v60 = vadd.f32 %v27284_v41, %v27598_v5  ;;  %v1060_v13 = vadd.f32 %v27621_v0, %v27284_v41 }
 0x135   : > { %v27751_v3 = vpop.f32.mrb[31].mxu1  ;;  %36503 = vst [vmem:[#allocation56_spill] sm:$0xff] %v27767_v10  ;;  %36507 = vst [vmem:[#allocation58_spill] sm:$0xff] %v27787_v61  ;;  %v27825_v6 = vadd.f32 %v27284_v41, %v27634_v15  ;;  %v36510_v59 = vcombine.low %v27489_v58, %v27503_v57  ;;  %v36511_v35 = vcombine.high %v27489_v58, %v27503_v57 }
 0x136   : > { %36509 = vst [vmem:[#allocation60_spill] sm:$0xff] %v27804_v7  ;;  %v36512_v5 = vcombine.low %v27492_v62, %v27506_v9  ;;  %v36513_v15 = vcombine.high %v27492_v62, %v27506_v9  ;;  %v1466_v57 = vcombine.low %v27771_v54, %v27804_v7  ;;  %v27856_v58 = vpack.c.bf16 %v1050_v31, %v27819_v60  ;;  %v36516_v9 = vld [vmem:[#allocation33_spill] sm:$0xff] }
 0x137   : > { %v27831_v22 = vrot.slane %v36510_v59, %v27438_v56  ;;  %v27837_v46 = vrot.slane %v36511_v35, %v27438_v56  ;;  %v1450_v59 = vcombine.low %v27767_v10, %v27787_v61  ;;  %v27859_v35 = vpack.c.bf16 %v1060_v13, %v27825_v6 }
 0x138   : > { %v27843_v0 = vrot.slane %v36512_v5, %v27438_v56  ;;  %v27849_v36 = vrot.slane %v36513_v15, %v27438_v56  ;;  %36514 = vst [vmem:[#allocation61_spill] sm:$0xff] %v27856_v58  ;;  %v1786_v5 = vcombine.low %v1730_v39, %v1746_v37  ;;  %v1787_v44 = vcombine.high %v1730_v39, %v1746_v37  ;;  %v36519_v37 = vld [vmem:[#allocation38_spill] sm:$0xff] }
 0x139   : > { %36515 = vst [vmem:[#allocation62_spill] sm:$0xff] %v27859_v35  ;;  %v1070_v24 = vadd.f32 %v27677_v42, %v27284_v41  ;;  %v1065_v62 = vadd.f32 %v27284_v41, %v1064_v43  ;;  %v36517_v15 = vcombine.low %v27541_v33, %v36516_v9  ;;  %v1802_v51 = vcombine.low %v1737_v12, %v1753_v45 }
 0x13a   : > { %v1803_v10 = vcombine.high %v1737_v12, %v1753_v45  ;;  %v1080_v58 = vadd.f32 %v24663_v53, %v27284_v41  ;;  %v36518_v42 = vcombine.high %v27541_v33, %v36516_v9  ;;  %v27886_v53 = vrot.slane %v1466_v57, %v27314_v14 }
 0x13b   : > { %v27868_v18 = vrot.slane %v36517_v15, %v27438_v56  ;;  %v2298_v61 = vcombine.low %v1050_v31, %v1070_v24  ;;  %v2299_v54 = vcombine.high %v1050_v31, %v1070_v24  ;;  %v2026_v35 = vcombine.low %v27819_v60, %v1065_v62  ;;  %v36520_v15 = vld [vmem:[#allocation34_spill] sm:$0xff] }
 0x13c   : > { %v2027_v39 = vcombine.high %v27819_v60, %v1065_v62  ;;  %v27877_v43 = vrot.slane %v36518_v42, %v27438_v56  ;;  %v36521_v7 = vcombine.low %v36519_v37, %v36520_v15  ;;  %36522 = vst [vmem:[#allocation33_spill] sm:$0xff] %v27886_v53  ;;  %v27888_v12 = vpack.c.bf16 %v1070_v24, %v1065_v62  ;;  %v36527_v62 = vld [vmem:[#allocation42_spill] sm:$0xff] }
 0x13d   : > { %v36524_v31 = vcombine.high %v36519_v37, %v36520_v15  ;;  %v27897_v33 = vrot.slane %v1450_v59, %v27314_v14  ;;  %v27900_v60 = vrot.slane %v1786_v5, %v27438_v56  ;;  %v27906_v57 = vrot.slane %v1802_v51, %v27438_v56  ;;  %v36532_v37 = vld [vmem:[#allocation46_spill] sm:$0xff] }
 0x13e   : > { %v27883_v27 = vrot.slane %v36521_v7, %v27438_v56  ;;  %36523 = vst [vmem:[#allocation38_spill] sm:$0xff] %v27888_v12  ;;  %v27903_v7 = vrot.slane %v1787_v44, %v27438_v56  ;;  %v27909_v24 = vrot.slane %v1803_v10, %v27438_v56  ;;  %v27913_v9 = vadd.f32 %v36527_v62, %v27333_v29 }
 0x13f   : > { %v27894_v45 = vrot.slane %v36524_v31, %v27438_v56  ;;  %36525 = vst [vmem:[#allocation34_spill] sm:$0xff] %v27897_v33  ;;  %v27917_v59 = vadd.f32 %v27623_v2, %v27333_v29  ;;  %v27921_v5 = vadd.f32 %v27679_v34, %v27333_v29  ;;  %v27925_v44 = vadd.f32 %v27739_v48, %v27333_v29 }
 0x140   : > { %36526 = vst [vmem:[#allocation63_spill] sm:$0xff] %v27909_v24  ;;  %36528 = vst [vmem:[#allocation42_spill] sm:$0xff] %v27913_v9  ;;  %v2314_v51 = vcombine.low %v1060_v13, %v1080_v58  ;;  %v2315_v42 = vcombine.high %v1060_v13, %v1080_v58  ;;  %v1514_v10 = vcombine.low %v27897_v33, %v27886_v53 }
 0x141   : > { %36529 = vst [vmem:[#allocation64_spill] sm:$0xff] %v27917_v59  ;;  %36530 = vst [vmem:[#allocation65_spill] sm:$0xff] %v27921_v5  ;;  %v27931_v15 = vadd.f32 %v27333_v29, %v36532_v37  ;;  %v27935_v2 = vadd.f32 %v27333_v29, %v27636_v8  ;;  %v1075_v34 = vadd.f32 %v27284_v41, %v27751_v3 }
 0x142   : > { %36531 = vst [vmem:[#allocation66_spill] sm:$0xff] %v27925_v44  ;;  %v27941_v48 = vadd.f32 %v27333_v29, %v27699_v50  ;;  %v2322_v13 = vrot.slane %v2314_v51, %v27314_v14  ;;  %v2329_v31 = vrot.slane %v2315_v42, %v27314_v14  ;;  %v27947_v62 = vadd.f32 %v27333_v29, %v27749_v40 }
 0x143   : > { %36533 = vst [vmem:[#allocation46_spill] sm:$0xff] %v27931_v15  ;;  %36534 = vst [vmem:[#allocation67_spill] sm:$0xff] %v27935_v2  ;;  %v2306_v37 = vrot.slane %v2298_v61, %v27314_v14  ;;  %v2313_v8 = vrot.slane %v2299_v54, %v27314_v14  ;;  %v2042_v12 = vcombine.low %v27825_v6, %v1075_v34 }
 0x144   : > { %36535 = vst [vmem:[#allocation68_spill] sm:$0xff] %v27941_v48  ;;  %36536 = vst [vmem:[#allocation69_spill] sm:$0xff] %v27947_v62  ;;  %v2043_v41 = vcombine.high %v27825_v6, %v1075_v34  ;;  %v36537_v50 = vcombine.low %v27716_v4, %v27710_v30  ;;  %v36538_v51 = vcombine.high %v27716_v4, %v27710_v30 }
 0x145   : > { %v1754_v40 = vcombine.low %v27913_v9, %v27921_v5  ;;  %v1770_v54 = vcombine.low %v27917_v59, %v27925_v44  ;;  %v2362_v61 = vcombine.low %v2306_v37, %v2322_v13  ;;  %v2363_v6 = vcombine.high %v2306_v37, %v2322_v13 }
 0x146   : > { %v27957_v3 = vrot.slane %v36537_v50, %v27438_v56  ;;  %v27963_v29 = vrot.slane %v36538_v51, %v27438_v56  ;;  %v2378_v42 = vcombine.low %v2313_v8, %v2329_v31  ;;  %v2379_v24 = vcombine.high %v2313_v8, %v2329_v31 }
 0x147   : > { %v36539_v50 = vcombine.low %v27719_v1, %v27713_v38  ;;  %v36540_v30 = vcombine.high %v27719_v1, %v27713_v38  ;;  %v1755_v51 = vcombine.high %v27913_v9, %v27921_v5  ;;  %v1482_v13 = vcombine.low %v27931_v15, %v27941_v48 }
 0x148   : > { %v27986_v31 = vrot.slane %v1514_v10, %v27438_v56  ;;  %v36541_v37 = vcombine.low %v27777_v25, %v27793_v63  ;;  %v1498_v38 = vcombine.low %v27935_v2, %v27947_v62  ;;  %v27996_v1 = vrot.slane %v2027_v39, %v27314_v14 }
 0x149   : > { %v27973_v33 = vrot.slane %v36539_v50, %v27438_v56  ;;  %v27979_v4 = vrot.slane %v36540_v30, %v27438_v56  ;;  %v2034_v50 = vrot.slane %v2026_v35, %v27314_v14  ;;  %v27999_v30 = vrot.slane %v1754_v40, %v27314_v14 }
 0x14a   : > { %v2066_v8 = vrot.slane %v36541_v37, %v27438_v56  ;;  %v1771_v10 = vcombine.high %v27917_v59, %v27925_v44  ;;  %v28004_v5 = vrot.slane %v2362_v61, %v27438_v56  ;;  %v1778_v9 = vrot.slane %v1770_v54, %v27314_v14 }
 0x14b   : > { %v2050_v37 = vrot.slane %v2042_v12, %v27314_v14  ;;  %v2057_v35 = vrot.slane %v2043_v41, %v27314_v14  ;;  %v28009_v15 = vpack.c.bf16 %v1080_v58, %v1075_v34  ;;  %v28012_v39 = vrot.slane %v1755_v51, %v27314_v14 }
 0x14c   : > { %v28015_v40 = vrot.slane %v1482_v13, %v27314_v14  ;;  %v28018_v48 = vrot.slane %v2363_v6, %v27438_v56  ;;  %v2258_v61 = vcombine.low %v27644_v21, %v27831_v22  ;;  %v28023_v54 = vrot.slane %v1498_v38, %v27314_v14 }
 0x14d   : > { %36542 = vst [vmem:[#allocation70_spill] sm:$0xff] %v28009_v15  ;;  %v2090_v12 = vcombine.low %v2034_v50, %v2050_v37  ;;  %v2091_v44 = vcombine.high %v2034_v50, %v2050_v37  ;;  %v2106_v58 = vcombine.low %v27996_v1, %v2057_v35  ;;  %v28027_v34 = vrot.slane %v2378_v42, %v27438_v56 }
 0x14e   : > { %v2107_v41 = vcombine.high %v27996_v1, %v2057_v35  ;;  %v2394_v51 = vcombine.low %v27957_v3, %v28004_v5  ;;  %v1986_v6 = vcombine.low %v27685_v26, %v27868_v18  ;;  %v1785_v13 = vrot.slane %v1771_v10, %v27314_v14 }
 0x14f   : > { %v1818_v38 = vcombine.low %v27999_v30, %v1778_v9  ;;  %v2098_v59 = vrot.slane %v2090_v12, %v27438_v56  ;;  %v36543_v50 = vmov 0  ;;  %v2260_v42 = vcombine.low %v27653_v19, %v27837_v46 }
 0x150   : > { %v36544_v50 = vsel %vm28039_vm2, 4294967295, %v36543_v50  ;;  %v2105_v1 = vrot.slane %v2091_v44, %v27438_v56  ;;  %v25828_v37 = vpack.c.bf16 %v2394_v51, %v2258_v61  ;;  %v2396_v35 = vcombine.low %v27963_v29, %v28018_v48 }
 0x151   : > { %36545 = vst [vmem:[#allocation71_spill] sm:$0xff] %v36544_v50  ;;  %v1987_v10 = vcombine.high %v27685_v26, %v27868_v18  ;;  %v36546_v12 = vcombine.high %v27777_v25, %v27793_v63  ;;  %v1546_v2 = vcombine.low %v28015_v40, %v28023_v54  ;;  %v2122_v62 = vcombine.low %v2066_v8, %v2098_v59 }
 0x152   : > { %v2123_v14 = vcombine.high %v2066_v8, %v2098_v59  ;;  %v28057_v53 = vrot.slane %v2379_v24, %v27438_v56  ;;  %25830 = vmatprep.subr.msk.bf16.mxu0 %vm28039_vm2, %v25828_v37  ;;  %v25840_v44 = vpack.c.bf16 %v2396_v35, %v2260_v42  ;;  %v2262_v18 = vcombine.low %v27659_v55, %v27843_v0 }
 0x153   : > { %v2073_v15 = vrot.slane %v36546_v12, %v27438_v56  ;;  %v2398_v26 = vcombine.low %v27973_v33, %v28027_v34  ;;  %v1819_v63 = vcombine.high %v27999_v30, %v1778_v9  ;;  %v25780_v25 = vpack.c.bf16 %v2122_v62, %v1986_v6  ;;  %25833 = vmatpush3.bf16.xpose.msk.msra.mxu0 %vm28039_vm2, %v25828_v37 }
 0x154   : > { %v25786_v59 = vpack.c.bf16 %v2123_v14, %v1987_v10  ;;  %v1988_v24 = vcombine.low %v27691_v49, %v27877_v43  ;;  %v28071_v8 = vrot.slane %v1818_v38, %v27438_v56  ;;  %v1834_v61 = vcombine.low %v28012_v39, %v1785_v13  ;;  %25842 = vmatprep.subr.msk.bf16.mxu0 %vm28039_vm2, %v25840_v44 }
 0x155   : > { %v28076_v51 = vpack.c.bf16 %v2398_v26, %v2262_v18  ;;  %v2124_v42 = vcombine.low %v2073_v15, %v2105_v1  ;;  %v1835_v9 = vcombine.high %v28012_v39, %v1785_v13  ;;  %v28080_v62 = vrot.slane %v1546_v2, %v27438_v56  ;;  %25782 = vmatprep.subr.msk.bf16.mxu1 %vm28039_vm2, %v25780_v25 }
 0x156   : > { %v2114_v14 = vrot.slane %v2106_v58, %v27438_v56  ;;  %v36547_v30 = vcombine.high %v27495_v47, %v27500_v28  ;;  %25785 = vmatpush3.bf16.xpose.msk.msra.mxu1 %vm28039_vm2, %v25780_v25  ;;  %v2264_v2 = vcombine.low %v27665_v17, %v27849_v36  ;;  %v2400_v39 = vcombine.low %v27979_v4, %v28057_v53  ;;  %v36553_v25 = vld [vmem:[#allocation47_spill] sm:$0xff] }
 0x157   : > { %v28093_v38 = vpack.c.bf16 %v2124_v42, %v1988_v24  ;;  %v1989_v58 = vcombine.high %v27691_v49, %v27877_v43  ;;  %v36548_v47 = vcombine.low %v27783_v23, %v27796_v11  ;;  %v36549_v13 = vcombine.high %v27783_v23, %v27796_v11  ;;  %25788 = vmatprep.subr.msk.bf16.mxu1 %vm28039_vm2, %v25786_v59 }
 0x158   : > { %v28089_v6 = vrot.slane %v36547_v30, %v27438_v56  ;;  %v36550_v35 = vcombine.high %v27463_v52, %v27466_v20  ;;  %v2125_v49 = vcombine.high %v2073_v15, %v2105_v1  ;;  %v28118_v43 = vrot.slane %v1819_v63, %v27438_v56  ;;  %v36552_v63 = vld [vmem:[#allocation48_spill] sm:$0xff] }
 0x159   : > { %v2082_v28 = vrot.slane %v36548_v47, %v27438_v56  ;;  %v2089_v37 = vrot.slane %v36549_v13, %v27438_v56  ;;  %v1850_v12 = vcombine.low %v27900_v60, %v28071_v8  ;;  %v2121_v18 = vrot.slane %v2107_v41, %v27438_v56 }
 0x15a   : > { %v28115_v10 = vrot.slane %v36550_v35, %v27438_v56  ;;  %v28123_v23 = vpack.c.bf16 %v2400_v39, %v2264_v2  ;;  %v28127_v26 = vpack.c.bf16 %v2125_v49, %v1989_v58  ;;  %v1990_v52 = vcombine.low %v27727_v32, %v27883_v27  ;;  %v36556_v39 = vld [vmem:[#allocation39_spill] sm:$0xff] }
 0x15b   : > { %v2126_v20 = vcombine.low %v2082_v28, %v2114_v14  ;;  %v28132_v15 = vrot.slane %v1834_v61, %v27438_v56  ;;  %v28135_v1 = vrot.slane %v1835_v9, %v27438_v56  ;;  %v1578_v41 = vcombine.low %v27986_v31, %v28080_v62  ;;  %24777 = vmatmul.mubr.msk.f32.vlgmr.msra.gmra.mrb[64].mxu0 %vm2946_vm1, %v1850_v12  ;;  %v36554_v61 = vld [vmem:[#allocation52_spill] sm:$0xff]  ;;  %v36559_v35 = vld [vmem:[#allocation55_spill] sm:$0xff] }
 0x15c   : > { %v1716_v11 = vcombine.low %v28115_v10, %v28089_v6  ;;  %v1443_v24 = vcombine.high %v36553_v25, %v36552_v63  ;;  %25845 = vmatpush3.bf16.xpose.msk.msra.mxu0 %vm28039_vm2, %v25840_v44  ;;  %v36555_v42 = vcombine.low %v27694_v16, %v36554_v61  ;;  %v1991_v2 = vcombine.high %v27727_v32, %v27883_v27  ;;  %v36557_v44 = vld [vmem:[#allocation32_spill] sm:$0xff] }
 0x15d   : > { %36551 = vst [vmem:[#allocation72_spill] sm:$0xff] %v28135_v1  ;;  %v28151_v9 = vpack.c.bf16 %v2126_v20, %v1990_v52  ;;  %25854 = vmatprep.subr.msk.bf16.mxu0 %vm28039_vm2, %v28076_v51  ;;  %v36558_v58 = vcombine.high %v36556_v39, %v36557_v44  ;;  %v2127_v13 = vcombine.high %v2082_v28, %v2114_v14  ;;  %v36560_v52 = vld [vmem:[#allocation40_spill] sm:$0xff]  ;;  %v36561_v20 = vld [vmem:[#allocation43_spill] sm:$0xff] }
 0x15e   : > { %24790 = vmatprep.mubr.msk.f32.mxu0 %vm2946_vm1, %v1716_v11  ;;  %v28149_v30 = vrot.slane %v36555_v42, %v27438_v56  ;;  %v1992_v49 = vcombine.low %v36559_v35, %v27894_v45  ;;  %v2128_v12 = vcombine.low %v2089_v37, %v2121_v18  ;;  %v1547_v11 = vcombine.high %v28015_v40, %v28023_v54  ;;  %v36563_v40 = vld [vmem:[#allocation37_spill] sm:$0xff]  ;;  %v36564_v54 = vld [vmem:[#allocation31_spill] sm:$0xff] }
 0x15f   : > { %v28162_v47 = vrot.slane %v36558_v58, %v27438_v56  ;;  %24721 = vmatmul.mubr.msk.f32.vlgmr.msra.gmra.mrb[32].mxu1 %vm2946_vm1, %v1578_v41  ;;  %v1852_v32 = vcombine.low %v27903_v7, %v28118_v43  ;;  %v1579_v27 = vcombine.high %v27986_v31, %v28080_v62  ;;  %v36562_v63 = vcombine.low %v36560_v52, %v36561_v20 }
 0x160   : > { %25791 = vmatpush3.bf16.xpose.msk.msra.mxu1 %vm28039_vm2, %v25786_v59  ;;  %24727 = vmatprep.mubr.msk.f32.mxu1 %vm2946_vm1, %v1443_v24  ;;  %v36565_v28 = vcombine.high %v36563_v40, %v36564_v54  ;;  %v28188_v25 = vpack.c.bf16 %v2127_v13, %v1991_v2  ;;  %v28190_v31 = vpack.c.bf16 %v2128_v12, %v1992_v49 }
 0x161   : > { %v28177_v14 = vrot.slane %v36562_v63, %v27438_v56  ;;  %25794 = vmatprep.subr.msk.bf16.mxu1 %vm28039_vm2, %v28093_v38  ;;  %v1993_v59 = vcombine.high %v36559_v35, %v27894_v45  ;;  %v2129_v24 = vcombine.high %v2089_v37, %v2121_v18  ;;  %v2259_v42 = vcombine.high %v27644_v21, %v27831_v22  ;;  %v36568_v21 = vld [vmem:[#allocation45_spill] sm:$0xff]  ;;  %v36569_v22 = vld [vmem:[#allocation44_spill] sm:$0xff] }
 0x162   : > { %v28186_v41 = vrot.slane %v36565_v28, %v27438_v56  ;;  %v36566_v39 = vcombine.high %v36560_v52, %v36561_v20  ;;  %v36567_v58 = vcombine.high %v27694_v16, %v36554_v61  ;;  %v2395_v45 = vcombine.high %v27957_v3, %v28004_v5  ;;  %v36572_v20 = vld [vmem:[#allocation63_spill] sm:$0xff]  ;;  %v36577_v28 = vld [vmem:[#allocation18_spill] sm:$0xff]  ;;  %v36587_v63 = vld [vmem:[#allocation68_spill] sm:$0xff] }
 0x163   : > { %v1718_v62 = vcombine.low %v28177_v14, %v28149_v30  ;;  %v28217_v37 = vpack.c.bf16 %v2129_v24, %v1993_v59  ;;  %v2261_v35 = vcombine.high %v27653_v19, %v27837_v46  ;;  %v2397_v49 = vcombine.high %v27963_v29, %v28018_v48  ;;  %24791 = vmatmul.mubr.msk.f32.vlgmr.msra.gmra.mrb[66].mxu0 %vm2946_vm1, %v1852_v32  ;;  %v36588_v52 = vld [vmem:[#allocation46_spill] sm:$0xff]  ;;  %v36590_v48 = vld [vmem:[#allocation56_spill] sm:$0xff] }
 0x164   : > { %v1444_v2 = vcombine.low %v28186_v41, %v28162_v47  ;;  %v28207_v44 = vrot.slane %v36566_v39, %v27438_v56  ;;  %v28213_v13 = vrot.slane %v36567_v58, %v27438_v56  ;;  %v28226_v12 = vpack.c.bf16 %v2395_v45, %v2259_v42  ;;  %25857 = vmatpush3.bf16.xpose.msk.msra.mxu0 %vm28039_vm2, %v28076_v51  ;;  %v36579_v42 = vld [vmem:[#allocation9_spill] sm:$0xff]  ;;  %v36580_v39 = vld [vmem:[#allocation28_spill] sm:$0xff]  ;;  %v36581_v58 = vld [vmem:[#allocation30_spill] sm:$0xff] }
 0x165   : > { %v2263_v3 = vcombine.high %v27659_v55, %v27843_v0  ;;  %24804 = vmatprep.mubr.msk.f32.mxu0 %vm2946_vm1, %v1718_v62  ;;  %v28238_v19 = vpack.c.bf16 %v2397_v49, %v2261_v35  ;;  %v2399_v46 = vcombine.high %v27973_v33, %v28027_v34  ;;  %25866 = vmatprep.subr.msk.bf16.mxu0 %vm28039_vm2, %v28123_v23  ;;  %v36570_v33 = vld [vmem:[#allocation33_spill] sm:$0xff]  ;;  %v36571_v34 = vld [vmem:[#allocation34_spill] sm:$0xff]  ;;  %v36584_v49 = vld [vmem:[#allocation67_spill] sm:$0xff] }
 0x166   : > { %v2265_v0 = vcombine.high %v27665_v17, %v27849_v36  ;;  %v2401_v29 = vcombine.high %v27979_v4, %v28057_v53  ;;  %v1515_v61 = vcombine.high %v36571_v34, %v36570_v33  ;;  %v36573_v17 = vld [vmem:[#allocation19_spill] sm:$0xff]  ;;  %v36575_v53 = vld [vmem:[#allocation29_spill] sm:$0xff]  ;;  %v1561_v24 = vrot.slane %v1547_v11, %v27438_v56  ;;  %v36585_v33 = vld [vmem:[#allocation60_spill] sm:$0xff] }
 0x167   : > { %24728 = vmatmul.mubr.msk.f32.vlgmr.msra.gmra.mrb[34].mxu1 %vm2946_vm1, %v1579_v27  ;;  %v28258_v32 = vpack.c.bf16 %v2399_v46, %v2263_v3  ;;  %v36574_v36 = vld [vmem:[#allocation15_spill] sm:$0xff]  ;;  %v36578_v62 = vld [vmem:[#allocation13_spill] sm:$0xff]  ;;  %v36582_v45 = vcombine.high %v36580_v39, %v36581_v58  ;;  %v1854_v3 = vcombine.low %v27906_v57, %v28132_v15  ;;  %v1720_v11 = vcombine.low %v28207_v44, %v28213_v13 }
 0x168   : > { %v1331_v40 = vcombine.high %v36574_v36, %v36573_v17  ;;  %v36576_v4 = vld [vmem:[#allocation27_spill] sm:$0xff]  ;;  %25797 = vmatpush3.bf16.xpose.msk.msra.mxu1 %vm28039_vm2, %v28093_v38  ;;  %24734 = vmatprep.mubr.msk.f32.mxu1 %vm2946_vm1, %v1444_v2  ;;  %v28272_v27 = vpack.c.bf16 %v2401_v29, %v2265_v0  ;;  %v1315_v59 = vcombine.high %v36578_v62, %v36577_v28  ;;  %v36583_v38 = vld [vmem:[#allocation69_spill] sm:$0xff] }
 0x169   : > { %v1347_v54 = vcombine.high %v36576_v4, %v36575_v53  ;;  %25800 = vmatprep.subr.msk.bf16.mxu1 %vm28039_vm2, %v28127_v26  ;;  %v28284_v35 = vrot.slane %v36582_v45, %v36579_v42  ;;  %v1499_v2 = vcombine.high %v36584_v49, %v36583_v38  ;;  %v1529_v46 = vrot.slane %v1515_v61, %v27438_v56  ;;  %v36586_v34 = vld [vmem:[#allocation57_spill] sm:$0xff] }
 0x16a   : > { %v28294_v0 = vrot.slane %v1331_v40, %v36579_v42  ;;  %v1467_v45 = vcombine.high %v36586_v34, %v36585_v33  ;;  %v1483_v51 = vcombine.high %v36588_v52, %v36587_v63  ;;  %v28305_v55 = vrot.slane %v1315_v59, %v36579_v42 }
 0x16b   : > { %v28297_v29 = vrot.slane %v1347_v54, %v36579_v42  ;;  %24805 = vmatmul.mubr.msk.f32.vlgmr.msra.gmra.mrb[68].mxu0 %vm2946_vm1, %v1854_v3  ;;  %v1580_v61 = vcombine.low %v1529_v46, %v1561_v24  ;;  %v36589_v54 = vld [vmem:[#allocation58_spill] sm:$0xff]  ;;  %v28316_v16 = vrot.slane %v1499_v2, %v36579_v42  ;;  %v1445_v59 = vcombine.high %v28186_v41, %v28162_v47  ;;  %v36591_v3 = vld [vmem:[#allocation5_spill] sm:$0xff]  ;;  %v24670_v47 = vpop.f32.mrb[32].mxu0 }
 0x16c   : > { %25869 = vmatpush3.bf16.xpose.msk.msra.mxu0 %vm28039_vm2, %v28123_v23  ;;  %24818 = vmatprep.mubr.msk.f32.mxu0 %vm2946_vm1, %v1720_v11  ;;  %v1451_v5 = vcombine.high %v36590_v48, %v36589_v54  ;;  %v1394_v23 = vcombine.low %v28305_v55, %v28294_v0  ;;  %v28327_v11 = vrot.slane %v1467_v45, %v36579_v42  ;;  %v28339_v41 = vld [vmem:[%s35846_s6] ss:$0 sm:$0xff] }
 0x16d   : > { %v1426_v40 = vcombine.low %v28297_v29, %v28284_v35  ;;  %25878 = vmatprep.subr.msk.bf16.mxu0 %vm28039_vm2, %v36591_v3  ;;  %v28330_v18 = vrot.slane %v1483_v51, %v36579_v42  ;;  %v28345_v2 = vadd.f32 %v24670_v47, %v28339_v41  ;;  %v1155_v51 = vpop.f32.mrb[33].mxu0  ;;  %v1581_v58 = vcombine.high %v1529_v46, %v1561_v24 }
 0x16e   : > { %v28348_v45 = vrot.slane %v1451_v5, %v36579_v42  ;;  %v24673_v38 = vpop.f32.mrb[34].mxu0  ;;  %v28364_v5 = vrot.slane %v1394_v23, %v27438_v56 }
 0x16f   : > { %24735 = vmatmul.mubr.msk.f32.vlgmr.msra.gmra.mrb[36].mxu1 %vm2946_vm1, %v1580_v61  ;;  %36592 = vst [vmem:[#allocation48_spill] sm:$0xff] %v28345_v2  ;;  %v1856_v61 = vcombine.low %v36572_v20, %v28135_v1  ;;  %v28358_v49 = vadd.f32 %v24673_v38, %v28339_v41  ;;  %v1165_v33 = vpop.f32.mrb[35].mxu0 }
 0x170   : > { %25803 = vmatpush3.bf16.xpose.msk.msra.mxu1 %vm28039_vm2, %v28127_v26  ;;  %24741 = vmatprep.mubr.msk.f32.mxu1 %vm2946_vm1, %v1445_v59  ;;  %v1562_v26 = vcombine.low %v28330_v18, %v28316_v16  ;;  %v28355_v59 = vrot.slane %v1426_v40, %v27438_v56  ;;  %v1530_v47 = vcombine.low %v28348_v45, %v28327_v11  ;;  %v24676_v34 = vpop.f32.mrb[36].mxu0 }
 0x171   : > { %25806 = vmatprep.subr.msk.bf16.mxu1 %vm28039_vm2, %v28151_v9  ;;  %36593 = vst [vmem:[#allocation47_spill] sm:$0xff] %v28358_v49  ;;  %v28372_v38 = vadd.f32 %v24676_v34, %v28339_v41  ;;  %v1175_v40 = vpop.f32.mrb[37].mxu0 }
 0x172   : > { %v28375_v39 = vrot.slane %v1562_v26, %v27438_v56  ;;  %v1446_v23 = vcombine.low %v28364_v5, %v28355_v59  ;;  %v24679_v24 = vpop.f32.mrb[38].mxu0  ;;  %v1395_v26 = vcombine.high %v28305_v55, %v28294_v0  ;;  %v28393_v17 = vrot.slane %v1530_v47, %v27438_v56 }
 0x173   : > { %24819 = vmatmul.mubr.msk.f32.vlgmr.msra.gmra.mrb[70].mxu0 %vm2946_vm1, %v1856_v61  ;;  %36594 = vst [vmem:[#allocation52_spill] sm:$0xff] %v28372_v38  ;;  %v36595_v61 = vld [vmem:[#allocation8_spill] sm:$0xff]  ;;  %v2675_v46 = vcombine.high %v28345_v2, %v28372_v38  ;;  %v28388_v34 = vadd.f32 %v24679_v24, %v28339_v41  ;;  %v1427_v47 = vcombine.high %v28297_v29, %v28284_v35 }
 0x174   : > { %25881 = vmatpush3.bf16.xpose.msk.msra.mxu0 %vm28039_vm2, %v36591_v3  ;;  %24832 = vmatprep.mubr.msk.f32.mxu0 %vm2946_vm1, %v36578_v62  ;;  %v2674_v62 = vcombine.low %v28345_v2, %v28372_v38  ;;  %v1185_v3 = vpop.f32.mrb[39].mxu0  ;;  %v28419_v2 = vadd.f32 %v28339_v41, %v1155_v51  ;;  %v28422_v36 = vadd.f32 %v28339_v41, %v1175_v40 }
 0x175   : > { %25890 = vmatprep.subr.msk.bf16.mxu0 %vm28039_vm2, %v36595_v61  ;;  %36596 = vst [vmem:[#allocation39_spill] sm:$0xff] %v28388_v34  ;;  %v28406_v38 = vrot.slane %v2675_v46, %v36579_v42  ;;  %v2690_v55 = vcombine.low %v28358_v49, %v28388_v34  ;;  %v2691_v0 = vcombine.high %v28358_v49, %v28388_v34 }
 0x176   : > { %v28403_v24 = vrot.slane %v2674_v62, %v36579_v42  ;;  %v1582_v62 = vcombine.low %v28393_v17, %v28375_v39  ;;  %36598 = vst [vmem:[#allocation55_spill] sm:$0xff] %v28419_v2  ;;  %36599 = vst [vmem:[#allocation40_spill] sm:$0xff] %v28422_v36  ;;  %v28436_v51 = vadd.f32 %v28339_v41, %v1165_v33 }
 0x177   : > { %24742 = vmatmul.mubr.msk.f32.vlgmr.msra.gmra.mrb[38].mxu1 %vm2946_vm1, %v1581_v58  ;;  %v24682_v58 = vpop.f32.mrb[40].mxu0  ;;  %36597 = vst [vmem:[#allocation32_spill] sm:$0xff] %v28406_v38  ;;  %v28425_v1 = vrot.slane %v2690_v55, %v36579_v42  ;;  %v28428_v34 = vrot.slane %v2691_v0, %v36579_v42  ;;  %v28439_v49 = vadd.f32 %v28339_v41, %v1185_v3 }
 0x178   : > { %25809 = vmatpush3.bf16.xpose.msk.msra.mxu1 %vm28039_vm2, %v28151_v9  ;;  %24748 = vmatprep.mubr.msk.f32.mxu1 %vm2946_vm1, %v1446_v23  ;;  %v1195_v9 = vpop.f32.mrb[41].mxu0  ;;  %v28431_v35 = vadd.f32 %v24682_v58, %v28339_v41  ;;  %v36603_v23 = vld [vmem:[#allocation10_spill] sm:$0xff]  ;;  %36604 = vst [vmem:[#allocation45_spill] sm:$0xff] %v28436_v51  ;;  %v2402_v58 = vcombine.low %v28419_v2, %v28422_v36 }
 0x179   : > { %25812 = vmatprep.subr.msk.bf16.mxu1 %vm28039_vm2, %v28188_v25  ;;  %v24685_v46 = vpop.f32.mrb[42].mxu0  ;;  %36600 = vst [vmem:[#allocation43_spill] sm:$0xff] %v28425_v1  ;;  %36601 = vst [vmem:[#allocation37_spill] sm:$0xff] %v28428_v34  ;;  %v28442_v40 = vadd.f32 %v28339_v41, %v1195_v9 }
 0x17a   : > { %36602 = vst [vmem:[#allocation31_spill] sm:$0xff] %v28431_v35  ;;  %v1205_v29 = vpop.f32.mrb[43].mxu0  ;;  %36605 = vst [vmem:[#allocation44_spill] sm:$0xff] %v28439_v49  ;;  %v28445_v55 = vadd.f32 %v24685_v46, %v28339_v41  ;;  %v36608_v46 = vld [vmem:[#allocation17_spill] sm:$0xff] }
 0x17b   : > { %24833 = vmatmul.mubr.msk.f32.vlgmr.msra.gmra.mrb[72].mxu0 %vm2946_vm1, %v36603_v23  ;;  %36606 = vst [vmem:[#allocation33_spill] sm:$0xff] %v28442_v40  ;;  %v24688_v0 = vpop.f32.mrb[44].mxu0  ;;  %v1447_v23 = vcombine.high %v28364_v5, %v28355_v59  ;;  %v28469_v33 = vadd.f32 %v28339_v41, %v1205_v29  ;;  %v1563_v29 = vcombine.high %v28330_v18, %v28316_v16 }
 0x17c   : > { %36607 = vst [vmem:[#allocation34_spill] sm:$0xff] %v28445_v55  ;;  %25893 = vmatpush3.bf16.xpose.msk.msra.mxu0 %vm28039_vm2, %v36595_v61  ;;  %24846 = vmatprep.mubr.msk.f32.mxu0 %vm2946_vm1, %v36577_v28  ;;  %v1215_v9 = vpop.f32.mrb[45].mxu0  ;;  %v28464_v61 = vrot.slane %v1427_v47, %v27438_v56  ;;  %v28475_v59 = vadd.f32 %v24688_v0, %v28339_v41 }
 0x17d   : > { %25902 = vmatprep.subr.msk.bf16.mxu0 %vm28039_vm2, %v36608_v46  ;;  %36609 = vst [vmem:[#allocation63_spill] sm:$0xff] %v28469_v33  ;;  %v24691_v3 = vpop.f32.mrb[46].mxu0  ;;  %v28478_v5 = vadd.f32 %v28339_v41, %v1215_v9  ;;  %v28571_v2 = vrot.slane %v1563_v29, %v27438_v56 }
 0x17e   : > { %36610 = vst [vmem:[#allocation29_spill] sm:$0xff] %v28475_v59  ;;  %v28481_v47 = vadd.f32 %v24691_v3, %v28339_v41  ;;  %v1225_v1 = vpop.f32.mrb[47].mxu0  ;;  %v28498_v3 = vrot.slane %v1395_v26, %v27438_v56  ;;  %v2706_v18 = vcombine.low %v28431_v35, %v28475_v59 }
 0x17f   : > { %24749 = vmatmul.mubr.msk.f32.vlgmr.msra.gmra.mrb[40].mxu1 %vm2946_vm1, %v1582_v62  ;;  %36611 = vst [vmem:[#allocation27_spill] sm:$0xff] %v28478_v5  ;;  %v2418_v62 = vcombine.low %v28436_v51, %v28439_v49  ;;  %v28492_v0 = vadd.f32 %v28339_v41, %v1225_v1  ;;  %v24694_v9 = vpop.f32.mrb[48].mxu0  ;;  %v2434_v16 = vcombine.low %v28442_v40, %v28478_v5  ;;  %v36615_v5 = vld [vmem:[#allocation11_spill] sm:$0xff] }
 0x180   : > { %36612 = vst [vmem:[#allocation18_spill] sm:$0xff] %v28481_v47  ;;  %25815 = vmatpush3.bf16.xpose.msk.msra.mxu1 %vm28039_vm2, %v28188_v25  ;;  %24755 = vmatprep.mubr.msk.f32.mxu1 %vm2946_vm1, %v1447_v23  ;;  %v2707_v25 = vcombine.high %v28431_v35, %v28475_v59  ;;  %v1235_v23 = vpop.f32.mrb[49].mxu0  ;;  %v1583_v1 = vcombine.high %v28393_v17, %v28375_v39 }
 0x181   : > { %36613 = vst [vmem:[#allocation13_spill] sm:$0xff] %v28492_v0  ;;  %25818 = vmatprep.subr.msk.bf16.mxu1 %vm28039_vm2, %v28190_v31  ;;  %v2722_v28 = vcombine.low %v28445_v55, %v28481_v47  ;;  %v2723_v26 = vcombine.high %v28445_v55, %v28481_v47  ;;  %v2450_v51 = vcombine.low %v28469_v33, %v28492_v0  ;;  %v24697_v49 = vpop.f32.mrb[50].mxu0 }
 0x182   : > { %v1448_v59 = vcombine.low %v28498_v3, %v28464_v61  ;;  %v28517_v35 = vrot.slane %v2402_v58, %v36579_v42  ;;  %v28520_v40 = vrot.slane %v2706_v18, %v36579_v42  ;;  %v28523_v17 = vrot.slane %v2707_v25, %v36579_v42  ;;  %v1245_v39 = vpop.f32.mrb[51].mxu0 }
 0x183   : > { %24847 = vmatmul.mubr.msk.f32.vlgmr.msra.gmra.mrb[74].mxu0 %vm2946_vm1, %v36615_v5  ;;  %v28528_v47 = vrot.slane %v2418_v62, %v36579_v42  ;;  %v28531_v55 = vrot.slane %v2434_v16, %v36579_v42  ;;  %v28534_v33 = vrot.slane %v2722_v28, %v36579_v42  ;;  %v28537_v58 = vrot.slane %v2723_v26, %v36579_v42  ;;  %v24700_v18 = vpop.f32.mrb[52].mxu0  ;;  %v36619_v16 = vld [vmem:[#allocation24_spill] sm:$0xff] }
 0x184   : > { %36614 = vst [vmem:[#allocation68_spill] sm:$0xff] %v28523_v17  ;;  %25905 = vmatpush3.bf16.xpose.msk.msra.mxu0 %vm28039_vm2, %v36608_v46  ;;  %24860 = vmatprep.mubr.msk.f32.mxu0 %vm2946_vm1, %v36576_v4  ;;  %v28545_v5 = vrot.slane %v2450_v51, %v36579_v42  ;;  %v28548_v62 = vadd.f32 %v24694_v9, %v28339_v41  ;;  %v1255_v25 = vpop.f32.mrb[53].mxu0 }
 0x185   : > { %36616 = vst [vmem:[#allocation46_spill] sm:$0xff] %v28537_v58  ;;  %v28551_v28 = vadd.f32 %v24697_v49, %v28339_v41  ;;  %25914 = vmatprep.subr.msk.bf16.mxu0 %vm28039_vm2, %v36619_v16  ;;  %v24703_v26 = vpop.f32.mrb[54].mxu0  ;;  %v36620_v49 = vcombine.high %v28348_v45, %v28327_v11  ;;  %v28579_v9 = vadd.f32 %v28339_v41, %v1235_v23  ;;  %v36628_v58 = vld [vmem:[#allocation21_spill] sm:$0xff] }
 0x186   : > { %36617 = vst [vmem:[#allocation58_spill] sm:$0xff] %v28548_v62  ;;  %v1265_v46 = vpop.f32.mrb[55].mxu0  ;;  %v28582_v51 = vadd.f32 %v24700_v18, %v28339_v41  ;;  %v28585_v11 = vadd.f32 %v28339_v41, %v1255_v25  ;;  %v28591_v29 = vadd.f32 %v28339_v41, %v1245_v39  ;;  %v2466_v18 = vcombine.low %v28517_v35, %v28528_v47 }
 0x187   : > { %36618 = vst [vmem:[#allocation56_spill] sm:$0xff] %v28551_v28  ;;  %v28568_v0 = vrot.slane %v36620_v49, %v27438_v56  ;;  %24756 = vmatmul.mubr.msk.f32.vlgmr.msra.gmra.mrb[42].mxu1 %vm2946_vm1, %v1583_v1  ;;  %36621 = vst [vmem:[#allocation5_spill] sm:$0xff] %v28579_v9  ;;  %v24706_v45 = vpop.f32.mrb[56].mxu0  ;;  %v2498_v25 = vcombine.low %v28531_v55, %v28545_v5  ;;  %v1449_v17 = vcombine.high %v28498_v3, %v28464_v61 }
 0x188   : > { %25821 = vmatpush3.bf16.xpose.msk.msra.mxu1 %vm28039_vm2, %v28190_v31  ;;  %24762 = vmatprep.mubr.msk.f32.mxu1 %vm2946_vm1, %v1448_v59  ;;  %36622 = vst [vmem:[#allocation8_spill] sm:$0xff] %v28582_v51  ;;  %36623 = vst [vmem:[#allocation10_spill] sm:$0xff] %v28585_v11  ;;  %v28594_v31 = vadd.f32 %v24703_v26, %v28339_v41  ;;  %v28597_v59 = vadd.f32 %v28339_v41, %v1265_v46  ;;  %v1275_v1 = vpop.f32.mrb[57].mxu0 }
 0x189   : > { %25824 = vmatprep.subr.msk.bf16.mxu1 %vm28039_vm2, %v28217_v37  ;;  %36624 = vst [vmem:[#allocation17_spill] sm:$0xff] %v28591_v29  ;;  %v28600_v23 = vadd.f32 %v24706_v45, %v28339_v41  ;;  %v2810_v39 = vcombine.low %v28548_v62, %v28582_v51  ;;  %v2811_v26 = vcombine.high %v28548_v62, %v28582_v51  ;;  %v24709_v49 = vpop.f32.mrb[58].mxu0 }
 0x18a   : > { %36625 = vst [vmem:[#allocation11_spill] sm:$0xff] %v28594_v31  ;;  %36626 = vst [vmem:[#allocation24_spill] sm:$0xff] %v28597_v59  ;;  %v1584_v46 = vcombine.low %v28568_v0, %v28571_v2  ;;  %v2826_v45 = vcombine.low %v28551_v28, %v28594_v31  ;;  %v2827_v4 = vcombine.high %v28551_v28, %v28594_v31  ;;  %v1285_v36 = vpop.f32.mrb[59].mxu0 }
 0x18b   : > { %36627 = vst [vmem:[#allocation73_spill] sm:$0xff] %v28600_v23  ;;  %24861 = vmatmul.mubr.msk.f32.vlgmr.msra.gmra.mrb[76].mxu0 %vm2946_vm1, %v36628_v58  ;;  %v28621_v34 = vrot.slane %v2810_v39, %v36579_v42  ;;  %v28624_v51 = vrot.slane %v2811_v26, %v36579_v42  ;;  %v2538_v62 = vcombine.low %v28579_v9, %v28585_v11  ;;  %v24712_v38 = vpop.f32.mrb[60].mxu0  ;;  %v36629_v26 = vld [vmem:[#allocation36_spill] sm:$0xff] }
 0x18c   : > { %25917 = vmatpush3.bf16.xpose.msk.msra.mxu0 %vm28039_vm2, %v36619_v16  ;;  %24874 = vmatprep.mubr.msk.f32.mxu0 %vm2946_vm1, %v36575_v53  ;;  %v28634_v58 = vrot.slane %v2826_v45, %v36579_v42  ;;  %v28637_v61 = vrot.slane %v2827_v4, %v36579_v42  ;;  %v2554_v3 = vcombine.low %v28591_v29, %v28597_v59  ;;  %v1295_v39 = vpop.f32.mrb[61].mxu0 }
 0x18d   : > { %25926 = vmatprep.subr.msk.bf16.mxu0 %vm28039_vm2, %v36629_v26  ;;  %v28645_v31 = vadd.f32 %v28339_v41, %v1275_v1  ;;  %v28648_v16 = vadd.f32 %v24709_v49, %v28339_v41  ;;  %v24715_v53 = vpop.f32.mrb[62].mxu0  ;;  %v28651_v45 = vrot.slane %v2466_v18, %v27438_v56  ;;  %v28654_v4 = vrot.slane %v2498_v25, %v27438_v56 }
 0x18e   : > { %v2874_v28 = vcombine.low %v28621_v34, %v28634_v58  ;;  %v2875_v29 = vcombine.high %v28621_v34, %v28634_v58  ;;  %v1305_v59 = vpop.f32.mrb[63].mxu0  ;;  %v2546_v18 = vrot.slane %v2538_v62, %v36579_v42  ;;  %v28671_v25 = vadd.f32 %v28339_v41, %v1285_v36  ;;  %v36684_v34 = vld [vmem:[#allocation68_spill] sm:$0xff] }
 0x18f   : > { %36630 = vst [vmem:[#allocation21_spill] sm:$0xff] %v28645_v31  ;;  %36631 = vst [vmem:[#allocation36_spill] sm:$0xff] %v28648_v16  ;;  %24763 = vmatmul.mubr.msk.f32.vlgmr.msra.gmra.mrb[44].mxu1 %vm2946_vm1, %v1584_v46  ;;  %v2562_v46 = vrot.slane %v2554_v3, %v36579_v42  ;;  %v28678_v49 = vadd.f32 %v24712_v38, %v28339_v41  ;;  %v28681_v1 = vadd.f32 %v28339_v41, %v1295_v39  ;;  %v36637_v39 = vld [vmem:[#allocation22_spill] sm:$0xff] }
 0x190   : > { %25827 = vmatpush3.bf16.xpose.msk.msra.mxu1 %vm28039_vm2, %v28217_v37  ;;  %24769 = vmatprep.mubr.msk.f32.mxu1 %vm2946_vm1, %v1449_v17  ;;  %36632 = vst [vmem:[#allocation74_spill] sm:$0xff] %v28671_v25  ;;  %v28684_v37 = vadd.f32 %v24715_v53, %v28339_v41  ;;  %v2467_v17 = vcombine.high %v28517_v35, %v28528_v47  ;;  %v36638_v47 = vld [vmem:[#allocation49_spill] sm:$0xff] }
 0x191   : > { %25836 = vmatprep.subr.msk.bf16.mxu1 %vm28039_vm2, %v28226_v12  ;;  %36633 = vst [vmem:[#allocation75_spill] sm:$0xff] %v28678_v49  ;;  %36634 = vst [vmem:[#allocation76_spill] sm:$0xff] %v28681_v1  ;;  %v28689_v36 = vadd.f32 %v28339_v41, %v1305_v59  ;;  %v2531_v62 = vcombine.high %v28651_v45, %v28654_v4  ;;  %v2499_v3 = vcombine.high %v28531_v55, %v28545_v5 }
 0x192   : > { %36635 = vst [vmem:[#allocation77_spill] sm:$0xff] %v28684_v37  ;;  %v2570_v38 = vcombine.low %v28645_v31, %v28681_v1  ;;  %v1585_v35 = vcombine.high %v28568_v0, %v28571_v2  ;;  %v2602_v41 = vcombine.low %v2546_v18, %v2562_v46  ;;  %v2603_v5 = vcombine.high %v2546_v18, %v2562_v46 }
 0x193   : > { %36636 = vst [vmem:[#allocation78_spill] sm:$0xff] %v28689_v36  ;;  %24875 = vmatmul.mubr.msk.f32.vlgmr.msra.gmra.mrb[78].mxu0 %vm2946_vm1, %v36637_v39  ;;  %v2586_v53 = vcombine.low %v28671_v25, %v28689_v36  ;;  %v2481_v39 = vrot.slane %v2467_v17, %v27438_v56  ;;  %v2513_v2 = vrot.slane %v2499_v3, %v27438_v56 }
 0x194   : > { %25929 = vmatpush3.bf16.xpose.msk.msra.mxu0 %vm28039_vm2, %v36629_v26  ;;  %24888 = vmatprep.mubr.msk.f32.mxu0 %vm2946_vm1, %v36590_v48  ;;  %v2578_v55 = vrot.slane %v2570_v38, %v36579_v42  ;;  %v36639_v48 = vcombine.high %v36569_v22, %v36568_v21  ;;  %v2610_v18 = vrot.slane %v2602_v41, %v27438_v56  ;;  %v36640_v38 = vld [vmem:[#allocation50_spill] sm:$0xff]  ;;  %v36641_v22 = vld [vmem:[#allocation61_spill] sm:$0xff] }
 0x195   : > { %25938 = vmatprep.subr.msk.bf16.mxu0 %vm28039_vm2, %v36638_v47  ;;  %v2594_v59 = vrot.slane %v2586_v53, %v36579_v42  ;;  %v2617_v46 = vrot.slane %v2603_v5, %v27438_v56  ;;  %v2533_v17 = vcombine.high %v2481_v39, %v2513_v2  ;;  %v36662_v5 = vld [vmem:[#allocation16_spill] sm:$0xff] }
 0x197   : > { %24770 = vmatmul.mubr.msk.f32.vlgmr.msra.gmra.mrb[46].mxu1 %vm2946_vm1, %v1585_v35  ;;  %v2634_v0 = vcombine.low %v2578_v55, %v2594_v59  ;;  %v2635_v26 = vcombine.high %v2578_v55, %v2594_v59  ;;  %v36642_v35 = vcombine.high %v27900_v60, %v28071_v8  ;;  %v36645_v60 = vld [vmem:[#allocation51_spill] sm:$0xff]  ;;  %v36646_v8 = vld [vmem:[#allocation38_spill] sm:$0xff]  ;;  %v36663_v59 = vld [vmem:[#allocation28_spill] sm:$0xff] }
 0x198   : > { %25839 = vmatpush3.bf16.xpose.msk.msra.mxu1 %vm28039_vm2, %v28226_v12  ;;  %24783 = vmatprep.mubr.msk.f32.mxu1 %vm2946_vm1, %v36639_v48  ;;  %v36666_v48 = vld [vmem:[#allocation30_spill] sm:$0xff] }
 0x199   : > { %25848 = vmatprep.subr.msk.bf16.mxu1 %vm28039_vm2, %v28238_v19  ;;  %v2642_v3 = vrot.slane %v2634_v0, %v27438_v56  ;;  %v2649_v12 = vrot.slane %v2635_v26, %v27438_v56  ;;  %v36667_v0 = vld [vmem:[#allocation41_spill] sm:$0xff]  ;;  %v2842_v26 = vcombine.low %v28600_v23, %v28678_v49 }
 0x19b   : > { %24889 = vmatmul.mubr.msk.f32.vlgmr.msra.gmra.mrb[80].mxu0 %vm2946_vm1, %v36640_v38  ;;  %v2667_v21 = vcombine.high %v2610_v18, %v2642_v3  ;;  %v2669_v53 = vcombine.high %v2617_v46, %v2649_v12  ;;  %v36668_v38 = vld [vmem:[#allocation25_spill] sm:$0xff] }
 0x19c   : > { %25941 = vmatpush3.bf16.xpose.msk.msra.mxu0 %vm28039_vm2, %v36638_v47  ;;  %24902 = vmatprep.mubr.msk.f32.mxu0 %vm2946_vm1, %v36589_v54  ;;  %v36643_v54 = vcombine.high %v28115_v10, %v28089_v6  ;;  %v2530_v6 = vcombine.low %v28651_v45, %v28654_v4  ;;  %v2666_v10 = vcombine.low %v2610_v18, %v2642_v3  ;;  %v36649_v4 = vld [vmem:[#allocation42_spill] sm:$0xff]  ;;  %v36661_v47 = vld [vmem:[#allocation20_spill] sm:$0xff] }
 0x19d   : > { %25950 = vmatprep.subr.msk.bf16.mxu0 %vm28039_vm2, %v36641_v22  ;;  %v28744_v41 = vpack.c.bf16 %v2667_v21, %v2531_v62  ;;  %v28753_v55 = vpack.c.bf16 %v2669_v53, %v2533_v17  ;;  %v36654_v62 = vld [vmem:[#allocation65_spill] sm:$0xff]  ;;  %v2858_v18 = vcombine.low %v28648_v16, %v28684_v37  ;;  %v2850_v17 = vrot.slane %v2842_v26, %v36579_v42 }
 0x19e   : > { %v25972_v45 = vpack.c.bf16 %v2666_v10, %v2530_v6  ;;  %v2859_v3 = vcombine.high %v28648_v16, %v28684_v37  ;;  %v36669_v21 = vld [vmem:[#allocation57_spill] sm:$0xff] }
 0x19f   : > { %24784 = vmatmul.mubr.msk.f32.vlgmr.msra.gmra.mrb[48].mxu1 %vm2946_vm1, %v36642_v35  ;;  %36644 = vst [vmem:[#allocation22_spill] sm:$0xff] %v28753_v55 }
 0x1a0   : > { %25851 = vmatpush3.bf16.xpose.msk.msra.mxu1 %vm28039_vm2, %v28238_v19  ;;  %24797 = vmatprep.mubr.msk.f32.mxu1 %vm2946_vm1, %v36643_v54  ;;  %v36647_v19 = vcombine.high %v27903_v7, %v28118_v43  ;;  %v2532_v7 = vcombine.low %v2481_v39, %v2513_v2  ;;  %v2668_v43 = vcombine.low %v2617_v46, %v2649_v12  ;;  %v36664_v39 = vld [vmem:[#allocation35_spill] sm:$0xff] }
 0x1a1   : > { %25860 = vmatprep.subr.msk.bf16.mxu1 %vm28039_vm2, %v28258_v32  ;;  %v36665_v2 = vld [vmem:[#allocation23_spill] sm:$0xff]  ;;  %v2843_v46 = vcombine.high %v28600_v23, %v28678_v49  ;;  %v2866_v12 = vrot.slane %v2858_v18, %v36579_v42  ;;  %v2873_v35 = vrot.slane %v2859_v3, %v36579_v42  ;;  %v36687_v18 = vcombine.low %v28624_v51, %v28637_v61 }
 0x1a3   : > { %24903 = vmatmul.mubr.msk.f32.vlgmr.msra.gmra.mrb[82].mxu0 %vm2946_vm1, %v36645_v60  ;;  %v2857_v53 = vrot.slane %v2843_v46, %v36579_v42  ;;  %v2906_v54 = vcombine.low %v2850_v17, %v2866_v12  ;;  %v2907_v60 = vcombine.high %v2850_v17, %v2866_v12  ;;  %v2898_v46 = vrot.slane %v36687_v18, %v27438_v56 }
 0x1a4   : > { %25953 = vmatpush3.bf16.xpose.msk.msra.mxu0 %vm28039_vm2, %v36641_v22  ;;  %24916 = vmatprep.mubr.msk.f32.mxu0 %vm2946_vm1, %v36588_v52  ;;  %v36648_v52 = vcombine.high %v28177_v14, %v28149_v30  ;;  %v36650_v30 = vcombine.high %v27906_v57, %v28132_v15  ;;  %v36651_v14 = vcombine.high %v28207_v44, %v28213_v13  ;;  %v36655_v57 = vld [vmem:[#allocation72_spill] sm:$0xff]  ;;  %v36657_v44 = vld [vmem:[#allocation15_spill] sm:$0xff] }
 0x1a5   : > { %25962 = vmatprep.subr.msk.bf16.mxu0 %vm28039_vm2, %v36646_v8  ;;  %v36656_v15 = vcombine.high %v36572_v20, %v36655_v57  ;;  %v36658_v13 = vld [vmem:[#allocation12_spill] sm:$0xff]  ;;  %v36660_v20 = vld [vmem:[#allocation19_spill] sm:$0xff] }
 0x1a6   : > { %v36670_v22 = vld [vmem:[#allocation59_spill] sm:$0xff] }
 0x1a7   : > { %24798 = vmatmul.mubr.msk.f32.vlgmr.msra.gmra.mrb[50].mxu1 %vm2946_vm1, %v36647_v19  ;;  %v36673_v19 = vcombine.low %v28520_v40, %v28534_v33 }
 0x1a8   : > { %25863 = vmatpush3.bf16.xpose.msk.msra.mxu1 %vm28039_vm2, %v28258_v32  ;;  %24811 = vmatprep.mubr.msk.f32.mxu1 %vm2946_vm1, %v36648_v52  ;;  %v36652_v32 = vld [vmem:[#allocation6_spill] sm:$0xff] }
 0x1a9   : > { %25872 = vmatprep.subr.msk.bf16.mxu1 %vm28039_vm2, %v28272_v27  ;;  %v2778_v52 = vrot.slane %v36673_v19, %v27438_v56 }
 0x1ab   : > { %24917 = vmatmul.mubr.msk.f32.vlgmr.msra.gmra.mrb[84].mxu0 %vm2946_vm1, %v36649_v4  ;;  %v2923_v4 = vcombine.high %v2857_v53, %v2873_v35 }
 0x1ac   : > { %25965 = vmatpush3.bf16.xpose.msk.msra.mxu0 %vm28039_vm2, %v36646_v8  ;;  %24930 = vmatprep.mubr.msk.f32.mxu0 %vm2946_vm1, %v36587_v63  ;;  %v28805_v63 = vpack.c.bf16 %v2668_v43, %v2532_v7  ;;  %v36671_v8 = vld [vmem:[#allocation43_spill] sm:$0xff]  ;;  %v2882_v7 = vrot.slane %v2874_v28, %v27438_v56  ;;  %v2914_v43 = vrot.slane %v2906_v54, %v27438_v56  ;;  %v36677_v28 = vld [vmem:[#allocation60_spill] sm:$0xff] }
 0x1ad   : > { %25973 = vmatprep.subr.bf16.mxu0 %v25972_v45  ;;  %v36672_v6 = vcombine.low %v28403_v24, %v36671_v8 }
 0x1ae   : > { %36653 = vst [vmem:[#allocation49_spill] sm:$0xff] %v28805_v63 }
 0x1af   : > { %24812 = vmatmul.mubr.msk.f32.vlgmr.msra.gmra.mrb[52].mxu1 %vm2946_vm1, %v36650_v30  ;;  %v2746_v10 = vrot.slane %v36672_v6, %v27438_v56  ;;  %v36674_v30 = vld [vmem:[#allocation53_spill] sm:$0xff] }
 0x1b0   : > { %25875 = vmatpush3.bf16.xpose.msk.msra.mxu1 %vm28039_vm2, %v28272_v27  ;;  %24825 = vmatprep.mubr.msk.f32.mxu1 %vm2946_vm1, %v36651_v14  ;;  %v36659_v27 = vld [vmem:[#allocation14_spill] sm:$0xff] }
 0x1b1   : > { %25884 = vmatprep.subr.msk.bf16.mxu1 %vm28039_vm2, %v36652_v32  ;;  %v2802_v14 = vcombine.low %v2746_v10, %v2778_v52 }
 0x1b3   : > { %24931 = vmatmul.mubr.msk.f32.vlgmr.msra.gmra.mrb[86].mxu0 %vm2946_vm1, %v36654_v62  ;;  %v36675_v62 = vcombine.high %v28403_v24, %v36671_v8  ;;  %v2889_v24 = vrot.slane %v2875_v29, %v27438_v56  ;;  %v36685_v29 = vld [vmem:[#allocation46_spill] sm:$0xff] }
 0x1b4   : > { %25975 = vmatpush3.bf16.msra.mxu0 %v25972_v45  ;;  %v2922_v45 = vcombine.low %v2857_v53, %v2873_v35  ;;  %v36686_v58 = vcombine.low %v36684_v34, %v36685_v29  ;;  %v36689_v35 = vcombine.high %v36684_v34, %v36685_v29  ;;  %v36710_v34 = vmov 0 }
 0x1b5   : > { %25981 = vmatprep.subr.bf16.mxu0 %v28805_v63  ;;  %v2753_v57 = vrot.slane %v36675_v62, %v27438_v56 }
 0x1b6   : > { %v2794_v26 = vrot.slane %v36686_v58, %v27438_v56  ;;  %v2930_v12 = vrot.slane %v2922_v45, %v27438_v56  ;;  %v2801_v54 = vrot.slane %v36689_v35, %v27438_v56 }
 0x1b7   : > { %24826 = vmatmul.mubr.msk.f32.vlgmr.msra.gmra.mrb[54].mxu1 %vm2946_vm1, %v36656_v15  ;;  %v36676_v15 = vcombine.high %v28520_v40, %v28534_v33  ;;  %v2921_v33 = vrot.slane %v2907_v60, %v27438_v56  ;;  %v36690_v60 = vcombine.high %v28624_v51, %v28637_v61  ;;  %v36696_v51 = vld [vmem:[#allocation67_spill] sm:$0xff] }
 0x1b8   : > { %25887 = vmatpush3.bf16.xpose.msk.msra.mxu1 %vm28039_vm2, %v36652_v32  ;;  %24839 = vmatprep.mubr.msk.f32.mxu1 %vm2946_vm1, %v36657_v44  ;;  %v2803_v32 = vcombine.high %v2746_v10, %v2778_v52  ;;  %v2942_v19 = vcombine.low %v2898_v46, %v2930_v12  ;;  %v2943_v52 = vcombine.high %v2898_v46, %v2930_v12 }
 0x1b9   : > { %25896 = vmatprep.subr.msk.bf16.mxu1 %vm28039_vm2, %v36658_v13  ;;  %v2785_v44 = vrot.slane %v36676_v15, %v27438_v56  ;;  %v2940_v17 = vcombine.low %v2889_v24, %v2921_v33  ;;  %v2941_v3 = vcombine.high %v2889_v24, %v2921_v33  ;;  %v2905_v8 = vrot.slane %v36690_v60, %v27438_v56 }
 0x1ba   : > { %v36705_v33 = vmov 0 }
 0x1bb   : > { %v2804_v40 = vcombine.low %v2753_v57, %v2785_v44 }
 0x1bd   : > { %v28939_v6 = vpack.c.bf16 %v2940_v17, %v2804_v40 }
 0x1bf   : > { %24840 = vmatmul.mubr.msk.f32.vlgmr.msra.gmra.mrb[56].mxu1 %vm2946_vm1, %v36659_v27  ;;  %v2939_v27 = vcombine.high %v2882_v7, %v2914_v43  ;;  %36691 = vst [vmem:[#allocation51_spill] sm:$0xff] %v28939_v6 }
 0x1c0   : > { %25899 = vmatpush3.bf16.xpose.msk.msra.mxu1 %vm28039_vm2, %v36658_v13  ;;  %24853 = vmatprep.mubr.msk.f32.mxu1 %vm2946_vm1, %v36660_v20  ;;  %v2938_v13 = vcombine.low %v2882_v7, %v2914_v43  ;;  %v36678_v20 = vld [vmem:[#allocation62_spill] sm:$0xff]  ;;  %v2937_v7 = vrot.slane %v2923_v4, %v27438_v56 }
 0x1c1   : > { %25908 = vmatprep.subr.msk.bf16.mxu1 %vm28039_vm2, %v36661_v47 }
 0x1c2   : > { %v2944_v61 = vcombine.low %v2905_v8, %v2937_v7  ;;  %v2945_v62 = vcombine.high %v2905_v8, %v2937_v7 }
 0x1c7   : > { %24854 = vmatmul.mubr.msk.f32.vlgmr.msra.gmra.mrb[58].mxu1 %vm2946_vm1, %v36662_v5  ;;  %v36679_v5 = vld [vmem:[#allocation32_spill] sm:$0xff] }
 0x1c8   : > { %25911 = vmatpush3.bf16.xpose.msk.msra.mxu1 %vm28039_vm2, %v36661_v47  ;;  %24867 = vmatprep.mubr.msk.f32.mxu1 %vm2946_vm1, %v36663_v59  ;;  %v2805_v47 = vcombine.high %v2753_v57, %v2785_v44  ;;  %v36680_v59 = vld [vmem:[#allocation37_spill] sm:$0xff]  ;;  %v36697_v57 = vld [vmem:[#allocation70_spill] sm:$0xff]  ;;  %v36700_v44 = vld [vmem:[#allocation64_spill] sm:$0xff] }
 0x1c9   : > { %25920 = vmatprep.subr.msk.bf16.mxu1 %vm28039_vm2, %v36664_v39 }
 0x1ca   : > { %v28941_v10 = vpack.c.bf16 %v2941_v3, %v2805_v47 }
 0x1cc   : > { %36692 = vst [vmem:[#allocation38_spill] sm:$0xff] %v28941_v10 }
 0x1cf   : > { %24868 = vmatmul.mubr.msk.f32.vlgmr.msra.gmra.mrb[60].mxu1 %vm2946_vm1, %v36665_v2 }
 0x1d0   : > { %25923 = vmatpush3.bf16.xpose.msk.msra.mxu1 %vm28039_vm2, %v36664_v39  ;;  %24881 = vmatprep.mubr.msk.f32.mxu1 %vm2946_vm1, %v36666_v48  ;;  %v36681_v39 = vcombine.low %v36679_v5, %v36680_v59  ;;  %v28914_v48 = vpack.c.bf16 %v2938_v13, %v2802_v14  ;;  %v36702_v13 = vld [vmem:[#allocation66_spill] sm:$0xff] }
 0x1d1   : > { %25932 = vmatprep.subr.msk.bf16.mxu1 %vm28039_vm2, %v36667_v0 }
 0x1d2   : > { %v2762_v2 = vrot.slane %v36681_v39, %v27438_v56  ;;  %36682 = vst [vmem:[#allocation50_spill] sm:$0xff] %v28914_v48 }
 0x1d4   : > { %v2807_v53 = vcombine.high %v2762_v2, %v2794_v26 }
 0x1d7   : > { %24882 = vmatmul.mubr.msk.f32.vlgmr.msra.gmra.mrb[62].mxu1 %vm2946_vm1, %v36668_v38  ;;  %v36688_v38 = vcombine.high %v36679_v5, %v36680_v59 }
 0x1d8   : > { %25935 = vmatpush3.bf16.xpose.msk.msra.mxu1 %vm28039_vm2, %v36667_v0  ;;  %24895 = vmatprep.mubr.msk.f32.mxu1 %vm2946_vm1, %v36669_v21  ;;  %v28916_v0 = vpack.c.bf16 %v2939_v27, %v2803_v32  ;;  %v28948_v32 = vpack.c.bf16 %v2943_v52, %v2807_v53  ;;  %v36703_v27 = vld [vmem:[#allocation7_spill] sm:$0xff] }
 0x1d9   : > { %25944 = vmatprep.subr.msk.bf16.mxu1 %vm28039_vm2, %v36670_v22  ;;  %v2769_v21 = vrot.slane %v36688_v38, %v27438_v56  ;;  %v4341_v24 = vadd.s32 8, %v36703_v27 }
 0x1da   : > { %36683 = vst [vmem:[#allocation61_spill] sm:$0xff] %v28916_v0  ;;  %36695 = vst [vmem:[#allocation6_spill] sm:$0xff] %v28948_v32 }
 0x1db   : > { %v2808_v45 = vcombine.low %v2769_v21, %v2801_v54  ;;  %v2809_v43 = vcombine.high %v2769_v21, %v2801_v54 }
 0x1dd   : > { %v28958_v4 = vpack.c.bf16 %v2944_v61, %v2808_v45  ;;  %v28960_v15 = vpack.c.bf16 %v2945_v62, %v2809_v43 }
 0x1df   : > { %24896 = vmatmul.mubr.msk.f32.vlgmr.msra.gmra.mrb[64].mxu1 %vm2946_vm1, %v36674_v30  ;;  %v36693_v30 = vld [vmem:[#allocation54_spill] sm:$0xff]  ;;  %36698 = vst [vmem:[#allocation65_spill] sm:$0xff] %v28958_v4  ;;  %36699 = vst [vmem:[#allocation72_spill] sm:$0xff] %v28960_v15 }
 0x1e0   : > { %25947 = vmatpush3.bf16.xpose.msk.msra.mxu1 %vm28039_vm2, %v36670_v22  ;;  %24909 = vmatprep.mubr.msk.f32.mxu1 %vm2946_vm1, %v36677_v28  ;;  %v2806_v22 = vcombine.low %v2762_v2, %v2794_v26  ;;  %v36701_v28 = vld [vmem:[#allocation69_spill] sm:$0xff] }
 0x1e1   : > { %25956 = vmatprep.subr.msk.bf16.mxu1 %vm28039_vm2, %v36678_v20 }
 0x1e2   : > { %v28946_v14 = vpack.c.bf16 %v2942_v19, %v2806_v22 }
 0x1e4   : > { %36694 = vst [vmem:[#allocation42_spill] sm:$0xff] %v28946_v14 }
 0x1e7   : > { %24910 = vmatmul.mubr.msk.f32.vlgmr.msra.gmra.mrb[66].mxu1 %vm2946_vm1, %v36693_v30 }
 0x1e8   : > { %25959 = vmatpush3.bf16.xpose.msk.msra.mxu1 %vm28039_vm2, %v36678_v20  ;;  %24923 = vmatprep.mubr.msk.f32.mxu1 %vm2946_vm1, %v36696_v51  ;;  %v36704_v20 = vlaneseq }
 0x1e9   : > { %25968 = vmatprep.subr.msk.bf16.mxu1 %vm28039_vm2, %v36697_v57 }
 0x1ea   : > { %v4343_v40 = vand.u32 127, %v36704_v20 }
 0x1ec   : > { %vm28976_vm3 = vcmp.eq.s32.totalorder %v4341_v24, %v4343_v40  ;;  %vm28991_vm4 = vcmp.eq.s32.totalorder %v36703_v27, %v4343_v40 }
 0x1ed   : > { %v36706_v33 = vsel %vm28976_vm3, 4294967295, %v36705_v33  ;;  %v36711_v34 = vsel %vm28991_vm4, 4294967295, %v36710_v34 }
 0x1ee   : > { %36707 = vst [vmem:[#allocation15_spill] sm:$0xff] %v36706_v33  ;;  %36712 = vst [vmem:[#allocation19_spill] sm:$0xff] %v36711_v34 }
 0x1ef   : > { %24924 = vmatmul.mubr.msk.f32.vlgmr.msra.gmra.mrb[68].mxu1 %vm2946_vm1, %v36700_v44 }
 0x1f0   : > { %25971 = vmatpush3.bf16.xpose.msk.msra.mxu1 %vm28039_vm2, %v36697_v57  ;;  %24937 = vmatprep.mubr.msk.f32.mxu1 %vm2946_vm1, %v36701_v28 }
 0x1f1   : > { %25977 = vmatprep.subr.bf16.mxu1 %v28744_v41 }
 0x1f7   : > { %24938 = vmatmul.mubr.msk.f32.vlgmr.msra.gmra.mrb[70].mxu1 %vm2946_vm1, %v36702_v13 }
 0x1f8   : > { %25979 = vmatpush3.bf16.msra.mxu1 %v28744_v41 }
 0x1f9   : > { %25985 = vmatprep.subr.bf16.mxu1 %v28753_v55 }
 0x22e   : > { %v24778_v47 = vpop.f32.mrb[64].mxu0 }
 0x22f   : > { %v28982_v5 = vsel %vm28976_vm3, -inf, %v24778_v47  ;;  %v3721_v59 = vpop.f32.mrb[65].mxu0 }
 0x230   : > { %36708 = vst [vmem:[#allocation12_spill] sm:$0xff] %v28982_v5  ;;  %v5821_v39 = vsel %vm530_vm0, %v28982_v5, -inf  ;;  %v28999_v26 = vsel %vm28991_vm4, -inf, %v3721_v59 }
 0x231   : > { %5822 = vmax.xlane.f32.xlu0 %v5821_v39  ;;  %36713 = vst [vmem:[#allocation20_spill] sm:$0xff] %v28999_v26  ;;  %v5818_v17 = vsel %vm530_vm0, %v28999_v26, -inf }
 0x232   : > { %v24722_v41 = vpop.f32.mrb[32].mxu1 }
 0x233   : > { %v28988_v2 = vsel %vm28976_vm3, -inf, %v24722_v41  ;;  %v3025_v29 = vpop.f32.mrb[33].mxu1 }
 0x234   : > { %36709 = vst [vmem:[#allocation14_spill] sm:$0xff] %v28988_v2  ;;  %v5773_v58 = vsel %vm530_vm0, %v28988_v2, -inf  ;;  %v29005_v3 = vsel %vm28991_vm4, -inf, %v3025_v29 }
 0x235   : > { %5774 = vmax.xlane.f32.xlu0 %v5773_v58  ;;  %36714 = vst [vmem:[#allocation16_spill] sm:$0xff] %v29005_v3  ;;  %v5770_v53 = vsel %vm530_vm0, %v29005_v3, -inf }
 0x236   : > { %v24792_v18 = vpop.f32.mrb[66].mxu0 }
 0x237   : > { %v3895_v46 = vpop.f32.mrb[67].mxu0  ;;  %v29017_v35 = vsel %vm28976_vm3, -inf, %v24792_v18 }
 0x238   : > { %36716 = vst [vmem:[#allocation35_spill] sm:$0xff] %v29017_v35  ;;  %v5833_v8 = vsel %vm530_vm0, %v29017_v35, -inf  ;;  %v29023_v19 = vsel %vm28991_vm4, -inf, %v3895_v46 }
 0x239   : > { %5819 = vmax.xlane.f32.xlu0 %v5818_v17  ;;  %36717 = vst [vmem:[#allocation23_spill] sm:$0xff] %v29023_v19  ;;  %v5830_v30 = vsel %vm530_vm0, %v29023_v19, -inf }
 0x23a   : > { %v24729_v12 = vpop.f32.mrb[34].mxu1 }
 0x23b   : > { %v29009_v38 = vsel %vm28976_vm3, -inf, %v24729_v12  ;;  %v3112_v21 = vpop.f32.mrb[35].mxu1 }
 0x23c   : > { %36715 = vst [vmem:[#allocation28_spill] sm:$0xff] %v29009_v38  ;;  %v5779_v22 = vsel %vm530_vm0, %v29009_v38, -inf  ;;  %v29035_v51 = vsel %vm28991_vm4, -inf, %v3112_v21 }
 0x23d   : > { %5780 = vmax.xlane.f32.xlu1 %v5779_v22  ;;  %5771 = vmax.xlane.f32.xlu0 %v5770_v53  ;;  %36719 = vst [vmem:[#allocation41_spill] sm:$0xff] %v29035_v51  ;;  %v5776_v57 = vsel %vm530_vm0, %v29035_v51, -inf }
 0x23e   : > { %v24806_v54 = vpop.f32.mrb[68].mxu0 }
 0x23f   : > { %v4069_v60 = vpop.f32.mrb[69].mxu0  ;;  %v29041_v44 = vsel %vm28976_vm3, -inf, %v24806_v54 }
 0x240   : > { %36720 = vst [vmem:[#allocation25_spill] sm:$0xff] %v29041_v44  ;;  %v5845_v40 = vsel %vm530_vm0, %v29041_v44, -inf  ;;  %v29069_v58 = vsel %vm28991_vm4, -inf, %v4069_v60 }
 0x241   : > { %5834 = vmax.xlane.f32.xlu0 %v5833_v8  ;;  %36726 = vst [vmem:[#allocation62_spill] sm:$0xff] %v29069_v58  ;;  %v5842_v17 = vsel %vm530_vm0, %v29069_v58, -inf }
 0x242   : > { %v24736_v52 = vpop.f32.mrb[36].mxu1 }
 0x243   : > { %v3199_v45 = vpop.f32.mrb[37].mxu1  ;;  %v29057_v47 = vsel %vm28976_vm3, -inf, %v24736_v52 }
 0x244   : > { %v29027_v7 = vsel %vm28991_vm4, -inf, %v3199_v45  ;;  %36723 = vst [vmem:[#allocation43_spill] sm:$0xff] %v29057_v47  ;;  %v5785_v29 = vsel %vm530_vm0, %v29057_v47, -inf }
 0x245   : > { %36718 = vst [vmem:[#allocation30_spill] sm:$0xff] %v29027_v7  ;;  %v5782_v43 = vsel %vm530_vm0, %v29027_v7, -inf  ;;  %5831 = vmax.xlane.f32.xlu0 %v5830_v30 }
 0x246   : > { %5783 = vmax.xlane.f32.xlu1 %v5782_v43  ;;  %v24820_v61 = vpop.f32.mrb[70].mxu0 }
 0x247   : > { %v4243_v62 = vpop.f32.mrb[71].mxu0  ;;  %v29075_v12 = vsel %vm28976_vm3, -inf, %v24820_v61 }
 0x248   : > { %36727 = vst [vmem:[#allocation32_spill] sm:$0xff] %v29075_v12  ;;  %v5857_v53 = vsel %vm530_vm0, %v29075_v12, -inf  ;;  %v29085_v54 = vsel %vm28991_vm4, -inf, %v4243_v62 }
 0x249   : > { %5777 = vmax.xlane.f32.xlu0 %v5776_v57  ;;  %36730 = vst [vmem:[#allocation46_spill] sm:$0xff] %v29085_v54  ;;  %v5854_v30 = vsel %vm530_vm0, %v29085_v54, -inf }
 0x24a   : > { %v24743_v28 = vpop.f32.mrb[38].mxu1 }
 0x24b   : > { %v29045_v13 = vsel %vm28976_vm3, -inf, %v24743_v28  ;;  %v3286_v27 = vpop.f32.mrb[39].mxu1 }
 0x24c   : > { %36721 = vst [vmem:[#allocation57_spill] sm:$0xff] %v29045_v13  ;;  %v5791_v24 = vsel %vm530_vm0, %v29045_v13, -inf  ;;  %v29051_v20 = vsel %vm28991_vm4, -inf, %v3286_v27 }
 0x24d   : > { %36722 = vst [vmem:[#allocation59_spill] sm:$0xff] %v29051_v20  ;;  %5792 = vmax.xlane.f32.xlu1 %v5791_v24  ;;  %5846 = vmax.xlane.f32.xlu0 %v5845_v40  ;;  %v5788_v39 = vsel %vm530_vm0, %v29051_v20, -inf }
 0x24e   : > { %v29059_v59 = vpop.f32.mrb[72].mxu0 }
 0x24f   : > { %36724 = vst [vmem:[#allocation53_spill] sm:$0xff] %v29059_v59  ;;  %v29063_v41 = vpop.f32.mrb[73].mxu0  ;;  %v5869_v28 = vsel %vm530_vm0, %v29059_v59, -inf }
 0x250   : > { %36725 = vst [vmem:[#allocation60_spill] sm:$0xff] %v29063_v41  ;;  %v5866_v40 = vsel %vm530_vm0, %v29063_v41, -inf }
 0x251   : > { %5789 = vmax.xlane.f32.xlu1 %v5788_v39  ;;  %5786 = vmax.xlane.f32.xlu0 %v5785_v29 }
 0x252   : > { %v24750_v18 = vpop.f32.mrb[40].mxu1 }
 0x253   : > { %v3373_v46 = vpop.f32.mrb[41].mxu1  ;;  %v29111_v39 = vsel %vm28976_vm3, -inf, %v24750_v18 }
 0x254   : > { %36735 = vst [vmem:[#allocation69_spill] sm:$0xff] %v29111_v39 }
 0x255   : > { %5843 = vmax.xlane.f32.xlu0 %v5842_v17 }
 0x256   : > { %v29077_v21 = vpop.f32.mrb[74].mxu0 }
 0x257   : > { %36728 = vst [vmem:[#allocation37_spill] sm:$0xff] %v29077_v21  ;;  %v29079_v22 = vpop.f32.mrb[75].mxu0 }
 0x258   : > { %36729 = vst [vmem:[#allocation68_spill] sm:$0xff] %v29079_v22 }
 0x259   : > { %5858 = vmax.xlane.f32.xlu0 %v5857_v53  ;;  %v5797_v53 = vsel %vm530_vm0, %v29111_v39, -inf }
 0x25a   : > { %v24757_v60 = vpop.f32.mrb[42].mxu1 }
 0x25b   : > { %v29089_v8 = vsel %vm28976_vm3, -inf, %v24757_v60  ;;  %v3460_v52 = vpop.f32.mrb[43].mxu1  ;;  %v29121_v60 = vsel %vm28991_vm4, -inf, %v3373_v46 }
 0x25c   : > { %36731 = vst [vmem:[#allocation54_spill] sm:$0xff] %v29089_v8  ;;  %v5803_v45 = vsel %vm530_vm0, %v29089_v8, -inf  ;;  %v29095_v43 = vsel %vm28991_vm4, -inf, %v3460_v52  ;;  %36738 = vst [vmem:[#allocation79_spill] sm:$0xff] %v29121_v60 }
 0x25d   : > { %36732 = vst [vmem:[#allocation67_spill] sm:$0xff] %v29095_v43  ;;  %5804 = vmax.xlane.f32.xlu1 %v5803_v45  ;;  %5855 = vmax.xlane.f32.xlu0 %v5854_v30  ;;  %v5800_v62 = vsel %vm530_vm0, %v29095_v43, -inf }
 0x25e   : > { %v29099_v61 = vpop.f32.mrb[76].mxu0 }
 0x25f   : > { %36733 = vst [vmem:[#allocation70_spill] sm:$0xff] %v29099_v61  ;;  %v29103_v57 = vpop.f32.mrb[77].mxu0  ;;  %v5893_v16 = vsel %vm530_vm0, %v29099_v61, -inf }
 0x260   : > { %36734 = vst [vmem:[#allocation64_spill] sm:$0xff] %v29103_v57 }
 0x261   : > { %5801 = vmax.xlane.f32.xlu1 %v5800_v62  ;;  %5870 = vmax.xlane.f32.xlu0 %v5869_v28  ;;  %v5794_v28 = vsel %vm530_vm0, %v29121_v60, -inf }
 0x262   : > { %v24764_v27 = vpop.f32.mrb[44].mxu1 }
 0x263   : > { %v3547_v24 = vpop.f32.mrb[45].mxu1  ;;  %v29177_v15 = vsel %vm28976_vm3, -inf, %v24764_v27 }
 0x264   : > { %36749 = vst [vmem:[#allocation90_spill] sm:$0xff] %v29177_v15 }
 0x265   : > { %5867 = vmax.xlane.f32.xlu0 %v5866_v40 }
 0x266   : > { %v29113_v29 = vpop.f32.mrb[78].mxu0 }
 0x267   : > { %36736 = vst [vmem:[#allocation66_spill] sm:$0xff] %v29113_v29  ;;  %v29115_v17 = vpop.f32.mrb[79].mxu0  ;;  %v5905_v41 = vsel %vm530_vm0, %v29113_v29, -inf }
 0x268   : > { %36737 = vst [vmem:[#allocation7_spill] sm:$0xff] %v29115_v17 }
 0x269   : > { %5798 = vmax.xlane.f32.xlu0 %v5797_v53 }
 0x26a   : > { %v24771_v52 = vpop.f32.mrb[46].mxu1 }
 0x26b   : > { %v29125_v45 = vsel %vm28976_vm3, -inf, %v24771_v52  ;;  %v3634_v18 = vpop.f32.mrb[47].mxu1  ;;  %v5881_v52 = vsel %vm530_vm0, %v29077_v21, -inf }
 0x26c   : > { %36739 = vst [vmem:[#allocation80_spill] sm:$0xff] %v29125_v45  ;;  %v5815_v30 = vsel %vm530_vm0, %v29125_v45, -inf  ;;  %v29131_v62 = vsel %vm28991_vm4, -inf, %v3634_v18 }
 0x26d   : > { %36740 = vst [vmem:[#allocation81_spill] sm:$0xff] %v29131_v62  ;;  %5816 = vmax.xlane.f32.xlu1 %v5815_v30  ;;  %5795 = vmax.xlane.f32.xlu0 %v5794_v28  ;;  %v5812_v40 = vsel %vm530_vm0, %v29131_v62, -inf }
 0x26e   : > { %v29135_v46 = vpop.f32.mrb[80].mxu0 }
 0x26f   : > { %36741 = vst [vmem:[#allocation82_spill] sm:$0xff] %v29135_v46  ;;  %v29139_v53 = vpop.f32.mrb[81].mxu0 }
 0x270   : > { %36742 = vst [vmem:[#allocation83_spill] sm:$0xff] %v29139_v53 }
 0x271   : > { %5813 = vmax.xlane.f32.xlu1 %v5812_v40  ;;  %5882 = vmax.xlane.f32.xlu0 %v5881_v52  ;;  %v5878_v40 = vsel %vm530_vm0, %v29079_v22, -inf }
 0x272   : > { %v24785_v50 = vpop.f32.mrb[48].mxu1 }
 0x273   : > { %v29145_v18 = vsel %vm28976_vm3, -inf, %v24785_v50  ;;  %v3808_v30 = vpop.f32.mrb[49].mxu1 }
 0x274   : > { %36743 = vst [vmem:[#allocation84_spill] sm:$0xff] %v29145_v18  ;;  %v5827_v28 = vsel %vm530_vm0, %v29145_v18, -inf  ;;  %v29151_v37 = vsel %vm28991_vm4, -inf, %v3808_v30 }
 0x275   : > { %36744 = vst [vmem:[#allocation85_spill] sm:$0xff] %v29151_v37  ;;  %5828 = vmax.xlane.f32.xlu1 %v5827_v28  ;;  %5879 = vmax.xlane.f32.xlu0 %v5878_v40  ;;  %v5824_v52 = vsel %vm530_vm0, %v29151_v37, -inf }
 0x276   : > { %v29155_v49 = vpop.f32.mrb[82].mxu0 }
 0x277   : > { %36745 = vst [vmem:[#allocation86_spill] sm:$0xff] %v29155_v49  ;;  %v29159_v50 = vpop.f32.mrb[83].mxu0 }
 0x278   : > { %36746 = vst [vmem:[#allocation87_spill] sm:$0xff] %v29159_v50 }
 0x279   : > { %5825 = vmax.xlane.f32.xlu1 %v5824_v52  ;;  %5894 = vmax.xlane.f32.xlu0 %v5893_v16  ;;  %v5890_v52 = vsel %vm530_vm0, %v29103_v57, -inf }
 0x27a   : > { %v24799_v23 = vpop.f32.mrb[50].mxu1 }
 0x27b   : > { %v29165_v30 = vsel %vm28976_vm3, -inf, %v24799_v23  ;;  %v3982_v28 = vpop.f32.mrb[51].mxu1 }
 0x27c   : > { %36747 = vst [vmem:[#allocation88_spill] sm:$0xff] %v29165_v30  ;;  %v5839_v40 = vsel %vm530_vm0, %v29165_v30, -inf  ;;  %v29171_v22 = vsel %vm28991_vm4, -inf, %v3982_v28  ;;  %v5809_v28 = vsel %vm530_vm0, %v29177_v15, -inf }
 0x27d   : > { %36748 = vst [vmem:[#allocation89_spill] sm:$0xff] %v29171_v22  ;;  %5840 = vmax.xlane.f32.xlu1 %v5839_v40  ;;  %5891 = vmax.xlane.f32.xlu0 %v5890_v52  ;;  %v5836_v23 = vsel %vm530_vm0, %v29171_v22, -inf  ;;  %v29189_v40 = vsel %vm28991_vm4, -inf, %v3547_v24 }
 0x27e   : > { %v29179_v16 = vpop.f32.mrb[84].mxu0  ;;  %36752 = vst [vmem:[#allocation93_spill] sm:$0xff] %v29189_v40  ;;  %v5806_v14 = vsel %vm530_vm0, %v29189_v40, -inf }
 0x27f   : > { %36750 = vst [vmem:[#allocation91_spill] sm:$0xff] %v29179_v16  ;;  %v29183_v4 = vpop.f32.mrb[85].mxu0 }
 0x280   : > { %36751 = vst [vmem:[#allocation92_spill] sm:$0xff] %v29183_v4 }
 0x281   : > { %5837 = vmax.xlane.f32.xlu1 %v5836_v23  ;;  %5810 = vmax.xlane.f32.xlu0 %v5809_v28 }
 0x282   : > { %v24813_v57 = vpop.f32.mrb[52].mxu1 }
 0x283   : > { %v29193_v27 = vsel %vm28976_vm3, -inf, %v24813_v57  ;;  %v4156_v52 = vpop.f32.mrb[53].mxu1 }
 0x284   : > { %36753 = vst [vmem:[#allocation94_spill] sm:$0xff] %v29193_v27  ;;  %v5851_v32 = vsel %vm530_vm0, %v29193_v27, -inf  ;;  %v29199_v23 = vsel %vm28991_vm4, -inf, %v4156_v52 }
 0x285   : > { %36754 = vst [vmem:[#allocation95_spill] sm:$0xff] %v29199_v23  ;;  %5852 = vmax.xlane.f32.xlu1 %v5851_v32  ;;  %5807 = vmax.xlane.f32.xlu0 %v5806_v14  ;;  %v5848_v28 = vsel %vm530_vm0, %v29199_v23, -inf }
 0x286   : > { %v29203_v24 = vpop.f32.mrb[86].mxu0 }
 0x287   : > { %36755 = vst [vmem:[#allocation96_spill] sm:$0xff] %v29203_v24  ;;  %v29207_v57 = vpop.f32.mrb[87].mxu0 }
 0x288   : > { %36756 = vst [vmem:[#allocation97_spill] sm:$0xff] %v29207_v57 }
 0x289   : > { %5849 = vmax.xlane.f32.xlu1 %v5848_v28  ;;  %5906 = vmax.xlane.f32.xlu0 %v5905_v41  ;;  %v5902_v28 = vsel %vm530_vm0, %v29115_v17, -inf  ;;  %v26934_v17 = vmov 0  }
 0x28a   : > { %v24827_v61 = vpop.f32.mrb[54].mxu1  ;;  %26455 = vset.pattern.permute.xlu0 %v26934_v17  ;;  %26454 = vset.pattern.permute.xlu1 %v26934_v17 }
 0x28b   : > { %v29213_v32 = vsel %vm28976_vm3, -inf, %v24827_v61  ;;  %v4330_v52 = vpop.f32.mrb[55].mxu1  ;;  %v5914_v61 = vsel %vm530_vm0, %v29139_v53, -inf }
 0x28c   : > { %36757 = vst [vmem:[#allocation98_spill] sm:$0xff] %v29213_v32  ;;  %v5863_v14 = vsel %vm530_vm0, %v29213_v32, -inf  ;;  %v29219_v10 = vsel %vm28991_vm4, -inf, %v4330_v52 }
 0x28d   : > { %36758 = vst [vmem:[#allocation99_spill] sm:$0xff] %v29219_v10  ;;  %5864 = vmax.xlane.f32.xlu1 %v5863_v14  ;;  %5903 = vmax.xlane.f32.xlu0 %v5902_v28  ;;  %v5860_v41 = vsel %vm530_vm0, %v29219_v10, -inf  ;;  %v5926_v14 = vsel %vm530_vm0, %v29159_v50, -inf }
 0x291   : > { %5861 = vmax.xlane.f32.xlu1 %v5860_v41  ;;  %5915 = vmax.xlane.f32.xlu0 %v5914_v61  ;;  %v5938_v41 = vsel %vm530_vm0, %v29183_v4, -inf }
 0x292   : > { %v29227_v33 = vpop.f32.mrb[56].mxu1 }
 0x293   : > { %36759 = vst [vmem:[#allocation100_spill] sm:$0xff] %v29227_v33  ;;  %v29229_v29 = vpop.f32.mrb[57].mxu1  ;;  %v5875_v52 = vsel %vm530_vm0, %v29227_v33, -inf }
 0x294   : > { %36760 = vst [vmem:[#allocation101_spill] sm:$0xff] %v29229_v29  ;;  %v5872_v28 = vsel %vm530_vm0, %v29229_v29, -inf }
 0x295   : > { %5876 = vmax.xlane.f32.xlu1 %v5875_v52  ;;  %5927 = vmax.xlane.f32.xlu0 %v5926_v14  ;;  %v5950_v52 = vsel %vm530_vm0, %v29207_v57, -inf }
 0x299   : > { %5873 = vmax.xlane.f32.xlu1 %v5872_v28  ;;  %5939 = vmax.xlane.f32.xlu0 %v5938_v41  ;;  %v5917_v28 = vsel %vm530_vm0, %v29135_v46, -inf }
 0x29a   : > { %v29239_v34 = vpop.f32.mrb[58].mxu1 }
 0x29b   : > { %36761 = vst [vmem:[#allocation102_spill] sm:$0xff] %v29239_v34  ;;  %v29241_v61 = vpop.f32.mrb[59].mxu1  ;;  %v5887_v53 = vsel %vm530_vm0, %v29239_v34, -inf }
 0x29c   : > { %36762 = vst [vmem:[#allocation103_spill] sm:$0xff] %v29241_v61  ;;  %v5884_v14 = vsel %vm530_vm0, %v29241_v61, -inf }
 0x29d   : > { %5888 = vmax.xlane.f32.xlu1 %v5887_v53  ;;  %5951 = vmax.xlane.f32.xlu0 %v5950_v52  ;;  %v5929_v53 = vsel %vm530_vm0, %v29155_v49, -inf }
 0x2a1   : > { %5885 = vmax.xlane.f32.xlu1 %v5884_v14  ;;  %5918 = vmax.xlane.f32.xlu0 %v5917_v28  ;;  %v5941_v14 = vsel %vm530_vm0, %v29179_v16, -inf }
 0x2a2   : > { %v29251_v4 = vpop.f32.mrb[60].mxu1 }
 0x2a3   : > { %36763 = vst [vmem:[#allocation104_spill] sm:$0xff] %v29251_v4  ;;  %v29253_v41 = vpop.f32.mrb[61].mxu1  ;;  %v5899_v50 = vsel %vm530_vm0, %v29251_v4, -inf }
 0x2a4   : > { %36764 = vst [vmem:[#allocation105_spill] sm:$0xff] %v29253_v41  ;;  %v5896_v52 = vsel %vm530_vm0, %v29253_v41, -inf }
 0x2a5   : > { %5900 = vmax.xlane.f32.xlu1 %v5899_v50  ;;  %5930 = vmax.xlane.f32.xlu0 %v5929_v53  ;;  %v5953_v50 = vsel %vm530_vm0, %v29203_v24, -inf }
 0x2a9   : > { %5897 = vmax.xlane.f32.xlu1 %v5896_v52  ;;  %5942 = vmax.xlane.f32.xlu0 %v5941_v14 }
 0x2aa   : > { %v29263_v57 = vpop.f32.mrb[62].mxu1 }
 0x2ab   : > { %36765 = vst [vmem:[#allocation106_spill] sm:$0xff] %v29263_v57  ;;  %v29265_v28 = vpop.f32.mrb[63].mxu1  ;;  %v5911_v46 = vsel %vm530_vm0, %v29263_v57, -inf }
 0x2ac   : > { %36766 = vst [vmem:[#allocation107_spill] sm:$0xff] %v29265_v28  ;;  %v5908_v53 = vsel %vm530_vm0, %v29265_v28, -inf }
 0x2ad   : > { %5912 = vmax.xlane.f32.xlu1 %v5911_v46  ;;  %5954 = vmax.xlane.f32.xlu0 %v5953_v50 }
 0x2b1   : > { %5909 = vmax.xlane.f32.xlu1 %v5908_v53 }
 0x2b2   : > { %v29273_v52 = vpop.f32.mrb[64].mxu1 }
 0x2b3   : > { %36767 = vst [vmem:[#allocation108_spill] sm:$0xff] %v29273_v52  ;;  %v29275_v16 = vpop.f32.mrb[65].mxu1  ;;  %v5923_v14 = vsel %vm530_vm0, %v29273_v52, -inf }
 0x2b4   : > { %36768 = vst [vmem:[#allocation109_spill] sm:$0xff] %v29275_v16  ;;  %v5920_v49 = vsel %vm530_vm0, %v29275_v16, -inf }
 0x2b5   : > { %5924 = vmax.xlane.f32.xlu1 %v5923_v14 }
 0x2b9   : > { %5921 = vmax.xlane.f32.xlu1 %v5920_v49 }
 0x2ba   : > { %v29281_v46 = vpop.f32.mrb[66].mxu1 }
 0x2bb   : > { %36769 = vst [vmem:[#allocation110_spill] sm:$0xff] %v29281_v46  ;;  %v29283_v24 = vpop.f32.mrb[67].mxu1  ;;  %v5935_v50 = vsel %vm530_vm0, %v29281_v46, -inf }
 0x2bc   : > { %36770 = vst [vmem:[#allocation111_spill] sm:$0xff] %v29283_v24  ;;  %v5932_v28 = vsel %vm530_vm0, %v29283_v24, -inf }
 0x2bd   : > { %5936 = vmax.xlane.f32.xlu1 %v5935_v50 }
 0x2be   : > { %v29287_v53 = vpop.xlane.xlu0 %5822 }
 0x2c1   : > { %5933 = vmax.xlane.f32.xlu1 %v5932_v28 }
 0x2c2   : > { %v29291_v52 = vpop.f32.mrb[68].mxu1  ;;  %v29295_v16 = vpop.xlane.xlu0 %5774 }
 0x2c3   : > { %36771 = vst [vmem:[#allocation112_spill] sm:$0xff] %v29291_v52  ;;  %v29293_v14 = vpop.f32.mrb[69].mxu1  ;;  %v5947_v49 = vsel %vm530_vm0, %v29291_v52, -inf }
 0x2c4   : > { %36772 = vst [vmem:[#allocation113_spill] sm:$0xff] %v29293_v14  ;;  %v5944_v46 = vsel %vm530_vm0, %v29293_v14, -inf }
 0x2c5   : > { %5948 = vmax.xlane.f32.xlu1 %v5947_v49 }
 0x2c6   : > { %v29299_v50 = vpop.xlane.xlu0 %5819 }
 0x2c9   : > { %5945 = vmax.xlane.f32.xlu1 %v5944_v46 }
 0x2ca   : > { %v29303_v28 = vpop.f32.mrb[70].mxu1  ;;  %v5772_v41 = vpop.xlane.xlu0 %5771 }
 0x2cb   : > { %36773 = vst [vmem:[#allocation114_spill] sm:$0xff] %v29303_v28  ;;  %v29305_v24 = vpop.f32.mrb[71].mxu1  ;;  %v5959_v17 = vsel %vm530_vm0, %v29303_v28, -inf  ;;  %v5781_v46 = vpop.xlane.xlu1 %5780 }
 0x2cc   : > { %36774 = vst [vmem:[#allocation115_spill] sm:$0xff] %v29305_v24  ;;  %v5956_v57 = vsel %vm530_vm0, %v29305_v24, -inf }
 0x2cd   : > { %5957 = vmax.xlane.f32.xlu1 %v5956_v57 }
 0x2ce   : > { %v5835_v52 = vpop.xlane.xlu0 %5834 }
 0x2cf   : > { %v6370_v39 = vcombine.low %v29287_v53, %v5835_v52  ;;  %v6371_v45 = vcombine.high %v29287_v53, %v5835_v52 }
 0x2d1   : > { %5960 = vmax.xlane.f32.xlu1 %v5959_v17  ;;  %v29367_v52 = vrot.slane %v6370_v39, %v36579_v42 }
 0x2d2   : > { %v5832_v49 = vpop.xlane.xlu0 %5831 }
 0x2d3   : > { %v5784_v34 = vpop.xlane.xlu1 %5783  ;;  %v6098_v13 = vcombine.low %v29299_v50, %v5832_v49  ;;  %v6099_v22 = vcombine.high %v29299_v50, %v5832_v49 }
 0x2d4   : > { %v5962_v40 = vcombine.low %v5772_v41, %v5784_v34  ;;  %v5963_v62 = vcombine.high %v5772_v41, %v5784_v34  ;;  %v29370_v34 = vrot.slane %v6371_v45, %v36579_v42 }
 0x2d5   : > { %v6106_v53 = vrot.slane %v6098_v13, %v36579_v42 }
 0x2d6   : > { %v29311_v61 = vpop.xlane.xlu0 %5777  ;;  %v29373_v41 = vrot.slane %v5962_v40, %v36579_v42 }
 0x2da   : > { %v29313_v4 = vpop.xlane.xlu0 %5846  ;;  %v5793_v6 = vpop.xlane.xlu1 %5792 }
 0x2db   : > { %v6250_v43 = vcombine.low %v5781_v46, %v5793_v6  ;;  %v6251_v47 = vcombine.high %v5781_v46, %v5793_v6  ;;  %v29376_v6 = vrot.slane %v5963_v62, %v36579_v42 }
 0x2dd   : > { %v29386_v39 = vrot.slane %v6251_v47, %v36579_v42 }
 0x2de   : > { %v29315_v14 = vpop.xlane.xlu0 %5786  ;;  %v29321_v24 = vpop.xlane.xlu1 %5789 }
 0x2df   : > { %v5978_v62 = vcombine.low %v29311_v61, %v29321_v24  ;;  %v6234_v47 = vcombine.low %v29295_v16, %v29315_v14 }
 0x2e1   : > { %v5986_v31 = vrot.slane %v5978_v62, %v36579_v42 }
 0x2e2   : > { %v29317_v29 = vpop.xlane.xlu0 %5843 }
 0x2e6   : > { %v29319_v12 = vpop.xlane.xlu0 %5858 }
 0x2ea   : > { %v5856_v57 = vpop.xlane.xlu0 %5855  ;;  %v29325_v17 = vpop.xlane.xlu1 %5804 }
 0x2eb   : > { %v6130_v60 = vcombine.low %v29317_v29, %v5856_v57  ;;  %v6131_v50 = vcombine.high %v29317_v29, %v5856_v57 }
 0x2ed   : > { %v6138_v40 = vrot.slane %v6130_v60, %v36579_v42  ;;  %v6235_v60 = vcombine.high %v29295_v16, %v29315_v14 }
 0x2ee   : > { %v29323_v0 = vpop.xlane.xlu0 %5870  ;;  %v29329_v48 = vpop.xlane.xlu1 %5801 }
 0x2f2   : > { %v29327_v28 = vpop.xlane.xlu0 %5867 }
 0x2f6   : > { %v29331_v32 = vpop.xlane.xlu0 %5798 }
 0x2fa   : > { %v29333_v54 = vpop.xlane.xlu1 %5816  ;;  %v29335_v21 = vpop.xlane.xlu0 %5795 }
 0x2fe   : > { %v29337_v10 = vpop.xlane.xlu1 %5813  ;;  %v29339_v44 = vpop.xlane.xlu0 %5882 }
 0x2ff   : > { %v6010_v46 = vcombine.low %v29329_v48, %v29337_v10 }
 0x302   : > { %v29341_v33 = vpop.xlane.xlu1 %5828  ;;  %v29343_v58 = vpop.xlane.xlu0 %5879 }
 0x306   : > { %v5826_v27 = vpop.xlane.xlu1 %5825  ;;  %v29345_v23 = vpop.xlane.xlu0 %5894 }
 0x30a   : > { %v29347_v59 = vpop.xlane.xlu1 %5840  ;;  %v29349_v30 = vpop.xlane.xlu0 %5891 }
 0x30e   : > { %v5838_v35 = vpop.xlane.xlu1 %5837  ;;  %v29353_v5 = vpop.xlane.xlu0 %5810 }
 0x30f   : > { %v6114_v26 = vcombine.low %v5826_v27, %v5838_v35  ;;  %v6115_v38 = vcombine.high %v5826_v27, %v5838_v35  ;;  %v29383_v35 = vrot.slane %v6250_v43, %v36579_v42 }
 0x311   : > { %v6122_v45 = vrot.slane %v6114_v26, %v36579_v42  ;;  %v6129_v13 = vrot.slane %v6115_v38, %v36579_v42  ;;  %v6145_v38 = vrot.slane %v6131_v50, %v36579_v42 }
 0x312   : > { %v29351_v55 = vpop.xlane.xlu1 %5852  ;;  %v5808_v19 = vpop.xlane.xlu0 %5807 }
 0x313   : > { %v5994_v43 = vcombine.low %v29335_v21, %v5808_v19  ;;  %v5995_v26 = vcombine.high %v29335_v21, %v5808_v19  ;;  %v6163_v57 = vcombine.high %v6106_v53, %v6122_v45 }
 0x315   : > { %v6002_v14 = vrot.slane %v5994_v43, %v36579_v42  ;;  %v6009_v50 = vrot.slane %v5995_v26, %v36579_v42 }
 0x316   : > { %v5850_v15 = vpop.xlane.xlu1 %5849  ;;  %v29361_v37 = vpop.xlane.xlu0 %5906 }
 0x31a   : > { %v29355_v18 = vpop.xlane.xlu1 %5864  ;;  %v29402_v27 = vpop.xlane.xlu0 %5903 }
 0x31e   : > { %v5862_v63 = vpop.xlane.xlu1 %5861  ;;  %v29425_v62 = vpop.xlane.xlu0 %5915 }
 0x31f   : > { %v6146_v8 = vcombine.low %v5850_v15, %v5862_v63  ;;  %v6147_v20 = vcombine.high %v5850_v15, %v5862_v63  ;;  %v6113_v15 = vrot.slane %v6099_v22, %v36579_v42  ;;  %v5979_v22 = vcombine.high %v29311_v61, %v29321_v24 }
 0x320   : > { %v6011_v24 = vcombine.high %v29329_v48, %v29337_v10  ;;  %v6162_v61 = vcombine.low %v6106_v53, %v6122_v45  ;;  %v29419_v48 = vrot.slane %v6235_v60, %v36579_v42 }
 0x321   : > { %v6154_v63 = vrot.slane %v6146_v8, %v36579_v42  ;;  %v6161_v29 = vrot.slane %v6147_v20, %v36579_v42  ;;  %v6178_v7 = vcombine.low %v6113_v15, %v6129_v13  ;;  %v6179_v25 = vcombine.high %v6113_v15, %v6129_v13 }
 0x322   : > { %v29364_v2 = vpop.xlane.xlu1 %5876  ;;  %v5993_v16 = vrot.slane %v5979_v22, %v36579_v42  ;;  %v6018_v15 = vrot.slane %v6010_v46, %v36579_v42  ;;  %v6025_v45 = vrot.slane %v6011_v24, %v36579_v42  ;;  %v6177_v13 = vrot.slane %v6163_v57, %v27438_v56 }
 0x323   : > { %v6194_v20 = vcombine.low %v6138_v40, %v6154_v63  ;;  %v6195_v49 = vcombine.high %v6138_v40, %v6154_v63  ;;  %v6210_v19 = vcombine.low %v6145_v38, %v6161_v29  ;;  %v6211_v21 = vcombine.high %v6145_v38, %v6161_v29 }
 0x324   : > { %v29416_v63 = vrot.slane %v6234_v47, %v36579_v42  ;;  %v6170_v40 = vrot.slane %v6162_v61, %v27438_v56  ;;  %v6186_v22 = vrot.slane %v6178_v7, %v27438_v56  ;;  %v6193_v43 = vrot.slane %v6179_v25, %v27438_v56 }
 0x325   : > { %v6202_v10 = vrot.slane %v6194_v20, %v27438_v56  ;;  %v6209_v53 = vrot.slane %v6195_v49, %v27438_v56  ;;  %v6218_v47 = vrot.slane %v6210_v19, %v27438_v56  ;;  %v6225_v26 = vrot.slane %v6211_v21, %v27438_v56 }
 0x326   : > { %v29394_v8 = vpop.xlane.xlu1 %5873  ;;  %v6058_v60 = vcombine.low %v6002_v14, %v6018_v15  ;;  %v6059_v38 = vcombine.high %v6002_v14, %v6018_v15  ;;  %v6074_v20 = vcombine.low %v6009_v50, %v6025_v45  ;;  %v6075_v49 = vcombine.high %v6009_v50, %v6025_v45  ;;  %v29444_v45 = vpop.xlane.xlu0 %5927 }
 0x327   : > { %v6226_v46 = vcombine.low %v6170_v40, %v6202_v10  ;;  %v6227_v24 = vcombine.high %v6170_v40, %v6202_v10  ;;  %v6228_v1 = vcombine.low %v6177_v13, %v6209_v53  ;;  %v6229_v9 = vcombine.high %v6177_v13, %v6209_v53 }
 0x328   : > { %v6026_v61 = vcombine.low %v29373_v41, %v5986_v31  ;;  %v6027_v57 = vcombine.high %v29373_v41, %v5986_v31  ;;  %v6042_v7 = vcombine.low %v29376_v6, %v5993_v16  ;;  %v6043_v19 = vcombine.high %v29376_v6, %v5993_v16 }
 0x329   : > { %v6298_v25 = vcombine.low %v29416_v63, %v29383_v35  ;;  %v6230_v14 = vcombine.low %v6186_v22, %v6218_v47  ;;  %v6232_v50 = vcombine.low %v6193_v43, %v6225_v26  ;;  %v6299_v10 = vcombine.high %v29416_v63, %v29383_v35 }
 0x32a   : > { %v5889_v36 = vpop.xlane.xlu1 %5888  ;;  %v6089_v53 = vrot.slane %v6075_v49, %v27438_v56  ;;  %v6066_v31 = vrot.slane %v6058_v60, %v27438_v56  ;;  %v6082_v41 = vrot.slane %v6074_v20, %v27438_v56  ;;  %v29449_v6 = vmax.f32 %v6226_v46, %v29323_v0 }
 0x32b   : > { %v29439_v21 = vmax.f32 %v6229_v9, %v5889_v36  ;;  %v29452_v9 = vmax.f32 %v6227_v24, %v29364_v2  ;;  %v29455_v36 = vmax.f32 %v6228_v1, %v29339_v44  ;;  %v6073_v16 = vrot.slane %v6059_v38, %v27438_v56 }
 0x32c   : > { %v6314_v35 = vcombine.low %v29419_v48, %v29386_v39  ;;  %v6057_v63 = vrot.slane %v6043_v19, %v27438_v56  ;;  %v6034_v40 = vrot.slane %v6026_v61, %v27438_v56  ;;  %v6050_v13 = vrot.slane %v6042_v7, %v27438_v56  ;;  %v29483_v19 = vpop.xlane.xlu0 %5939 }
 0x32d   : > { %v6826_v0 = vcombine.low %v29452_v9, %v29439_v21  ;;  %v6041_v2 = vrot.slane %v6027_v57, %v27438_v56  ;;  %v29467_v60 = vmax.f32 %v6230_v14, %v29345_v23  ;;  %v29470_v44 = vmax.f32 %v6232_v50, %v29361_v37 }
 0x32e   : > { %v5886_v29 = vpop.xlane.xlu1 %5885  ;;  %v6096_v20 = vcombine.low %v6057_v63, %v6089_v53  ;;  %v29475_v49 = vrot.slane %v6298_v25, %v27438_v56  ;;  %v6094_v46 = vcombine.low %v6050_v13, %v6082_v41  ;;  %v6090_v24 = vcombine.low %v6034_v40, %v6066_v31 }
 0x32f   : > { %v6092_v61 = vcombine.low %v6041_v2, %v6073_v16  ;;  %v6093_v7 = vcombine.high %v6041_v2, %v6073_v16  ;;  %v6810_v57 = vcombine.low %v29449_v6, %v29455_v36  ;;  %v6402_v23 = vcombine.low %v29313_v4, %v29319_v12 }
 0x330   : > { %v6403_v37 = vcombine.high %v29313_v4, %v29319_v12  ;;  %v6231_v14 = vcombine.high %v6186_v22, %v6218_v47  ;;  %v6233_v50 = vcombine.high %v6193_v43, %v6225_v26  ;;  %v6091_v38 = vcombine.high %v6034_v40, %v6066_v31  ;;  %v29521_v40 = vpop.xlane.xlu0 %5951 }
 0x331   : > { %v6834_v25 = vrot.slane %v6826_v0, %v36579_v42  ;;  %v29486_v11 = vmax.f32 %v6093_v7, %v5886_v29  ;;  %v6842_v16 = vcombine.low %v29467_v60, %v29470_v44  ;;  %v29491_v2 = vmax.f32 %v6096_v20, %v29402_v27 }
 0x332   : > { %v5901_v15 = vpop.xlane.xlu1 %5900  ;;  %v29496_v4 = vmax.f32 %v6094_v46, %v29349_v30  ;;  %v29501_v22 = vmax.f32 %v6090_v24, %v29327_v28  ;;  %v29504_v29 = vmax.f32 %v6091_v38, %v29394_v8  ;;  %v29507_v47 = vmax.f32 %v6092_v61, %v29343_v58 }
 0x333   : > { %36775 = vst [vmem:[#allocation116_spill] sm:$0xff] %v29491_v2  ;;  %v29493_v3 = vmax.f32 %v6231_v14, %v5901_v15  ;;  %v6818_v43 = vrot.slane %v6810_v57, %v36579_v42  ;;  %v29511_v27 = vrot.slane %v6299_v10, %v27438_v56  ;;  %v6095_v26 = vcombine.high %v6050_v13, %v6082_v41 }
 0x334   : > { %36776 = vst [vmem:[#allocation117_spill] sm:$0xff] %v29496_v4  ;;  %v29516_v15 = vrot.slane %v6314_v35, %v27438_v56  ;;  %v6554_v28 = vcombine.low %v29504_v29, %v29486_v11  ;;  %v6850_v58 = vrot.slane %v6842_v16, %v36579_v42  ;;  %v29531_v35 = vrot.slane %v6402_v23, %v36579_v42 }
 0x335   : > { %v6874_v31 = vcombine.low %v6818_v43, %v6834_v25  ;;  %v6282_v13 = vcombine.low %v29325_v17, %v29333_v54  ;;  %v6555_v61 = vcombine.high %v29504_v29, %v29486_v11 }
 0x336   : > { %v5898_v1 = vpop.xlane.xlu1 %5897  ;;  %v6562_v7 = vrot.slane %v6554_v28, %v36579_v42 }
 0x337   : > { %v29523_v0 = vmax.f32 %v6095_v26, %v5898_v1  ;;  %v6538_v1 = vcombine.low %v29501_v22, %v29507_v47  ;;  %v6882_v23 = vrot.slane %v6874_v31, %v27438_v56  ;;  %v6571_v26 = vcombine.high %v29496_v4, %v29491_v2 }
 0x339   : > { %36777 = vst [vmem:[#allocation118_spill] sm:$0xff] %v29523_v0  ;;  %v6546_v28 = vrot.slane %v6538_v1, %v36579_v42  ;;  %v29573_v1 = vrot.slane %v6555_v61, %v36579_v42 }
 0x33a   : > { %v5913_v51 = vpop.xlane.xlu1 %5912 }
 0x33b   : > { %v29498_v12 = vmax.f32 %v6233_v50, %v5913_v51  ;;  %v6097_v51 = vcombine.high %v6057_v63, %v6089_v53  ;;  %v6570_v53 = vcombine.low %v29496_v4, %v29491_v2  ;;  %v29534_v63 = vrot.slane %v6403_v37, %v36579_v42 }
 0x33c   : > { %v6875_v37 = vcombine.high %v6818_v43, %v6834_v25  ;;  %v6539_v25 = vcombine.high %v29501_v22, %v29507_v47  ;;  %v29563_v43 = vpop.xlane.xlu0 %5918 }
 0x33d   : > { %v6858_v30 = vcombine.low %v29493_v3, %v29498_v12  ;;  %v6578_v16 = vrot.slane %v6570_v53, %v36579_v42  ;;  %v6283_v53 = vcombine.high %v29325_v17, %v29333_v54  ;;  %v6419_v54 = vcombine.high %v29351_v55, %v29355_v18 }
 0x33e   : > { %v5910_v8 = vpop.xlane.xlu1 %5909 }
 0x33f   : > { %v6866_v10 = vrot.slane %v6858_v30, %v36579_v42  ;;  %v29526_v41 = vmax.f32 %v6097_v51, %v5910_v8  ;;  %v6418_v30 = vcombine.low %v29351_v55, %v29355_v18  ;;  %v6267_v55 = vcombine.high %v29331_v32, %v29353_v5 }
 0x341   : > { %36778 = vst [vmem:[#allocation119_spill] sm:$0xff] %v29526_v41  ;;  %v6586_v38 = vcombine.low %v29523_v0, %v29526_v41  ;;  %v6587_v20 = vcombine.high %v29523_v0, %v29526_v41  ;;  %v6906_v46 = vcombine.low %v6850_v58, %v6866_v10  ;;  %v6907_v24 = vcombine.high %v6850_v58, %v6866_v10 }
 0x342   : > { %v29547_v57 = vpop.xlane.xlu1 %5924  ;;  %v6426_v17 = vrot.slane %v6418_v30, %v36579_v42  ;;  %v6603_v30 = vcombine.high %v6546_v28, %v6562_v7 }
 0x343   : > { %v6594_v14 = vrot.slane %v6586_v38, %v36579_v42  ;;  %v6914_v50 = vrot.slane %v6906_v46, %v27438_v56  ;;  %v29558_v51 = vrot.slane %v6587_v20, %v36579_v42  ;;  %v6921_v31 = vrot.slane %v6907_v24, %v27438_v56 }
 0x344   : > { %v6386_v38 = vcombine.low %v29341_v33, %v29347_v59  ;;  %v6387_v20 = vcombine.high %v29341_v33, %v29347_v59  ;;  %v6602_v24 = vcombine.low %v6546_v28, %v6562_v7  ;;  %v6553_v33 = vrot.slane %v6539_v25, %v36579_v42 }
 0x345   : > { %v6939_v8 = vcombine.high %v6882_v23, %v6914_v50  ;;  %v6938_v58 = vcombine.low %v6882_v23, %v6914_v50  ;;  %v6634_v10 = vcombine.low %v6578_v16, %v6594_v14  ;;  %v6889_v23 = vrot.slane %v6875_v37, %v27438_v56 }
 0x346   : > { %v29575_v46 = vpop.xlane.xlu1 %5921  ;;  %v6585_v50 = vrot.slane %v6571_v26, %v36579_v42  ;;  %v6635_v41 = vcombine.high %v6578_v16, %v6594_v14  ;;  %v6394_v37 = vrot.slane %v6386_v38, %v36579_v42  ;;  %v6266_v26 = vcombine.low %v29331_v32, %v29353_v5  ;;  %v29593_v14 = vpop.xlane.xlu0 %5930 }
 0x347   : > { %7174 = vperm.xlu0 %26455, %v6939_v8   ;;  %7164 = vperm.xlu1 %26454, %v6938_v58   ;;  %v6941_v59 = vcombine.high %v6889_v23, %v6921_v31  ;;  %v6940_v61 = vcombine.low %v6889_v23, %v6921_v31  ;;  %v6642_v2 = vrot.slane %v6634_v10, %v27438_v56 }
 0x348   : > { %v6650_v8 = vcombine.low %v6585_v50, %v29558_v51  ;;  %v29586_v58 = vrot.slane %v6282_v13, %v36579_v42  ;;  %v6610_v16 = vrot.slane %v6602_v24, %v27438_v56  ;;  %v6618_v25 = vcombine.low %v6553_v33, %v29573_v1 }
 0x349   : > { %v6401_v13 = vrot.slane %v6387_v20, %v36579_v42  ;;  %v6433_v31 = vrot.slane %v6419_v54, %v36579_v42  ;;  %v6467_v10 = vcombine.high %v29531_v35, %v6426_v17  ;;  %v6651_v38 = vcombine.high %v6585_v50, %v29558_v51 }
 0x34a   : > { %v5937_v18 = vpop.xlane.xlu1 %5936  ;;  %v6667_v23 = vcombine.high %v6610_v16, %v6642_v2  ;;  %v6666_v5 = vcombine.low %v6610_v16, %v6642_v2  ;;  %v6649_v32 = vrot.slane %v6635_v41, %v27438_v56  ;;  %v6435_v24 = vcombine.high %v29367_v52, %v6394_v37 }
 0x34b   : > { %7194 = vperm.xlu0 %26455, %v6941_v59   ;;  %7184 = vperm.xlu1 %26454, %v6940_v61   ;;  %v29603_v59 = vrot.slane %v6650_v8, %v27438_v56  ;;  %v6274_v7 = vrot.slane %v6266_v26, %v36579_v42  ;;  %v6281_v28 = vrot.slane %v6267_v55, %v36579_v42 }
 0x34c   : > { %v6466_v20 = vcombine.low %v29531_v35, %v6426_v17  ;;  %v6617_v51 = vrot.slane %v6603_v30, %v27438_v56  ;;  %v6626_v2 = vrot.slane %v6618_v25, %v27438_v56  ;;  %v6619_v41 = vcombine.high %v6553_v33, %v29573_v1  ;;  %v5943_v17 = vpop.xlane.xlu0 %5942 }
 0x34d   : > { %v6297_v50 = vrot.slane %v6283_v53, %v36579_v42  ;;  %v6434_v61 = vcombine.low %v29367_v52, %v6394_v37  ;;  %v6451_v8 = vcombine.high %v29370_v34, %v6401_v13  ;;  %v6483_v26 = vcombine.high %v29534_v63, %v6433_v31 }
 0x34e   : > { %v29609_v54 = vpop.xlane.xlu1 %5933  ;;  %v6481_v35 = vrot.slane %v6467_v10, %v27438_v56  ;;  %v6668_v55 = vcombine.low %v6617_v51, %v6649_v32  ;;  %v6671_v16 = vcombine.high %v6626_v2, %v29603_v59  ;;  %v29621_v30 = vrot.slane %v6651_v38, %v27438_v56 }
 0x34f   : > { %7094 = vperm.xlu1 %26454, %v6667_v23   ;;  %7084 = vperm.xlu0 %26455, %v6666_v5   ;;  %v6331_v25 = vcombine.high %v6274_v7, %v29586_v58  ;;  %v6346_v1 = vcombine.low %v6281_v28, %v6297_v50  ;;  %v6347_v33 = vcombine.high %v6281_v28, %v6297_v50 }
 0x350   : > { %v6482_v53 = vcombine.low %v29534_v63, %v6433_v31  ;;  %v6474_v37 = vrot.slane %v6466_v20, %v27438_v56  ;;  %v6449_v23 = vrot.slane %v6435_v24, %v27438_v56  ;;  %v6633_v10 = vrot.slane %v6619_v41, %v27438_v56 }
 0x351   : > { %v6450_v5 = vcombine.low %v29370_v34, %v6401_v13  ;;  %v6330_v38 = vcombine.low %v6274_v7, %v29586_v58  ;;  %v6442_v0 = vrot.slane %v6434_v61, %v27438_v56  ;;  %v6497_v4 = vrot.slane %v6483_v26, %v27438_v56  ;;  %v5955_v7 = vpop.xlane.xlu0 %5954 }
 0x352   : > { %v5949_v52 = vpop.xlane.xlu1 %5948  ;;  %v6465_v28 = vrot.slane %v6451_v8, %v27438_v56  ;;  %v6501_v63 = vcombine.high %v6449_v23, %v6481_v35  ;;  %v6669_v31 = vcombine.high %v6617_v51, %v6649_v32  ;;  %v6673_v20 = vcombine.high %v6633_v10, %v29621_v30 }
 0x353   : > { %7104 = vperm.xlu1 %26454, %v6668_v55   ;;  %7134 = vperm.xlu0 %26455, %v6671_v16   ;;  %v6345_v24 = vrot.slane %v6331_v25, %v27438_v56  ;;  %v6354_v50 = vrot.slane %v6346_v1, %v27438_v56  ;;  %v6361_v41 = vrot.slane %v6347_v33, %v27438_v56 }
 0x354   : > { %v6490_v34 = vrot.slane %v6482_v53, %v27438_v56  ;;  %v6500_v58 = vcombine.low %v6449_v23, %v6481_v35  ;;  %v6499_v61 = vcombine.high %v6442_v0, %v6474_v37  ;;  %v29638_v55 = vmax.f32 %v6501_v63, %v5937_v18 }
 0x355   : > { %v6338_v32 = vrot.slane %v6330_v38, %v27438_v56  ;;  %v36779_v51 = vcombine.high %v29419_v48, %v29386_v39  ;;  %v6458_v26 = vrot.slane %v6450_v5, %v27438_v56  ;;  %v6504_v16 = vcombine.low %v6465_v28, %v6497_v4 }
 0x356   : > { %v5946_v13 = vpop.xlane.xlu1 %5945  ;;  %v6498_v25 = vcombine.low %v6442_v0, %v6474_v37  ;;  %v29647_v1 = vmax.f32 %v6500_v58, %v29593_v14  ;;  %v29650_v35 = vmax.f32 %v6499_v61, %v29547_v57  ;;  %v6670_v18 = vcombine.low %v6626_v2, %v29603_v59 }
 0x357   : > { %7114 = vperm.xlu1 %26454, %v6669_v31   ;;  %7154 = vperm.xlu0 %26455, %v6673_v20   ;;  %v6329_v8 = vrot.slane %v36779_v51, %v27438_v56  ;;  %v6364_v33 = vcombine.low %v29511_v27, %v6345_v24  ;;  %v6502_v53 = vcombine.low %v6458_v26, %v6490_v34 }
 0x358   : > { %v29654_v23 = vmax.f32 %v6504_v16, %v5955_v7  ;;  %v6366_v48 = vcombine.low %v29516_v15, %v6354_v50  ;;  %v29658_v0 = vmax.f32 %v6498_v25, %v29563_v43  ;;  %v6962_v14 = vcombine.low %v29650_v35, %v29638_v55 }
 0x359   : > { %v6369_v38 = vcombine.high %v6329_v8, %v6361_v41  ;;  %v6368_v5 = vcombine.low %v6329_v8, %v6361_v41  ;;  %v29662_v57 = vmax.f32 %v6502_v53, %v5943_v17  ;;  %v6365_v59 = vcombine.high %v29511_v27, %v6345_v24 }
 0x35a   : > { %v5958_v39 = vpop.xlane.xlu1 %5957  ;;  %v6367_v2 = vcombine.high %v29516_v15, %v6354_v50  ;;  %v6946_v63 = vcombine.low %v29658_v0, %v29647_v1  ;;  %v6503_v31 = vcombine.high %v6458_v26, %v6490_v34  ;;  %v6505_v20 = vcombine.high %v6465_v28, %v6497_v4 }
 0x35b   : > { %7124 = vperm.xlu1 %26454, %v6670_v18   ;;  %v29666_v37 = vmax.f32 %v6369_v38, %v5958_v39  ;;  %v6672_v43 = vcombine.low %v6633_v10, %v29621_v30  ;;  %v29672_v41 = vmax.f32 %v6368_v5, %v29521_v40  ;;  %v6978_v17 = vcombine.low %v29662_v57, %v29654_v23 }
 0x35c   : > { %v6363_v58 = vcombine.high %v29475_v49, %v6338_v32  ;;  %v29677_v27 = vmax.f32 %v6367_v2, %v5946_v13  ;;  %v6970_v24 = vrot.slane %v6962_v14, %v36579_v42  ;;  %v29681_v50 = vmax.f32 %v6365_v59, %v29609_v54 }
 0x35d   : > { %v29683_v34 = vmax.f32 %v6503_v31, %v5949_v52  ;;  %v6362_v40 = vcombine.low %v29475_v49, %v6338_v32  ;;  %v29689_v30 = vmax.f32 %v6364_v33, %v29444_v45  ;;  %v29692_v10 = vmax.f32 %v6366_v48, %v29483_v19 }
 0x35e   : > { %v5961_v15 = vpop.xlane.xlu1 %5960  ;;  %v6723_v28 = vcombine.high %v29677_v27, %v29666_v37  ;;  %v6954_v13 = vrot.slane %v6946_v63, %v36579_v42  ;;  %v29698_v54 = vmax.f32 %v6363_v58, %v29575_v46  ;;  %v6722_v52 = vcombine.low %v29677_v27, %v29666_v37 }
 0x35f   : > { %v29685_v4 = vmax.f32 %v6505_v20, %v5961_v15  ;;  %7144 = vperm.xlu1 %26454, %v6672_v43   ;;  %v29705_v45 = vmax.f32 %v6362_v40, %v29425_v62  ;;  %v6706_v19 = vcombine.low %v29692_v10, %v29672_v41  ;;  %v6707_v7 = vcombine.high %v29692_v10, %v29672_v41 }
 0x360   : > { %v6986_v61 = vrot.slane %v6978_v17, %v36579_v42  ;;  %v6690_v46 = vcombine.low %v29698_v54, %v29681_v50  ;;  %v6691_v32 = vcombine.high %v29698_v54, %v29681_v50  ;;  %v7010_v8 = vcombine.low %v6954_v13, %v6970_v24 }
 0x361   : > { %v6994_v49 = vcombine.low %v29683_v34, %v29685_v4  ;;  %v6674_v62 = vcombine.low %v29705_v45, %v29689_v30  ;;  %v6675_v26 = vcombine.high %v29705_v45, %v29689_v30  ;;  %v6737_v16 = vrot.slane %v6723_v28, %v36579_v42 }
 0x362   : > { %v6730_v25 = vrot.slane %v6722_v52, %v36579_v42  ;;  %v6714_v53 = vrot.slane %v6706_v19, %v36579_v42  ;;  %v6721_v38 = vrot.slane %v6707_v7, %v36579_v42  ;;  %v7011_v39 = vcombine.high %v6954_v13, %v6970_v24 }
 0x363   : > { %v7002_v51 = vrot.slane %v6994_v49, %v36579_v42  ;;  %v6698_v48 = vrot.slane %v6690_v46, %v36579_v42  ;;  %v6705_v5 = vrot.slane %v6691_v32, %v36579_v42  ;;  %v7018_v14 = vrot.slane %v7010_v8, %v27438_v56 }
 0x364   : > { %v6682_v2 = vrot.slane %v6674_v62, %v36579_v42  ;;  %v6689_v63 = vrot.slane %v6675_v26, %v36579_v42  ;;  %v6859_v31 = vcombine.high %v29493_v3, %v29498_v12  ;;  %v6786_v20 = vcombine.low %v6721_v38, %v6737_v16 }
 0x365   : > { %v7042_v18 = vcombine.low %v6986_v61, %v7002_v51  ;;  %v7043_v33 = vcombine.high %v6986_v61, %v7002_v51  ;;  %v6770_v15 = vcombine.low %v6714_v53, %v6730_v25  ;;  %v6827_v24 = vcombine.high %v29452_v9, %v29439_v21 }
 0x366   : > { %v6843_v40 = vcombine.high %v29467_v60, %v29470_v44  ;;  %v7025_v28 = vrot.slane %v7011_v39, %v27438_v56  ;;  %v6754_v13 = vcombine.low %v6689_v63, %v6705_v5  ;;  %v6738_v52 = vcombine.low %v6682_v2, %v6698_v48 }
 0x367   : > { %v7050_v59 = vrot.slane %v7042_v18, %v27438_v56  ;;  %v7057_v58 = vrot.slane %v7043_v33, %v27438_v56  ;;  %v6873_v49 = vrot.slane %v6859_v31, %v36579_v42  ;;  %v6995_v19 = vcombine.high %v29683_v34, %v29685_v4 }
 0x368   : > { %v6787_v7 = vcombine.high %v6721_v38, %v6737_v16  ;;  %v6811_v61 = vcombine.high %v29449_v6, %v29455_v36  ;;  %v6794_v51 = vrot.slane %v6786_v20, %v27438_v56  ;;  %v6778_v8 = vrot.slane %v6770_v15, %v27438_v56 }
 0x369   : > { %v7075_v43 = vcombine.high %v7018_v14, %v7050_v59  ;;  %v7074_v17 = vcombine.low %v7018_v14, %v7050_v59  ;;  %v7077_v46 = vcombine.high %v7025_v28, %v7057_v58  ;;  %v7076_v32 = vcombine.low %v7025_v28, %v7057_v58 }
 0x36a   : > { %v6841_v62 = vrot.slane %v6827_v24, %v36579_v42  ;;  %v6979_v26 = vcombine.high %v29662_v57, %v29654_v23  ;;  %v6963_v18 = vcombine.high %v29650_v35, %v29638_v55  ;;  %v6857_v33 = vrot.slane %v6843_v40, %v36579_v42 }
 0x36b   : > { %7179 = vperm.xlu0 %26455, %v7075_v43   ;;  %7169 = vperm.xlu1 %26454, %v7074_v17   ;;  %v6762_v16 = vrot.slane %v6754_v13, %v27438_v56  ;;  %v6746_v38 = vrot.slane %v6738_v52, %v27438_v56  ;;  %v6755_v39 = vcombine.high %v6689_v63, %v6705_v5 }
 0x36c   : > { %v6947_v14 = vcombine.high %v29658_v0, %v29647_v1  ;;  %v6825_v59 = vrot.slane %v6811_v61, %v36579_v42  ;;  %v6922_v31 = vcombine.low %v6857_v33, %v6873_v49  ;;  %v6771_v20 = vcombine.high %v6714_v53, %v6730_v25 }
 0x36d   : > { %v7009_v43 = vrot.slane %v6995_v19, %v36579_v42  ;;  %v6807_v17 = vcombine.high %v6762_v16, %v6794_v51  ;;  %v6802_v58 = vcombine.low %v6746_v38, %v6778_v8  ;;  %v6801_v15 = vrot.slane %v6787_v7, %v27438_v56 }
 0x36e   : > { %v6993_v24 = vrot.slane %v6979_v26, %v36579_v42  ;;  %v6890_v40 = vcombine.low %v6825_v59, %v6841_v62  ;;  %v6977_v28 = vrot.slane %v6963_v18, %v36579_v42  ;;  %v6769_v5 = vrot.slane %v6755_v39, %v27438_v56 }
 0x36f   : > { %7199 = vperm.xlu0 %26455, %v7077_v46   ;;  %7189 = vperm.xlu1 %26454, %v7076_v32   ;;  %v6739_v63 = vcombine.high %v6682_v2, %v6698_v48  ;;  %v6961_v13 = vrot.slane %v6947_v14, %v36579_v42  ;;  %v6930_v25 = vrot.slane %v6922_v31, %v27438_v56 }
 0x370   : > { %v6809_v53 = vcombine.high %v6769_v5, %v6801_v15  ;;  %v6803_v52 = vcombine.high %v6746_v38, %v6778_v8  ;;  %v6785_v19 = vrot.slane %v6771_v20, %v27438_v56  ;;  %v7058_v61 = vcombine.low %v6993_v24, %v7009_v43 }
 0x371   : > { %v6898_v7 = vrot.slane %v6890_v40, %v27438_v56  ;;  %v6753_v46 = vrot.slane %v6739_v63, %v27438_v56  ;;  %v7026_v32 = vcombine.low %v6961_v13, %v6977_v28  ;;  %v6923_v2 = vcombine.high %v6857_v33, %v6873_v49 }
 0x372   : > { %v7066_v48 = vrot.slane %v7058_v61, %v27438_v56  ;;  %v6891_v8 = vcombine.high %v6825_v59, %v6841_v62  ;;  %v7059_v20 = vcombine.high %v6993_v24, %v7009_v43  ;;  %v6806_v63 = vcombine.low %v6762_v16, %v6794_v51  ;;  %v36793_v61 = vld [vmem:[#allocation63_spill] sm:$0xff] }
 0x373   : > { %7139 = vperm.xlu0 %26455, %v6807_v17   ;;  %7089 = vperm.xlu1 %26454, %v6802_v58   ;;  %v6943_v26 = vcombine.high %v6898_v7, %v6930_v25  ;;  %v6804_v18 = vcombine.low %v6753_v46, %v6785_v19  ;;  %v7034_v39 = vrot.slane %v7026_v32, %v27438_v56  ;;  %v36795_v32 = vld [vmem:[#allocation5_spill] sm:$0xff] }
 0x374   : > { %v6805_v14 = vcombine.high %v6753_v46, %v6785_v19  ;;  %v6937_v31 = vrot.slane %v6923_v2, %v27438_v56  ;;  %v6905_v17 = vrot.slane %v6891_v8, %v27438_v56  ;;  %v7027_v58 = vcombine.high %v6961_v13, %v6977_v28  ;;  %v36789_v28 = vld [vmem:[#allocation45_spill] sm:$0xff]  ;;  %v36790_v13 = vld [vmem:[#allocation27_spill] sm:$0xff]  ;;  %v36794_v46 = vld [vmem:[#allocation10_spill] sm:$0xff] }
 0x375   : > { %v7079_v38 = vcombine.high %v7034_v39, %v7066_v48  ;;  %v6808_v62 = vcombine.low %v6769_v5, %v6801_v15  ;;  %v6942_v59 = vcombine.low %v6898_v7, %v6930_v25  ;;  %v7078_v43 = vcombine.low %v7034_v39, %v7066_v48  ;;  %v36788_v15 = vld [vmem:[#allocation44_spill] sm:$0xff]  ;;  %v36791_v25 = vld [vmem:[#allocation33_spill] sm:$0xff] }
 0x376   : > { %v6945_v40 = vcombine.high %v6905_v17, %v6937_v31  ;;  %v7041_v49 = vrot.slane %v7027_v58, %v27438_v56  ;;  %v6944_v24 = vcombine.low %v6905_v17, %v6937_v31  ;;  %v2419_v5 = vcombine.high %v36789_v28, %v36788_v15  ;;  %v36792_v19 = vld [vmem:[#allocation13_spill] sm:$0xff]  ;;  %v36798_v39 = vld [vmem:[#allocation76_spill] sm:$0xff]  ;;  %v36801_v31 = vld [vmem:[#allocation74_spill] sm:$0xff] }
 0x377   : > { %7159 = vperm.xlu0 %26455, %v6809_v53   ;;  %7099 = vperm.xlu1 %26454, %v6803_v52   ;;  %v7073_v53 = vrot.slane %v7059_v20, %v27438_v56  ;;  %v2435_v52 = vcombine.high %v36791_v25, %v36790_v13  ;;  %v2451_v7 = vcombine.high %v36793_v61, %v36792_v19  ;;  %v36797_v48 = vld [vmem:[#allocation17_spill] sm:$0xff] }
 0x378   : > { %v36799_v8 = vld [vmem:[#allocation21_spill] sm:$0xff] }
 0x379   : > { %v7081_v33 = vcombine.high %v7041_v49, %v7073_v53  ;;  %v7080_v51 = vcombine.low %v7041_v49, %v7073_v53  ;;  %v2449_v53 = vrot.slane %v2435_v52, %v36579_v42  ;;  %v2465_v49 = vrot.slane %v2451_v7, %v36579_v42 }
 0x37b   : > { %7214 = vperm.xlu0 %26455, %v6943_v26   ;;  %7109 = vperm.xlu1 %26454, %v6804_v18   ;;  %v2539_v26 = vcombine.high %v36795_v32, %v36794_v46  ;;  %v36796_v18 = vld [vmem:[#allocation24_spill] sm:$0xff] }
 0x37c   : > { %v2555_v2 = vcombine.high %v36797_v48, %v36796_v18 }
 0x37f   : > { %7219 = vperm.xlu0 %26455, %v7079_v38   ;;  %7119 = vperm.xlu1 %26454, %v6805_v14   ;;  %v2571_v38 = vcombine.high %v36799_v8, %v36798_v39  ;;  %v36800_v14 = vld [vmem:[#allocation78_spill] sm:$0xff] }
 0x380   : > { %v2587_v20 = vcombine.high %v36801_v31, %v36800_v14 }
 0x383   : > { %7234 = vperm.xlu0 %26455, %v6945_v40   ;;  %7129 = vperm.xlu1 %26454, %v6806_v63   ;;  %v2433_v63 = vrot.slane %v2419_v5, %v36579_v42  ;;  %v36805_v5 = vld [vmem:[#allocation28_spill] sm:$0xff] }
 0x387   : > { %7239 = vperm.xlu0 %26455, %v7081_v33   ;;  %7149 = vperm.xlu1 %26454, %v6808_v62   ;;  %v36802_v33 = vld [vmem:[#allocation30_spill] sm:$0xff] }
 0x38b   : > { %7345 = vperm.xlu0 %26455, %v29449_v6   ;;  %7204 = vperm.xlu1 %26454, %v6942_v59   ;;  %v36781_v6 = vld [vmem:[#allocation118_spill] sm:$0xff]  ;;  %v2553_v59 = vrot.slane %v2539_v26, %v36579_v42  ;;  %v2515_v26 = vcombine.high %v2449_v53, %v2465_v49 }
 0x38f   : > { %7355 = vperm.xlu0 %26455, %v29452_v9   ;;  %7209 = vperm.xlu1 %26454, %v7078_v43   ;;  %v36783_v9 = vld [vmem:[#allocation119_spill] sm:$0xff]  ;;  %v2569_v43 = vrot.slane %v2555_v2, %v36579_v42 }
 0x393   : > { %7365 = vperm.xlu0 %26455, %v29455_v36   ;;  %7224 = vperm.xlu1 %26454, %v6944_v24   ;;  %v2585_v24 = vrot.slane %v2571_v38, %v36579_v42 }
 0x397   : > { %7375 = vperm.xlu0 %26455, %v29439_v21   ;;  %7229 = vperm.xlu1 %26454, %v7080_v51   ;;  %v36780_v21 = vld [vmem:[#allocation117_spill] sm:$0xff]  ;;  %v2601_v51 = vrot.slane %v2587_v20, %v36579_v42  ;;  %v36806_v20 = vld [vmem:[#allocation79_spill] sm:$0xff] }
 0x39b   : > { %7385 = vperm.xlu0 %26455, %v29467_v60   ;;  %7340 = vperm.xlu1 %26454, %v29501_v22  }
 0x39f   : > { %7395 = vperm.xlu0 %26455, %v29493_v3   ;;  %7350 = vperm.xlu1 %26454, %v29504_v29   ;;  %v36782_v3 = vld [vmem:[#allocation116_spill] sm:$0xff] }
 0x3a0   : > { %v36784_v29 = vld [vmem:[#allocation16_spill] sm:$0xff] }
 0x3a3   : > { %7405 = vperm.xlu0 %26455, %v29470_v44   ;;  %7360 = vperm.xlu1 %26454, %v29507_v47  }
 0x3a7   : > { %7415 = vperm.xlu0 %26455, %v29498_v12   ;;  %7370 = vperm.xlu1 %26454, %v29486_v11  }
 0x3ab   : > { %7425 = vperm.xlu0 %26455, %v29658_v0   ;;  %7380 = vperm.xlu1 %26454, %v36780_v21  }
 0x3af   : > { %7435 = vperm.xlu0 %26455, %v29650_v35   ;;  %7390 = vperm.xlu1 %26454, %v36781_v6  }
 0x3b3   : > { %7445 = vperm.xlu0 %26455, %v29647_v1   ;;  %7400 = vperm.xlu1 %26454, %v36782_v3   ;;  %v36803_v3 = vld [vmem:[#allocation14_spill] sm:$0xff] }
 0x3b7   : > { %7455 = vperm.xlu0 %26455, %v29638_v55   ;;  %7410 = vperm.xlu1 %26454, %v36783_v9   ;;  %v36785_v55 = vld [vmem:[#allocation41_spill] sm:$0xff] }
 0x3bb   : > { %7465 = vperm.xlu0 %26455, %v29662_v57   ;;  %7420 = vperm.xlu1 %26454, %v29705_v45   ;;  %v36787_v45 = vld [vmem:[#allocation55_spill] sm:$0xff] }
 0x3bf   : > { %7475 = vperm.xlu0 %26455, %v29683_v34   ;;  %7430 = vperm.xlu1 %26454, %v29698_v54   ;;  %v36786_v54 = vld [vmem:[#allocation40_spill] sm:$0xff] }
 0x3c0   : > { %v2403_v16 = vcombine.high %v36787_v45, %v36786_v54 }
 0x3c2   : > { %v2417_v40 = vrot.slane %v2403_v16, %v36579_v42 }
 0x3c3   : > { %7485 = vperm.xlu0 %26455, %v29654_v23   ;;  %7440 = vperm.xlu1 %26454, %v29689_v30  }
 0x3c4   : > { %v2483_v7 = vcombine.high %v2417_v40, %v2433_v63 }
 0x3c6   : > { %v29799_v11 = vpop.permute.xlu0 %7174  ;;  %v29801_v36 = vpop.permute.xlu1 %7164 }
 0x3c7   : > { %7495 = vperm.xlu0 %26455, %v29685_v4   ;;  %7450 = vperm.xlu1 %26454, %v29681_v50  }
 0x3ca   : > { %v29805_v60 = vpop.permute.xlu0 %7194  ;;  %v29807_v44 = vpop.permute.xlu1 %7184 }
 0x3cb   : > { %7460 = vperm.xlu1 %26454, %v29692_v10  }
 0x3ce   : > { %v7085_v12 = vpop.permute.xlu0 %7084  ;;  %v7095_v22 = vpop.permute.xlu1 %7094 }
 0x3cf   : > { %v7242_v47 = vsub.f32 %v36784_v29, %v7085_v12  ;;  %v7244_v1 = vsub.f32 %v36785_v55, %v7095_v22  ;;  %7470 = vperm.xlu1 %26454, %v29677_v27   ;;  %v2482_v12 = vcombine.low %v2417_v40, %v2433_v63  ;;  %v36804_v29 = vld [vmem:[#allocation59_spill] sm:$0xff] }
 0x3d1   : > { %v7274_v35 = vmul.f32 1.442695, %v7242_v47  ;;  %v7278_v23 = vmul.f32 1.442695, %v7244_v1  ;;  %v2514_v1 = vcombine.low %v2449_v53, %v2465_v49  ;;  %v29870_v2 = vrot.slane %v2482_v12, %v27438_v56  ;;  %v36808_v49 = vld [vmem:[#allocation20_spill] sm:$0xff]  ;;  %v36809_v12 = vld [vmem:[#allocation43_spill] sm:$0xff] }
 0x3d2   : > { %v7105_v0 = vpop.permute.xlu1 %7104  ;;  %v29823_v27 = vpop.permute.xlu0 %7134  ;;  %v2619_v53 = vcombine.high %v2553_v59, %v2569_v43 }
 0x3d3   : > { %26456 = vpow2.f32 %v7274_v35  ;;  %7480 = vperm.xlu1 %26454, %v29672_v41   ;;  %v7246_v62 = vsub.f32 %v36802_v33, %v7105_v0  ;;  %v2618_v35 = vcombine.low %v2553_v59, %v2569_v43  ;;  %v36811_v43 = vld [vmem:[#allocation89_spill] sm:$0xff] }
 0x3d4   : > { %26458 = vpow2.f32 %v7278_v23  ;;  %v2650_v23 = vcombine.low %v2585_v24, %v2601_v51 }
 0x3d5   : > { %v7282_v22 = vmul.f32 1.442695, %v7246_v62  ;;  %v36807_v62 = vld [vmem:[#allocation85_spill] sm:$0xff]  ;;  %v29881_v40 = vrot.slane %v2618_v35, %v27438_v56 }
 0x3d6   : > { %v7115_v57 = vpop.permute.xlu1 %7114  ;;  %v29825_v30 = vpop.permute.xlu0 %7154  ;;  %v29884_v63 = vrot.slane %v2650_v23, %v27438_v56 }
 0x3d7   : > { %7490 = vperm.xlu1 %26454, %v29666_v37   ;;  %v7248_v47 = vsub.f32 %v36804_v29, %v7115_v57  ;;  %v29878_v29 = vrot.slane %v2514_v1, %v27438_v56  ;;  %v36810_v1 = vld [vmem:[#allocation67_spill] sm:$0xff] }
 0x3d8   : > { %v7252_v35 = vsub.f32 %v36810_v1, %v29823_v27  ;;  %v36816_v1 = vld [vmem:[#allocation80_spill] sm:$0xff] }
 0x3d9   : > { %v7286_v38 = vmul.f32 1.442695, %v7248_v47  ;;  %v2651_v47 = vcombine.high %v2585_v24, %v2601_v51  ;;  %v2534_v51 = vcombine.low %v29870_v2, %v29878_v29 }
 0x3da   : > { %v7125_v4 = vpop.permute.xlu1 %7124 }
 0x3db   : > { %v7250_v33 = vsub.f32 %v36806_v20, %v7125_v4  ;;  %v7258_v4 = vsub.f32 %v36808_v49, %v29801_v36  ;;  %v7264_v36 = vsub.f32 %v36811_v43, %v29805_v60  ;;  %v2535_v60 = vcombine.high %v29870_v2, %v29878_v29 }
 0x3dd   : > { %v29815_v50 = vpop.eup %26456  ;;  %v7290_v23 = vmul.f32 1.442695, %v7250_v33  ;;  %v29909_v33 = vrot.slane %v2619_v53, %v27438_v56  ;;  %v7318_v53 = vmul.f32 1.442695, %v7264_v36 }
 0x3de   : > { %v29817_v34 = vpop.eup %26458  ;;  %24944 = vmatprep.mubr.msk.f32.mxu0 %vm530_vm0, %v29815_v50  ;;  %v29827_v41 = vpop.permute.xlu1 %7144 }
 0x3df   : > { %24951 = vmatprep.mubr.msk.f32.mxu1 %vm530_vm0, %v29817_v34 }
 0x3ea   : > { %v29829_v10 = vpop.permute.xlu0 %7179  ;;  %v29831_v37 = vpop.permute.xlu1 %7169 }
 0x3ee   : > { %v29849_v17 = vpop.permute.xlu0 %7199  ;;  %v29851_v58 = vpop.permute.xlu1 %7189 }
 0x3f2   : > { %v29862_v21 = vpop.permute.xlu0 %7139  ;;  %v7090_v6 = vpop.permute.xlu1 %7089 }
 0x3f3   : > { %v7243_v9 = vsub.f32 %v36803_v3, %v7090_v6  ;;  %v7260_v6 = vsub.f32 %v36807_v62, %v29799_v11  ;;  %v29890_v11 = vrot.slane %v2483_v7, %v27438_v56  ;;  %v7306_v7 = vmul.f32 1.442695, %v7258_v4 }
 0x3f4   : > { %v29916_v62 = vrot.slane %v2651_v47, %v27438_v56 }
 0x3f5   : > { %v7276_v55 = vmul.f32 1.442695, %v7243_v9  ;;  %v7310_v59 = vmul.f32 1.442695, %v7260_v6  ;;  %v7294_v6 = vmul.f32 1.442695, %v7252_v35 }
 0x3f6   : > { %v29866_v0 = vpop.permute.xlu0 %7159  ;;  %v7100_v16 = vpop.permute.xlu1 %7099  ;;  %v36817_v35 = vld [vmem:[#allocation69_spill] sm:$0xff] }
 0x3f7   : > { %v7245_v52 = vsub.f32 %v36805_v5, %v7100_v16  ;;  %26460 = vpow2.f32 %v7276_v55  ;;  %v29893_v55 = vrot.slane %v2515_v26, %v27438_v56  ;;  %v36812_v26 = vld [vmem:[#allocation54_spill] sm:$0xff] }
 0x3f8   : > { %26462 = vpow2.f32 %v7282_v22  ;;  %v7253_v27 = vsub.f32 %v36812_v26, %v29862_v21 }
 0x3f9   : > { %v7280_v57 = vmul.f32 1.442695, %v7245_v52  ;;  %v2670_v52 = vcombine.low %v29881_v40, %v29884_v63 }
 0x3fa   : > { %v29875_v3 = vpop.permute.xlu0 %7214  ;;  %v7110_v9 = vpop.permute.xlu1 %7109  ;;  %v7296_v47 = vmul.f32 1.442695, %v7253_v27 }
 0x3fb   : > { %v7247_v22 = vsub.f32 %v36809_v12, %v7110_v9  ;;  %26464 = vpow2.f32 %v7280_v57  ;;  %v2671_v57 = vcombine.high %v29881_v40, %v29884_v63  ;;  %v36814_v9 = vld [vmem:[#allocation81_spill] sm:$0xff]  ;;  %v25988_v40 = vpack.c.bf16 %v2670_v52, %v2534_v51  ;;  %v36820_v52 = vld [vmem:[#allocation84_spill] sm:$0xff] }
 0x3fc   : > { %26466 = vpow2.f32 %v7286_v38  ;;  %v36813_v38 = vld [vmem:[#allocation57_spill] sm:$0xff]  ;;  %v7256_v49 = vsub.f32 %v36814_v9, %v29825_v30  ;;  %v7257_v30 = vsub.f32 %v36816_v1, %v29866_v0 }
 0x3fd   : > { %v7284_v16 = vmul.f32 1.442695, %v7247_v22  ;;  %v36815_v12 = vld [vmem:[#allocation93_spill] sm:$0xff] }
 0x3fe   : > { %v29899_v5 = vpop.permute.xlu0 %7219  ;;  %v7120_v24 = vpop.permute.xlu1 %7119  ;;  %v7254_v22 = vsub.f32 %v36815_v12, %v29827_v41  ;;  %v2536_v41 = vcombine.low %v29890_v11, %v29893_v55  ;;  %v7302_v36 = vmul.f32 1.442695, %v7256_v49  ;;  %v25992_v49 = vpack.c.bf16 %v2671_v57, %v2535_v60  ;;  %v36825_v57 = vld [vmem:[#allocation35_spill] sm:$0xff] }
 0x3ff   : > { %v7249_v20 = vsub.f32 %v36813_v38, %v7120_v24  ;;  %26468 = vpow2.f32 %v7284_v16  ;;  %v36818_v16 = vld [vmem:[#allocation49_spill] sm:$0xff]  ;;  %v2672_v38 = vcombine.low %v29909_v33, %v29916_v62 }
 0x400   : > { %26470 = vpow2.f32 %v7290_v23  ;;  %v7298_v51 = vmul.f32 1.442695, %v7254_v22  ;;  %v36824_v22 = vld [vmem:[#allocation88_spill] sm:$0xff] }
 0x401   : > { %v7288_v21 = vmul.f32 1.442695, %v7249_v20  ;;  %v29920_v4 = vpop.eup %26460  ;;  %26472 = vpow2.f32 %v7310_v59  ;;  %v36819_v59 = vld [vmem:[#allocation23_spill] sm:$0xff] }
 0x402   : > { %v29924_v2 = vpop.permute.xlu0 %7234  ;;  %v7130_v29 = vpop.permute.xlu1 %7129  ;;  %26474 = vpow2.f32 %v7306_v7  ;;  %24945 = vmatmul.mubr.msk.f32.vlgmr.msra.gmra.mrb[88].mxu0 %vm530_vm0, %v29920_v4  ;;  %v7262_v43 = vsub.f32 %v36819_v59, %v29807_v44  ;;  %v7261_v7 = vsub.f32 %v36820_v52, %v29829_v10  ;;  %v7304_v44 = vmul.f32 1.442695, %v7257_v30  ;;  %v36823_v10 = vld [vmem:[#allocation22_spill] sm:$0xff]  ;;  %v36826_v59 = vld [vmem:[#allocation53_spill] sm:$0xff] }
 0x403   : > { %v29926_v63 = vpop.eup %26462  ;;  %v7251_v23 = vsub.f32 %v36817_v35, %v7130_v29  ;;  %26476 = vpow2.f32 %v7288_v21  ;;  %25983 = vmatpush3.bf16.msra.mxu0 %v36818_v16  ;;  %v36822_v21 = vld [vmem:[#allocation12_spill] sm:$0xff]  ;;  %v7265_v29 = vsub.f32 %v36824_v22, %v29849_v17  ;;  %v25996_v17 = vpack.c.bf16 %v2672_v38, %v2536_v41  ;;  %v36828_v41 = vld [vmem:[#allocation94_spill] sm:$0xff] }
 0x404   : > { %24958 = vmatprep.mubr.msk.f32.mxu0 %vm530_vm0, %v29926_v63  ;;  %26478 = vpow2.f32 %v7294_v6  ;;  %25989 = vmatprep.subr.bf16.mxu0 %v25988_v40  ;;  %v36821_v6 = vld [vmem:[#allocation90_spill] sm:$0xff]  ;;  %v7314_v12 = vmul.f32 1.442695, %v7262_v43  ;;  %v7312_v60 = vmul.f32 1.442695, %v7261_v7  ;;  %v7269_v7 = vsub.f32 %v36828_v41, %v29899_v5 }
 0x405   : > { %v7292_v0 = vmul.f32 1.442695, %v7251_v23  ;;  %v29940_v24 = vpop.eup %26464  ;;  %26480 = vpow2.f32 %v7318_v53  ;;  %v7259_v53 = vsub.f32 %v36822_v21, %v29831_v37  ;;  %v7263_v37 = vsub.f32 %v36825_v57, %v29851_v58  ;;  %v36829_v38 = vld [vmem:[#allocation62_spill] sm:$0xff] }
 0x406   : > { %v29944_v26 = vpop.permute.xlu0 %7239  ;;  %v7150_v27 = vpop.permute.xlu1 %7149  ;;  %26482 = vpow2.f32 %v7296_v47  ;;  %24952 = vmatmul.mubr.msk.f32.vlgmr.msra.gmra.mrb[72].mxu1 %vm530_vm0, %v29940_v24  ;;  %v2537_v23 = vcombine.high %v29890_v11, %v29893_v55  ;;  %v7320_v55 = vmul.f32 1.442695, %v7265_v29 }
 0x407   : > { %v29948_v20 = vpop.eup %26466  ;;  %v7255_v9 = vsub.f32 %v36821_v6, %v7150_v27  ;;  %26484 = vpow2.f32 %v7292_v0  ;;  %25987 = vmatpush3.bf16.msra.mxu1 %v36823_v10  ;;  %v7308_v58 = vmul.f32 1.442695, %v7259_v53 }
 0x408   : > { %24965 = vmatprep.mubr.msk.f32.mxu1 %vm530_vm0, %v29948_v20  ;;  %26486 = vpow2.f32 %v7302_v36  ;;  %25993 = vmatprep.subr.bf16.mxu1 %v25992_v49  ;;  %v2673_v36 = vcombine.high %v29909_v33, %v29916_v62  ;;  %v7316_v62 = vmul.f32 1.442695, %v7263_v37 }
 0x409   : > { %v7300_v47 = vmul.f32 1.442695, %v7255_v9  ;;  %v29960_v1 = vpop.eup %26468  ;;  %26488 = vpow2.f32 %v7298_v51  ;;  %v36827_v51 = vld [vmem:[#allocation95_spill] sm:$0xff]  ;;  %v36830_v9 = vld [vmem:[#allocation100_spill] sm:$0xff] }
 0x40a   : > { %v7346_v30 = vpop.permute.xlu0 %7345  ;;  %v7205_v35 = vpop.permute.xlu1 %7204  ;;  %26490 = vpow2.f32 %v7304_v44  ;;  %24959 = vmatmul.mubr.msk.f32.vlgmr.msra.gmra.mrb[90].mxu0 %vm530_vm0, %v29960_v1  ;;  %v7268_v52 = vsub.f32 %v36827_v51, %v29875_v3  ;;  %v26000_v53 = vpack.c.bf16 %v2673_v36, %v2537_v23 }
 0x40b   : > { %v29966_v16 = vpop.eup %26470  ;;  %v7499_v43 = vsub.f32 %v36826_v59, %v7346_v30  ;;  %26492 = vpow2.f32 %v7300_v47  ;;  %25991 = vmatpush3.bf16.msra.mxu0 %v25988_v40  ;;  %v7266_v3 = vsub.f32 %v36829_v38, %v7205_v35  ;;  %v7328_v47 = vmul.f32 1.442695, %v7269_v7 }
 0x40c   : > { %v29973_v0 = vpop.eup %26472  ;;  %24972 = vmatprep.mubr.msk.f32.mxu0 %vm530_vm0, %v29966_v16  ;;  %26494 = vpow2.f32 %v7314_v12  ;;  %25997 = vmatprep.subr.bf16.mxu0 %v25996_v17  ;;  %v7326_v10 = vmul.f32 1.442695, %v7268_v52  ;;  %v36831_v12 = vld [vmem:[#allocation25_spill] sm:$0xff] }
 0x40d   : > { %v29979_v11 = vpop.eup %26474  ;;  %v7532_v27 = vmul.f32 1.442695, %v7499_v43  ;;  %26496 = vpow2.f32 %v7312_v60  ;;  %v7322_v37 = vmul.f32 1.442695, %v7266_v3  ;;  %v36834_v43 = vld [vmem:[#allocation37_spill] sm:$0xff]  ;;  %v36838_v3 = vld [vmem:[#allocation50_spill] sm:$0xff] }
 0x40e   : > { %v29983_v33 = vpop.eup %26476  ;;  %v7356_v44 = vpop.permute.xlu0 %7355 }
 0x40f   : > { %v7210_v40 = vpop.permute.xlu1 %7209  ;;  %v29986_v6 = vpop.eup %26478  ;;  %26498 = vpow2.f32 %v7532_v27  ;;  %v7501_v21 = vsub.f32 %v36830_v9, %v7356_v44  ;;  %24966 = vmatmul.mubr.msk.f32.vlgmr.msra.gmra.mrb[74].mxu1 %vm530_vm0, %v29983_v33 }
 0x410   : > { %v29991_v5 = vpop.eup %26480  ;;  %26500 = vpow2.f32 %v7308_v58  ;;  %25995 = vmatpush3.bf16.msra.mxu1 %v25992_v49  ;;  %v7267_v22 = vsub.f32 %v36831_v12, %v7210_v40  ;;  %24979 = vmatprep.mubr.msk.f32.mxu1 %vm530_vm0, %v29986_v6  ;;  %v36833_v49 = vld [vmem:[#allocation99_spill] sm:$0xff]  ;;  %v36835_v58 = vld [vmem:[#allocation46_spill] sm:$0xff] }
 0x411   : > { %v29996_v29 = vpop.eup %26482  ;;  %26502 = vpow2.f32 %v7320_v55  ;;  %v7536_v60 = vmul.f32 1.442695, %v7501_v21  ;;  %26001 = vmatprep.subr.bf16.mxu1 %v26000_v53  ;;  %v7272_v59 = vsub.f32 %v36833_v49, %v29924_v2 }
 0x412   : > { %v29998_v57 = vpop.eup %26484  ;;  %26504 = vpow2.f32 %v7316_v62  ;;  %v7366_v30 = vpop.permute.xlu0 %7365  ;;  %v7324_v55 = vmul.f32 1.442695, %v7267_v22  ;;  %v36837_v62 = vld [vmem:[#allocation98_spill] sm:$0xff] }
 0x413   : > { %36832 = vst [vmem:[#allocation117_spill] sm:$0xff] %v29998_v57  ;;  %v7225_v35 = vpop.permute.xlu1 %7224  ;;  %v30000_v23 = vpop.eup %26486  ;;  %26506 = vpow2.f32 %v7536_v60  ;;  %v7503_v36 = vsub.f32 %v36834_v43, %v7366_v30  ;;  %24973 = vmatmul.mubr.msk.f32.vlgmr.msra.gmra.mrb[92].mxu0 %vm530_vm0, %v29998_v57  ;;  %24980 = vmatmul.mubr.msk.f32.vlgmr.msra.gmra.mrb[76].mxu1 %vm530_vm0, %v29996_v29  ;;  %v7273_v38 = vsub.f32 %v36837_v62, %v29944_v26  ;;  %v7334_v21 = vmul.f32 1.442695, %v7272_v59  ;;  %v36842_v30 = vld [vmem:[#allocation38_spill] sm:$0xff] }
 0x414   : > { %v7270_v51 = vsub.f32 %v36835_v58, %v7225_v35  ;;  %v30010_v52 = vpop.eup %26488  ;;  %26508 = vpow2.f32 %v7326_v10  ;;  %25999 = vmatpush3.bf16.msra.mxu0 %v25996_v17  ;;  %26003 = vmatpush3.bf16.msra.mxu1 %v26000_v53  ;;  %v36839_v17 = vld [vmem:[#allocation61_spill] sm:$0xff]  ;;  %v36840_v53 = vld [vmem:[#allocation32_spill] sm:$0xff] }
 0x415   : > { %v30012_v41 = vpop.eup %26490  ;;  %26510 = vpow2.f32 %v7328_v47  ;;  %v7540_v2 = vmul.f32 1.442695, %v7503_v36  ;;  %24986 = vmatprep.mubr.msk.f32.mxu0 %vm530_vm0, %v30010_v52  ;;  %24993 = vmatprep.mubr.msk.f32.mxu1 %vm530_vm0, %v30000_v23  ;;  %v7336_v60 = vmul.f32 1.442695, %v7273_v38  ;;  %v36843_v36 = vld [vmem:[#allocation70_spill] sm:$0xff] }
 0x416   : > { %v7330_v7 = vmul.f32 1.442695, %v7270_v51  ;;  %v30018_v27 = vpop.eup %26492  ;;  %26512 = vpow2.f32 %v7322_v37  ;;  %26005 = vmatprep.subr.bf16.mxu0 %v36838_v3  ;;  %26009 = vmatprep.subr.bf16.mxu1 %v36839_v17  ;;  %v30024_v44 = vpop.permute.xlu0 %7375  ;;  %v36841_v37 = vld [vmem:[#allocation51_spill] sm:$0xff]  ;;  %v36844_v51 = vld [vmem:[#allocation60_spill] sm:$0xff] }
 0x417   : > { %36836 = vst [vmem:[#allocation118_spill] sm:$0xff] %v30018_v27  ;;  %v7230_v40 = vpop.permute.xlu1 %7229  ;;  %v30026_v9 = vpop.eup %26494  ;;  %26514 = vpow2.f32 %v7540_v2  ;;  %24987 = vmatmul.mubr.msk.f32.vlgmr.msra.gmra.mrb[94].mxu0 %vm530_vm0, %v30018_v27  ;;  %24994 = vmatmul.mubr.msk.f32.vlgmr.msra.gmra.mrb[78].mxu1 %vm530_vm0, %v30012_v41  ;;  %v36854_v27 = vld [vmem:[#allocation104_spill] sm:$0xff] }
 0x418   : > { %v7271_v26 = vsub.f32 %v36840_v53, %v7230_v40  ;;  %v30033_v10 = vpop.eup %26496  ;;  %26516 = vpow2.f32 %v7324_v55  ;;  %26007 = vmatpush3.bf16.msra.mxu0 %v36838_v3  ;;  %26011 = vmatpush3.bf16.msra.mxu1 %v36839_v17  ;;  %v36845_v17 = vld [vmem:[#allocation42_spill] sm:$0xff] }
 0x419   : > { %v30037_v12 = vpop.eup %26498  ;;  %26518 = vpow2.f32 %v7330_v7  ;;  %25000 = vmatprep.mubr.msk.f32.mxu0 %vm530_vm0, %v29979_v11  ;;  %25007 = vmatprep.mubr.msk.f32.mxu1 %vm530_vm0, %v29973_v0 }
 0x41a   : > { %v7332_v22 = vmul.f32 1.442695, %v7271_v26  ;;  %v30043_v47 = vpop.eup %26500  ;;  %26013 = vmatprep.subr.bf16.mxu0 %v36841_v37  ;;  %26017 = vmatprep.subr.bf16.mxu1 %v36842_v30  ;;  %v7386_v35 = vpop.permute.xlu0 %7385  ;;  %v8237_v59 = vsel %vm530_vm0, %v30037_v12, 0.0  ;;  %26520 = vpow2.f32 %v7334_v21 }
 0x41b   : > { %v7341_v49 = vpop.permute.xlu1 %7340  ;;  %v30049_v43 = vpop.eup %26502  ;;  %v7507_v58 = vsub.f32 %v36843_v36, %v7386_v35  ;;  %25001 = vmatmul.mubr.msk.f32.vlgmr.msra.gmra.mrb[96].mxu0 %vm530_vm0, %v30043_v47  ;;  %25008 = vmatmul.mubr.msk.f32.vlgmr.msra.gmra.mrb[80].mxu1 %vm530_vm0, %v30033_v10 }
 0x41c   : > { %v7498_v55 = vsub.f32 %v36844_v51, %v7341_v49  ;;  %v30057_v2 = vpop.eup %26504  ;;  %26522 = vpow2.f32 %v7332_v22  ;;  %26015 = vmatpush3.bf16.msra.mxu0 %v36841_v37  ;;  %26019 = vmatpush3.bf16.msra.mxu1 %v36842_v30  ;;  %v36846_v22 = vld [vmem:[#allocation6_spill] sm:$0xff]  ;;  %v36847_v37 = vld [vmem:[#allocation101_spill] sm:$0xff] }
 0x41d   : > { %v30061_v7 = vpop.eup %26506  ;;  %v7548_v62 = vmul.f32 1.442695, %v7507_v58  ;;  %8238 = vadd.xlane.f32.xlu1 %v8237_v59  ;;  %25014 = vmatprep.mubr.msk.f32.mxu0 %vm530_vm0, %v30026_v9  ;;  %26524 = vpow2.f32 %v7336_v60  ;;  %v36848_v49 = vld [vmem:[#allocation102_spill] sm:$0xff] }
 0x41e   : > { %v7530_v38 = vmul.f32 1.442695, %v7498_v55  ;;  %v30065_v3 = vpop.eup %26508  ;;  %25021 = vmatprep.mubr.msk.f32.mxu1 %vm530_vm0, %v29991_v5  ;;  %26021 = vmatprep.subr.bf16.mxu0 %v36845_v17  ;;  %v7396_v40 = vpop.permute.xlu0 %7395  ;;  %v8243_v53 = vsel %vm530_vm0, %v30061_v7, 0.0  ;;  %v7505_v59 = vsub.f32 %v36848_v49, %v30024_v44  ;;  %v36851_v44 = vld [vmem:[#allocation66_spill] sm:$0xff] }
 0x41f   : > { %v7351_v21 = vpop.permute.xlu1 %7350  ;;  %v30072_v26 = vpop.eup %26510  ;;  %26526 = vpow2.f32 %v7548_v62  ;;  %26025 = vmatprep.subr.bf16.mxu1 %v36846_v22  ;;  %25015 = vmatmul.mubr.msk.f32.vlgmr.msra.gmra.mrb[98].mxu0 %vm530_vm0, %v30057_v2 }
 0x420   : > { %v7500_v60 = vsub.f32 %v36847_v37, %v7351_v21  ;;  %v30078_v30 = vpop.eup %26512  ;;  %26528 = vpow2.f32 %v7530_v38  ;;  %25022 = vmatmul.mubr.msk.f32.vlgmr.msra.gmra.mrb[82].mxu1 %vm530_vm0, %v30049_v43  ;;  %26023 = vmatpush3.bf16.msra.mxu0 %v36845_v17  ;;  %v36849_v38 = vld [vmem:[#allocation65_spill] sm:$0xff]  ;;  %v36850_v17 = vld [vmem:[#allocation72_spill] sm:$0xff]  ;;  %v7544_v42 = vmul.f32 1.442695, %v7505_v59 }
 0x421   : > { %v30083_v35 = vpop.eup %26514  ;;  %26027 = vmatpush3.bf16.msra.mxu1 %v36846_v22  ;;  %8244 = vadd.xlane.f32.xlu1 %v8243_v53  ;;  %v36852_v22 = vld [vmem:[#allocation68_spill] sm:$0xff] }
 0x422   : > { %v7534_v36 = vmul.f32 1.442695, %v7500_v60  ;;  %v30088_v58 = vpop.eup %26516  ;;  %25028 = vmatprep.mubr.msk.f32.mxu0 %vm530_vm0, %v30078_v30  ;;  %25035 = vmatprep.mubr.msk.f32.mxu1 %vm530_vm0, %v30065_v3  ;;  %v7406_v51 = vpop.permute.xlu0 %7405  ;;  %v8249_v37 = vsel %vm530_vm0, %v30083_v35, 0.0  ;;  %v36853_v60 = vld [vmem:[#allocation48_spill] sm:$0xff] }
 0x423   : > { %v7361_v55 = vpop.permute.xlu1 %7360  ;;  %v30094_v62 = vpop.eup %26518  ;;  %26029 = vmatprep.subr.bf16.mxu0 %v36849_v38  ;;  %26033 = vmatprep.subr.bf16.mxu1 %v36850_v17  ;;  %v7511_v21 = vsub.f32 %v36851_v44, %v7406_v51  ;;  %v26036_v49 = vpack.c.bf16 %v36853_v60, %v36787_v45  ;;  %v7509_v51 = vsub.f32 %v36854_v27, %v7396_v40  ;;  %v36856_v27 = vld [vmem:[#allocation103_spill] sm:$0xff] }
 0x424   : > { %v7502_v53 = vsub.f32 %v36852_v22, %v7361_v55  ;;  %26530 = vpow2.f32 %v7534_v36  ;;  %25029 = vmatmul.mubr.msk.f32.vlgmr.msra.gmra.mrb[100].mxu0 %vm530_vm0, %v30088_v58  ;;  %25036 = vmatmul.mubr.msk.f32.vlgmr.msra.gmra.mrb[84].mxu1 %vm530_vm0, %v30072_v26  ;;  %v30108_v56 = vpop.eup %26520  ;;  %v36855_v22 = vld [vmem:[#allocation47_spill] sm:$0xff] }
 0x425   : > { %v7556_v44 = vmul.f32 1.442695, %v7511_v21  ;;  %26031 = vmatpush3.bf16.msra.mxu0 %v36849_v38  ;;  %26035 = vmatpush3.bf16.msra.mxu1 %v36850_v17  ;;  %v26040_v45 = vpack.c.bf16 %v36855_v22, %v36789_v28  ;;  %v36857_v38 = vld [vmem:[#allocation52_spill] sm:$0xff]  ;;  %v36858_v28 = vld [vmem:[#allocation39_spill] sm:$0xff] }
 0x426   : > { %v7538_v36 = vmul.f32 1.442695, %v7502_v53  ;;  %v30113_v55 = vpop.eup %26522  ;;  %8250 = vadd.xlane.f32.xlu1 %v8249_v37  ;;  %25042 = vmatprep.mubr.msk.f32.mxu0 %vm530_vm0, %v30094_v62  ;;  %v7416_v60 = vpop.permute.xlu0 %7415  ;;  %v26044_v17 = vpack.c.bf16 %v36857_v38, %v36786_v54  ;;  %v26048_v21 = vpack.c.bf16 %v36858_v28, %v36788_v15  ;;  %v7552_v37 = vmul.f32 1.442695, %v7509_v51 }
 0x427   : > { %v7371_v57 = vpop.permute.xlu1 %7370  ;;  %26532 = vpow2.f32 %v7556_v44  ;;  %25049 = vmatprep.mubr.msk.f32.mxu1 %vm530_vm0, %v30108_v56  ;;  %26037 = vmatprep.subr.bf16.mxu0 %v26036_v49  ;;  %v30122_v59 = vpop.eup %26524  ;;  %v36859_v44 = vld [vmem:[#allocation106_spill] sm:$0xff] }
 0x428   : > { %v7504_v40 = vsub.f32 %v36856_v27, %v7371_v57  ;;  %26534 = vpow2.f32 %v7538_v36  ;;  %26041 = vmatprep.subr.bf16.mxu1 %v26040_v45  ;;  %25043 = vmatmul.mubr.msk.f32.vlgmr.msra.gmra.mrb[102].mxu0 %vm530_vm0, %v30113_v55  ;;  %v7513_v22 = vsub.f32 %v36859_v44, %v7416_v60 }
 0x429   : > { %v30130_v53 = vpop.eup %26526  ;;  %26536 = vpow2.f32 %v7544_v42  ;;  %25050 = vmatmul.mubr.msk.f32.vlgmr.msra.gmra.mrb[86].mxu1 %vm530_vm0, %v30122_v59  ;;  %26039 = vmatpush3.bf16.msra.mxu0 %v26036_v49  ;;  %v36860_v42 = vld [vmem:[#allocation64_spill] sm:$0xff]  ;;  %v36861_v49 = vld [vmem:[#allocation31_spill] sm:$0xff] }
 0x42a   : > { %v7542_v57 = vmul.f32 1.442695, %v7504_v40  ;;  %v26529_v36 = vpop.eup %26528  ;;  %26043 = vmatpush3.bf16.msra.mxu1 %v26040_v45  ;;  %26045 = vmatprep.subr.bf16.mxu0 %v26044_v17  ;;  %v30135_v27 = vpop.permute.xlu0 %7425  ;;  %v8261_v15 = vsel %vm530_vm0, %v30130_v53, 0.0  ;;  %v26052_v45 = vpack.c.bf16 %v36861_v49, %v36791_v25  ;;  %v7560_v40 = vmul.f32 1.442695, %v7513_v22  ;;  %v36863_v25 = vld [vmem:[#allocation34_spill] sm:$0xff] }
 0x42b   : > { %v7381_v54 = vpop.permute.xlu1 %7380  ;;  %26049 = vmatprep.subr.bf16.mxu1 %v26048_v21  ;;  %25056 = vmatprep.mubr.msk.f32.mxu0 %vm530_vm0, %v26529_v36  ;;  %v8234_v60 = vsel %vm530_vm0, %v26529_v36, 0.0 }
 0x42c   : > { %v7506_v51 = vsub.f32 %v36860_v42, %v7381_v54  ;;  %26538 = vpow2.f32 %v7542_v57  ;;  %8262 = vadd.xlane.f32.xlu1 %v8261_v15  ;;  %25057 = vmatmul.mubr.msk.f32.vlgmr.msra.gmra.mrb[104].mxu0 %vm530_vm0, %v30037_v12  ;;  %v36862_v57 = vld [vmem:[#allocation105_spill] sm:$0xff]  ;;  %v26056_v12 = vpack.c.bf16 %v36863_v25, %v36793_v61 }
 0x42d   : > { %26540 = vpow2.f32 %v7552_v37  ;;  %26047 = vmatpush3.bf16.msra.mxu0 %v26044_v17  ;;  %8235 = vadd.xlane.f32.xlu0 %v8234_v60 }
 0x42e   : > { %v7546_v38 = vmul.f32 1.442695, %v7506_v51  ;;  %v30146_v28 = vpop.eup %26530  ;;  %26053 = vmatprep.subr.bf16.mxu0 %v26052_v45  ;;  %v30148_v44 = vpop.permute.xlu0 %7435 }
 0x42f   : > { %v7391_v54 = vpop.permute.xlu1 %7390  ;;  %25063 = vmatprep.mubr.msk.f32.mxu1 %vm530_vm0, %v30146_v28 }
 0x430   : > { %v7508_v36 = vsub.f32 %v36862_v57, %v7391_v54  ;;  %26542 = vpow2.f32 %v7546_v38  ;;  %25064 = vmatmul.mubr.msk.f32.vlgmr.msra.gmra.mrb[88].mxu1 %vm530_vm0, %v30061_v7  ;;  %v36864_v7 = vld [vmem:[#allocation7_spill] sm:$0xff] }
 0x431   : > { %v30157_v17 = vpop.eup %26532  ;;  %26544 = vpow2.f32 %v7560_v40  ;;  %26051 = vmatpush3.bf16.msra.mxu1 %v26048_v21  ;;  %v36865_v21 = vld [vmem:[#allocation29_spill] sm:$0xff] }
 0x432   : > { %v7550_v37 = vmul.f32 1.442695, %v7508_v36  ;;  %v26535_v22 = vpop.eup %26534  ;;  %26057 = vmatprep.subr.bf16.mxu1 %v26056_v12  ;;  %v8273_v42 = vsel %vm530_vm0, %v30157_v17, 0.0  ;;  %v30161_v60 = vpop.permute.xlu0 %7445  ;;  %v26060_v40 = vpack.c.bf16 %v36865_v21, %v36790_v13  ;;  %v36867_v13 = vld [vmem:[#allocation18_spill] sm:$0xff] }
 0x433   : > { %v7401_v15 = vpop.permute.xlu1 %7400  ;;  %v26537_v51 = vpop.eup %26536  ;;  %25070 = vmatprep.mubr.msk.f32.mxu0 %vm530_vm0, %v26535_v22  ;;  %8274 = vadd.xlane.f32.xlu1 %v8273_v42  ;;  %v8246_v61 = vsel %vm530_vm0, %v26535_v22, 0.0 }
 0x434   : > { %v7510_v49 = vsub.f32 %v36864_v7, %v7401_v15  ;;  %26546 = vpow2.f32 %v7550_v37  ;;  %25071 = vmatmul.mubr.msk.f32.vlgmr.msra.gmra.mrb[106].mxu0 %vm530_vm0, %v30083_v35  ;;  %8247 = vadd.xlane.f32.xlu0 %v8246_v61  ;;  %v8255_v36 = vsel %vm530_vm0, %v26537_v51, 0.0  ;;  %v36866_v37 = vld [vmem:[#allocation107_spill] sm:$0xff]  ;;  %v26064_v35 = vpack.c.bf16 %v36867_v13, %v36792_v19 }
 0x435   : > { %26055 = vmatpush3.bf16.msra.mxu0 %v26052_v45  ;;  %v36868_v45 = vld [vmem:[#allocation82_spill] sm:$0xff] }
 0x436   : > { %v7554_v38 = vmul.f32 1.442695, %v7510_v49  ;;  %v30170_v54 = vpop.eup %26538  ;;  %26061 = vmatprep.subr.bf16.mxu0 %v26060_v40  ;;  %v7515_v15 = vsub.f32 %v36868_v45, %v30135_v27  ;;  %v30181_v42 = vpop.permute.xlu0 %7455  ;;  %v36870_v27 = vld [vmem:[#allocation58_spill] sm:$0xff] }
 0x437   : > { %v7411_v57 = vpop.permute.xlu1 %7410  ;;  %v26541_v25 = vpop.eup %26540  ;;  %25077 = vmatprep.mubr.msk.f32.mxu1 %vm530_vm0, %v30170_v54  ;;  %8256 = vadd.xlane.f32.xlu1 %v8255_v36 }
 0x438   : > { %v7512_v22 = vsub.f32 %v36866_v37, %v7411_v57  ;;  %26548 = vpow2.f32 %v7554_v38  ;;  %25078 = vmatmul.mubr.msk.f32.vlgmr.msra.gmra.mrb[90].mxu1 %vm530_vm0, %v26537_v51  ;;  %v8267_v21 = vsel %vm530_vm0, %v26541_v25, 0.0  ;;  %v36869_v38 = vld [vmem:[#allocation83_spill] sm:$0xff]  ;;  %v7564_v36 = vmul.f32 1.442695, %v7515_v15  ;;  %v36871_v37 = vld [vmem:[#allocation108_spill] sm:$0xff]  ;;  %v36874_v15 = vld [vmem:[#allocation86_spill] sm:$0xff] }
 0x439   : > { %26059 = vmatpush3.bf16.msra.mxu1 %v26056_v12  ;;  %v26068_v12 = vpack.c.bf16 %v36870_v27, %v36795_v32  ;;  %v36873_v32 = vld [vmem:[#allocation56_spill] sm:$0xff] }
 0x43a   : > { %v7558_v7 = vmul.f32 1.442695, %v7512_v22  ;;  %v26543_v49 = vpop.eup %26542  ;;  %26065 = vmatprep.subr.bf16.mxu1 %v26064_v35  ;;  %v7517_v22 = vsub.f32 %v36871_v37, %v30148_v44  ;;  %v26072_v44 = vpack.c.bf16 %v36873_v32, %v36797_v48  ;;  %v7648_v37 = vsel %vm530_vm0, %v29973_v0, 0.0 }
 0x43b   : > { %v7421_v61 = vpop.permute.xlu1 %7420  ;;  %v26545_v57 = vpop.eup %26544  ;;  %25084 = vmatprep.mubr.msk.f32.mxu0 %vm530_vm0, %v26543_v49  ;;  %8268 = vadd.xlane.f32.xlu1 %v8267_v21  ;;  %v8258_v19 = vsel %vm530_vm0, %v26543_v49, 0.0  ;;  %v7660_v32 = vsel %vm530_vm0, %v29991_v5, 0.0 }
 0x43c   : > { %v7514_v51 = vsub.f32 %v36869_v38, %v7421_v61  ;;  %26550 = vpow2.f32 %v7558_v7  ;;  %25085 = vmatmul.mubr.msk.f32.vlgmr.msra.gmra.mrb[108].mxu0 %vm530_vm0, %v30130_v53  ;;  %8259 = vadd.xlane.f32.xlu0 %v8258_v19  ;;  %v8279_v49 = vsel %vm530_vm0, %v26545_v57, 0.0  ;;  %v7466_v7 = vpop.permute.xlu0 %7465  ;;  %v36872_v53 = vld [vmem:[#allocation109_spill] sm:$0xff]  ;;  %v7519_v38 = vsub.f32 %v36874_v15, %v30161_v60  ;;  %v36876_v60 = vld [vmem:[#allocation8_spill] sm:$0xff] }
 0x43d   : > { %26063 = vmatpush3.bf16.msra.mxu0 %v26060_v40  ;;  %v7568_v40 = vmul.f32 1.442695, %v7517_v22  ;;  %v36877_v22 = vld [vmem:[#allocation110_spill] sm:$0xff] }
 0x43e   : > { %v7562_v13 = vmul.f32 1.442695, %v7514_v51  ;;  %v30193_v45 = vpop.eup %26546  ;;  %26069 = vmatprep.subr.bf16.mxu0 %v26068_v12  ;;  %v7521_v0 = vsub.f32 %v36877_v22, %v30181_v42  ;;  %v36879_v42 = vld [vmem:[#allocation91_spill] sm:$0xff] }
 0x43f   : > { %v7431_v61 = vpop.permute.xlu1 %7430  ;;  %25091 = vmatprep.mubr.msk.f32.mxu1 %vm530_vm0, %v30193_v45  ;;  %8280 = vadd.xlane.f32.xlu1 %v8279_v49  ;;  %v7523_v15 = vsub.f32 %v36879_v42, %v7466_v7 }
 0x440   : > { %v7516_v21 = vsub.f32 %v36872_v53, %v7431_v61  ;;  %26552 = vpow2.f32 %v7562_v13  ;;  %25092 = vmatmul.mubr.msk.f32.vlgmr.msra.gmra.mrb[92].mxu1 %vm530_vm0, %v26541_v25  ;;  %v36875_v13 = vld [vmem:[#allocation87_spill] sm:$0xff]  ;;  %v7476_v61 = vpop.permute.xlu0 %7475  ;;  %v7576_v5 = vmul.f32 1.442695, %v7521_v0 }
 0x441   : > { %26554 = vpow2.f32 %v7564_v36  ;;  %26067 = vmatpush3.bf16.msra.mxu1 %v26064_v35  ;;  %v26076_v35 = vpack.c.bf16 %v36876_v60, %v36794_v46  ;;  %v7572_v36 = vmul.f32 1.442695, %v7519_v38 }
 0x442   : > { %v7566_v51 = vmul.f32 1.442695, %v7516_v21  ;;  %v26549_v19 = vpop.eup %26548  ;;  %26073 = vmatprep.subr.bf16.mxu1 %v26072_v44 }
 0x443   : > { %v7441_v27 = vpop.permute.xlu1 %7440  ;;  %25098 = vmatprep.mubr.msk.f32.mxu0 %vm530_vm0, %v26549_v19  ;;  %7649 = vadd.xlane.f32.xlu1 %v7648_v37  ;;  %v8270_v48 = vsel %vm530_vm0, %v26549_v19, 0.0 }
 0x444   : > { %v7518_v25 = vsub.f32 %v36875_v13, %v7441_v27  ;;  %26556 = vpow2.f32 %v7566_v51  ;;  %25099 = vmatmul.mubr.msk.f32.vlgmr.msra.gmra.mrb[110].mxu0 %vm530_vm0, %v30157_v17  ;;  %8271 = vadd.xlane.f32.xlu0 %v8270_v48  ;;  %v36878_v17 = vld [vmem:[#allocation111_spill] sm:$0xff]  ;;  %v7486_v7 = vpop.permute.xlu0 %7485 }
 0x445   : > { %26558 = vpow2.f32 %v7568_v40  ;;  %26071 = vmatpush3.bf16.msra.mxu0 %v26068_v12  ;;  %v8240_v40 = vsel %vm530_vm0, %v30146_v28, 0.0  ;;  %v36880_v12 = vld [vmem:[#allocation11_spill] sm:$0xff]  ;;  %v7672_v28 = vsel %vm530_vm0, %v30065_v3, 0.0  ;;  %v36883_v3 = vld [vmem:[#allocation73_spill] sm:$0xff] }
 0x446   : > { %v7570_v49 = vmul.f32 1.442695, %v7518_v25  ;;  %v30215_v53 = vpop.eup %26550  ;;  %26077 = vmatprep.subr.bf16.mxu0 %v26076_v35  ;;  %v26080_v38 = vpack.c.bf16 %v36880_v12, %v36796_v18  ;;  %v8252_v18 = vsel %vm530_vm0, %v30170_v54, 0.0  ;;  %v36882_v25 = vld [vmem:[#allocation112_spill] sm:$0xff]  ;;  %v26084_v60 = vpack.c.bf16 %v36883_v3, %v36799_v8 }
 0x447   : > { %v7451_v21 = vpop.permute.xlu1 %7450  ;;  %25105 = vmatprep.mubr.msk.f32.mxu1 %vm530_vm0, %v30215_v53  ;;  %7661 = vadd.xlane.f32.xlu1 %v7660_v32  ;;  %v7525_v48 = vsub.f32 %v36882_v25, %v7476_v61  ;;  %v7684_v54 = vsel %vm530_vm0, %v30108_v56, 0.0  ;;  %v36884_v61 = vld [vmem:[#allocation113_spill] sm:$0xff]  ;;  %v8264_v8 = vsel %vm530_vm0, %v30193_v45, 0.0  ;;  %v36885_v32 = vld [vmem:[#allocation96_spill] sm:$0xff]  ;;  %v7594_v45 = vsel %vm530_vm0, %v29815_v50, 0.0  ;;  %v36889_v50 = vld [vmem:[#allocation75_spill] sm:$0xff] }
 0x448   : > { %v7520_v46 = vsub.f32 %v36878_v17, %v7451_v21  ;;  %26560 = vpow2.f32 %v7570_v49  ;;  %8241 = vadd.xlane.f32.xlu0 %v8240_v40  ;;  %25106 = vmatmul.mubr.msk.f32.vlgmr.msra.gmra.mrb[94].mxu1 %vm530_vm0, %v26545_v57  ;;  %v36881_v57 = vld [vmem:[#allocation92_spill] sm:$0xff]  ;;  %v7527_v17 = vsub.f32 %v36885_v32, %v7486_v7  ;;  %v7496_v40 = vpop.permute.xlu0 %7495 }
 0x449   : > { %26562 = vpow2.f32 %v7572_v36  ;;  %26075 = vmatpush3.bf16.msra.mxu1 %v26072_v44  ;;  %v7580_v44 = vmul.f32 1.442695, %v7523_v15  ;;  %v36886_v56 = vld [vmem:[#allocation36_spill] sm:$0xff] }
 0x44a   : > { %v7574_v51 = vmul.f32 1.442695, %v7520_v46  ;;  %v30228_v19 = vpop.eup %26552  ;;  %26081 = vmatprep.subr.bf16.mxu1 %v26080_v38  ;;  %v26088_v46 = vpack.c.bf16 %v36886_v56, %v36801_v31  ;;  %v8276_v31 = vsel %vm530_vm0, %v30215_v53, 0.0  ;;  %v7612_v53 = vsel %vm530_vm0, %v29948_v20, 0.0  ;;  %v36891_v20 = vld [vmem:[#allocation77_spill] sm:$0xff] }
 0x44b   : > { %v7461_v27 = vpop.permute.xlu1 %7460  ;;  %v30232_v37 = vpop.eup %26554  ;;  %25112 = vmatprep.mubr.msk.f32.mxu0 %vm530_vm0, %v30228_v19  ;;  %7673 = vadd.xlane.f32.xlu1 %v7672_v28  ;;  %v36888_v28 = vld [vmem:[#allocation114_spill] sm:$0xff] }
 0x44c   : > { %v7522_v13 = vsub.f32 %v36881_v57, %v7461_v27  ;;  %26564 = vpow2.f32 %v7574_v51  ;;  %8253 = vadd.xlane.f32.xlu0 %v8252_v18  ;;  %25113 = vmatmul.mubr.msk.f32.vlgmr.msra.gmra.mrb[112].mxu0 %vm530_vm0, %v30232_v37  ;;  %v36887_v51 = vld [vmem:[#allocation97_spill] sm:$0xff]  ;;  %v7529_v7 = vsub.f32 %v36888_v28, %v7496_v40  ;;  %v26092_v57 = vpack.c.bf16 %v36889_v50, %v36798_v39 }
 0x44d   : > { %26566 = vpow2.f32 %v7576_v5  ;;  %26079 = vmatpush3.bf16.msra.mxu0 %v26076_v35  ;;  %v7584_v35 = vmul.f32 1.442695, %v7525_v48  ;;  %v36890_v48 = vld [vmem:[#allocation115_spill] sm:$0xff]  ;;  %v7642_v39 = vsel %vm530_vm0, %v29979_v11, 0.0  ;;  %v7624_v11 = vsel %vm530_vm0, %v29986_v6, 0.0 }
 0x44e   : > { %v7578_v36 = vmul.f32 1.442695, %v7522_v13  ;;  %v30244_v22 = vpop.eup %26556  ;;  %26085 = vmatprep.subr.bf16.mxu0 %v26084_v60  ;;  %v7636_v6 = vsel %vm530_vm0, %v30000_v23, 0.0  ;;  %v7678_v23 = vsel %vm530_vm0, %v30094_v62, 0.0  ;;  %v7675_v62 = vsel %vm530_vm0, %v30072_v26, 0.0 }
 0x44f   : > { %v7471_v0 = vpop.permute.xlu1 %7470  ;;  %v30248_v49 = vpop.eup %26558  ;;  %25119 = vmatprep.mubr.msk.f32.mxu1 %vm530_vm0, %v30244_v22  ;;  %7685 = vadd.xlane.f32.xlu1 %v7684_v54  ;;  %v7606_v40 = vsel %vm530_vm0, %v29926_v63, 0.0  ;;  %v7630_v26 = vsel %vm530_vm0, %v30010_v52, 0.0  ;;  %v7615_v63 = vsel %vm530_vm0, %v29983_v33, 0.0  ;;  %v8285_v52 = vsel %vm530_vm0, %v30232_v37, 0.0 }
 0x450   : > { %26568 = vpow2.f32 %v7578_v36  ;;  %v7524_v21 = vsub.f32 %v36884_v61, %v7471_v0  ;;  %8265 = vadd.xlane.f32.xlu0 %v8264_v8  ;;  %25120 = vmatmul.mubr.msk.f32.vlgmr.msra.gmra.mrb[96].mxu1 %vm530_vm0, %v30248_v49  ;;  %v26096_v36 = vpack.c.bf16 %v36891_v20, %v36800_v14  ;;  %v7669_v33 = vsel %vm530_vm0, %v30088_v58, 0.0 }
 0x451   : > { %26570 = vpow2.f32 %v7580_v44  ;;  %26083 = vmatpush3.bf16.msra.mxu1 %v26080_v38  ;;  %v7588_v38 = vmul.f32 1.442695, %v7527_v17  ;;  %v7651_v17 = vsel %vm530_vm0, %v30033_v10, 0.0  ;;  %v7600_v10 = vsel %vm530_vm0, %v29817_v34, 0.0 }
 0x452   : > { %v7582_v42 = vmul.f32 1.442695, %v7524_v21  ;;  %v30260_v15 = vpop.eup %26560  ;;  %26089 = vmatprep.subr.bf16.mxu1 %v26088_v46  ;;  %v7654_v21 = vsel %vm530_vm0, %v30026_v9, 0.0  ;;  %v7666_v9 = vsel %vm530_vm0, %v30078_v30, 0.0  ;;  %v7603_v34 = vsel %vm530_vm0, %v29940_v24, 0.0 }
 0x453   : > { %v7481_v12 = vpop.permute.xlu1 %7480  ;;  %v30264_v5 = vpop.eup %26562  ;;  %25126 = vmatprep.mubr.msk.f32.mxu0 %vm530_vm0, %v30260_v15  ;;  %7595 = vadd.xlane.f32.xlu1 %v7594_v45  ;;  %v7657_v24 = vsel %vm530_vm0, %v30057_v2, 0.0  ;;  %v8291_v2 = vsel %vm530_vm0, %v30248_v49, 0.0  ;;  %v7597_v37 = vsel %vm530_vm0, %v29920_v4, 0.0  ;;  %v36893_v45 = vld [vmem:[#allocation118_spill] sm:$0xff]  ;;  %v8294_v28 = vsel %vm530_vm0, %v30260_v15, 0.0 }
 0x454   : > { %26572 = vpow2.f32 %v7582_v42  ;;  %v7526_v27 = vsub.f32 %v36887_v51, %v7481_v12  ;;  %8277 = vadd.xlane.f32.xlu0 %v8276_v31  ;;  %25127 = vmatmul.mubr.msk.f32.vlgmr.msra.gmra.mrb[114].mxu0 %vm530_vm0, %v30264_v5  ;;  %v7687_v42 = vsel %vm530_vm0, %v30122_v59, 0.0  ;;  %v7645_v59 = vsel %vm530_vm0, %v30043_v47, 0.0  ;;  %v36892_v12 = vld [vmem:[#allocation117_spill] sm:$0xff] }
 0x455   : > { %26574 = vpow2.f32 %v7584_v35  ;;  %26087 = vmatpush3.bf16.msra.mxu0 %v26084_v60  ;;  %v7592_v60 = vmul.f32 1.442695, %v7529_v7  ;;  %v7639_v47 = vsel %vm530_vm0, %v30012_v41, 0.0  ;;  %v8297_v58 = vsel %vm530_vm0, %v30264_v5, 0.0 }
 0x456   : > { %v7586_v13 = vmul.f32 1.442695, %v7526_v27  ;;  %v30276_v18 = vpop.eup %26564  ;;  %26093 = vmatprep.subr.bf16.mxu0 %v26092_v57  ;;  %v7609_v41 = vsel %vm530_vm0, %v29960_v1, 0.0  ;;  %v7621_v49 = vsel %vm530_vm0, %v36892_v12, 0.0  ;;  %v7633_v5 = vsel %vm530_vm0, %v36893_v45, 0.0 }
 0x457   : > { %v7491_v44 = vpop.permute.xlu1 %7490  ;;  %v30280_v25 = vpop.eup %26566  ;;  %25133 = vmatprep.mubr.msk.f32.mxu1 %vm530_vm0, %v30276_v18  ;;  %7613 = vadd.xlane.f32.xlu1 %v7612_v53  ;;  %v8282_v51 = vsel %vm530_vm0, %v30228_v19, 0.0  ;;  %v8288_v31 = vsel %vm530_vm0, %v30244_v22, 0.0  ;;  %v8300_v7 = vsel %vm530_vm0, %v30276_v18, 0.0 }
 0x458   : > { %26576 = vpow2.f32 %v7586_v13  ;;  %v7528_v3 = vsub.f32 %v36890_v48, %v7491_v44  ;;  %7643 = vadd.xlane.f32.xlu0 %v7642_v39  ;;  %25134 = vmatmul.mubr.msk.f32.vlgmr.msra.gmra.mrb[98].mxu1 %vm530_vm0, %v30280_v25 }
 0x459   : > { %26578 = vpow2.f32 %v7588_v38  ;;  %26091 = vmatpush3.bf16.msra.mxu1 %v26088_v46  ;;  %v7663_v46 = vsel %vm530_vm0, %v30049_v43, 0.0  ;;  %v7618_v43 = vsel %vm530_vm0, %v29966_v16, 0.0  ;;  %v7627_v16 = vsel %vm530_vm0, %v29996_v29, 0.0 }
 0x45a   : > { %v30291_v0 = vpop.eup %26568  ;;  %v7590_v54 = vmul.f32 1.442695, %v7528_v3  ;;  %26097 = vmatprep.subr.bf16.mxu1 %v26096_v36  ;;  %v7681_v29 = vsel %vm530_vm0, %v30113_v55, 0.0  ;;  %v8303_v55 = vsel %vm530_vm0, %v30280_v25, 0.0 }
 0x45b   : > { %v30293_v61 = vpop.eup %26570  ;;  %25140 = vmatprep.mubr.msk.f32.mxu0 %vm530_vm0, %v30291_v0  ;;  %7625 = vadd.xlane.f32.xlu1 %v7624_v11  ;;  %v8306_v19 = vsel %vm530_vm0, %v30291_v0, 0.0 }
 0x45c   : > { %26580 = vpow2.f32 %v7590_v54  ;;  %25141 = vmatmul.mubr.msk.f32.vlgmr.msra.gmra.mrb[116].mxu0 %vm530_vm0, %v30293_v61  ;;  %7655 = vadd.xlane.f32.xlu0 %v7654_v21  ;;  %v8309_v4 = vsel %vm530_vm0, %v30293_v61, 0.0 }
 0x45d   : > { %26582 = vpow2.f32 %v7592_v60  ;;  %26095 = vmatpush3.bf16.msra.mxu0 %v26092_v57 }
 0x45e   : > { %v30303_v14 = vpop.eup %26572 }
 0x45f   : > { %v30305_v8 = vpop.eup %26574  ;;  %25147 = vmatprep.mubr.msk.f32.mxu1 %vm530_vm0, %v30303_v14  ;;  %7637 = vadd.xlane.f32.xlu1 %v7636_v6  ;;  %v8312_v50 = vsel %vm530_vm0, %v30303_v14, 0.0 }
 0x460   : > { %25148 = vmatmul.mubr.msk.f32.vlgmr.msra.gmra.mrb[100].mxu1 %vm530_vm0, %v30305_v8  ;;  %7667 = vadd.xlane.f32.xlu0 %v7666_v9  ;;  %v8315_v1 = vsel %vm530_vm0, %v30305_v8, 0.0 }
 0x461   : > { %26099 = vmatpush3.bf16.msra.mxu1 %v26096_v36 }
 0x462   : > { %v30315_v35 = vpop.eup %26576 }
 0x463   : > { %v30317_v32 = vpop.eup %26578  ;;  %25154 = vmatprep.mubr.msk.f32.mxu0 %vm530_vm0, %v30315_v35  ;;  %7652 = vadd.xlane.f32.xlu1 %v7651_v17  ;;  %v8318_v57 = vsel %vm530_vm0, %v30315_v35, 0.0 }
 0x464   : > { %25155 = vmatmul.mubr.msk.f32.vlgmr.msra.gmra.mrb[118].mxu0 %vm530_vm0, %v30317_v32  ;;  %7679 = vadd.xlane.f32.xlu0 %v7678_v23  ;;  %v8321_v27 = vsel %vm530_vm0, %v30317_v32, 0.0 }
 0x466   : > { %v30327_v30 = vpop.eup %26580 }
 0x467   : > { %v26583_v56 = vpop.eup %26582  ;;  %25161 = vmatprep.mubr.msk.f32.mxu1 %vm530_vm0, %v30327_v30  ;;  %7664 = vadd.xlane.f32.xlu1 %v7663_v46  ;;  %v8324_v13 = vsel %vm530_vm0, %v30327_v30, 0.0 }
 0x468   : > { %25162 = vmatmul.mubr.msk.f32.vlgmr.msra.gmra.mrb[102].mxu1 %vm530_vm0, %v26583_v56  ;;  %7601 = vadd.xlane.f32.xlu0 %v7600_v10  ;;  %v8327_v38 = vsel %vm530_vm0, %v26583_v56, 0.0 }
 0x46b   : > { %7676 = vadd.xlane.f32.xlu1 %v7675_v62 }
 0x46c   : > { %7607 = vadd.xlane.f32.xlu0 %v7606_v40 }
 0x46f   : > { %7688 = vadd.xlane.f32.xlu1 %v7687_v42 }
 0x470   : > { %7619 = vadd.xlane.f32.xlu0 %v7618_v43 }
 0x473   : > { %7604 = vadd.xlane.f32.xlu1 %v7603_v34 }
 0x474   : > { %7631 = vadd.xlane.f32.xlu0 %v7630_v26 }
 0x477   : > { %7616 = vadd.xlane.f32.xlu1 %v7615_v63 }
 0x478   : > { %7646 = vadd.xlane.f32.xlu0 %v7645_v59 }
 0x47b   : > { %7628 = vadd.xlane.f32.xlu1 %v7627_v16 }
 0x47c   : > { %7658 = vadd.xlane.f32.xlu0 %v7657_v24  ;;  %v36898_v24 = vld [vmem:[#allocation9_spill] sm:$0xff] }
 0x47f   : > { %8286 = vadd.xlane.f32.xlu1 %v8285_v52 }
 0x480   : > { %7670 = vadd.xlane.f32.xlu0 %v7669_v33 }
 0x483   : > { %7640 = vadd.xlane.f32.xlu1 %v7639_v47 }
 0x484   : > { %7682 = vadd.xlane.f32.xlu0 %v7681_v29 }
 0x487   : > { %8292 = vadd.xlane.f32.xlu1 %v8291_v2 }
 0x488   : > { %7598 = vadd.xlane.f32.xlu0 %v7597_v37 }
 0x48b   : > { %8298 = vadd.xlane.f32.xlu1 %v8297_v58 }
 0x48c   : > { %7610 = vadd.xlane.f32.xlu0 %v7609_v41 }
 0x48f   : > { %8304 = vadd.xlane.f32.xlu1 %v8303_v55 }
 0x490   : > { %7622 = vadd.xlane.f32.xlu0 %v7621_v49 }
 0x493   : > { %8310 = vadd.xlane.f32.xlu1 %v8309_v4 }
 0x494   : > { %7634 = vadd.xlane.f32.xlu0 %v7633_v5 }
 0x497   : > { %8316 = vadd.xlane.f32.xlu1 %v8315_v1 }
 0x498   : > { %8283 = vadd.xlane.f32.xlu0 %v8282_v51 }
 0x49b   : > { %8322 = vadd.xlane.f32.xlu1 %v8321_v27 }
 0x49c   : > { %8289 = vadd.xlane.f32.xlu0 %v8288_v31 }
 0x49f   : > { %8328 = vadd.xlane.f32.xlu1 %v8327_v38 }
 0x4a0   : > { %8295 = vadd.xlane.f32.xlu0 %v8294_v28 }
 0x4a4   : > { %8301 = vadd.xlane.f32.xlu0 %v8300_v7 }
 0x4a8   : > { %8307 = vadd.xlane.f32.xlu0 %v8306_v19 }
 0x4aa   : > { %v30397_v22 = vpop.xlane.xlu1 %8238 }
 0x4ac   : > { %8313 = vadd.xlane.f32.xlu0 %v8312_v50 }
 0x4ae   : > { %v30401_v15 = vpop.xlane.xlu1 %8244 }
 0x4b0   : > { %8319 = vadd.xlane.f32.xlu0 %v8318_v57 }
 0x4b3   : > { %v30405_v18 = vpop.xlane.xlu1 %8250 }
 0x4b4   : > { %8325 = vadd.xlane.f32.xlu0 %v8324_v13 }
 0x4b9   : > { %v30407_v44 = vpop.xlane.xlu1 %8262 }
 0x4ba   : > { %v30413_v48 = vpop.xlane.xlu0 %8235 }
 0x4c0   : > { %v30409_v53 = vpop.xlane.xlu1 %8274 }
 0x4c1   : > { %v30417_v39 = vpop.xlane.xlu0 %8247 }
 0x4c4   : > { %v30411_v25 = vpop.xlane.xlu1 %8256 }
 0x4c8   : > { %v30415_v3 = vpop.xlane.xlu1 %8268 }
 0x4c9   : > { %v30421_v20 = vpop.xlane.xlu0 %8259 }
 0x4ca   : > { %36894 = vst [vmem:[#allocation116_spill] sm:$0xff] %v30421_v20 }
 0x4cc   : > { %v30419_v60 = vpop.xlane.xlu1 %8280 }
 0x4d0   : > { %v30423_v36 = vpop.xlane.xlu1 %7649 }
 0x4d1   : > { %v30425_v0 = vpop.xlane.xlu0 %8271 }
 0x4d2   : > { %36895 = vst [vmem:[#allocation119_spill] sm:$0xff] %v30425_v0 }
 0x4d4   : > { %v30427_v54 = vpop.xlane.xlu1 %7661 }
 0x4d5   : > { %v30429_v61 = vpop.xlane.xlu0 %8241  ;;  %v24946_v11 = vpop.f32.mrb[88].mxu0 }
 0x4d6   : > { %v8466_v21 = vpop.f32.mrb[89].mxu0 }
 0x4d8   : > { %v30431_v14 = vpop.xlane.xlu1 %7673 }
 0x4d9   : > { %v30433_v8 = vpop.xlane.xlu0 %8253  ;;  %v24953_v6 = vpop.f32.mrb[72].mxu1 }
 0x4da   : > { %v8547_v9 = vpop.f32.mrb[73].mxu1 }
 0x4dc   : > { %v30435_v35 = vpop.xlane.xlu1 %7685 }
 0x4dd   : > { %v30437_v32 = vpop.xlane.xlu0 %8265  ;;  %v24960_v17 = vpop.f32.mrb[90].mxu0 }
 0x4de   : > { %36896 = vst [vmem:[#allocation16_spill] sm:$0xff] %v30437_v32  ;;  %v9962_v23 = vcombine.low %v24946_v11, %v24960_v17  ;;  %v9963_v30 = vcombine.high %v24946_v11, %v24960_v17  ;;  %v8628_v56 = vpop.f32.mrb[91].mxu0 }
 0x4df   : > { %v9690_v46 = vcombine.low %v8466_v21, %v8628_v56  ;;  %v9691_v10 = vcombine.high %v8466_v21, %v8628_v56 }
 0x4e0   : > { %v30439_v62 = vpop.xlane.xlu1 %7595  ;;  %v30446_v52 = vrot.slane %v9962_v23, %v36898_v24  ;;  %v30449_v33 = vrot.slane %v9963_v30, %v36898_v24 }
 0x4e1   : > { %v30441_v40 = vpop.xlane.xlu0 %8277  ;;  %v30460_v37 = vrot.slane %v9690_v46, %v36898_v24  ;;  %v30463_v58 = vrot.slane %v9691_v10, %v36898_v24 }
 0x4e2   : > { %36897 = vst [vmem:[#allocation41_spill] sm:$0xff] %v30441_v40  ;;  %v24967_v42 = vpop.f32.mrb[74].mxu1 }
 0x4e3   : > { %v9978_v43 = vcombine.low %v24953_v6, %v24967_v42  ;;  %v9979_v34 = vcombine.high %v24953_v6, %v24967_v42  ;;  %v8709_v26 = vpop.f32.mrb[75].mxu1 }
 0x4e4   : > { %v9706_v63 = vcombine.low %v8547_v9, %v8709_v26  ;;  %v9707_v59 = vcombine.high %v8547_v9, %v8709_v26  ;;  %v30443_v16 = vpop.xlane.xlu1 %7613 }
 0x4e5   : > { %v30452_v47 = vrot.slane %v9978_v43, %v36898_v24  ;;  %v30455_v29 = vrot.slane %v9979_v34, %v36898_v24  ;;  %v30457_v2 = vpop.xlane.xlu0 %7643 }
 0x4e6   : > { %v30466_v41 = vrot.slane %v9706_v63, %v36898_v24  ;;  %v30469_v55 = vrot.slane %v9707_v59, %v36898_v24  ;;  %v24974_v12 = vpop.f32.mrb[92].mxu0  ;;  %v24981_v49 = vpop.f32.mrb[76].mxu1  ;;  %v7842_v59 = vcombine.low %v30423_v36, %v30427_v54 }
 0x4e7   : > { %v8790_v51 = vpop.f32.mrb[93].mxu0  ;;  %v8871_v27 = vpop.f32.mrb[77].mxu1 }
 0x4e8   : > { %v30487_v19 = vpop.xlane.xlu1 %7625  ;;  %v7850_v38 = vrot.slane %v7842_v59, %v36898_v24 }
 0x4e9   : > { %v30489_v50 = vpop.xlane.xlu0 %7655 }
 0x4ea   : > { %v24988_v57 = vpop.f32.mrb[94].mxu0  ;;  %v24995_v13 = vpop.f32.mrb[78].mxu1  ;;  %v7826_v30 = vcombine.low %v30457_v2, %v30489_v50 }
 0x4eb   : > { %v9994_v11 = vcombine.low %v24974_v12, %v24988_v57  ;;  %v9995_v21 = vcombine.high %v24974_v12, %v24988_v57  ;;  %v10010_v6 = vcombine.low %v24981_v49, %v24995_v13  ;;  %v10011_v9 = vcombine.high %v24981_v49, %v24995_v13  ;;  %v8952_v17 = vpop.f32.mrb[95].mxu0  ;;  %v9033_v23 = vpop.f32.mrb[79].mxu1 }
 0x4ec   : > { %v9722_v56 = vcombine.low %v8790_v51, %v8952_v17  ;;  %v9723_v46 = vcombine.high %v8790_v51, %v8952_v17  ;;  %v30505_v63 = vpop.xlane.xlu1 %7637  ;;  %v7874_v17 = vcombine.low %v30431_v14, %v30435_v35  ;;  %v30526_v51 = vrot.slane %v7826_v30, %v36898_v24 }
 0x4ed   : > { %v30494_v10 = vrot.slane %v9994_v11, %v36898_v24  ;;  %v30497_v42 = vrot.slane %v9995_v21, %v36898_v24  ;;  %v30500_v43 = vrot.slane %v10010_v6, %v36898_v24  ;;  %v30503_v34 = vrot.slane %v10011_v9, %v36898_v24  ;;  %v7668_v26 = vpop.xlane.xlu0 %7667 }
 0x4ee   : > { %v25002_v12 = vpop.f32.mrb[96].mxu0  ;;  %v25009_v49 = vpop.f32.mrb[80].mxu1  ;;  %v7843_v9 = vcombine.high %v30423_v36, %v30427_v54  ;;  %v30529_v57 = vrot.slane %v9722_v56, %v36898_v24  ;;  %v30532_v13 = vrot.slane %v9723_v46, %v36898_v24  ;;  %v9738_v11 = vcombine.low %v8871_v27, %v9033_v23 }
 0x4ef   : > { %36899 = vst [vmem:[#allocation40_spill] sm:$0xff] %v30494_v10  ;;  %36900 = vst [vmem:[#allocation55_spill] sm:$0xff] %v30497_v42  ;;  %v30517_v21 = vpop.f32.mrb[97].mxu0  ;;  %v30519_v6 = vpop.f32.mrb[81].mxu1  ;;  %v9739_v7 = vcombine.high %v8871_v27, %v9033_v23  ;;  %v7875_v36 = vcombine.high %v30431_v14, %v30435_v35  ;;  %v7882_v27 = vrot.slane %v7874_v17, %v36898_v24 }
 0x4f0   : > { %36901 = vst [vmem:[#allocation44_spill] sm:$0xff] %v30500_v43  ;;  %36902 = vst [vmem:[#allocation45_spill] sm:$0xff] %v30503_v34  ;;  %v30538_v30 = vrot.slane %v9738_v11, %v36898_v24  ;;  %v7827_v23 = vcombine.high %v30457_v2, %v30489_v50  ;;  %v7890_v14 = vcombine.low %v30526_v51, %v7850_v38 }
 0x4f1   : > { %v7680_v28 = vpop.xlane.xlu0 %7679  ;;  %v30541_v56 = vrot.slane %v9739_v7, %v36898_v24  ;;  %v30565_v50 = vrot.slane %v7843_v9, %v36898_v24  ;;  %v7889_v11 = vrot.slane %v7875_v36, %v36898_v24  ;;  %v36906_v9 = vcombine.high %v30446_v52, %v30452_v47 }
 0x4f2   : > { %v7858_v54 = vcombine.low %v7668_v26, %v7680_v28  ;;  %v7859_v31 = vcombine.high %v7668_v26, %v7680_v28  ;;  %v25016_v1 = vpop.f32.mrb[98].mxu0  ;;  %v7841_v10 = vrot.slane %v7827_v23, %v36898_v24  ;;  %v7891_v40 = vcombine.high %v30526_v51, %v7850_v38 }
 0x4f3   : > { %v10098_v5 = vcombine.low %v25002_v12, %v25016_v1  ;;  %v10099_v46 = vcombine.high %v25002_v12, %v25016_v1  ;;  %v25023_v45 = vpop.f32.mrb[82].mxu1  ;;  %v30543_v4 = vpop.f32.mrb[99].mxu0  ;;  %v36904_v1 = vcombine.low %v30446_v52, %v30452_v47 }
 0x4f4   : > { %v7866_v35 = vrot.slane %v7858_v54, %v36898_v24  ;;  %v30550_v28 = vpop.f32.mrb[83].mxu1  ;;  %v30560_v12 = vpop.xlane.xlu1 %7652  ;;  %v36903_v54 = vld [vmem:[#allocation26_spill] sm:$0xff]  ;;  %v7873_v26 = vrot.slane %v7859_v31, %v36898_v24  ;;  %v10114_v34 = vcombine.low %v25009_v49, %v25023_v45  ;;  %v10115_v59 = vcombine.high %v25009_v49, %v25023_v45 }
 0x4f5   : > { %v30562_v2 = vpop.xlane.xlu0 %7601  ;;  %v30572_v7 = vrot.slane %v36904_v1, %v36903_v54  ;;  %v30583_v36 = vrot.slane %v36906_v9, %v36903_v54  ;;  %v7898_v1 = vrot.slane %v7890_v14, %v36903_v54  ;;  %v30594_v0 = vrot.slane %v10098_v5, %v36898_v24 }
 0x4f6   : > { %v7922_v17 = vcombine.low %v7866_v35, %v7882_v27  ;;  %v7923_v49 = vcombine.high %v7866_v35, %v7882_v27  ;;  %v9826_v52 = vcombine.low %v30517_v21, %v30543_v4  ;;  %v9827_v47 = vcombine.high %v30517_v21, %v30543_v4 }
 0x4f7   : > { %36905 = vst [vmem:[#allocation27_spill] sm:$0xff] %v30572_v7  ;;  %v30575_v42 = vpop.f32.mrb[100].mxu0  ;;  %v30577_v43 = vpop.f32.mrb[84].mxu1  ;;  %36907 = vst [vmem:[#allocation33_spill] sm:$0xff] %v30583_v36  ;;  %v30603_v51 = vrot.slane %v10099_v46, %v36898_v24  ;;  %v30606_v14 = vrot.slane %v10114_v34, %v36898_v24  ;;  %v30609_v27 = vrot.slane %v10115_v59, %v36898_v24 }
 0x4f8   : > { %v7930_v31 = vrot.slane %v7922_v17, %v36903_v54  ;;  %v30589_v7 = vpop.f32.mrb[101].mxu0  ;;  %v30591_v45 = vpop.f32.mrb[85].mxu1  ;;  %36908 = vst [vmem:[#allocation13_spill] sm:$0xff] %v30594_v0  ;;  %v7938_v5 = vcombine.low %v7873_v26, %v7889_v11  ;;  %v7939_v35 = vcombine.high %v7873_v26, %v7889_v11  ;;  %v36912_v4 = vcombine.low %v30449_v33, %v30455_v29 }
 0x4f9   : > { %v30600_v23 = vpop.xlane.xlu0 %7607  ;;  %36909 = vst [vmem:[#allocation63_spill] sm:$0xff] %v30603_v51  ;;  %36910 = vst [vmem:[#allocation10_spill] sm:$0xff] %v30606_v14  ;;  %v30611_v17 = vpop.xlane.xlu1 %7664  ;;  %v36914_v34 = vcombine.high %v30449_v33, %v30455_v29  ;;  %v7906_v59 = vcombine.low %v7841_v10, %v30565_v50  ;;  %v7907_v26 = vcombine.high %v7841_v10, %v30565_v50 }
 0x4fa   : > { %v7954_v38 = vcombine.low %v7898_v1, %v7930_v31  ;;  %36911 = vst [vmem:[#allocation5_spill] sm:$0xff] %v30609_v27  ;;  %v30619_v21 = vrot.slane %v36912_v4, %v36903_v54  ;;  %v36916_v4 = vcombine.low %v30460_v37, %v30466_v41  ;;  %v7905_v33 = vrot.slane %v7891_v40, %v36903_v54 }
 0x4fb   : > { %v30613_v9 = vpop.f32.mrb[102].mxu0  ;;  %v30625_v46 = vrot.slane %v36914_v34, %v36903_v54  ;;  %v7738_v29 = vcombine.low %v30487_v19, %v30505_v63  ;;  %v7739_v10 = vcombine.high %v30487_v19, %v30505_v63  ;;  %v7953_v19 = vrot.slane %v7939_v35, %v36903_v54 }
 0x4fc   : > { %36913 = vst [vmem:[#allocation24_spill] sm:$0xff] %v30619_v21  ;;  %v8331_v11 = vadd.f32 %v30397_v22, %v7954_v38  ;;  %v30630_v36 = vpop.f32.mrb[86].mxu1  ;;  %v30632_v32 = vpop.f32.mrb[103].mxu0  ;;  %v30638_v21 = vrot.slane %v36916_v4, %v36903_v54  ;;  %v7937_v22 = vrot.slane %v7923_v49, %v36903_v54  ;;  %v7955_v63 = vcombine.high %v7898_v1, %v7930_v31 }
 0x4fd   : > { %36915 = vst [vmem:[#allocation17_spill] sm:$0xff] %v30625_v46  ;;  %v30646_v50 = vpop.f32.mrb[87].mxu1  ;;  %v30648_v38 = vpop.xlane.xlu0 %7619  ;;  %v7946_v46 = vrot.slane %v7938_v5, %v36903_v54  ;;  %v30666_v34 = vrot.slane %v9827_v47, %v36898_v24  ;;  %v9842_v4 = vcombine.low %v30519_v6, %v30550_v28  ;;  %v9843_v5 = vcombine.high %v30519_v6, %v30550_v28 }
 0x4fe   : > { %26584 = vrcp.f32 %v8331_v11  ;;  %v30663_v11 = vrot.slane %v9826_v52, %v36898_v24  ;;  %v7914_v1 = vrot.slane %v7906_v59, %v36903_v54  ;;  %v7956_v31 = vcombine.low %v7905_v33, %v7937_v22  ;;  %v30675_v49 = vpop.xlane.xlu1 %7676 }
 0x4ff   : > { %v30660_v20 = vpop.f32.mrb[104].mxu0  ;;  %v7957_v35 = vcombine.high %v7905_v33, %v7937_v22  ;;  %v36917_v52 = vcombine.high %v30460_v37, %v30466_v41  ;;  %v7921_v51 = vrot.slane %v7907_v26, %v36903_v54  ;;  %v30687_v6 = vrot.slane %v7738_v29, %v36898_v24 }
 0x500   : > { %v30672_v40 = vpop.f32.mrb[105].mxu0  ;;  %v30690_v28 = vrot.slane %v9842_v4, %v36898_v24  ;;  %v30693_v59 = vrot.slane %v9843_v5, %v36898_v24  ;;  %v30696_v33 = vrot.slane %v7739_v10, %v36898_v24  ;;  %v7958_v22 = vcombine.low %v7914_v1, %v7946_v46 }
 0x501   : > { %v30677_v27 = vpop.xlane.xlu0 %7631  ;;  %v30683_v47 = vrot.slane %v36917_v52, %v36903_v54  ;;  %v7959_v14 = vcombine.high %v7914_v1, %v7946_v46  ;;  %v8333_v37 = vadd.f32 %v30401_v15, %v7955_v63  ;;  %v7960_v52 = vcombine.low %v7921_v51, %v7953_v19 }
 0x502   : > { %v7961_v10 = vcombine.high %v7921_v51, %v7953_v19  ;;  %v8335_v0 = vadd.f32 %v30405_v18, %v7956_v31  ;;  %v8337_v46 = vadd.f32 %v30411_v25, %v7957_v35  ;;  %v10130_v1 = vcombine.low %v30575_v42, %v30613_v9  ;;  %v30728_v31 = vpop.xlane.xlu1 %7688 }
 0x503   : > { %v30699_v41 = vpop.f32.mrb[88].mxu1  ;;  %v10131_v29 = vcombine.high %v30575_v42, %v30613_v9  ;;  %v10146_v4 = vcombine.low %v30577_v43, %v30630_v36  ;;  %v10147_v51 = vcombine.high %v30577_v43, %v30630_v36  ;;  %v8339_v18 = vadd.f32 %v30407_v44, %v7958_v22 }
 0x504   : > { %v30707_v5 = vpop.f32.mrb[89].mxu1  ;;  %26586 = vrcp.f32 %v8333_v37  ;;  %v9858_v25 = vcombine.low %v30589_v7, %v30632_v32  ;;  %v9859_v19 = vcombine.high %v30589_v7, %v30632_v32  ;;  %v30733_v9 = vrot.slane %v10130_v1, %v36898_v24 }
 0x505   : > { %v30713_v63 = vpop.xlane.xlu0 %7646  ;;  %v30736_v15 = vrot.slane %v10131_v29, %v36898_v24  ;;  %v30739_v44 = vrot.slane %v10146_v4, %v36898_v24  ;;  %v30742_v43 = vrot.slane %v10147_v51, %v36898_v24  ;;  %v8341_v32 = vadd.f32 %v30415_v3, %v7959_v14 }
 0x506   : > { %36918 = vst [vmem:[#allocation76_spill] sm:$0xff] %v30733_v9  ;;  %v30748_v7 = vadd.f32 %v30409_v53, %v7960_v52  ;;  %26588 = vrcp.f32 %v8335_v0  ;;  %v7690_v22 = vcombine.low %v30439_v62, %v30600_v23  ;;  %v30763_v3 = vadd.f32 %v30419_v60, %v7961_v10 }
 0x507   : > { %v30730_v35 = vpop.f32.mrb[106].mxu0  ;;  %36919 = vst [vmem:[#allocation21_spill] sm:$0xff] %v30736_v15  ;;  %36920 = vst [vmem:[#allocation78_spill] sm:$0xff] %v30739_v44  ;;  %26590 = vrcp.f32 %v8337_v46  ;;  %v7706_v0 = vcombine.low %v30562_v2, %v30443_v16  ;;  %v7707_v14 = vcombine.high %v30562_v2, %v30443_v16  ;;  %v9866_v51 = vrot.slane %v9858_v25, %v36898_v24 }
 0x508   : > { %v26585_v42 = vpop.eup %26584  ;;  %36921 = vst [vmem:[#allocation74_spill] sm:$0xff] %v30742_v43  ;;  %v30744_v36 = vpop.f32.mrb[107].mxu0  ;;  %v9874_v53 = vcombine.low %v30591_v45, %v30646_v50  ;;  %v9875_v60 = vcombine.high %v30591_v45, %v30646_v50  ;;  %26592 = vrcp.f32 %v8339_v18  ;;  %v8114_v46 = vcombine.low %v30560_v12, %v30611_v17 }
 0x509   : > { %v30752_v37 = vpop.xlane.xlu0 %7658  ;;  %11569 = vperm.xlu1 %26454, %v26585_v42   ;;  %v30773_v42 = vrot.slane %v9859_v19, %v36898_v24  ;;  %v7698_v16 = vrot.slane %v7690_v22, %v36898_v24  ;;  %v36922_v2 = vcombine.low %v30529_v57, %v30538_v30  ;;  %v30788_v19 = vpop.xlane.xlu1 %7604  ;;  %v7722_v50 = vcombine.low %v30648_v38, %v30677_v27 }
 0x50a   : > { %v9882_v4 = vrot.slane %v9874_v53, %v36898_v24  ;;  %v30794_v45 = vrot.slane %v9875_v60, %v36898_v24  ;;  %v7723_v18 = vcombine.high %v30648_v38, %v30677_v27  ;;  %v7714_v22 = vrot.slane %v7706_v0, %v36898_v24 }
 0x50b   : > { %v30769_v52 = vpop.f32.mrb[90].mxu1  ;;  %v9794_v25 = vrot.slane %v36922_v2, %v36903_v54  ;;  %v7691_v2 = vcombine.high %v30439_v62, %v30600_v23  ;;  %v7730_v23 = vrot.slane %v7722_v50, %v36898_v24  ;;  %26594 = vrcp.f32 %v8341_v32 }
 0x50c   : > { %v30779_v10 = vpop.f32.mrb[91].mxu1  ;;  %v9922_v53 = vcombine.low %v9866_v51, %v9882_v4  ;;  %v9923_v60 = vcombine.high %v9866_v51, %v9882_v4  ;;  %v7754_v0 = vcombine.low %v7698_v16, %v7714_v22  ;;  %v7755_v51 = vcombine.high %v7698_v16, %v7714_v22 }
 0x50d   : > { %v30790_v1 = vpop.xlane.xlu0 %7670  ;;  %v9818_v29 = vcombine.low %v30638_v21, %v9794_v25  ;;  %v9819_v26 = vcombine.high %v30638_v21, %v9794_v25  ;;  %v36926_v25 = vcombine.low %v30663_v11, %v30690_v28  ;;  %v7737_v9 = vrot.slane %v7723_v18, %v36898_v24 }
 0x50e   : > { %v30813_v38 = vpop.eup %26586  ;;  %v9930_v15 = vrot.slane %v9922_v53, %v36903_v54  ;;  %v7721_v50 = vrot.slane %v7707_v14, %v36898_v24  ;;  %v7705_v22 = vrot.slane %v7691_v2, %v36898_v24  ;;  %v7769_v14 = vrot.slane %v7755_v51, %v36903_v54 }
 0x50f   : > { %v30805_v43 = vpop.f32.mrb[108].mxu0  ;;  %36923 = vst [vmem:[#allocation30_spill] sm:$0xff] %v30813_v38  ;;  %v30816_v62 = vadd.f32 %v30672_v40, %v9818_v29  ;;  %v30820_v21 = vadd.f32 %v30707_v5, %v9819_v26  ;;  %v9898_v44 = vrot.slane %v36926_v25, %v36903_v54  ;;  %v8115_v40 = vcombine.high %v30560_v12, %v30611_v17  ;;  %v30836_v29 = vpop.xlane.xlu1 %7616 }
 0x510   : > { %v30811_v27 = vpop.f32.mrb[109].mxu0  ;;  %v30830_v38 = vpop.eup %26588  ;;  %v7786_v26 = vcombine.low %v7730_v23, %v30687_v6  ;;  %v7787_v5 = vcombine.high %v7730_v23, %v30687_v6  ;;  %v30847_v12 = vrot.slane %v8114_v46, %v36898_v24  ;;  %v7762_v17 = vrot.slane %v7754_v0, %v36903_v54 }
 0x511   : > { %36924 = vst [vmem:[#allocation14_spill] sm:$0xff] %v30816_v62  ;;  %36925 = vst [vmem:[#allocation59_spill] sm:$0xff] %v30820_v21  ;;  %v30822_v4 = vpop.xlane.xlu0 %7682  ;;  %v9954_v53 = vcombine.low %v9898_v44, %v9930_v15  ;;  %v9955_v18 = vcombine.high %v9898_v44, %v9930_v15  ;;  %v30844_v32 = vpop.eup %26590  ;;  %v7802_v15 = vcombine.low %v7737_v9, %v30696_v33  ;;  %26596 = vrcp.f32 %v30748_v7 }
 0x512   : > { %36927 = vst [vmem:[#allocation28_spill] sm:$0xff] %v30844_v32  ;;  %v7794_v6 = vrot.slane %v7786_v26, %v36903_v54  ;;  %v7801_v23 = vrot.slane %v7787_v5, %v36903_v54  ;;  %v30862_v46 = vpop.eup %26592  ;;  %v9937_v26 = vrot.slane %v9923_v60, %v36903_v54  ;;  %v36930_v5 = vcombine.high %v30529_v57, %v30538_v30 }
 0x513   : > { %v30838_v16 = vpop.f32.mrb[92].mxu1  ;;  %v30856_v2 = vadd.f32 %v30660_v20, %v9954_v53  ;;  %v30860_v44 = vadd.f32 %v30699_v41, %v9955_v18  ;;  %v30873_v20 = vrot.slane %v8115_v40, %v36898_v24  ;;  %v7770_v41 = vcombine.low %v7705_v22, %v7721_v50 }
 0x514   : > { %v30842_v25 = vpop.f32.mrb[93].mxu1  ;;  %v7818_v62 = vcombine.low %v7762_v17, %v7794_v6  ;;  %v7819_v0 = vcombine.high %v7762_v17, %v7794_v6  ;;  %v9801_v32 = vrot.slane %v36930_v5, %v36903_v54  ;;  %v7820_v53 = vcombine.low %v7769_v14, %v7801_v23  ;;  %v30883_v6 = vpop.xlane.xlu1 %7628 }
 0x515   : > { %v30852_v21 = vpop.xlane.xlu0 %7598  ;;  %36928 = vst [vmem:[#allocation79_spill] sm:$0xff] %v30856_v2  ;;  %36929 = vst [vmem:[#allocation85_spill] sm:$0xff] %v30860_v44  ;;  %v7771_v44 = vcombine.high %v7705_v22, %v7721_v50  ;;  %v36931_v57 = vcombine.high %v30663_v11, %v30690_v28  ;;  %v8146_v40 = vcombine.low %v30675_v49, %v30728_v31 }
 0x516   : > { %v8330_v17 = vadd.f32 %v30413_v48, %v7818_v62  ;;  %v8332_v60 = vadd.f32 %v30429_v61, %v7819_v0  ;;  %v8147_v5 = vcombine.high %v30675_v49, %v30728_v31  ;;  %v7803_v50 = vcombine.high %v7737_v9, %v30696_v33  ;;  %v30900_v49 = vpop.eup %26594 }
 0x517   : > { %v30869_v51 = vpop.f32.mrb[110].mxu0  ;;  %v9905_v30 = vrot.slane %v36931_v57, %v36903_v54  ;;  %v7810_v48 = vrot.slane %v7802_v15, %v36903_v54  ;;  %v7821_v61 = vcombine.high %v7769_v14, %v7801_v23  ;;  %v9820_v11 = vcombine.low %v30683_v47, %v9801_v32 }
 0x518   : > { %v30875_v18 = vpop.f32.mrb[111].mxu0  ;;  %26598 = vrcp.f32 %v8330_v17  ;;  %v8334_v22 = vadd.f32 %v30417_v39, %v7820_v53  ;;  %v9821_v57 = vcombine.high %v30683_v47, %v9801_v32  ;;  %v7778_v33 = vrot.slane %v7770_v41, %v36903_v54 }
 0x519   : > { %v30885_v7 = vpop.xlane.xlu0 %7610  ;;  %v9956_v62 = vcombine.low %v9905_v30, %v9937_v26  ;;  %26600 = vrcp.f32 %v8332_v60  ;;  %v9957_v0 = vcombine.high %v9905_v30, %v9937_v26  ;;  %v30908_v9 = vadd.f32 %v30744_v36, %v9820_v11  ;;  %v30928_v26 = vpop.xlane.xlu1 %8286 }
 0x51a   : > { %26602 = vrcp.f32 %v30763_v3  ;;  %v7785_v39 = vrot.slane %v7771_v44, %v36903_v54  ;;  %v7817_v47 = vrot.slane %v7803_v50, %v36903_v54  ;;  %v30918_v14 = vadd.f32 %v30779_v10, %v9821_v57 }
 0x51b   : > { %v30894_v28 = vpop.f32.mrb[94].mxu1  ;;  %v30905_v31 = vadd.f32 %v30730_v35, %v9956_v62  ;;  %36933 = vst [vmem:[#allocation43_spill] sm:$0xff] %v30908_v9  ;;  %v30915_v32 = vadd.f32 %v30769_v52, %v9957_v0  ;;  %v30921_v3 = vrot.slane %v8146_v40, %v36898_v24  ;;  %v30924_v35 = vrot.slane %v8147_v5, %v36898_v24  ;;  %v30957_v11 = vpop.eup %26596 }
 0x51c   : > { %v30898_v2 = vpop.f32.mrb[95].mxu1  ;;  %36935 = vst [vmem:[#allocation89_spill] sm:$0xff] %v30918_v14  ;;  %v7822_v36 = vcombine.low %v7778_v33, %v7810_v48  ;;  %v7978_v15 = vcombine.low %v30788_v19, %v30836_v29  ;;  %v8336_v52 = vadd.f32 %v30433_v8, %v7821_v61  ;;  %26604 = vrcp.f32 %v8334_v22  ;;  %36940 = vst [vmem:[#allocation54_spill] sm:$0xff] %v30957_v11 }
 0x51d   : > { %36932 = vst [vmem:[#allocation20_spill] sm:$0xff] %v30905_v31  ;;  %v30910_v23 = vpop.xlane.xlu0 %7622  ;;  %36934 = vst [vmem:[#allocation67_spill] sm:$0xff] %v30915_v32  ;;  %v36936_v10 = vcombine.low %v30666_v34, %v30693_v59  ;;  %v36937_v53 = vcombine.low %v30773_v42, %v30794_v45  ;;  %v8098_v30 = vcombine.low %v30713_v63, %v30752_v37 }
 0x51e   : > { %v36938_v8 = vcombine.low %v30463_v58, %v30469_v55  ;;  %v36939_v5 = vcombine.low %v30532_v13, %v30541_v56  ;;  %v8130_v61 = vcombine.low %v30790_v1, %v30822_v4  ;;  %v7823_v22 = vcombine.high %v7778_v33, %v7810_v48 }
 0x51f   : > { %v30930_v44 = vpop.f32.mrb[112].mxu0  ;;  %v9914_v41 = vrot.slane %v36936_v10, %v36903_v54  ;;  %v9946_v17 = vrot.slane %v36937_v53, %v36903_v54  ;;  %v7824_v0 = vcombine.low %v7785_v39, %v7817_v47  ;;  %v7979_v57 = vcombine.high %v30788_v19, %v30836_v29  ;;  %v36941_v53 = vld [vmem:[#allocation116_spill] sm:$0xff] }
 0x520   : > { %v30941_v60 = vpop.f32.mrb[113].mxu0  ;;  %v9778_v40 = vrot.slane %v36938_v8, %v36903_v54  ;;  %v9810_v50 = vrot.slane %v36939_v5, %v36903_v54  ;;  %v8338_v8 = vadd.f32 %v36941_v53, %v7822_v36  ;;  %v8099_v32 = vcombine.high %v30713_v63, %v30752_v37 }
 0x521   : > { %v30955_v62 = vpop.xlane.xlu0 %7634  ;;  %v9958_v10 = vcombine.low %v9914_v41, %v9946_v17  ;;  %v9959_v5 = vcombine.high %v9914_v41, %v9946_v17  ;;  %26606 = vrcp.f32 %v8336_v52  ;;  %v30970_v48 = vrot.slane %v8130_v61, %v36898_v24  ;;  %v30983_v52 = vpop.xlane.xlu1 %7640  ;;  %v36942_v41 = vld [vmem:[#allocation16_spill] sm:$0xff] }
 0x522   : > { %v9822_v14 = vcombine.low %v9778_v40, %v9810_v50  ;;  %v9823_v33 = vcombine.high %v9778_v40, %v9810_v50  ;;  %v26599_v19 = vpop.eup %26598  ;;  %v7825_v29 = vcombine.high %v7785_v39, %v7817_v47  ;;  %v30975_v36 = vrot.slane %v7978_v15, %v36898_v24 }
 0x523   : > { %v30964_v31 = vpop.f32.mrb[96].mxu1  ;;  %v30967_v9 = vadd.f32 %v30805_v43, %v9958_v10  ;;  %v30978_v63 = vrot.slane %v8098_v30, %v36898_v24  ;;  %v26601_v43 = vpop.eup %26600  ;;  %v8340_v17 = vadd.f32 %v36942_v41, %v7823_v22  ;;  %v30987_v40 = vrot.slane %v7979_v57, %v36898_v24  ;;  %11564 = vperm.xlu0 %26455, %v26599_v19  }
 0x524   : > { %v30972_v11 = vpop.f32.mrb[97].mxu1  ;;  %v30981_v37 = vadd.f32 %v30811_v27, %v9822_v14  ;;  %v30990_v50 = vadd.f32 %v30838_v16, %v9959_v5  ;;  %v30993_v39 = vadd.f32 %v30842_v25, %v9823_v33  ;;  %v30997_v15 = vpop.eup %26602  ;;  %v36945_v27 = vld [vmem:[#allocation119_spill] sm:$0xff]  ;;  %v31001_v30 = vrot.slane %v8099_v32, %v36898_v24  ;;  %11574 = vperm.xlu1 %26454, %v26601_v43   ;;  %v36951_v43 = vld [vmem:[#allocation30_spill] sm:$0xff] }
 0x525   : > { %v30995_v47 = vpop.xlane.xlu0 %8283  ;;  %v8342_v14 = vadd.f32 %v36945_v27, %v7824_v0  ;;  %v36946_v61 = vcombine.high %v30666_v34, %v30693_v59  ;;  %v36947_v16 = vcombine.high %v30773_v42, %v30794_v45  ;;  %26608 = vrcp.f32 %v8338_v8  ;;  %v36950_v42 = vld [vmem:[#allocation41_spill] sm:$0xff]  ;;  %v31039_v41 = vpop.xlane.xlu1 %8292 }
 0x526   : > { %36943 = vst [vmem:[#allocation57_spill] sm:$0xff] %v30990_v50  ;;  %36944 = vst [vmem:[#allocation81_spill] sm:$0xff] %v30993_v39  ;;  %v8194_v0 = vcombine.low %v30970_v48, %v30921_v3  ;;  %v36948_v32 = vcombine.high %v30463_v58, %v30469_v55  ;;  %v36949_v34 = vcombine.high %v30532_v13, %v30541_v56  ;;  %v26605_v19 = vpop.eup %26604  ;;  %26610 = vrcp.f32 %v8340_v17 }
 0x527   : > { %v9921_v22 = vrot.slane %v36946_v61, %v36903_v54  ;;  %v9953_v25 = vrot.slane %v36947_v16, %v36903_v54  ;;  %v31011_v57 = vpop.f32.mrb[114].mxu0  ;;  %v8344_v45 = vadd.f32 %v36950_v42, %v7825_v29  ;;  %v8162_v8 = vcombine.low %v30978_v63, %v30847_v12  ;;  %11579 = vperm.xlu0 %26455, %v36951_v43  }
 0x528   : > { %v9785_v10 = vrot.slane %v36948_v32, %v36903_v54  ;;  %v9817_v59 = vrot.slane %v36949_v34, %v36903_v54  ;;  %v31023_v53 = vpop.f32.mrb[115].mxu0  ;;  %v7962_v33 = vcombine.low %v30852_v21, %v30885_v7  ;;  %v8163_v58 = vcombine.high %v30978_v63, %v30847_v12  ;;  %11584 = vperm.xlu1 %26454, %v26605_v19  }
 0x529   : > { %v9960_v5 = vcombine.low %v9921_v22, %v9953_v25  ;;  %v8131_v55 = vcombine.high %v30790_v1, %v30822_v4  ;;  %v8010_v13 = vcombine.low %v30883_v6, %v30983_v52  ;;  %v9961_v61 = vcombine.high %v9921_v22, %v9953_v25  ;;  %v31054_v17 = vpop.xlane.xlu0 %8289  ;;  %v31102_v1 = vpop.xlane.xlu1 %8298 }
 0x52a   : > { %v9824_v56 = vcombine.low %v9785_v10, %v9817_v59  ;;  %26612 = vrcp.f32 %v8342_v14  ;;  %v31049_v4 = vrot.slane %v8194_v0, %v36903_v54  ;;  %v31061_v22 = vrot.slane %v7962_v33, %v36898_v24  ;;  %v36959_v33 = vld [vmem:[#allocation78_spill] sm:$0xff] }
 0x52b   : > { %v31042_v27 = vadd.f32 %v30869_v51, %v9960_v5  ;;  %v31044_v12 = vpop.f32.mrb[98].mxu1  ;;  %26614 = vrcp.f32 %v8344_v45  ;;  %v8011_v51 = vcombine.high %v30883_v6, %v30983_v52  ;;  %v31064_v14 = vadd.f32 %v30894_v28, %v9961_v61  ;;  %v26607_v25 = vpop.eup %26606  ;;  %11589 = vperm.xlu0 %26455, %v30830_v38   ;;  %v36955_v6 = vld [vmem:[#allocation13_spill] sm:$0xff]  ;;  %v36956_v52 = vld [vmem:[#allocation10_spill] sm:$0xff]  ;;  %v36958_v5 = vld [vmem:[#allocation76_spill] sm:$0xff] }
 0x52c   : > { %v31052_v63 = vadd.f32 %v30875_v18, %v9824_v56  ;;  %v31056_v16 = vpop.f32.mrb[99].mxu1  ;;  %v31067_v0 = vrot.slane %v8131_v55, %v36898_v24  ;;  %v31070_v18 = vrot.slane %v8010_v13, %v36898_v24  ;;  %v8170_v32 = vrot.slane %v8162_v8, %v36903_v54  ;;  %v36961_v13 = vld [vmem:[#allocation40_spill] sm:$0xff]  ;;  %11594 = vperm.xlu1 %26454, %v26607_v25   ;;  %v36965_v25 = vld [vmem:[#allocation27_spill] sm:$0xff] }
 0x52d   : > { %36952 = vst [vmem:[#allocation93_spill] sm:$0xff] %v31042_v27  ;;  %36954 = vst [vmem:[#allocation69_spill] sm:$0xff] %v31064_v14  ;;  %v9825_v34 = vcombine.high %v9785_v10, %v9817_v59  ;;  %v36957_v45 = vcombine.low %v36955_v6, %v36956_v52  ;;  %v36960_v19 = vcombine.low %v36958_v5, %v36959_v33  ;;  %v36962_v56 = vld [vmem:[#allocation44_spill] sm:$0xff] }
 0x52e   : > { %36953 = vst [vmem:[#allocation80_spill] sm:$0xff] %v31052_v63  ;;  %v36963_v43 = vcombine.low %v36961_v13, %v36962_v56  ;;  %v7994_v38 = vcombine.low %v30910_v23, %v30955_v62  ;;  %v8195_v59 = vcombine.high %v30970_v48, %v30921_v3  ;;  %v8226_v61 = vcombine.low %v8170_v32, %v31049_v4 }
 0x52f   : > { %v31074_v42 = vpop.f32.mrb[116].mxu0  ;;  %v10170_v28 = vrot.slane %v36957_v45, %v36903_v54  ;;  %v10202_v55 = vrot.slane %v36960_v19, %v36903_v54  ;;  %v7963_v45 = vcombine.high %v30852_v21, %v30885_v7  ;;  %v31098_v19 = vadd.f32 %v30898_v2, %v9825_v34  ;;  %v26609_v63 = vpop.eup %26608  ;;  %v36966_v7 = vld [vmem:[#allocation28_spill] sm:$0xff] }
 0x530   : > { %v10066_v8 = vrot.slane %v36963_v43, %v36903_v54  ;;  %v31090_v10 = vpop.f32.mrb[117].mxu0  ;;  %v8026_v43 = vcombine.low %v31061_v22, %v30975_v36  ;;  %v8002_v27 = vrot.slane %v7994_v38, %v36898_v24  ;;  %v31109_v48 = vrot.slane %v8011_v51, %v36898_v24  ;;  %11599 = vperm.xlu0 %26455, %v36966_v7   ;;  %v31113_v34 = vpop.xlane.xlu0 %8295 }
 0x531   : > { %36964 = vst [vmem:[#allocation49_spill] sm:$0xff] %v31098_v19  ;;  %v10226_v29 = vcombine.low %v10170_v28, %v10202_v55  ;;  %v8227_v21 = vcombine.high %v8170_v32, %v31049_v4  ;;  %v10227_v2 = vcombine.high %v10170_v28, %v10202_v55  ;;  %v8177_v50 = vrot.slane %v8163_v58, %v36903_v54 }
 0x532   : > { %v10090_v14 = vcombine.low %v36965_v25, %v10066_v8  ;;  %v8058_v51 = vcombine.low %v8002_v27, %v31070_v18  ;;  %11604 = vperm.xlu1 %26454, %v26609_v63   ;;  %v8347_v4 = vadd.f32 %v30928_v26, %v8226_v61  ;;  %v31129_v32 = vrot.slane %v7963_v45, %v36898_v24 }
 0x533   : > { %v31115_v19 = vpop.f32.mrb[100].mxu1  ;;  %v31119_v38 = vadd.f32 %v30930_v44, %v10226_v29  ;;  %v8209_v28 = vrot.slane %v8195_v59, %v36903_v54  ;;  %v31133_v58 = vadd.f32 %v30964_v31, %v10227_v2  ;;  %v26611_v44 = vpop.eup %26610  ;;  %v10091_v29 = vcombine.high %v36965_v25, %v10066_v8  ;;  %v36970_v2 = vld [vmem:[#allocation33_spill] sm:$0xff] }
 0x534   : > { %v31122_v39 = vadd.f32 %v30941_v60, %v10090_v14  ;;  %v31125_v3 = vpop.f32.mrb[101].mxu1  ;;  %v7995_v60 = vcombine.high %v30910_v23, %v30955_v62  ;;  %v8034_v63 = vrot.slane %v8026_v43, %v36903_v54  ;;  %v8066_v14 = vrot.slane %v8058_v51, %v36903_v54  ;;  %v26613_v55 = vpop.eup %26612  ;;  %11609 = vperm.xlu0 %26455, %v30862_v46  }
 0x535   : > { %v8027_v26 = vcombine.high %v31061_v22, %v30975_v36  ;;  %v36967_v59 = vcombine.high %v36955_v6, %v36956_v52  ;;  %v36968_v61 = vcombine.high %v36958_v5, %v36959_v33  ;;  %v36969_v62 = vcombine.high %v36961_v13, %v36962_v56  ;;  %v26615_v36 = vpop.eup %26614  ;;  %v8305_v22 = vpop.xlane.xlu1 %8304 }
 0x536   : > { %v8059_v43 = vcombine.high %v8002_v27, %v31070_v18  ;;  %v31159_v6 = vadd.f32 %v30972_v11, %v10091_v29  ;;  %v8090_v52 = vcombine.low %v8034_v63, %v8066_v14  ;;  %v8091_v25 = vcombine.high %v8034_v63, %v8066_v14  ;;  %11614 = vperm.xlu1 %26454, %v26611_v44   ;;  %v8302_v7 = vpop.xlane.xlu0 %8301 }
 0x537   : > { %v10177_v31 = vrot.slane %v36967_v59, %v36903_v54  ;;  %v10209_v23 = vrot.slane %v36968_v61, %v36903_v54  ;;  %v10073_v8 = vrot.slane %v36969_v62, %v36903_v54  ;;  %v31155_v45 = vpop.f32.mrb[118].mxu0  ;;  %v8349_v33 = vadd.f32 %v31039_v41, %v8227_v21  ;;  %v36972_v61 = vld [vmem:[#allocation5_spill] sm:$0xff] }
 0x538   : > { %v31161_v5 = vpop.f32.mrb[119].mxu0  ;;  %v8228_v13 = vcombine.low %v8177_v50, %v8209_v28  ;;  %26616 = vrcp.f32 %v8347_v4  ;;  %v8042_v51 = vcombine.low %v31129_v32, %v30987_v40  ;;  %v31168_v27 = vrot.slane %v7995_v60, %v36898_v24  ;;  %11619 = vperm.xlu0 %26455, %v30900_v49   ;;  %v36974_v62 = vld [vmem:[#allocation21_spill] sm:$0xff] }
 0x539   : > { %v10228_v56 = vcombine.low %v10177_v31, %v10209_v23  ;;  %v10092_v46 = vcombine.low %v36970_v2, %v10073_v8  ;;  %v8346_v11 = vadd.f32 %v30995_v47, %v8090_v52  ;;  %v10229_v41 = vcombine.high %v10177_v31, %v10209_v23  ;;  %v36979_v52 = vld [vmem:[#allocation45_spill] sm:$0xff] }
 0x53a   : > { %v10093_v21 = vcombine.high %v36970_v2, %v10073_v8  ;;  %v8348_v29 = vadd.f32 %v31054_v17, %v8091_v25  ;;  %v8041_v60 = vrot.slane %v8027_v26, %v36903_v54  ;;  %v8073_v47 = vrot.slane %v8059_v43, %v36903_v54  ;;  %11624 = vperm.xlu1 %26454, %v26613_v55   ;;  %v8311_v17 = vpop.xlane.xlu1 %8310  ;;  %v36971_v26 = vld [vmem:[#allocation63_spill] sm:$0xff]  ;;  %v8308_v2 = vpop.xlane.xlu0 %8307 }
 0x53b   : > { %v31172_v18 = vadd.f32 %v31011_v57, %v10228_v56  ;;  %v31175_v44 = vadd.f32 %v31023_v53, %v10092_v46  ;;  %v31179_v4 = vpop.f32.mrb[102].mxu1  ;;  %26618 = vrcp.f32 %v8346_v11  ;;  %v8351_v53 = vadd.f32 %v31102_v1, %v8228_v13  ;;  %v36975_v1 = vld [vmem:[#allocation74_spill] sm:$0xff]  ;;  %v36978_v43 = vld [vmem:[#allocation55_spill] sm:$0xff] }
 0x53c   : > { %v31184_v57 = vpop.f32.mrb[103].mxu1  ;;  %v8229_v63 = vcombine.high %v8177_v50, %v8209_v28  ;;  %v31188_v14 = vadd.f32 %v31044_v12, %v10229_v41  ;;  %v31191_v49 = vadd.f32 %v31056_v16, %v10093_v21  ;;  %v8074_v59 = vcombine.low %v31168_v27, %v31109_v48  ;;  %v36981_v56 = vld [vmem:[#allocation54_spill] sm:$0xff]  ;;  %v36983_v21 = vld [vmem:[#allocation24_spill] sm:$0xff] }
 0x53d   : > { %v8092_v31 = vcombine.low %v8041_v60, %v8073_v47  ;;  %v36973_v55 = vcombine.low %v36971_v26, %v36972_v61  ;;  %v36976_v50 = vcombine.low %v36974_v62, %v36975_v1  ;;  %26620 = vrcp.f32 %v8349_v33  ;;  %11629 = vperm.xlu0 %26455, %v36981_v56  }
 0x53e   : > { %v8353_v12 = vadd.f32 %v8305_v22, %v8229_v63  ;;  %v36977_v16 = vcombine.low %v31001_v30, %v30873_v20  ;;  %v36980_v25 = vcombine.low %v36978_v43, %v36979_v52  ;;  %26622 = vrcp.f32 %v8348_v29  ;;  %11634 = vperm.xlu1 %26454, %v26615_v36   ;;  %v11819_v36 = vld [vmem:[%s35847_s7] sm:$0xff] }
 0x53f   : > { %v10186_v23 = vrot.slane %v36973_v55, %v36903_v54  ;;  %v10218_v28 = vrot.slane %v36976_v50, %v36903_v54  ;;  %v8350_v46 = vadd.f32 %v31113_v34, %v8092_v31  ;;  %v36982_v33 = vcombine.low %v31067_v0, %v30924_v35  ;;  %v11820_v31 = vld [vmem:[%s35847_s7 + $0x8] sm:$0xff] }
 0x540   : > { %v31207_v8 = vrot.slane %v36977_v16, %v36903_v54  ;;  %v10082_v13 = vrot.slane %v36980_v25, %v36903_v54  ;;  %v8093_v55 = vcombine.high %v8041_v60, %v8073_v47  ;;  %26624 = vrcp.f32 %v8351_v53 }
 0x541   : > { %v10230_v11 = vcombine.low %v10186_v23, %v10218_v28  ;;  %v10231_v22 = vcombine.high %v10186_v23, %v10218_v28  ;;  %v8218_v41 = vrot.slane %v36982_v33, %v36903_v54  ;;  %v8082_v34 = vrot.slane %v8074_v59, %v36903_v54  ;;  %11639 = vperm.xlu0 %26455, %v30997_v15   ;;  %v8317_v59 = vpop.xlane.xlu1 %8316 }
 0x542   : > { %v10094_v63 = vcombine.low %v36983_v21, %v10082_v13  ;;  %v10095_v50 = vcombine.high %v36983_v21, %v10082_v13  ;;  %v8352_v47 = vadd.f32 %v8302_v7, %v8093_v55  ;;  %v26617_v53 = vpop.eup %26616  ;;  %26626 = vrcp.f32 %v8350_v46 }
 0x543   : > { %v31222_v16 = vadd.f32 %v31074_v42, %v10230_v11  ;;  %v31225_v29 = vadd.f32 %v31115_v19, %v10231_v22  ;;  %v8050_v19 = vrot.slane %v8042_v51, %v36903_v54  ;;  %v36984_v23 = vcombine.high %v36971_v26, %v36972_v61  ;;  %v8314_v26 = vpop.xlane.xlu0 %8313  ;;  %v36987_v11 = vld [vmem:[#allocation17_spill] sm:$0xff] }
 0x544   : > { %v31235_v60 = vadd.f32 %v31090_v10, %v10094_v63  ;;  %v31238_v42 = vadd.f32 %v31125_v3, %v10095_v50  ;;  %v36985_v10 = vcombine.high %v36974_v62, %v36975_v1  ;;  %v36986_v3 = vcombine.high %v36978_v43, %v36979_v52 }
 0x545   : > { %v10193_v28 = vrot.slane %v36984_v23, %v36903_v54  ;;  %v8211_v15 = vcombine.high %v31067_v0, %v30924_v35  ;;  %v8043_v25 = vcombine.high %v31129_v32, %v30987_v40  ;;  %v8230_v13 = vcombine.low %v31207_v8, %v8218_v41  ;;  %v26619_v56 = vpop.eup %26618  ;;  %11649 = vperm.xlu0 %26455, %v26617_v53   ;;  %v11822_v40 = vld [vmem:[%s35849_s9] sm:$0xff]  ;;  %v11823_v32 = vld [vmem:[%s35849_s9 + $0x8] sm:$0xff]  ;;  %v8323_v55 = vpop.xlane.xlu1 %8322 }
 0x546   : > { %v10225_v7 = vrot.slane %v36985_v10, %v36903_v54  ;;  %v10089_v51 = vrot.slane %v36986_v3, %v36903_v54  ;;  %v26100_v61 = vpack.c.bf16 %v11820_v31, %v11819_v36  ;;  %v8075_v62 = vcombine.high %v31168_v27, %v31109_v48  ;;  %11644 = vperm.xlu1 %26454, %v26619_v56  }
 0x547   : > { %v8094_v1 = vcombine.low %v8050_v19, %v8082_v34  ;;  %26628 = vrcp.f32 %v8353_v12  ;;  %v8355_v43 = vadd.f32 %v8311_v17, %v8230_v13  ;;  %v26621_v12 = vpop.eup %26620  ;;  %v8231_v52 = vcombine.high %v31207_v8, %v8218_v41  ;;  %v8320_v31 = vpop.xlane.xlu0 %8319 }
 0x548   : > { %v10232_v46 = vcombine.low %v10193_v28, %v10225_v7  ;;  %v10096_v22 = vcombine.low %v36987_v11, %v10089_v51  ;;  %v10233_v35 = vcombine.high %v10193_v28, %v10225_v7  ;;  %v10097_v0 = vcombine.high %v36987_v11, %v10089_v51  ;;  %26101 = vmatprep.subr.bf16.mxu0 %v26100_v61  ;;  %v11825_v11 = vld [vmem:[%s35851_s11] sm:$0xff] }
 0x549   : > { %26630 = vrcp.f32 %v8352_v47  ;;  %v8354_v48 = vadd.f32 %v8308_v2, %v8094_v1  ;;  %v8225_v33 = vrot.slane %v8211_v15, %v36903_v54  ;;  %26103 = vmatpush3.bf16.msra.mxu0 %v26100_v61  ;;  %v26623_v2 = vpop.eup %26622  ;;  %v8089_v50 = vrot.slane %v8075_v62, %v36903_v54  ;;  %11659 = vperm.xlu0 %26455, %v26621_v12   ;;  %v8329_v23 = vpop.xlane.xlu1 %8328  ;;  %v36990_v12 = vld [vmem:[#allocation14_spill] sm:$0xff] }
 0x54a   : > { %v31270_v27 = vadd.f32 %v31155_v45, %v10232_v46  ;;  %v31273_v17 = vadd.f32 %v31161_v5, %v10096_v22  ;;  %v31278_v21 = vadd.f32 %v31179_v4, %v10233_v35  ;;  %v31281_v63 = vadd.f32 %v31184_v57, %v10097_v0  ;;  %11654 = vperm.xlu1 %26454, %v26623_v2   ;;  %v26625_v4 = vpop.eup %26624  ;;  %v11826_v22 = vld [vmem:[%s35851_s11 + $0x8] sm:$0xff]  ;;  %v36989_v0 = vld [vmem:[#allocation79_spill] sm:$0xff] }
 0x54b   : > { %v8095_v45 = vcombine.high %v8050_v19, %v8082_v34  ;;  %v26104_v5 = vpack.c.bf16 %v11823_v32, %v11822_v40  ;;  %26632 = vrcp.f32 %v8355_v43  ;;  %v8357_v36 = vadd.f32 %v8317_v59, %v8231_v52  ;;  %v8326_v10 = vpop.xlane.xlu0 %8325 }
 0x54c   : > { %v36988_v8 = vcombine.high %v31001_v30, %v30873_v20  ;;  %26634 = vrcp.f32 %v8354_v48  ;;  %v8057_v47 = vrot.slane %v8043_v25, %v36903_v54  ;;  %v26627_v19 = vpop.eup %26626  ;;  %v26108_v43 = vpack.c.bf16 %v11826_v22, %v11825_v11  ;;  %v37002_v22 = vld [vmem:[#allocation67_spill] sm:$0xff] }
 0x54d   : > { %v8356_v57 = vadd.f32 %v8314_v26, %v8095_v45  ;;  %26105 = vmatprep.subr.bf16.mxu1 %v26104_v5  ;;  %26636 = vrcp.f32 %v8357_v36  ;;  %11669 = vperm.xlu0 %26455, %v26625_v4   ;;  %v31296_v32 = vstv %s523_s15 }
 0x54e   : > { %v8193_v41 = vrot.slane %v36988_v8, %v36903_v54  ;;  %26107 = vmatpush3.bf16.msra.mxu1 %v26104_v5  ;;  %v8096_v53 = vcombine.low %v8057_v47, %v8089_v50  ;;  %11664 = vperm.xlu1 %26454, %v26627_v19   ;;  %v8097_v3 = vcombine.high %v8057_v47, %v8089_v50  ;;  %v26840_v8 = vld [vmem:[%s27066_s22] sm:$0xff]  ;;  %v26841_v47 = vld [vmem:[%s27066_s22 + $0x8] sm:$0xff]  ;;  %v36995_v19 = vld [vmem:[#allocation43_spill] sm:$0xff] }
 0x54f   : > { %26638 = vrcp.f32 %v8356_v57  ;;  %26109 = vmatprep.subr.bf16.mxu0 %v26108_v43 }
 0x550   : > { %v8232_v34 = vcombine.low %v8193_v41, %v8225_v33  ;;  %v8358_v20 = vadd.f32 %v8320_v31, %v8096_v53  ;;  %v8233_v28 = vcombine.high %v8193_v41, %v8225_v33  ;;  %v8360_v15 = vadd.f32 %v8326_v10, %v8097_v3  ;;  %v36993_v31 = vld [vmem:[#allocation85_spill] sm:$0xff]  ;;  %v26843_v10 = vld [vmem:[%s27066_s22 + $0x18] sm:$0xff] }
 0x551   : > { %v26629_v30 = vpop.eup %26628  ;;  %v36998_v3 = vld [vmem:[#allocation20_spill] sm:$0xff] }
 0x552   : > { %v8359_v59 = vadd.f32 %v8323_v55, %v8232_v34  ;;  %v8361_v51 = vadd.f32 %v8329_v23, %v8233_v28  ;;  %11679 = vperm.xlu0 %26455, %v26629_v30   ;;  %v36991_v55 = vld [vmem:[#allocation59_spill] sm:$0xff] }
 0x553   : > { %v26631_v7 = vpop.eup %26630 }
 0x554   : > { %26640 = vrcp.f32 %v8359_v59  ;;  %11674 = vperm.xlu1 %26454, %v26631_v7   ;;  %v26842_v59 = vld [vmem:[%s27066_s22 + $0x10] sm:$0xff] }
 0x555   : > { %26642 = vrcp.f32 %v8358_v20  ;;  %v26633_v25 = vpop.eup %26632 }
 0x556   : > { %v26635_v13 = vpop.eup %26634  ;;  %26644 = vrcp.f32 %v8361_v51  ;;  %11689 = vperm.xlu0 %26455, %v26633_v25   ;;  %v36999_v25 = vld [vmem:[#allocation89_spill] sm:$0xff] }
 0x557   : > { %26646 = vrcp.f32 %v8360_v15  ;;  %v26637_v26 = vpop.eup %26636 }
 0x558   : > { %11684 = vperm.xlu1 %26454, %v26635_v13  }
 0x559   : > { %v26639_v61 = vpop.eup %26638 }
 0x55a   : > { %11699 = vperm.xlu0 %26455, %v26637_v26   ;;  %v26844_v26 = vld [vmem:[%s27066_s22 + $0x20] sm:$0xff] }
 0x55c   : > { %11694 = vperm.xlu1 %26454, %v26639_v61  }
 0x55e   : > { %v26641_v56 = vpop.eup %26640 }
 0x55f   : > { %v26643_v62 = vpop.eup %26642  ;;  %11709 = vperm.xlu0 %26455, %v26641_v56  }
 0x560   : > { %11704 = vperm.xlu1 %26454, %v26643_v62   ;;  %v26645_v1 = vpop.eup %26644 }
 0x561   : > { %v26647_v46 = vpop.eup %26646 }
 0x563   : > { %11719 = vperm.xlu0 %26455, %v26645_v1  }
 0x564   : > { %11714 = vperm.xlu1 %26454, %v26647_v46   ;;  %v26845_v46 = vld [vmem:[%s27066_s22 + $0x28] sm:$0xff] }
 0x588   : > { %v11570_v35 = vpop.permute.xlu1 %11569 }
 0x589   : > { %v11723_v40 = vmul.f32 %v11570_v35, %v36989_v0 }
 0x58b   : > { %v11756_v2 = vmul.f32 %v31296_v32, %v11723_v40  ;;  %v26846_v40 = vld [vmem:[%s27066_s22 + $0x30] sm:$0xff] }
 0x58d   : > { %v31308_v34 = vadd.f32 %v26841_v47, %v11756_v2  ;;  %v26847_v2 = vld [vmem:[%s27066_s22 + $0x38] sm:$0xff] }
 0x58f   : > { %36994 = vst [vmem:[#allocation84_spill] sm:$0xff] %v31308_v34 }
 0x5a2   : > { %v11565_v48 = vpop.permute.xlu0 %11564 }
 0x5a3   : > { %v11722_v52 = vmul.f32 %v11565_v48, %v36990_v12  ;;  %v11575_v33 = vpop.permute.xlu1 %11574 }
 0x5a4   : > { %v11724_v45 = vmul.f32 %v11575_v33, %v36991_v55 }
 0x5a5   : > { %v11755_v50 = vmul.f32 %v31296_v32, %v11722_v52 }
 0x5a6   : > { %v11757_v5 = vmul.f32 %v31296_v32, %v11724_v45  ;;  %v11580_v36 = vpop.permute.xlu0 %11579 }
 0x5a7   : > { %v31304_v41 = vadd.f32 %v26840_v8, %v11755_v50  ;;  %v11725_v4 = vmul.f32 %v11580_v36, %v36993_v31  ;;  %v11585_v57 = vpop.permute.xlu1 %11584  ;;  %v37005_v50 = vld [vmem:[#allocation81_spill] sm:$0xff] }
 0x5a8   : > { %v11726_v53 = vmul.f32 %v11585_v57, %v36995_v19  ;;  %v31312_v23 = vadd.f32 %v26842_v59, %v11757_v5  ;;  %v26848_v36 = vld [vmem:[%s27066_s22 + $0x40] sm:$0xff] }
 0x5a9   : > { %36992 = vst [vmem:[#allocation23_spill] sm:$0xff] %v31304_v41  ;;  %v11758_v20 = vmul.f32 %v31296_v32, %v11725_v4  ;;  %25168 = vmatprep.mubr.msk.f32.mxu0 %vm530_vm0, %v31304_v41  ;;  %25220 = vmatprep.mubr.msk.f32.mxu1 %vm530_vm0, %v31304_v41  ;;  %v37008_v19 = vld [vmem:[#allocation57_spill] sm:$0xff] }
 0x5aa   : > { %36996 = vst [vmem:[#allocation90_spill] sm:$0xff] %v31312_v23  ;;  %v11759_v30 = vmul.f32 %v31296_v32, %v11726_v53  ;;  %v11590_v28 = vpop.permute.xlu0 %11589  ;;  %25169 = vmatmul.mubr.msk.f32.vlgmr.msra.gmra.mrb[120].mxu0 %vm530_vm0, %v31308_v34  ;;  %25221 = vmatmul.mubr.msk.f32.vlgmr.msra.gmra.mrb[104].mxu1 %vm530_vm0, %v31308_v34 }
 0x5ab   : > { %v31325_v7 = vadd.f32 %v26843_v10, %v11758_v20  ;;  %v11727_v51 = vmul.f32 %v11590_v28, %v36998_v3  ;;  %v11595_v15 = vpop.permute.xlu1 %11594  ;;  %25171 = vmatprep.mubr.msk.f32.mxu0 %vm530_vm0, %v31312_v23  ;;  %25223 = vmatprep.mubr.msk.f32.mxu1 %vm530_vm0, %v31312_v23  ;;  %v37009_v20 = vld [vmem:[#allocation80_spill] sm:$0xff]  ;;  %v26850_v28 = vld [vmem:[%s27066_s22 + $0x50] sm:$0xff] }
 0x5ac   : > { %v11728_v13 = vmul.f32 %v11595_v15, %v36999_v25  ;;  %26111 = vmatpush3.bf16.msra.mxu0 %v26108_v43  ;;  %v31334_v61 = vadd.f32 %v26844_v26, %v11759_v30  ;;  %v26851_v25 = vld [vmem:[%s27066_s22 + $0x58] sm:$0xff]  ;;  %v37012_v26 = vld [vmem:[#allocation93_spill] sm:$0xff] }
 0x5ad   : > { %36997 = vst [vmem:[#allocation12_spill] sm:$0xff] %v31325_v7  ;;  %v11760_v56 = vmul.f32 %v31296_v32, %v11727_v51 }
 0x5ae   : > { %37000 = vst [vmem:[#allocation22_spill] sm:$0xff] %v31334_v61  ;;  %v11761_v62 = vmul.f32 %v31296_v32, %v11728_v13  ;;  %25172 = vmatmul.mubr.msk.f32.gmra.mrb[122].mxu0 %vm530_vm0, %v31325_v7  ;;  %25224 = vmatmul.mubr.msk.f32.gmra.mrb[106].mxu1 %vm530_vm0, %v31325_v7 }
 0x5af   : > { %v11600_v1 = vpop.permute.xlu0 %11599  ;;  %v31343_v11 = vadd.f32 %v26845_v46, %v11760_v56  ;;  %25174 = vmatprep.mubr.msk.f32.mxu0 %vm530_vm0, %v31334_v61  ;;  %25226 = vmatprep.mubr.msk.f32.mxu1 %vm530_vm0, %v31334_v61 }
 0x5b0   : > { %v11729_v43 = vmul.f32 %v11600_v1, %v37002_v22  ;;  %v31352_v48 = vadd.f32 %v26846_v40, %v11761_v62  ;;  %v37013_v1 = vld [vmem:[#allocation49_spill] sm:$0xff] }
 0x5b1   : > { %37001 = vst [vmem:[#allocation88_spill] sm:$0xff] %v31343_v11  ;;  %v11605_v35 = vpop.permute.xlu1 %11604  ;;  %v26852_v22 = vld [vmem:[%s27066_s22 + $0x60] sm:$0xff] }
 0x5b2   : > { %v11730_v0 = vmul.f32 %v11605_v35, %v30981_v37  ;;  %37003 = vst [vmem:[#allocation35_spill] sm:$0xff] %v31352_v48  ;;  %v11762_v12 = vmul.f32 %v31296_v32, %v11729_v43  ;;  %25175 = vmatmul.mubr.msk.f32.gmra.mrb[124].mxu0 %vm530_vm0, %v31343_v11  ;;  %25227 = vmatmul.mubr.msk.f32.gmra.mrb[108].mxu1 %vm530_vm0, %v31343_v11 }
 0x5b3   : > { %v11610_v33 = vpop.permute.xlu0 %11609  ;;  %25177 = vmatprep.mubr.msk.f32.mxu0 %vm530_vm0, %v31352_v48  ;;  %25229 = vmatprep.mubr.msk.f32.mxu1 %vm530_vm0, %v31352_v48 }
 0x5b4   : > { %v11763_v52 = vmul.f32 %v31296_v32, %v11730_v0  ;;  %v31361_v55 = vadd.f32 %v26847_v2, %v11762_v12  ;;  %v11731_v37 = vmul.f32 %v11610_v33, %v30967_v9  ;;  %v26849_v9 = vld [vmem:[%s27066_s22 + $0x48] sm:$0xff]  ;;  %v37016_v33 = vld [vmem:[#allocation69_spill] sm:$0xff] }
 0x5b5   : > { %v11615_v45 = vpop.permute.xlu1 %11614  ;;  %v26853_v12 = vld [vmem:[%s27066_s22 + $0x68] sm:$0xff] }
 0x5b6   : > { %37004 = vst [vmem:[#allocation53_spill] sm:$0xff] %v31361_v55  ;;  %v11732_v5 = vmul.f32 %v11615_v45, %v37005_v50  ;;  %v31370_v8 = vadd.f32 %v26848_v36, %v11763_v52  ;;  %v11764_v31 = vmul.f32 %v31296_v32, %v11731_v37  ;;  %25178 = vmatmul.mubr.msk.f32.gmra.mrb[126].mxu0 %vm530_vm0, %v31361_v55  ;;  %v26854_v37 = vld [vmem:[%s27066_s22 + $0x70] sm:$0xff] }
 0x5b7   : > { %v11620_v57 = vpop.permute.xlu0 %11619  ;;  %25230 = vmatmul.mubr.msk.f32.gmra.mrb[110].mxu1 %vm530_vm0, %v31361_v55 }
 0x5b8   : > { %37006 = vst [vmem:[#allocation95_spill] sm:$0xff] %v31370_v8  ;;  %v11765_v4 = vmul.f32 %v31296_v32, %v11732_v5  ;;  %v31379_v47 = vadd.f32 %v26849_v9, %v11764_v31  ;;  %v11733_v53 = vmul.f32 %v11620_v57, %v37008_v19  ;;  %25180 = vmatprep.mubr.msk.f32.mxu0 %vm530_vm0, %v31370_v8  ;;  %v26855_v31 = vld [vmem:[%s27066_s22 + $0x78] sm:$0xff] }
 0x5b9   : > { %v11625_v59 = vpop.permute.xlu1 %11624  ;;  %25232 = vmatprep.mubr.msk.f32.mxu1 %vm530_vm0, %v31370_v8 }
 0x5ba   : > { %37007 = vst [vmem:[#allocation94_spill] sm:$0xff] %v31379_v47  ;;  %v11734_v30 = vmul.f32 %v11625_v59, %v37009_v20  ;;  %v31388_v10 = vadd.f32 %v26850_v28, %v11765_v4  ;;  %v11766_v3 = vmul.f32 %v31296_v32, %v11733_v53  ;;  %25181 = vmatmul.mubr.msk.f32.gmra.mrb[128].mxu0 %vm530_vm0, %v31379_v47 }
 0x5bb   : > { %25233 = vmatmul.mubr.msk.f32.gmra.mrb[112].mxu1 %vm530_vm0, %v31379_v47 }
 0x5bc   : > { %37010 = vst [vmem:[#allocation62_spill] sm:$0xff] %v31388_v10  ;;  %v11767_v51 = vmul.f32 %v31296_v32, %v11734_v30  ;;  %v11630_v15 = vpop.permute.xlu0 %11629  ;;  %v31397_v13 = vadd.f32 %v26851_v25, %v11766_v3  ;;  %25183 = vmatprep.mubr.msk.f32.mxu0 %vm530_vm0, %v31388_v10  ;;  %25235 = vmatprep.mubr.msk.f32.mxu1 %vm530_vm0, %v31388_v10  ;;  %v26857_v30 = vld [vmem:[%s27066_s22 + $0x80] sm:$0xff] }
 0x5bd   : > { %v11735_v56 = vmul.f32 %v11630_v15, %v37012_v26  ;;  %v11635_v62 = vpop.permute.xlu1 %11634 }
 0x5be   : > { %37011 = vst [vmem:[#allocation100_spill] sm:$0xff] %v31397_v13  ;;  %v11736_v46 = vmul.f32 %v11635_v62, %v37013_v1  ;;  %v31406_v43 = vadd.f32 %v26852_v22, %v11767_v51  ;;  %25184 = vmatmul.mubr.msk.f32.gmra.mrb[130].mxu0 %vm530_vm0, %v31397_v13  ;;  %v26859_v62 = vld [vmem:[%s27066_s22 + $0x90] sm:$0xff] }
 0x5bf   : > { %v11768_v35 = vmul.f32 %v31296_v32, %v11735_v56  ;;  %25236 = vmatmul.mubr.msk.f32.gmra.mrb[114].mxu1 %vm530_vm0, %v31397_v13 }
 0x5c0   : > { %37014 = vst [vmem:[#allocation25_spill] sm:$0xff] %v31406_v43  ;;  %v11769_v0 = vmul.f32 %v31296_v32, %v11736_v46  ;;  %v11640_v40 = vpop.permute.xlu0 %11639  ;;  %25186 = vmatprep.mubr.msk.f32.mxu0 %vm530_vm0, %v31406_v43  ;;  %25238 = vmatprep.mubr.msk.f32.mxu1 %vm530_vm0, %v31406_v43 }
 0x5c1   : > { %v31415_v52 = vadd.f32 %v26853_v12, %v11768_v35  ;;  %v11737_v2 = vmul.f32 %v11640_v40, %v37016_v33  ;;  %v26861_v33 = vld [vmem:[%s27066_s22 + $0xa0] sm:$0xff] }
 0x5c2   : > { %v31423_v45 = vadd.f32 %v26854_v37, %v11769_v0 }
 0x5c3   : > { %37015 = vst [vmem:[#allocation99_spill] sm:$0xff] %v31415_v52  ;;  %v11770_v50 = vmul.f32 %v31296_v32, %v11737_v2  ;;  %25187 = vmatmul.mubr.msk.f32.gmra.mrb[132].mxu0 %vm530_vm0, %v31415_v52  ;;  %25239 = vmatmul.mubr.msk.f32.gmra.mrb[116].mxu1 %vm530_vm0, %v31415_v52 }
 0x5c4   : > { %37017 = vst [vmem:[#allocation37_spill] sm:$0xff] %v31423_v45  ;;  %v11650_v5 = vpop.permute.xlu0 %11649  ;;  %25189 = vmatprep.mubr.msk.f32.mxu0 %vm530_vm0, %v31423_v45  ;;  %25241 = vmatprep.mubr.msk.f32.mxu1 %vm530_vm0, %v31423_v45 }
 0x5c5   : > { %v11645_v36 = vpop.permute.xlu1 %11644  ;;  %v31431_v4 = vadd.f32 %v26855_v31, %v11770_v50  ;;  %v11739_v57 = vmul.f32 %v11650_v5, %v31119_v38 }
 0x5c6   : > { %v11738_v9 = vmul.f32 %v11645_v36, %v31122_v39  ;;  %v26856_v39 = vld [vmem:[%s27066_s22 + $0x88] sm:$0xff] }
 0x5c7   : > { %37018 = vst [vmem:[#allocation46_spill] sm:$0xff] %v31431_v4  ;;  %v11772_v19 = vmul.f32 %v31296_v32, %v11739_v57  ;;  %25190 = vmatmul.mubr.msk.f32.gmra.mrb[134].mxu0 %vm530_vm0, %v31431_v4  ;;  %25242 = vmatmul.mubr.msk.f32.gmra.mrb[118].mxu1 %vm530_vm0, %v31431_v4 }
 0x5c8   : > { %v11771_v53 = vmul.f32 %v31296_v32, %v11738_v9  ;;  %v11660_v59 = vpop.permute.xlu0 %11659  ;;  %v26863_v9 = vld [vmem:[%s27066_s22 + $0xb0] sm:$0xff] }
 0x5c9   : > { %v11655_v38 = vpop.permute.xlu1 %11654  ;;  %v31446_v20 = vadd.f32 %v26856_v39, %v11772_v19  ;;  %v11741_v3 = vmul.f32 %v11660_v59, %v31133_v58 }
 0x5ca   : > { %v31449_v28 = vadd.f32 %v26857_v30, %v11771_v53  ;;  %v11740_v51 = vmul.f32 %v11655_v38, %v31159_v6  ;;  %v26858_v6 = vld [vmem:[%s27066_s22 + $0x98] sm:$0xff] }
 0x5cb   : > { %37019 = vst [vmem:[#allocation98_spill] sm:$0xff] %v31446_v20  ;;  %v11774_v15 = vmul.f32 %v31296_v32, %v11741_v3 }
 0x5cc   : > { %37020 = vst [vmem:[#allocation50_spill] sm:$0xff] %v31449_v28  ;;  %v11773_v25 = vmul.f32 %v31296_v32, %v11740_v51  ;;  %25192 = vmatprep.mubr.msk.f32.mxu0 %vm530_vm0, %v31449_v28  ;;  %25244 = vmatprep.mubr.msk.f32.mxu1 %vm530_vm0, %v31449_v28  ;;  %v11670_v26 = vpop.permute.xlu0 %11669  ;;  %v26865_v51 = vld [vmem:[%s27066_s22 + $0xc0] sm:$0xff] }
 0x5cd   : > { %25193 = vmatmul.mubr.msk.f32.gmra.mrb[136].mxu0 %vm530_vm0, %v31446_v20  ;;  %25245 = vmatmul.mubr.msk.f32.gmra.mrb[120].mxu1 %vm530_vm0, %v31446_v20  ;;  %v11665_v58 = vpop.permute.xlu1 %11664  ;;  %v31464_v56 = vadd.f32 %v26858_v6, %v11774_v15  ;;  %v11743_v46 = vmul.f32 %v11670_v26, %v31172_v18 }
 0x5ce   : > { %v31467_v1 = vadd.f32 %v26859_v62, %v11773_v25  ;;  %v11742_v22 = vmul.f32 %v11665_v58, %v31175_v44  ;;  %v26860_v44 = vld [vmem:[%s27066_s22 + $0xa8] sm:$0xff] }
 0x5cf   : > { %37021 = vst [vmem:[#allocation61_spill] sm:$0xff] %v31464_v56  ;;  %v11776_v35 = vmul.f32 %v31296_v32, %v11743_v46 }
 0x5d0   : > { %37022 = vst [vmem:[#allocation32_spill] sm:$0xff] %v31467_v1  ;;  %v11775_v0 = vmul.f32 %v31296_v32, %v11742_v22  ;;  %25195 = vmatprep.mubr.msk.f32.mxu0 %vm530_vm0, %v31467_v1  ;;  %25247 = vmatprep.mubr.msk.f32.mxu1 %vm530_vm0, %v31467_v1  ;;  %v26867_v22 = vld [vmem:[%s27066_s22 + $0xd0] sm:$0xff] }
 0x5d1   : > { %v11680_v40 = vpop.permute.xlu0 %11679  ;;  %25196 = vmatmul.mubr.msk.f32.gmra.mrb[138].mxu0 %vm530_vm0, %v31464_v56  ;;  %25248 = vmatmul.mubr.msk.f32.gmra.mrb[122].mxu1 %vm530_vm0, %v31464_v56  ;;  %v31482_v12 = vadd.f32 %v26860_v44, %v11776_v35 }
 0x5d2   : > { %v31485_v2 = vadd.f32 %v26861_v33, %v11775_v0  ;;  %v11745_v37 = vmul.f32 %v11680_v40, %v31188_v14 }
 0x5d3   : > { %v11675_v18 = vpop.permute.xlu1 %11674  ;;  %37023 = vst [vmem:[#allocation51_spill] sm:$0xff] %v31482_v12 }
 0x5d4   : > { %37024 = vst [vmem:[#allocation38_spill] sm:$0xff] %v31485_v2  ;;  %v11744_v50 = vmul.f32 %v11675_v18, %v31191_v49  ;;  %v11778_v5 = vmul.f32 %v31296_v32, %v11745_v37  ;;  %25198 = vmatprep.mubr.msk.f32.mxu0 %vm530_vm0, %v31485_v2  ;;  %25250 = vmatprep.mubr.msk.f32.mxu1 %vm530_vm0, %v31485_v2  ;;  %v26862_v49 = vld [vmem:[%s27066_s22 + $0xb8] sm:$0xff] }
 0x5d5   : > { %v11690_v31 = vpop.permute.xlu0 %11689  ;;  %25199 = vmatmul.mubr.msk.f32.gmra.mrb[140].mxu0 %vm530_vm0, %v31482_v12  ;;  %25251 = vmatmul.mubr.msk.f32.gmra.mrb[124].mxu1 %vm530_vm0, %v31482_v12 }
 0x5d6   : > { %v11777_v36 = vmul.f32 %v31296_v32, %v11744_v50  ;;  %v31500_v57 = vadd.f32 %v26862_v49, %v11778_v5  ;;  %v11747_v53 = vmul.f32 %v11690_v31, %v31222_v16  ;;  %v26869_v50 = vld [vmem:[%s27066_s22 + $0xe0] sm:$0xff] }
 0x5d7   : > { %v11685_v14 = vpop.permute.xlu1 %11684 }
 0x5d8   : > { %37025 = vst [vmem:[#allocation70_spill] sm:$0xff] %v31500_v57  ;;  %v31503_v19 = vadd.f32 %v26863_v9, %v11777_v36  ;;  %v11746_v59 = vmul.f32 %v11685_v14, %v31235_v60  ;;  %v11780_v38 = vmul.f32 %v31296_v32, %v11747_v53  ;;  %v26864_v60 = vld [vmem:[%s27066_s22 + $0xc8] sm:$0xff]  ;;  %v26870_v9 = vld [vmem:[%s27066_s22 + $0xf8] sm:$0xff] }
 0x5d9   : > { %v11700_v30 = vpop.permute.xlu0 %11699 }
 0x5da   : > { %37026 = vst [vmem:[#allocation60_spill] sm:$0xff] %v31503_v19  ;;  %v11779_v39 = vmul.f32 %v31296_v32, %v11746_v59  ;;  %25201 = vmatprep.mubr.msk.f32.mxu0 %vm530_vm0, %v31503_v19  ;;  %25253 = vmatprep.mubr.msk.f32.mxu1 %vm530_vm0, %v31503_v19  ;;  %v31518_v3 = vadd.f32 %v26864_v60, %v11780_v38 }
 0x5db   : > { %25202 = vmatmul.mubr.msk.f32.gmra.mrb[142].mxu0 %vm530_vm0, %v31500_v57  ;;  %25254 = vmatmul.mubr.msk.f32.gmra.mrb[126].mxu1 %vm530_vm0, %v31500_v57  ;;  %v11695_v16 = vpop.permute.xlu1 %11694  ;;  %v11749_v25 = vmul.f32 %v11700_v30, %v31225_v29 }
 0x5dc   : > { %37027 = vst [vmem:[#allocation42_spill] sm:$0xff] %v31518_v3  ;;  %v31521_v15 = vadd.f32 %v26865_v51, %v11779_v39  ;;  %v11748_v26 = vmul.f32 %v11695_v16, %v31238_v42  ;;  %v26866_v42 = vld [vmem:[%s27066_s22 + $0xd8] sm:$0xff] }
 0x5dd   : > { %v11782_v58 = vmul.f32 %v31296_v32, %v11749_v25 }
 0x5de   : > { %37028 = vst [vmem:[#allocation6_spill] sm:$0xff] %v31521_v15  ;;  %v11781_v6 = vmul.f32 %v31296_v32, %v11748_v26  ;;  %25204 = vmatprep.mubr.msk.f32.mxu0 %vm530_vm0, %v31521_v15  ;;  %25256 = vmatprep.mubr.msk.f32.mxu1 %vm530_vm0, %v31521_v15  ;;  %v11710_v62 = vpop.permute.xlu0 %11709 }
 0x5df   : > { %25205 = vmatmul.mubr.msk.f32.gmra.mrb[144].mxu0 %vm530_vm0, %v31518_v3  ;;  %25257 = vmatmul.mubr.msk.f32.gmra.mrb[128].mxu1 %vm530_vm0, %v31518_v3  ;;  %v11705_v29 = vpop.permute.xlu1 %11704  ;;  %v31536_v46 = vadd.f32 %v26866_v42, %v11782_v58  ;;  %v11751_v0 = vmul.f32 %v11710_v62, %v31270_v27 }
 0x5e0   : > { %v31539_v35 = vadd.f32 %v26867_v22, %v11781_v6  ;;  %v11750_v40 = vmul.f32 %v11705_v29, %v31273_v17  ;;  %v26868_v17 = vld [vmem:[%s27066_s22 + $0xe8] sm:$0xff]  ;;  %v31662_v29 = vld [vmem:[%s35848_s8] ss:$0 sm:$0xff] }
 0x5e1   : > { %37029 = vst [vmem:[#allocation101_spill] sm:$0xff] %v31536_v46  ;;  %v11784_v18 = vmul.f32 %v31296_v32, %v11751_v0 }
 0x5e2   : > { %37030 = vst [vmem:[#allocation102_spill] sm:$0xff] %v31539_v35  ;;  %v11783_v44 = vmul.f32 %v31296_v32, %v11750_v40  ;;  %25207 = vmatprep.mubr.msk.f32.mxu0 %vm530_vm0, %v31539_v35  ;;  %25259 = vmatprep.mubr.msk.f32.mxu1 %vm530_vm0, %v31539_v35  ;;  %v11720_v33 = vpop.permute.xlu0 %11719 }
 0x5e3   : > { %25208 = vmatmul.mubr.msk.f32.gmra.mrb[146].mxu0 %vm530_vm0, %v31536_v46  ;;  %25260 = vmatmul.mubr.msk.f32.gmra.mrb[130].mxu1 %vm530_vm0, %v31536_v46  ;;  %v11715_v27 = vpop.permute.xlu1 %11714  ;;  %v31554_v37 = vadd.f32 %v26868_v17, %v11784_v18  ;;  %v11753_v36 = vmul.f32 %v11720_v33, %v31278_v21 }
 0x5e4   : > { %v31557_v5 = vadd.f32 %v26869_v50, %v11783_v44  ;;  %v11752_v31 = vmul.f32 %v11715_v27, %v31281_v63  ;;  %v26871_v63 = vld [vmem:[%s27066_s22 + $0xf0] sm:$0xff] }
 0x5e5   : > { %37031 = vst [vmem:[#allocation65_spill] sm:$0xff] %v31554_v37  ;;  %v11786_v14 = vmul.f32 %v31296_v32, %v11753_v36 }
 0x5e6   : > { %37032 = vst [vmem:[#allocation72_spill] sm:$0xff] %v31557_v5  ;;  %v11785_v49 = vmul.f32 %v31296_v32, %v11752_v31  ;;  %25210 = vmatprep.mubr.msk.f32.mxu0 %vm530_vm0, %v31557_v5  ;;  %25262 = vmatprep.mubr.msk.f32.mxu1 %vm530_vm0, %v31557_v5  ;;  %v31652_v32 = vld [vmem:[%s35850_s10] ss:$0 sm:$0xff] }
 0x5e7   : > { %25211 = vmatmul.mubr.msk.f32.gmra.mrb[148].mxu0 %vm530_vm0, %v31554_v37  ;;  %25263 = vmatmul.mubr.msk.f32.gmra.mrb[132].mxu1 %vm530_vm0, %v31554_v37  ;;  %v31572_v21 = vadd.f32 %v26870_v9, %v11786_v14 }
 0x5e8   : > { %v31575_v53 = vadd.f32 %v26871_v63, %v11785_v49 }
 0x5e9   : > { %37033 = vst [vmem:[#allocation66_spill] sm:$0xff] %v31572_v21 }
 0x5ea   : > { %37034 = vst [vmem:[#allocation68_spill] sm:$0xff] %v31575_v53  ;;  %25213 = vmatprep.mubr.msk.f32.mxu0 %vm530_vm0, %v31575_v53  ;;  %25265 = vmatprep.mubr.msk.f32.mxu1 %vm530_vm0, %v31575_v53 }
 0x5eb   : > { %25214 = vmatmul.mubr.msk.f32.gmra.mrb[150].mxu0 %vm530_vm0, %v31572_v21  ;;  %25266 = vmatmul.mubr.msk.f32.gmra.mrb[134].mxu1 %vm530_vm0, %v31572_v21 }
 0x5ec   : > { %25272 = vmatprep.mubr.msk.f32.mxu0 %vm530_vm0, %v31304_v41 }
 0x5ef   : > { %25273 = vmatmul.mubr.msk.f32.vlgmr.msra.gmra.mrb[152].mxu0 %vm530_vm0, %v31308_v34 }
 0x5f0   : > { %25275 = vmatprep.mubr.msk.f32.mxu0 %vm530_vm0, %v31312_v23 }
 0x5f3   : > { %25276 = vmatmul.mubr.msk.f32.gmra.mrb[154].mxu0 %vm530_vm0, %v31325_v7 }
 0x5f4   : > { %25278 = vmatprep.mubr.msk.f32.mxu0 %vm530_vm0, %v31334_v61 }
 0x5f7   : > { %25279 = vmatmul.mubr.msk.f32.gmra.mrb[156].mxu0 %vm530_vm0, %v31343_v11 }
 0x5f8   : > { %25281 = vmatprep.mubr.msk.f32.mxu0 %vm530_vm0, %v31352_v48 }
 0x5fb   : > { %25282 = vmatmul.mubr.msk.f32.gmra.mrb[158].mxu0 %vm530_vm0, %v31361_v55 }
 0x5fc   : > { %25284 = vmatprep.mubr.msk.f32.mxu0 %vm530_vm0, %v31370_v8 }
 0x5ff   : > { %25285 = vmatmul.mubr.msk.f32.gmra.mrb[160].mxu0 %vm530_vm0, %v31379_v47 }
 0x600   : > { %25287 = vmatprep.mubr.msk.f32.mxu0 %vm530_vm0, %v31388_v10 }
 0x603   : > { %25288 = vmatmul.mubr.msk.f32.gmra.mrb[162].mxu0 %vm530_vm0, %v31397_v13 }
 0x604   : > { %25290 = vmatprep.mubr.msk.f32.mxu0 %vm530_vm0, %v31406_v43 }
 0x607   : > { %25291 = vmatmul.mubr.msk.f32.gmra.mrb[164].mxu0 %vm530_vm0, %v31415_v52 }
 0x608   : > { %25293 = vmatprep.mubr.msk.f32.mxu0 %vm530_vm0, %v31423_v45 }
 0x60b   : > { %25294 = vmatmul.mubr.msk.f32.gmra.mrb[166].mxu0 %vm530_vm0, %v31431_v4 }
 0x60c   : > { %25296 = vmatprep.mubr.msk.f32.mxu0 %vm530_vm0, %v31449_v28 }
 0x60f   : > { %25297 = vmatmul.mubr.msk.f32.gmra.mrb[168].mxu0 %vm530_vm0, %v31446_v20 }
 0x610   : > { %25299 = vmatprep.mubr.msk.f32.mxu0 %vm530_vm0, %v31467_v1 }
 0x613   : > { %25300 = vmatmul.mubr.msk.f32.gmra.mrb[170].mxu0 %vm530_vm0, %v31464_v56 }
 0x614   : > { %25302 = vmatprep.mubr.msk.f32.mxu0 %vm530_vm0, %v31485_v2 }
 0x617   : > { %25303 = vmatmul.mubr.msk.f32.gmra.mrb[172].mxu0 %vm530_vm0, %v31482_v12 }
 0x618   : > { %25305 = vmatprep.mubr.msk.f32.mxu0 %vm530_vm0, %v31503_v19 }
 0x61b   : > { %25306 = vmatmul.mubr.msk.f32.gmra.mrb[174].mxu0 %vm530_vm0, %v31500_v57 }
 0x61c   : > { %25308 = vmatprep.mubr.msk.f32.mxu0 %vm530_vm0, %v31521_v15 }
 0x61f   : > { %25309 = vmatmul.mubr.msk.f32.gmra.mrb[176].mxu0 %vm530_vm0, %v31518_v3 }
 0x620   : > { %25311 = vmatprep.mubr.msk.f32.mxu0 %vm530_vm0, %v31539_v35 }
 0x623   : > { %25312 = vmatmul.mubr.msk.f32.gmra.mrb[178].mxu0 %vm530_vm0, %v31536_v46 }
 0x624   : > { %25314 = vmatprep.mubr.msk.f32.mxu0 %vm530_vm0, %v31557_v5 }
 0x627   : > { %25315 = vmatmul.mubr.msk.f32.gmra.mrb[180].mxu0 %vm530_vm0, %v31554_v37 }
 0x628   : > { %25317 = vmatprep.mubr.msk.f32.mxu0 %vm530_vm0, %v31575_v53 }
 0x62b   : > { %25318 = vmatmul.mubr.msk.f32.gmra.mrb[182].mxu0 %vm530_vm0, %v31572_v21 }
 0x67d   : > { %v25170_v59 = vpop.f32.mrb[120].mxu0  ;;  %v25222_v38 = vpop.f32.mrb[104].mxu1 }
 0x67e   : > { %v12234_v39 = vadd.f32 %v25222_v38, %v31652_v32  ;;  %v11997_v30 = vpop.f32.mrb[121].mxu0  ;;  %v12228_v16 = vpop.f32.mrb[105].mxu1  ;;  %v31668_v18 = vadd.f32 %v25170_v59, %v31662_v29 }
 0x67f   : > { %v12229_v60 = vadd.f32 %v31652_v32, %v12228_v16  ;;  %v31675_v50 = vadd.f32 %v31662_v29, %v11997_v30 }
 0x680   : > { %37037 = vst [vmem:[#allocation47_spill] sm:$0xff] %v31668_v18 }
 0x681   : > { %v31656_v51 = vpack.c.bf16 %v12234_v39, %v12229_v60  ;;  %v25173_v25 = vpop.f32.mrb[122].mxu0  ;;  %v25225_v26 = vpop.f32.mrb[106].mxu1  ;;  %37039 = vst [vmem:[#allocation52_spill] sm:$0xff] %v31675_v50 }
 0x682   : > { %v12244_v58 = vadd.f32 %v25225_v26, %v31652_v32  ;;  %v12007_v6 = vpop.f32.mrb[123].mxu0  ;;  %v12238_v62 = vpop.f32.mrb[107].mxu1 }
 0x683   : > { %37035 = vst [vmem:[#allocation48_spill] sm:$0xff] %v31656_v51  ;;  %v12239_v42 = vadd.f32 %v31652_v32, %v12238_v62 }
 0x685   : > { %v31665_v22 = vpack.c.bf16 %v12244_v58, %v12239_v42  ;;  %v25176_v0 = vpop.f32.mrb[124].mxu0  ;;  %v25228_v40 = vpop.f32.mrb[108].mxu1 }
 0x686   : > { %v31671_v44 = vadd.f32 %v25176_v0, %v31662_v29  ;;  %v12254_v33 = vadd.f32 %v25228_v40, %v31652_v32  ;;  %v12017_v27 = vpop.f32.mrb[125].mxu0  ;;  %v12248_v17 = vpop.f32.mrb[109].mxu1  ;;  %v31690_v0 = vadd.f32 %v25173_v25, %v31662_v29  ;;  %v31693_v40 = vadd.f32 %v31662_v29, %v12007_v6 }
 0x687   : > { %37036 = vst [vmem:[#allocation104_spill] sm:$0xff] %v31665_v22  ;;  %v31678_v36 = vadd.f32 %v31662_v29, %v12017_v27  ;;  %v12249_v31 = vadd.f32 %v31652_v32, %v12248_v17 }
 0x688   : > { %37038 = vst [vmem:[#allocation103_spill] sm:$0xff] %v31671_v44  ;;  %v12890_v14 = vcombine.low %v31668_v18, %v31671_v44  ;;  %v12891_v49 = vcombine.high %v31668_v18, %v31671_v44  ;;  %v13434_v9 = vcombine.low %v12234_v39, %v12254_v33  ;;  %v13435_v63 = vcombine.high %v12234_v39, %v12254_v33 }
 0x689   : > { %37040 = vst [vmem:[#allocation39_spill] sm:$0xff] %v31678_v36  ;;  %v12618_v59 = vcombine.low %v31675_v50, %v31678_v36  ;;  %v12619_v38 = vcombine.high %v31675_v50, %v31678_v36  ;;  %v13162_v30 = vcombine.low %v12229_v60, %v12249_v31  ;;  %v13163_v16 = vcombine.high %v12229_v60, %v12249_v31  ;;  %v25179_v26 = vpop.f32.mrb[126].mxu0 }
 0x68a   : > { %v25231_v62 = vpop.f32.mrb[110].mxu1  ;;  %37041 = vst [vmem:[#allocation106_spill] sm:$0xff] %v31690_v0  ;;  %37042 = vst [vmem:[#allocation64_spill] sm:$0xff] %v31693_v40  ;;  %v31696_v27 = vrot.slane %v12890_v14, %v36898_v24  ;;  %v12027_v39 = vpop.f32.mrb[127].mxu0  ;;  %v31699_v53 = vrot.slane %v12891_v49, %v36898_v24  ;;  %v13442_v5 = vrot.slane %v13434_v9, %v36898_v24 }
 0x68b   : > { %v12258_v17 = vpop.f32.mrb[111].mxu1  ;;  %v13449_v60 = vrot.slane %v13435_v63, %v36898_v24  ;;  %v31704_v35 = vrot.slane %v12618_v59, %v36898_v24  ;;  %v31706_v25 = vpack.c.bf16 %v12254_v33, %v12249_v31  ;;  %v31709_v6 = vadd.f32 %v25179_v26, %v31662_v29 }
 0x68c   : > { %37043 = vst [vmem:[#allocation31_spill] sm:$0xff] %v31699_v53  ;;  %v12264_v14 = vadd.f32 %v25231_v62, %v31652_v32  ;;  %v31713_v15 = vadd.f32 %v31662_v29, %v12027_v39  ;;  %v31716_v49 = vrot.slane %v12619_v38, %v36898_v24  ;;  %v13170_v9 = vrot.slane %v13162_v30, %v36898_v24 }
 0x68d   : > { %37044 = vst [vmem:[#allocation105_spill] sm:$0xff] %v31704_v35  ;;  %37045 = vst [vmem:[#allocation34_spill] sm:$0xff] %v31706_v25  ;;  %v13177_v63 = vrot.slane %v13163_v16, %v36898_v24  ;;  %v12259_v59 = vadd.f32 %v31652_v32, %v12258_v17  ;;  %v25182_v19 = vpop.f32.mrb[128].mxu0  ;;  %v12906_v31 = vcombine.low %v31690_v0, %v31709_v6 }
 0x68e   : > { %37046 = vst [vmem:[#allocation7_spill] sm:$0xff] %v31709_v6  ;;  %37047 = vst [vmem:[#allocation29_spill] sm:$0xff] %v31713_v15  ;;  %v25234_v33 = vpop.f32.mrb[112].mxu1  ;;  %v12907_v26 = vcombine.high %v31690_v0, %v31709_v6  ;;  %v13450_v62 = vcombine.low %v12244_v58, %v12264_v14  ;;  %v13451_v39 = vcombine.high %v12244_v58, %v12264_v14  ;;  %v12037_v2 = vpop.f32.mrb[129].mxu0 }
 0x68f   : > { %37048 = vst [vmem:[#allocation107_spill] sm:$0xff] %v31716_v49  ;;  %v12268_v1 = vpop.f32.mrb[113].mxu1  ;;  %v12634_v38 = vcombine.low %v31693_v40, %v31713_v15  ;;  %v12635_v30 = vcombine.high %v31693_v40, %v31713_v15  ;;  %v13178_v16 = vcombine.low %v12239_v42, %v12259_v59  ;;  %v13179_v17 = vcombine.high %v12239_v42, %v12259_v59 }
 0x690   : > { %v31730_v21 = vrot.slane %v12906_v31, %v36898_v24  ;;  %v31733_v28 = vrot.slane %v12907_v26, %v36898_v24  ;;  %v13458_v37 = vrot.slane %v13450_v62, %v36898_v24  ;;  %v13465_v58 = vrot.slane %v13451_v39, %v36898_v24 }
 0x691   : > { %v31738_v46 = vrot.slane %v12634_v38, %v36898_v24  ;;  %v31741_v3 = vrot.slane %v12635_v30, %v36898_v24  ;;  %v13186_v57 = vrot.slane %v13178_v16, %v36898_v24  ;;  %v13193_v42 = vrot.slane %v13179_v17, %v36898_v24  ;;  %v25185_v12 = vpop.f32.mrb[130].mxu0 }
 0x692   : > { %37049 = vst [vmem:[#allocation18_spill] sm:$0xff] %v31733_v28  ;;  %v25237_v31 = vpop.f32.mrb[114].mxu1  ;;  %v12047_v30 = vpop.f32.mrb[131].mxu0  ;;  %v13498_v20 = vcombine.low %v13442_v5, %v13458_v37  ;;  %v13499_v16 = vcombine.high %v13442_v5, %v13458_v37  ;;  %v13514_v45 = vcombine.low %v13449_v60, %v13465_v58  ;;  %v13515_v17 = vcombine.high %v13449_v60, %v13465_v58 }
 0x693   : > { %37050 = vst [vmem:[#allocation82_spill] sm:$0xff] %v31738_v46  ;;  %37051 = vst [vmem:[#allocation83_spill] sm:$0xff] %v31741_v3  ;;  %v12278_v56 = vpop.f32.mrb[115].mxu1  ;;  %v13226_v26 = vcombine.low %v13170_v9, %v13186_v57  ;;  %v13227_v43 = vcombine.high %v13170_v9, %v13186_v57  ;;  %v13242_v62 = vcombine.low %v13177_v63, %v13193_v42 }
 0x694   : > { %v31762_v38 = vrot.slane %v13498_v20, %v36903_v54  ;;  %v31765_v10 = vrot.slane %v13499_v16, %v36903_v54  ;;  %v31768_v37 = vrot.slane %v13514_v45, %v36903_v54  ;;  %v31771_v5 = vrot.slane %v13515_v17, %v36903_v54 }
 0x695   : > { %v13243_v8 = vcombine.high %v13177_v63, %v13193_v42  ;;  %v31773_v61 = vpack.c.bf16 %v12264_v14, %v12259_v59  ;;  %v31776_v20 = vadd.f32 %v25182_v19, %v31662_v29  ;;  %v12274_v16 = vadd.f32 %v25234_v33, %v31652_v32 }
 0x696   : > { %37052 = vst [vmem:[#allocation58_spill] sm:$0xff] %v31762_v38  ;;  %37053 = vst [vmem:[#allocation108_spill] sm:$0xff] %v31771_v5  ;;  %v25188_v60 = vpop.f32.mrb[132].mxu0  ;;  %v25240_v58 = vpop.f32.mrb[116].mxu1  ;;  %v31780_v45 = vadd.f32 %v31662_v29, %v12037_v2  ;;  %v31783_v17 = vrot.slane %v13226_v26, %v36903_v54  ;;  %v31786_v23 = vrot.slane %v13227_v43, %v36903_v54 }
 0x697   : > { %v12057_v48 = vpop.f32.mrb[133].mxu0  ;;  %v12288_v39 = vpop.f32.mrb[117].mxu1  ;;  %37054 = vst [vmem:[#allocation109_spill] sm:$0xff] %v31773_v61  ;;  %37055 = vst [vmem:[#allocation56_spill] sm:$0xff] %v31776_v20  ;;  %v31789_v57 = vrot.slane %v13242_v62, %v36903_v54  ;;  %v31792_v14 = vrot.slane %v13243_v8, %v36903_v54  ;;  %v12269_v19 = vadd.f32 %v31652_v32, %v12268_v1 }
 0x698   : > { %37056 = vst [vmem:[#allocation86_spill] sm:$0xff] %v31780_v45  ;;  %v31796_v9 = vadd.f32 %v25185_v12, %v31662_v29  ;;  %v12284_v2 = vadd.f32 %v25237_v31, %v31652_v32  ;;  %v31800_v63 = vadd.f32 %v31662_v29, %v12047_v30  ;;  %v31803_v43 = vadd.f32 %v31652_v32, %v12278_v56 }
 0x699   : > { %37057 = vst [vmem:[#allocation87_spill] sm:$0xff] %v31789_v57  ;;  %37058 = vst [vmem:[#allocation8_spill] sm:$0xff] %v31792_v14  ;;  %v31806_v42 = vadd.f32 %v25188_v60, %v31662_v29  ;;  %v12294_v8 = vadd.f32 %v25240_v58, %v31652_v32  ;;  %v31810_v1 = vadd.f32 %v31662_v29, %v12057_v48 }
 0x69a   : > { %37059 = vst [vmem:[#allocation110_spill] sm:$0xff] %v31796_v9  ;;  %37060 = vst [vmem:[#allocation111_spill] sm:$0xff] %v31800_v63  ;;  %v25191_v59 = vpop.f32.mrb[134].mxu0  ;;  %v25243_v33 = vpop.f32.mrb[118].mxu1  ;;  %v31812_v62 = vpack.c.bf16 %v12274_v16, %v12269_v19  ;;  %v12289_v31 = vadd.f32 %v31652_v32, %v12288_v39  ;;  %v31822_v60 = vpack.c.bf16 %v12284_v2, %v31803_v43 }
 0x69b   : > { %37061 = vst [vmem:[#allocation91_spill] sm:$0xff] %v31806_v42  ;;  %37062 = vst [vmem:[#allocation11_spill] sm:$0xff] %v31810_v1  ;;  %v12067_v12 = vpop.f32.mrb[135].mxu0  ;;  %v12298_v26 = vpop.f32.mrb[119].mxu1  ;;  %v31816_v30 = vadd.f32 %v25191_v59, %v31662_v29  ;;  %v31819_v56 = vadd.f32 %v25243_v33, %v31652_v32  ;;  %v12922_v58 = vcombine.low %v31776_v20, %v31806_v42 }
 0x69c   : > { %37063 = vst [vmem:[#allocation92_spill] sm:$0xff] %v31812_v62  ;;  %37065 = vst [vmem:[#allocation73_spill] sm:$0xff] %v31822_v60  ;;  %v12923_v48 = vcombine.high %v31776_v20, %v31806_v42  ;;  %v13466_v41 = vcombine.low %v12274_v16, %v12294_v8  ;;  %v13467_v4 = vcombine.high %v12274_v16, %v12294_v8 }
 0x69d   : > { %37064 = vst [vmem:[#allocation112_spill] sm:$0xff] %v31816_v30  ;;  %v12650_v39 = vcombine.low %v31780_v45, %v31810_v1  ;;  %v12651_v59 = vcombine.high %v31780_v45, %v31810_v1  ;;  %v13194_v52 = vcombine.low %v12269_v19, %v12289_v31  ;;  %v31833_v47 = vrot.slane %v12922_v58, %v36898_v24 }
 0x69e   : > { %v31836_v55 = vrot.slane %v12923_v48, %v36898_v24  ;;  %v13474_v11 = vrot.slane %v13466_v41, %v36898_v24  ;;  %v13195_v7 = vcombine.high %v12269_v19, %v12289_v31  ;;  %v13481_v6 = vrot.slane %v13467_v4, %v36898_v24 }
 0x69f   : > { %v31841_v60 = vrot.slane %v12650_v39, %v36898_v24  ;;  %v31844_v15 = vrot.slane %v12651_v59, %v36898_v24  ;;  %v31847_v0 = vrot.slane %v13194_v52, %v36898_v24  ;;  %v31852_v48 = vpack.c.bf16 %v12294_v8, %v12289_v31 }
 0x6a0   : > { %v25194_v33 = vpop.f32.mrb[136].mxu0  ;;  %v25246_v13 = vpop.f32.mrb[120].mxu1  ;;  %37066 = vst [vmem:[#allocation113_spill] sm:$0xff] %v31836_v55  ;;  %v31850_v58 = vrot.slane %v13195_v7, %v36898_v24  ;;  %v12938_v41 = vcombine.low %v31796_v9, %v31816_v30  ;;  %v12939_v4 = vcombine.high %v31796_v9, %v31816_v30  ;;  %v13482_v19 = vcombine.low %v12284_v2, %v31819_v56 }
 0x6a1   : > { %v12077_v34 = vpop.f32.mrb[137].mxu0  ;;  %v12308_v16 = vpop.f32.mrb[121].mxu1  ;;  %37067 = vst [vmem:[#allocation96_spill] sm:$0xff] %v31841_v60  ;;  %37068 = vst [vmem:[#allocation36_spill] sm:$0xff] %v31844_v15  ;;  %v13483_v39 = vcombine.high %v12284_v2, %v31819_v56  ;;  %v31861_v59 = vadd.f32 %v31662_v29, %v12067_v12  ;;  %v12299_v52 = vadd.f32 %v31652_v32, %v12298_v26 }
 0x6a2   : > { %37069 = vst [vmem:[#allocation97_spill] sm:$0xff] %v31852_v48  ;;  %v31865_v8 = vrot.slane %v12938_v41, %v36898_v24  ;;  %v31868_v31 = vrot.slane %v12939_v4, %v36898_v24  ;;  %v31871_v40 = vadd.f32 %v25194_v33, %v31662_v29  ;;  %v31874_v30 = vadd.f32 %v25246_v13, %v31652_v32 }
 0x6a3   : > { %37070 = vst [vmem:[#allocation114_spill] sm:$0xff] %v31861_v59  ;;  %v13490_v12 = vrot.slane %v13482_v19, %v36898_v24  ;;  %v13497_v26 = vrot.slane %v13483_v39, %v36898_v24  ;;  %v12666_v22 = vcombine.low %v31800_v63, %v31861_v59  ;;  %v12667_v41 = vcombine.high %v31800_v63, %v31861_v59 }
 0x6a4   : > { %v25197_v61 = vpop.f32.mrb[138].mxu0  ;;  %v25249_v7 = vpop.f32.mrb[122].mxu1  ;;  %37071 = vst [vmem:[#allocation75_spill] sm:$0xff] %v31868_v31  ;;  %37072 = vst [vmem:[#allocation115_spill] sm:$0xff] %v31871_v40  ;;  %v13210_v33 = vcombine.low %v31803_v43, %v12299_v52  ;;  %v13211_v63 = vcombine.high %v31803_v43, %v12299_v52  ;;  %v12309_v43 = vadd.f32 %v31652_v32, %v12308_v16 }
 0x6a5   : > { %v12087_v2 = vpop.f32.mrb[139].mxu0  ;;  %v12318_v9 = vpop.f32.mrb[123].mxu1  ;;  %v13530_v42 = vcombine.low %v13474_v11, %v13490_v12  ;;  %v13531_v39 = vcombine.high %v13474_v11, %v13490_v12  ;;  %v13546_v1 = vcombine.low %v13481_v6, %v13497_v26  ;;  %v13547_v20 = vcombine.high %v13481_v6, %v13497_v26 }
 0x6a6   : > { %v31891_v59 = vrot.slane %v12666_v22, %v36898_v24  ;;  %v31894_v4 = vrot.slane %v12667_v41, %v36898_v24  ;;  %v13218_v41 = vrot.slane %v13210_v33, %v36898_v24  ;;  %v31928_v18 = vadd.f32 %v25197_v61, %v31662_v29 }
 0x6a7   : > { %v31899_v19 = vrot.slane %v13530_v42, %v36903_v54  ;;  %v31902_v11 = vrot.slane %v13531_v39, %v36903_v54  ;;  %v31905_v6 = vrot.slane %v13546_v1, %v36903_v54  ;;  %v31908_v22 = vrot.slane %v13547_v20, %v36903_v54 }
 0x6a8   : > { %v25200_v48 = vpop.f32.mrb[140].mxu0  ;;  %v25252_v45 = vpop.f32.mrb[124].mxu1  ;;  %37073 = vst [vmem:[#allocation77_spill] sm:$0xff] %v31891_v59  ;;  %37074 = vst [vmem:[#allocation117_spill] sm:$0xff] %v31894_v4  ;;  %v12714_v12 = vcombine.low %v31841_v60, %v31891_v59  ;;  %v13225_v1 = vrot.slane %v13211_v63, %v36898_v24  ;;  %v31921_v39 = vpack.c.bf16 %v31819_v56, %v12299_v52 }
 0x6a9   : > { %v12097_v13 = vpop.f32.mrb[141].mxu0  ;;  %v12328_v44 = vpop.f32.mrb[125].mxu1  ;;  %37075 = vst [vmem:[#allocation118_spill] sm:$0xff] %v31899_v19  ;;  %37076 = vst [vmem:[#allocation116_spill] sm:$0xff] %v31908_v22  ;;  %v31924_v20 = vadd.f32 %v31662_v29, %v12077_v34  ;;  %v31931_v26 = vadd.f32 %v25249_v7, %v31652_v32  ;;  %v31934_v33 = vadd.f32 %v31662_v29, %v12087_v2 }
 0x6aa   : > { %37077 = vst [vmem:[#allocation16_spill] sm:$0xff] %v31921_v39  ;;  %37079 = vst [vmem:[#allocation41_spill] sm:$0xff] %v31928_v18  ;;  %v13258_v56 = vcombine.low %v31847_v0, %v13218_v41  ;;  %v13259_v34 = vcombine.high %v31847_v0, %v13218_v41  ;;  %v13274_v52 = vcombine.low %v31850_v58, %v13225_v1 }
 0x6ab   : > { %37078 = vst [vmem:[#allocation119_spill] sm:$0xff] %v31924_v20  ;;  %37080 = vst [vmem:[#allocation30_spill] sm:$0xff] %v31934_v33  ;;  %v13275_v39 = vcombine.high %v31850_v58, %v13225_v1  ;;  %v31941_v16 = vpack.c.bf16 %v31874_v30, %v12309_v43  ;;  %v31944_v61 = vadd.f32 %v31652_v32, %v12318_v9 }
 0x6ac   : > { %v31947_v7 = vadd.f32 %v25200_v48, %v31662_v29  ;;  %v12334_v2 = vadd.f32 %v25252_v45, %v31652_v32  ;;  %v31951_v14 = vrot.slane %v13258_v56, %v36903_v54  ;;  %v31954_v0 = vrot.slane %v13259_v34, %v36903_v54 }
 0x6ad   : > { %37081 = vst [vmem:[#allocation13_spill] sm:$0xff] %v31941_v16  ;;  %v31957_v41 = vrot.slane %v13274_v52, %v36903_v54  ;;  %v31960_v58 = vrot.slane %v13275_v39, %v36903_v54  ;;  %v31964_v48 = vpack.c.bf16 %v31931_v26, %v31944_v61  ;;  %v12329_v25 = vadd.f32 %v31652_v32, %v12328_v44 }
 0x6ae   : > { %v25203_v62 = vpop.f32.mrb[142].mxu0  ;;  %v25255_v36 = vpop.f32.mrb[126].mxu1  ;;  %37082 = vst [vmem:[#allocation10_spill] sm:$0xff] %v31947_v7  ;;  %v13026_v45 = vcombine.low %v31871_v40, %v31947_v7  ;;  %v13027_v56 = vcombine.high %v31871_v40, %v31947_v7  ;;  %v13570_v34 = vcombine.low %v31874_v30, %v12334_v2  ;;  %v13571_v39 = vcombine.high %v31874_v30, %v12334_v2 }
 0x6af   : > { %v12107_v63 = vpop.f32.mrb[143].mxu0  ;;  %v12338_v42 = vpop.f32.mrb[127].mxu1  ;;  %37083 = vst [vmem:[#allocation76_spill] sm:$0xff] %v31957_v41  ;;  %37084 = vst [vmem:[#allocation78_spill] sm:$0xff] %v31960_v58  ;;  %v31977_v58 = vadd.f32 %v31662_v29, %v12097_v13  ;;  %v37089_v30 = vcombine.low %v31833_v47, %v31865_v8  ;;  %v13299_v3 = vcombine.high %v12309_v43, %v12329_v25 }
 0x6b0   : > { %37085 = vst [vmem:[#allocation40_spill] sm:$0xff] %v31964_v48  ;;  %v37087_v48 = vcombine.low %v31696_v27, %v31730_v21  ;;  %v31987_v7 = vrot.slane %v13026_v45, %v36898_v24  ;;  %v31990_v40 = vrot.slane %v13027_v56, %v36898_v24  ;;  %v31993_v4 = vrot.slane %v13570_v34, %v36898_v24 }
 0x6b1   : > { %37086 = vst [vmem:[#allocation44_spill] sm:$0xff] %v31977_v58  ;;  %v31999_v44 = vrot.slane %v37089_v30, %v36903_v54  ;;  %v32002_v13 = vrot.slane %v13571_v39, %v36898_v24  ;;  %v12755_v45 = vcombine.high %v31924_v20, %v31977_v58  ;;  %v13298_v56 = vcombine.low %v12309_v43, %v12329_v25 }
 0x6b2   : > { %v25206_v1 = vpop.f32.mrb[144].mxu0  ;;  %v25258_v9 = vpop.f32.mrb[128].mxu1  ;;  %v31984_v50 = vrot.slane %v37087_v48, %v36903_v54  ;;  %v12754_v48 = vcombine.low %v31924_v20, %v31977_v58  ;;  %v32012_v49 = vpack.c.bf16 %v12334_v2, %v12329_v25  ;;  %v37092_v39 = vcombine.low %v31704_v35, %v31738_v46 }
 0x6b3   : > { %v31971_v16 = vpop.f32.mrb[145].mxu0  ;;  %v31973_v52 = vpop.f32.mrb[129].mxu1  ;;  %37090 = vst [vmem:[#allocation28_spill] sm:$0xff] %v31999_v44  ;;  %v32030_v43 = vrot.slane %v12755_v45, %v36898_v24  ;;  %v32033_v25 = vrot.slane %v13298_v56, %v36898_v24  ;;  %v32036_v2 = vrot.slane %v12714_v12, %v36903_v54  ;;  %v32049_v45 = vadd.f32 %v31662_v29, %v12107_v63 }
 0x6b4   : > { %37088 = vst [vmem:[#allocation27_spill] sm:$0xff] %v31984_v50  ;;  %37091 = vst [vmem:[#allocation33_spill] sm:$0xff] %v32012_v49  ;;  %v13018_v30 = vcombine.low %v31984_v50, %v31999_v44  ;;  %v32020_v51 = vrot.slane %v37092_v39, %v36903_v54  ;;  %v32027_v20 = vrot.slane %v12754_v48, %v36898_v24 }
 0x6b5   : > { %v32039_v49 = vrot.slane %v13299_v3, %v36898_v24  ;;  %v32043_v39 = vadd.f32 %v25203_v62, %v31662_v29  ;;  %v32046_v48 = vadd.f32 %v25255_v36, %v31652_v32  ;;  %37094 = vst [vmem:[#allocation5_spill] sm:$0xff] %v32049_v45  ;;  %v32054_v12 = vadd.f32 %v31652_v32, %v12338_v42 }
 0x6b6   : > { %v32008_v15 = vpop.f32.mrb[146].mxu0  ;;  %v32010_v34 = vpop.f32.mrb[130].mxu1  ;;  %25380 = vmatprep.mubr.msk.f32.mxu0 %vm2946_vm1, %v13018_v30  ;;  %v12746_v56 = vcombine.low %v32020_v51, %v32036_v2  ;;  %v32057_v3 = vadd.f32 %v25206_v1, %v31662_v29  ;;  %v32060_v30 = vadd.f32 %v25258_v9, %v31652_v32  ;;  %v12770_v41 = vcombine.low %v31934_v33, %v32049_v45 }
 0x6b7   : > { %v32022_v57 = vpop.f32.mrb[147].mxu0  ;;  %v32024_v58 = vpop.f32.mrb[131].mxu1  ;;  %37093 = vst [vmem:[#allocation63_spill] sm:$0xff] %v32043_v39  ;;  %v13042_v36 = vcombine.low %v31928_v18, %v32043_v39  ;;  %v13043_v63 = vcombine.high %v31928_v18, %v32043_v39  ;;  %v13586_v42 = vcombine.low %v31931_v26, %v32046_v48  ;;  %v13587_v1 = vcombine.high %v31931_v26, %v32046_v48 }
 0x6b8   : > { %37095 = vst [vmem:[#allocation21_spill] sm:$0xff] %v32057_v3  ;;  %25324 = vmatprep.mubr.msk.f32.mxu1 %vm2946_vm1, %v12746_v56  ;;  %v12771_v5 = vcombine.high %v31934_v33, %v32049_v45  ;;  %v13314_v39 = vcombine.low %v31944_v61, %v32054_v12  ;;  %v13315_v18 = vcombine.high %v31944_v61, %v32054_v12 }
 0x6b9   : > { %v13050_v26 = vrot.slane %v13042_v36, %v36898_v24  ;;  %v13057_v22 = vrot.slane %v13043_v63, %v36898_v24  ;;  %v13594_v59 = vrot.slane %v13586_v42, %v36898_v24  ;;  %v13601_v56 = vrot.slane %v13587_v1, %v36898_v24 }
 0x6ba   : > { %v32062_v62 = vpop.f32.mrb[148].mxu0  ;;  %v32064_v50 = vpop.f32.mrb[132].mxu1  ;;  %v12778_v60 = vrot.slane %v12770_v41, %v36898_v24  ;;  %v12785_v46 = vrot.slane %v12771_v5, %v36898_v24  ;;  %v13322_v45 = vrot.slane %v13314_v39, %v36898_v24  ;;  %v13329_v33 = vrot.slane %v13315_v18, %v36898_v24 }
 0x6bb   : > { %v32074_v44 = vpop.f32.mrb[149].mxu0  ;;  %v32076_v9 = vpop.f32.mrb[133].mxu1  ;;  %v13090_v61 = vcombine.low %v31987_v7, %v13050_v26  ;;  %v13091_v36 = vcombine.high %v31987_v7, %v13050_v26  ;;  %v13106_v63 = vcombine.low %v31990_v40, %v13057_v22  ;;  %v13107_v42 = vcombine.high %v31990_v40, %v13057_v22 }
 0x6bc   : > { %v13634_v5 = vcombine.low %v31993_v4, %v13594_v59  ;;  %v13635_v39 = vcombine.high %v31993_v4, %v13594_v59  ;;  %v13650_v18 = vcombine.low %v32002_v13, %v13601_v56  ;;  %v13651_v55 = vcombine.high %v32002_v13, %v13601_v56 }
 0x6bd   : > { %v32110_v28 = vrot.slane %v13090_v61, %v36903_v54  ;;  %v32113_v7 = vrot.slane %v13091_v36, %v36903_v54  ;;  %v32116_v40 = vrot.slane %v13106_v63, %v36903_v54  ;;  %v32119_v22 = vrot.slane %v13107_v42, %v36903_v54 }
 0x6be   : > { %v25215_v35 = vpop.f32.mrb[150].mxu0  ;;  %v32095_v31 = vpop.f32.mrb[134].mxu1  ;;  %v32122_v26 = vrot.slane %v13634_v5, %v36903_v54  ;;  %v32125_v59 = vrot.slane %v13635_v39, %v36903_v54  ;;  %v32128_v4 = vrot.slane %v13650_v18, %v36903_v54  ;;  %v32131_v13 = vrot.slane %v13651_v55, %v36903_v54 }
 0x6bf   : > { %v32101_v1 = vpop.f32.mrb[151].mxu0  ;;  %v32103_v41 = vpop.f32.mrb[135].mxu1  ;;  %37096 = vst [vmem:[#allocation74_spill] sm:$0xff] %v32113_v7  ;;  %37097 = vst [vmem:[#allocation55_spill] sm:$0xff] %v32116_v40  ;;  %v12818_v61 = vcombine.low %v32027_v20, %v12778_v60  ;;  %v12819_v36 = vcombine.high %v32027_v20, %v12778_v60  ;;  %v12834_v63 = vcombine.low %v32030_v43, %v12785_v46 }
 0x6c0   : > { %37098 = vst [vmem:[#allocation45_spill] sm:$0xff] %v32119_v22  ;;  %37099 = vst [vmem:[#allocation54_spill] sm:$0xff] %v32122_v26  ;;  %v12835_v42 = vcombine.high %v32030_v43, %v12785_v46  ;;  %v13362_v22 = vcombine.low %v32033_v25, %v13322_v45  ;;  %v13363_v39 = vcombine.high %v32033_v25, %v13322_v45 }
 0x6c1   : > { %37100 = vst [vmem:[#allocation24_spill] sm:$0xff] %v32125_v59  ;;  %37101 = vst [vmem:[#allocation17_spill] sm:$0xff] %v32131_v13  ;;  %v13378_v18 = vcombine.low %v32039_v49, %v13329_v33  ;;  %v13379_v40 = vcombine.high %v32039_v49, %v13329_v33  ;;  %v32142_v55 = vrot.slane %v12818_v61, %v36903_v54 }
 0x6c2   : > { %v25274_v56 = vpop.f32.mrb[152].mxu0  ;;  %v32145_v13 = vrot.slane %v12819_v36, %v36903_v54  ;;  %v32148_v60 = vrot.slane %v12834_v63, %v36903_v54  ;;  %v32151_v46 = vrot.slane %v12835_v42, %v36903_v54  ;;  %v32154_v20 = vrot.slane %v13362_v22, %v36903_v54 }
 0x6c3   : > { %v12459_v5 = vpop.f32.mrb[153].mxu0  ;;  %v32157_v43 = vrot.slane %v13363_v39, %v36903_v54  ;;  %v32160_v49 = vrot.slane %v13378_v18, %v36903_v54  ;;  %v32163_v33 = vrot.slane %v13379_v40, %v36903_v54  ;;  %v32167_v45 = vpack.c.bf16 %v32046_v48, %v32054_v12 }
 0x6c4   : > { %37102 = vst [vmem:[#allocation79_spill] sm:$0xff] %v32145_v13  ;;  %37103 = vst [vmem:[#allocation14_spill] sm:$0xff] %v32148_v60  ;;  %v32171_v61 = vadd.f32 %v31662_v29, %v31971_v16  ;;  %v12349_v22 = vadd.f32 %v31652_v32, %v31973_v52  ;;  %v32177_v36 = vadd.f32 %v32008_v15, %v31662_v29 }
 0x6c5   : > { %37104 = vst [vmem:[#allocation59_spill] sm:$0xff] %v32151_v46  ;;  %37105 = vst [vmem:[#allocation85_spill] sm:$0xff] %v32157_v43  ;;  %v12364_v40 = vadd.f32 %v32010_v34, %v31652_v32  ;;  %v32185_v48 = vadd.f32 %v31662_v29, %v32022_v57  ;;  %v32189_v16 = vadd.f32 %v31652_v32, %v32024_v58 }
 0x6c6   : > { %37106 = vst [vmem:[#allocation43_spill] sm:$0xff] %v32160_v49  ;;  %37107 = vst [vmem:[#allocation20_spill] sm:$0xff] %v32163_v33  ;;  %v25277_v25 = vpop.f32.mrb[154].mxu0  ;;  %v32193_v52 = vadd.f32 %v32062_v62, %v31662_v29  ;;  %v32196_v15 = vpack.c.bf16 %v32060_v30, %v12349_v22  ;;  %v12374_v12 = vadd.f32 %v32064_v50, %v31652_v32 }
 0x6c7   : > { %37108 = vst [vmem:[#allocation89_spill] sm:$0xff] %v32167_v45  ;;  %37109 = vst [vmem:[#allocation67_spill] sm:$0xff] %v32171_v61  ;;  %v32179_v63 = vpop.f32.mrb[155].mxu0  ;;  %v32202_v34 = vadd.f32 %v31662_v29, %v32074_v44  ;;  %v12369_v57 = vadd.f32 %v31652_v32, %v32076_v9  ;;  %v32207_v58 = vpack.c.bf16 %v12364_v40, %v32189_v16 }
 0x6c8   : > { %37110 = vst [vmem:[#allocation81_spill] sm:$0xff] %v32177_v36  ;;  %37111 = vst [vmem:[#allocation57_spill] sm:$0xff] %v32185_v48  ;;  %v13058_v62 = vcombine.low %v32057_v3, %v32193_v52  ;;  %v13059_v42 = vcombine.high %v32057_v3, %v32193_v52  ;;  %v32214_v39 = vadd.f32 %v25215_v35, %v31662_v29 }
 0x6c9   : > { %37112 = vst [vmem:[#allocation80_spill] sm:$0xff] %v32193_v52  ;;  %37113 = vst [vmem:[#allocation93_spill] sm:$0xff] %v32196_v15  ;;  %v13602_v44 = vcombine.low %v32060_v30, %v12374_v12  ;;  %v13603_v18 = vcombine.high %v32060_v30, %v12374_v12  ;;  %v12786_v9 = vcombine.low %v32171_v61, %v32202_v34 }
 0x6ca   : > { %37114 = vst [vmem:[#allocation49_spill] sm:$0xff] %v32202_v34  ;;  %37115 = vst [vmem:[#allocation69_spill] sm:$0xff] %v32207_v58  ;;  %v32216_v50 = vpop.f32.mrb[156].mxu0  ;;  %v12787_v58 = vcombine.high %v32171_v61, %v32202_v34  ;;  %v13066_v15 = vrot.slane %v13058_v62, %v36898_v24  ;;  %v13073_v52 = vrot.slane %v13059_v42, %v36898_v24  ;;  %v32235_v34 = vld [vmem:[%s35852_s12] ss:$0 sm:$0xff] }
 0x6cb   : > { %37116 = vst [vmem:[#allocation120_spill] sm:$0xff] %v32214_v39  ;;  %v32224_v45 = vpop.f32.mrb[157].mxu0  ;;  %v13330_v35 = vcombine.low %v12349_v22, %v12369_v57  ;;  %v13331_v3 = vcombine.high %v12349_v22, %v12369_v57  ;;  %v13610_v46 = vrot.slane %v13602_v44, %v36898_v24  ;;  %v13617_v33 = vrot.slane %v13603_v18, %v36898_v24 }
 0x6cc   : > { %v12794_v30 = vrot.slane %v12786_v9, %v36898_v24  ;;  %v12801_v60 = vrot.slane %v12787_v58, %v36898_v24  ;;  %v32243_v22 = vpack.c.bf16 %v12374_v12, %v12369_v57  ;;  %v13074_v42 = vcombine.low %v32177_v36, %v32214_v39 }
 0x6cd   : > { %v32238_v61 = vrot.slane %v13330_v35, %v36898_v24  ;;  %v32241_v62 = vrot.slane %v13331_v3, %v36898_v24  ;;  %v13075_v58 = vcombine.high %v32177_v36, %v32214_v39  ;;  %v12384_v18 = vadd.f32 %v32095_v31, %v31652_v32 }
 0x6ce   : > { %37117 = vst [vmem:[#allocation121_spill] sm:$0xff] %v32243_v22  ;;  %v32247_v44 = vpop.f32.mrb[158].mxu0  ;;  %v32255_v9 = vadd.f32 %v31662_v29, %v32101_v1  ;;  %v12379_v3 = vadd.f32 %v31652_v32, %v32103_v41  ;;  %v13082_v57 = vrot.slane %v13074_v42, %v36898_v24  ;;  %v32263_v35 = vadd.f32 %v25274_v56, %v32235_v34 }
 0x6cf   : > { %v32259_v12 = vpop.f32.mrb[159].mxu0  ;;  %v32266_v22 = vadd.f32 %v32235_v34, %v12459_v5  ;;  %v32269_v39 = vadd.f32 %v25277_v25, %v32235_v34  ;;  %v13089_v31 = vrot.slane %v13075_v58, %v36898_v24  ;;  %v13618_v29 = vcombine.low %v12364_v40, %v12384_v18 }
 0x6d0   : > { %37118 = vst [vmem:[#allocation122_spill] sm:$0xff] %v32255_v9  ;;  %37119 = vst [vmem:[#allocation123_spill] sm:$0xff] %v32263_v35  ;;  %v13619_v1 = vcombine.high %v12364_v40, %v12384_v18  ;;  %v12802_v32 = vcombine.low %v32185_v48, %v32255_v9  ;;  %v13122_v41 = vcombine.low %v13066_v15, %v13082_v57 }
 0x6d1   : > { %37120 = vst [vmem:[#allocation124_spill] sm:$0xff] %v32266_v22  ;;  %37121 = vst [vmem:[#allocation125_spill] sm:$0xff] %v32269_v39  ;;  %v13123_v36 = vcombine.high %v13066_v15, %v13082_v57  ;;  %v12803_v42 = vcombine.high %v32185_v48, %v32255_v9  ;;  %v13346_v56 = vcombine.low %v32189_v16, %v12379_v3 }
 0x6d2   : > { %v32277_v49 = vpop.f32.mrb[160].mxu0  ;;  %v13138_v5 = vcombine.low %v13073_v52, %v13089_v31  ;;  %v13139_v13 = vcombine.high %v13073_v52, %v13089_v31  ;;  %v13626_v25 = vrot.slane %v13618_v29, %v36898_v24  ;;  %v13633_v58 = vrot.slane %v13619_v1, %v36898_v24 }
 0x6d3   : > { %v32281_v53 = vpop.f32.mrb[161].mxu0  ;;  %v32284_v40 = vrot.slane %v13122_v41, %v36903_v54  ;;  %v32287_v15 = vrot.slane %v13123_v36, %v36903_v54  ;;  %v12810_v57 = vrot.slane %v12802_v32, %v36898_v24  ;;  %v12817_v9 = vrot.slane %v12803_v42, %v36898_v24 }
 0x6d4   : > { %v32292_v48 = vrot.slane %v13138_v5, %v36903_v54  ;;  %v32295_v52 = vrot.slane %v13139_v13, %v36903_v54  ;;  %v13666_v31 = vcombine.low %v13610_v46, %v13626_v25  ;;  %v13667_v29 = vcombine.high %v13610_v46, %v13626_v25 }
 0x6d5   : > { %v13682_v41 = vcombine.low %v13617_v33, %v13633_v58  ;;  %v13683_v7 = vcombine.high %v13617_v33, %v13633_v58  ;;  %v12850_v43 = vcombine.low %v12794_v30, %v12810_v57  ;;  %v12851_v5 = vcombine.high %v12794_v30, %v12810_v57 }
 0x6d6   : > { %37122 = vst [vmem:[#allocation126_spill] sm:$0xff] %v32292_v48  ;;  %37123 = vst [vmem:[#allocation127_spill] sm:$0xff] %v32295_v52  ;;  %v32299_v36 = vpop.f32.mrb[162].mxu0  ;;  %v32302_v32 = vrot.slane %v13666_v31, %v36903_v54  ;;  %v32305_v42 = vrot.slane %v13667_v29, %v36903_v54  ;;  %v12866_v48 = vcombine.low %v12801_v60, %v12817_v9 }
 0x6d7   : > { %v32307_v13 = vpop.f32.mrb[163].mxu0  ;;  %v32310_v46 = vrot.slane %v13682_v41, %v36903_v54  ;;  %v32313_v25 = vrot.slane %v13683_v7, %v36903_v54  ;;  %v32316_v33 = vrot.slane %v12850_v43, %v36903_v54  ;;  %v12867_v58 = vcombine.high %v12801_v60, %v12817_v9 }
 0x6d8   : > { %37124 = vst [vmem:[#allocation128_spill] sm:$0xff] %v32302_v32  ;;  %37125 = vst [vmem:[#allocation129_spill] sm:$0xff] %v32305_v42  ;;  %v32319_v31 = vrot.slane %v12851_v5, %v36903_v54  ;;  %v32322_v29 = vrot.slane %v12866_v48, %v36903_v54  ;;  %v13347_v30 = vcombine.high %v32189_v16, %v12379_v3 }
 0x6d9   : > { %v13354_v57 = vrot.slane %v13346_v56, %v36898_v24  ;;  %v32327_v41 = vrot.slane %v12867_v58, %v36903_v54  ;;  %v32331_v1 = vpack.c.bf16 %v12384_v18, %v12379_v3  ;;  %v32335_v60 = vadd.f32 %v32235_v34, %v32179_v63 }
 0x6da   : > { %v32337_v43 = vpop.f32.mrb[164].mxu0  ;;  %v13361_v48 = vrot.slane %v13347_v30, %v36898_v24  ;;  %v32344_v56 = vadd.f32 %v32216_v50, %v32235_v34  ;;  %v32350_v18 = vadd.f32 %v32235_v34, %v32224_v45  ;;  %v13562_v63 = vcombine.low %v31762_v38, %v31899_v19 }
 0x6db   : > { %37126 = vst [vmem:[#allocation130_spill] sm:$0xff] %v32331_v1  ;;  %37127 = vst [vmem:[#allocation131_spill] sm:$0xff] %v32335_v60  ;;  %v13394_v16 = vcombine.low %v32238_v61, %v13354_v57  ;;  %v13395_v9 = vcombine.high %v32238_v61, %v13354_v57  ;;  %v32346_v5 = vpop.f32.mrb[165].mxu0  ;;  %v13698_v3 = vcombine.low %v32122_v26, %v32302_v32 }
 0x6dc   : > { %37128 = vst [vmem:[#allocation132_spill] sm:$0xff] %v32344_v56  ;;  %37129 = vst [vmem:[#allocation133_spill] sm:$0xff] %v32350_v18  ;;  %v32358_v58 = vadd.f32 %v32247_v44, %v32235_v34  ;;  %v13410_v30 = vcombine.low %v32241_v62, %v13361_v48  ;;  %v13411_v45 = vcombine.high %v32241_v62, %v13361_v48 }
 0x6dd   : > { %v13402_v61 = vrot.slane %v13394_v16, %v36903_v54  ;;  %v32362_v50 = vrot.slane %v13395_v9, %v36903_v54  ;;  %v13978_v57 = vcombine.low %v32263_v35, %v32344_v56  ;;  %v13979_v7 = vcombine.high %v32263_v35, %v32344_v56 }
 0x6de   : > { %37130 = vst [vmem:[#allocation134_spill] sm:$0xff] %v32358_v58  ;;  %v13706_v1 = vcombine.low %v32266_v22, %v32350_v18  ;;  %v13707_v44 = vcombine.high %v32266_v22, %v32350_v18  ;;  %v32374_v16 = vpop.f32.mrb[166].mxu0  ;;  %v32377_v9 = vrot.slane %v13410_v30, %v36903_v54  ;;  %v32380_v26 = vrot.slane %v13411_v45, %v36903_v54 }
 0x6df   : > { %v26160_v62 = vpack.c.bf16 %v13698_v3, %v13562_v63  ;;  %v13994_v48 = vcombine.low %v32269_v39, %v32358_v58  ;;  %v32384_v32 = vpop.f32.mrb[167].mxu0  ;;  %v32387_v56 = vrot.slane %v13978_v57, %v36898_v24  ;;  %v32390_v35 = vrot.slane %v13979_v7, %v36898_v24 }
 0x6e0   : > { %v32393_v18 = vrot.slane %v13706_v1, %v36898_v24  ;;  %v32396_v30 = vrot.slane %v13707_v44, %v36898_v24  ;;  %v13995_v63 = vcombine.high %v32269_v39, %v32358_v58  ;;  %v13290_v57 = vcombine.low %v31783_v17, %v31951_v14 }
 0x6e1   : > { %37131 = vst [vmem:[#allocation135_spill] sm:$0xff] %v32387_v56  ;;  %37132 = vst [vmem:[#allocation136_spill] sm:$0xff] %v32390_v35  ;;  %26162 = vmatprep.subr.msk.bf16.mxu0 %vm28039_vm2, %v26160_v62  ;;  %v32403_v3 = vrot.slane %v13994_v48, %v36898_v24  ;;  %v13426_v7 = vcombine.low %v32154_v20, %v13402_v61  ;;  %v32412_v1 = vadd.f32 %v32235_v34, %v32259_v12 }
 0x6e2   : > { %37133 = vst [vmem:[#allocation137_spill] sm:$0xff] %v32393_v18  ;;  %37134 = vst [vmem:[#allocation138_spill] sm:$0xff] %v32396_v30  ;;  %26165 = vmatpush3.bf16.xpose.msk.msra.mxu0 %vm28039_vm2, %v26160_v62  ;;  %v13564_v44 = vcombine.low %v31765_v10, %v31902_v11  ;;  %v13700_v58 = vcombine.low %v32125_v59, %v32305_v42  ;;  %v13291_v48 = vcombine.high %v31783_v17, %v31951_v14  ;;  %v32420_v39 = vpop.f32.mrb[168].mxu0  ;;  %v37174_v18 = vld [vmem:[#allocation108_spill] sm:$0xff] }
 0x6e3   : > { %37136 = vst [vmem:[#allocation71_spill] sm:$0xff] %v32403_v3  ;;  %37137 = vst [vmem:[#allocation139_spill] sm:$0xff] %v32412_v1  ;;  %v32423_v22 = vrot.slane %v13995_v63, %v36898_v24  ;;  %v26112_v38 = vpack.c.bf16 %v13426_v7, %v13290_v57  ;;  %v32429_v19 = vpop.f32.mrb[169].mxu0  ;;  %v13722_v59 = vcombine.low %v32335_v60, %v32412_v1 }
 0x6e4   : > { %v13723_v17 = vcombine.high %v32335_v60, %v32412_v1  ;;  %v26172_v14 = vpack.c.bf16 %v13700_v58, %v13564_v44  ;;  %v13427_v42 = vcombine.high %v32154_v20, %v13402_v61  ;;  %v32444_v57 = vadd.f32 %v32277_v49, %v32235_v34 }
 0x6e5   : > { %37138 = vst [vmem:[#allocation140_spill] sm:$0xff] %v32423_v22  ;;  %26114 = vmatprep.subr.msk.bf16.mxu1 %vm28039_vm2, %v26112_v38  ;;  %v32448_v7 = vadd.f32 %v32235_v34, %v32281_v53  ;;  %v32451_v58 = vrot.slane %v13722_v59, %v36898_v24  ;;  %v32464_v49 = vadd.f32 %v32299_v36, %v32235_v34 }
 0x6e6   : > { %37139 = vst [vmem:[#allocation141_spill] sm:$0xff] %v32444_v57  ;;  %v32454_v20 = vrot.slane %v13723_v17, %v36898_v24  ;;  %26117 = vmatpush3.bf16.xpose.msk.msra.mxu1 %vm28039_vm2, %v26112_v38  ;;  %26174 = vmatprep.subr.msk.bf16.mxu0 %vm28039_vm2, %v26172_v14  ;;  %v26118_v61 = vpack.c.bf16 %v13427_v42, %v13291_v48  ;;  %v32460_v44 = vpop.f32.mrb[170].mxu0 }
 0x6e7   : > { %37140 = vst [vmem:[#allocation142_spill] sm:$0xff] %v32448_v7  ;;  %37141 = vst [vmem:[#allocation143_spill] sm:$0xff] %v32451_v58  ;;  %v37144_v53 = vcombine.high %v31696_v27, %v31730_v21  ;;  %v37145_v38 = vcombine.high %v31833_v47, %v31865_v8  ;;  %v32480_v42 = vadd.f32 %v32235_v34, %v32307_v13  ;;  %v32482_v48 = vpop.f32.mrb[171].mxu0 }
 0x6e8   : > { %37142 = vst [vmem:[#allocation144_spill] sm:$0xff] %v32454_v20  ;;  %37143 = vst [vmem:[#allocation145_spill] sm:$0xff] %v32464_v49  ;;  %26120 = vmatprep.subr.msk.bf16.mxu1 %vm28039_vm2, %v26118_v61  ;;  %v37147_v8 = vcombine.low %v32110_v28, %v32284_v40  ;;  %v13702_v62 = vcombine.low %v32128_v4, %v32310_v46  ;;  %v13292_v63 = vcombine.low %v31786_v23, %v31954_v0  ;;  %v37171_v20 = vld [vmem:[#allocation77_spill] sm:$0xff] }
 0x6e9   : > { %v32470_v59 = vrot.slane %v37144_v53, %v36903_v54  ;;  %v32476_v17 = vrot.slane %v37145_v38, %v36903_v54  ;;  %37146 = vst [vmem:[#allocation146_spill] sm:$0xff] %v32480_v42  ;;  %v12747_v53 = vcombine.high %v32020_v51, %v32036_v2  ;;  %v13566_v38 = vcombine.low %v31768_v37, %v31905_v6 }
 0x6ea   : > { %25381 = vmatmul.mubr.msk.f32.vlgmr.msra.gmra.mrb[184].mxu0 %vm2946_vm1, %v37147_v8  ;;  %v37148_v8 = vld [vmem:[#allocation85_spill] sm:$0xff]  ;;  %v32514_v47 = vadd.f32 %v32337_v43, %v32235_v34  ;;  %v32518_v51 = vadd.f32 %v32235_v34, %v32346_v5  ;;  %v32520_v2 = vpop.f32.mrb[172].mxu0  ;;  %v32527_v36 = vadd.f32 %v32374_v16, %v32235_v34  ;;  %v12883_v43 = vcombine.high %v32142_v55, %v32316_v33 }
 0x6eb   : > { %v13020_v13 = vcombine.low %v32470_v59, %v32476_v17  ;;  %26177 = vmatpush3.bf16.xpose.msk.msra.mxu0 %vm28039_vm2, %v26172_v14  ;;  %v13428_v12 = vcombine.low %v37148_v8, %v32362_v50  ;;  %v26184_v27 = vpack.c.bf16 %v13702_v62, %v13566_v38  ;;  %v37151_v14 = vld [vmem:[#allocation74_spill] sm:$0xff]  ;;  %v32531_v1 = vpop.f32.mrb[173].mxu0  ;;  %v37153_v38 = vcombine.low %v32142_v55, %v32316_v33 }
 0x6ec   : > { %37149 = vst [vmem:[#allocation85_spill] sm:$0xff] %v32514_v47  ;;  %37150 = vst [vmem:[#allocation147_spill] sm:$0xff] %v32518_v51  ;;  %v13156_v21 = vcombine.low %v37151_v14, %v32287_v15  ;;  %v14010_v5 = vcombine.low %v32444_v57, %v32514_v47  ;;  %v13738_v62 = vcombine.low %v32448_v7, %v32518_v51 }
 0x6ed   : > { %25394 = vmatprep.mubr.msk.f32.mxu0 %vm2946_vm1, %v13020_v13  ;;  %37152 = vst [vmem:[#allocation74_spill] sm:$0xff] %v32527_v36  ;;  %v26124_v60 = vpack.c.bf16 %v13428_v12, %v13292_v63  ;;  %v14011_v13 = vcombine.high %v32444_v57, %v32514_v47  ;;  %25325 = vmatmul.mubr.msk.f32.vlgmr.msra.gmra.mrb[136].mxu1 %vm2946_vm1, %v37153_v38  ;;  %v37163_v57 = vld [vmem:[#allocation113_spill] sm:$0xff] }
 0x6ee   : > { %26186 = vmatprep.subr.msk.bf16.mxu0 %vm28039_vm2, %v26184_v27  ;;  %v13739_v16 = vcombine.high %v32448_v7, %v32518_v51  ;;  %v14026_v12 = vcombine.low %v32464_v49, %v32527_v36  ;;  %v14027_v63 = vcombine.high %v32464_v49, %v32527_v36  ;;  %26123 = vmatpush3.bf16.xpose.msk.msra.mxu1 %vm28039_vm2, %v26118_v61  ;;  %v25307_v47 = vpop.f32.mrb[174].mxu0  ;;  %v37164_v7 = vld [vmem:[#allocation75_spill] sm:$0xff] }
 0x6ef   : > { %25331 = vmatprep.mubr.msk.f32.mxu1 %vm2946_vm1, %v12747_v53  ;;  %v32555_v55 = vrot.slane %v14010_v5, %v36898_v24  ;;  %v32558_v33 = vrot.slane %v14011_v13, %v36898_v24  ;;  %v32561_v38 = vrot.slane %v13738_v62, %v36898_v24  ;;  %26126 = vmatprep.subr.msk.bf16.mxu1 %vm28039_vm2, %v26124_v60  ;;  %v37160_v5 = vld [vmem:[#allocation31_spill] sm:$0xff]  ;;  %v37161_v13 = vld [vmem:[#allocation18_spill] sm:$0xff]  ;;  %v12569_v62 = vpop.f32.mrb[175].mxu0 }
 0x6f0   : > { %v32566_v36 = vrot.slane %v13739_v16, %v36898_v24  ;;  %v32569_v61 = vrot.slane %v14026_v12, %v36898_v24  ;;  %v32572_v53 = vrot.slane %v14027_v63, %v36898_v24  ;;  %v37162_v51 = vcombine.low %v37160_v5, %v37161_v13  ;;  %v37167_v12 = vld [vmem:[#allocation105_spill] sm:$0xff]  ;;  %v37168_v63 = vld [vmem:[#allocation82_spill] sm:$0xff] }
 0x6f1   : > { %37154 = vst [vmem:[#allocation148_spill] sm:$0xff] %v32555_v55  ;;  %37155 = vst [vmem:[#allocation149_spill] sm:$0xff] %v32558_v33  ;;  %v37165_v22 = vcombine.low %v37163_v57, %v37164_v7  ;;  %v32588_v16 = vadd.f32 %v32235_v34, %v32384_v32  ;;  %v37169_v3 = vcombine.high %v37167_v12, %v37168_v63  ;;  %v37175_v32 = vld [vmem:[#allocation17_spill] sm:$0xff] }
 0x6f2   : > { %37156 = vst [vmem:[#allocation150_spill] sm:$0xff] %v32561_v38  ;;  %37157 = vst [vmem:[#allocation151_spill] sm:$0xff] %v32566_v36  ;;  %v32578_v49 = vrot.slane %v37162_v51, %v36903_v54  ;;  %v37170_v51 = vld [vmem:[#allocation96_spill] sm:$0xff]  ;;  %25395 = vmatmul.mubr.msk.f32.vlgmr.msra.gmra.mrb[186].mxu0 %vm2946_vm1, %v13156_v21  ;;  %v32621_v63 = vpop.f32.mrb[176].mxu0 }
 0x6f3   : > { %37158 = vst [vmem:[#allocation152_spill] sm:$0xff] %v32569_v61  ;;  %37159 = vst [vmem:[#allocation153_spill] sm:$0xff] %v32572_v53  ;;  %v32584_v35 = vrot.slane %v37165_v22, %v36903_v54  ;;  %v32594_v56 = vrot.slane %v37169_v3, %v36903_v54  ;;  %v37172_v30 = vcombine.high %v37170_v51, %v37171_v20  ;;  %26189 = vmatpush3.bf16.xpose.msk.msra.mxu0 %vm28039_vm2, %v26184_v27  ;;  %v37173_v51 = vld [vmem:[#allocation116_spill] sm:$0xff]  ;;  %v32631_v33 = vpop.f32.mrb[177].mxu0 }
 0x6f4   : > { %37166 = vst [vmem:[#allocation31_spill] sm:$0xff] %v32588_v16  ;;  %v13754_v20 = vcombine.low %v32480_v42, %v32588_v16  ;;  %v13755_v21 = vcombine.high %v32480_v42, %v32588_v16  ;;  %v13568_v3 = vcombine.low %v37174_v18, %v37173_v51  ;;  %v13704_v27 = vcombine.low %v37175_v32, %v32313_v25  ;;  %v37206_v38 = vld [vmem:[#allocation52_spill] sm:$0xff] }
 0x6f5   : > { %v32600_v58 = vrot.slane %v37172_v30, %v36903_v54  ;;  %v13022_v30 = vcombine.low %v32578_v49, %v32584_v35  ;;  %v13293_v22 = vcombine.high %v31786_v23, %v31954_v0  ;;  %v13429_v53 = vcombine.high %v37148_v8, %v32362_v50  ;;  %25332 = vmatmul.mubr.msk.f32.vlgmr.msra.gmra.mrb[138].mxu1 %vm2946_vm1, %v12883_v43  ;;  %v37180_v8 = vld [vmem:[#allocation126_spill] sm:$0xff] }
 0x6f6   : > { %v32635_v16 = vrot.slane %v13754_v20, %v36898_v24  ;;  %v32638_v42 = vrot.slane %v13755_v21, %v36898_v24  ;;  %v32642_v61 = vadd.f32 %v32420_v39, %v32235_v34  ;;  %v32646_v23 = vadd.f32 %v32235_v34, %v32429_v19  ;;  %26129 = vmatpush3.bf16.xpose.msk.msra.mxu1 %vm28039_vm2, %v26124_v60  ;;  %v37190_v21 = vld [vmem:[#allocation43_spill] sm:$0xff] }
 0x6f7   : > { %v12748_v12 = vcombine.low %v32594_v56, %v32600_v58  ;;  %25408 = vmatprep.mubr.msk.f32.mxu0 %vm2946_vm1, %v13022_v30  ;;  %v26196_v0 = vpack.c.bf16 %v13704_v27, %v13568_v3  ;;  %v26130_v50 = vpack.c.bf16 %v13429_v53, %v13293_v22  ;;  %v37181_v30 = vld [vmem:[#allocation55_spill] sm:$0xff]  ;;  %v32653_v20 = vadd.f32 %v32460_v44, %v32235_v34  ;;  %v32665_v53 = vpop.f32.mrb[178].mxu0 }
 0x6f8   : > { %37176 = vst [vmem:[#allocation18_spill] sm:$0xff] %v32635_v16  ;;  %37177 = vst [vmem:[#allocation113_spill] sm:$0xff] %v32638_v42  ;;  %v13158_v55 = vcombine.low %v37181_v30, %v37180_v8  ;;  %v37183_v44 = vld [vmem:[#allocation79_spill] sm:$0xff]  ;;  %v37184_v3 = vcombine.high %v37160_v5, %v37161_v13  ;;  %v37186_v60 = vcombine.high %v37163_v57, %v37164_v7  ;;  %v32684_v19 = vpop.f32.mrb[179].mxu0  ;;  %v37188_v13 = vld [vmem:[#allocation76_spill] sm:$0xff] }
 0x6f9   : > { %37178 = vst [vmem:[#allocation75_spill] sm:$0xff] %v32642_v61  ;;  %37179 = vst [vmem:[#allocation105_spill] sm:$0xff] %v32646_v23  ;;  %25338 = vmatprep.mubr.msk.f32.mxu1 %vm2946_vm1, %v12748_v12  ;;  %26198 = vmatprep.subr.msk.bf16.mxu0 %vm28039_vm2, %v26196_v0  ;;  %v12884_v22 = vcombine.low %v37183_v44, %v32319_v31  ;;  %v32690_v12 = vadd.f32 %v32235_v34, %v32482_v48 }
 0x6fa   : > { %37182 = vst [vmem:[#allocation82_spill] sm:$0xff] %v32653_v20  ;;  %v32676_v27 = vrot.slane %v37184_v3, %v36903_v54  ;;  %v32682_v43 = vrot.slane %v37186_v60, %v36903_v54  ;;  %26132 = vmatprep.subr.msk.bf16.mxu1 %vm28039_vm2, %v26130_v50  ;;  %v12749_v5 = vcombine.high %v32594_v56, %v32600_v58  ;;  %v37189_v3 = vld [vmem:[#allocation87_spill] sm:$0xff]  ;;  %v37193_v56 = vld [vmem:[#allocation45_spill] sm:$0xff]  ;;  %v25316_v16 = vpop.f32.mrb[180].mxu0 }
 0x6fb   : > { %37187 = vst [vmem:[#allocation77_spill] sm:$0xff] %v32690_v12  ;;  %v13294_v39 = vcombine.low %v37189_v3, %v37188_v13  ;;  %v13430_v57 = vcombine.low %v37190_v21, %v32377_v9  ;;  %25409 = vmatmul.mubr.msk.f32.vlgmr.msra.gmra.mrb[188].mxu0 %vm2946_vm1, %v13158_v55  ;;  %v32703_v60 = vadd.f32 %v32520_v2, %v32235_v34 }
 0x6fc   : > { %37185 = vst [vmem:[#allocation96_spill] sm:$0xff] %v32676_v27  ;;  %v13024_v7 = vcombine.low %v32676_v27, %v32682_v43  ;;  %v32707_v48 = vadd.f32 %v32235_v34, %v32531_v1  ;;  %v13160_v58 = vcombine.low %v37193_v56, %v32295_v52  ;;  %26201 = vmatpush3.bf16.xpose.msk.msra.mxu0 %vm28039_vm2, %v26196_v0  ;;  %v37196_v1 = vld [vmem:[#allocation48_spill] sm:$0xff]  ;;  %v37212_v27 = vld [vmem:[#allocation78_spill] sm:$0xff] }
 0x6fd   : > { %37191 = vst [vmem:[#allocation116_spill] sm:$0xff] %v32703_v60  ;;  %v26136_v42 = vpack.c.bf16 %v13430_v57, %v13294_v39  ;;  %v32714_v55 = vadd.f32 %v25307_v47, %v32235_v34  ;;  %v12885_v36 = vcombine.high %v37183_v44, %v32319_v31  ;;  %v32719_v2 = vadd.f32 %v32235_v34, %v12569_v62  ;;  %v12599_v31 = vpop.f32.mrb[181].mxu0 }
 0x6fe   : > { %37192 = vst [vmem:[#allocation108_spill] sm:$0xff] %v32707_v48  ;;  %25422 = vmatprep.mubr.msk.f32.mxu0 %vm2946_vm1, %v13024_v7  ;;  %26210 = vmatprep.subr.msk.bf16.mxu0 %vm28039_vm2, %v37196_v1  ;;  %v14114_v0 = vcombine.low %v32642_v61, %v32703_v60  ;;  %v14115_v47 = vcombine.high %v32642_v61, %v32703_v60 }
 0x6ff   : > { %37194 = vst [vmem:[#allocation17_spill] sm:$0xff] %v32714_v55  ;;  %37195 = vst [vmem:[#allocation126_spill] sm:$0xff] %v32719_v2  ;;  %v13842_v39 = vcombine.low %v32646_v23, %v32707_v48  ;;  %v13843_v62 = vcombine.high %v32646_v23, %v32707_v48  ;;  %v14130_v44 = vcombine.low %v32653_v20, %v32714_v55  ;;  %25339 = vmatmul.mubr.msk.f32.vlgmr.msra.gmra.mrb[140].mxu1 %vm2946_vm1, %v12884_v22 }
 0x700   : > { %v14131_v57 = vcombine.high %v32653_v20, %v32714_v55  ;;  %v13858_v7 = vcombine.low %v32690_v12, %v32719_v2  ;;  %v32741_v60 = vrot.slane %v14114_v0, %v36898_v24  ;;  %v32744_v61 = vrot.slane %v14115_v47, %v36898_v24  ;;  %26135 = vmatpush3.bf16.xpose.msk.msra.mxu1 %vm28039_vm2, %v26130_v50  ;;  %v25319_v47 = vpop.f32.mrb[182].mxu0 }
 0x701   : > { %v32747_v56 = vrot.slane %v13842_v39, %v36898_v24  ;;  %v13859_v48 = vcombine.high %v32690_v12, %v32719_v2  ;;  %25345 = vmatprep.mubr.msk.f32.mxu1 %vm2946_vm1, %v12749_v5  ;;  %v32755_v55 = vrot.slane %v13843_v62, %v36898_v24  ;;  %v32758_v22 = vrot.slane %v14130_v44, %v36898_v24  ;;  %v37200_v5 = vld [vmem:[#allocation107_spill] sm:$0xff]  ;;  %v37203_v44 = vld [vmem:[#allocation36_spill] sm:$0xff]  ;;  %v12609_v52 = vpop.f32.mrb[183].mxu0 }
 0x702   : > { %37197 = vst [vmem:[#allocation55_spill] sm:$0xff] %v32744_v61  ;;  %v32761_v0 = vrot.slane %v14131_v57, %v36898_v24  ;;  %26138 = vmatprep.subr.msk.bf16.mxu1 %vm28039_vm2, %v26136_v42  ;;  %v32766_v39 = vrot.slane %v13858_v7, %v36898_v24  ;;  %v37201_v62 = vld [vmem:[#allocation83_spill] sm:$0xff]  ;;  %v37204_v57 = vld [vmem:[#allocation117_spill] sm:$0xff]  ;;  %v37207_v7 = vld [vmem:[#allocation34_spill] sm:$0xff] }
 0x703   : > { %37198 = vst [vmem:[#allocation79_spill] sm:$0xff] %v32758_v22  ;;  %v32769_v50 = vrot.slane %v13859_v48, %v36898_v24  ;;  %v37202_v2 = vcombine.low %v37200_v5, %v37201_v62  ;;  %v37205_v12 = vcombine.low %v37203_v44, %v37204_v57  ;;  %25423 = vmatmul.mubr.msk.f32.vlgmr.msra.gmra.mrb[190].mxu0 %vm2946_vm1, %v13160_v58 }
 0x704   : > { %37199 = vst [vmem:[#allocation76_spill] sm:$0xff] %v32761_v0  ;;  %26213 = vmatpush3.bf16.xpose.msk.msra.mxu0 %vm28039_vm2, %v37196_v1  ;;  %25436 = vmatprep.mubr.msk.f32.mxu0 %vm2946_vm1, %v37206_v38  ;;  %v32816_v48 = vadd.f32 %v32621_v63, %v32235_v34  ;;  %v32820_v38 = vadd.f32 %v32235_v34, %v32631_v33  ;;  %v37213_v0 = vld [vmem:[#allocation8_spill] sm:$0xff] }
 0x705   : > { %v32775_v20 = vrot.slane %v37202_v2, %v36903_v54  ;;  %v32781_v23 = vrot.slane %v37205_v12, %v36903_v54  ;;  %v13295_v2 = vcombine.high %v37189_v3, %v37188_v13  ;;  %v13431_v12 = vcombine.high %v37190_v21, %v32377_v9  ;;  %26222 = vmatprep.subr.msk.bf16.mxu0 %vm28039_vm2, %v37207_v7  ;;  %v37210_v13 = vld [vmem:[#allocation14_spill] sm:$0xff]  ;;  %v37214_v33 = vld [vmem:[#allocation20_spill] sm:$0xff] }
 0x706   : > { %37208 = vst [vmem:[#allocation87_spill] sm:$0xff] %v32816_v48  ;;  %v32824_v1 = vadd.f32 %v32665_v53, %v32235_v34  ;;  %v12886_v3 = vcombine.low %v37210_v13, %v32322_v29  ;;  %v32830_v21 = vadd.f32 %v32235_v34, %v32684_v19  ;;  %v13296_v61 = vcombine.low %v37213_v0, %v37212_v27 }
 0x707   : > { %v12750_v58 = vcombine.low %v32775_v20, %v32781_v23  ;;  %v26142_v9 = vpack.c.bf16 %v13431_v12, %v13295_v2  ;;  %v12751_v63 = vcombine.high %v32775_v20, %v32781_v23  ;;  %25346 = vmatmul.mubr.msk.f32.vlgmr.msra.gmra.mrb[142].mxu1 %vm2946_vm1, %v12885_v36  ;;  %v13432_v53 = vcombine.low %v37214_v33, %v32380_v26  ;;  %v37220_v12 = vld [vmem:[#allocation47_spill] sm:$0xff] }
 0x708   : > { %37209 = vst [vmem:[#allocation43_spill] sm:$0xff] %v32824_v1  ;;  %37211 = vst [vmem:[#allocation48_spill] sm:$0xff] %v32830_v21  ;;  %v32840_v22 = vadd.f32 %v25316_v16, %v32235_v34  ;;  %v32843_v2 = vadd.f32 %v32235_v34, %v12599_v31  ;;  %v32846_v19 = vadd.f32 %v25319_v47, %v32235_v34  ;;  %26141 = vmatpush3.bf16.xpose.msk.msra.mxu1 %vm28039_vm2, %v26136_v42 }
 0x709   : > { %25352 = vmatprep.mubr.msk.f32.mxu1 %vm2946_vm1, %v12750_v58  ;;  %v32854_v23 = vadd.f32 %v32235_v34, %v12609_v52  ;;  %v37219_v16 = vcombine.high %v37200_v5, %v37201_v62  ;;  %26144 = vmatprep.subr.msk.bf16.mxu1 %vm28039_vm2, %v26142_v9  ;;  %v32864_v31 = vpack.c.bf16 %v13432_v53, %v13296_v61 }
 0x70a   : > { %37215 = vst [vmem:[#allocation107_spill] sm:$0xff] %v32840_v22  ;;  %37216 = vst [vmem:[#allocation83_spill] sm:$0xff] %v32843_v2  ;;  %v14146_v42 = vcombine.low %v32816_v48, %v32840_v22  ;;  %v14147_v47 = vcombine.high %v32816_v48, %v32840_v22  ;;  %v13874_v34 = vcombine.low %v32820_v38, %v32843_v2  ;;  %v37233_v48 = vld [vmem:[#allocation103_spill] sm:$0xff] }
 0x70b   : > { %37217 = vst [vmem:[#allocation36_spill] sm:$0xff] %v32846_v19  ;;  %37218 = vst [vmem:[#allocation117_spill] sm:$0xff] %v32854_v23  ;;  %v32860_v20 = vrot.slane %v37219_v16, %v36903_v54  ;;  %v13875_v52 = vcombine.high %v32820_v38, %v32843_v2  ;;  %v14162_v5 = vcombine.low %v32824_v1, %v32846_v19  ;;  %25437 = vmatmul.mubr.msk.f32.vlgmr.msra.gmra.mrb[192].mxu0 %vm2946_vm1, %v37220_v12 }
 0x70c   : > { %v14163_v62 = vcombine.high %v32824_v1, %v32846_v19  ;;  %v13890_v61 = vcombine.low %v32830_v21, %v32854_v23  ;;  %v32883_v58 = vrot.slane %v14146_v42, %v36898_v24  ;;  %v32886_v53 = vrot.slane %v14147_v47, %v36898_v24  ;;  %26225 = vmatpush3.bf16.xpose.msk.msra.mxu0 %vm28039_vm2, %v37207_v7  ;;  %v37221_v19 = vld [vmem:[#allocation39_spill] sm:$0xff]  ;;  %v37231_v1 = vld [vmem:[#allocation129_spill] sm:$0xff] }
 0x70d   : > { %v32889_v16 = vrot.slane %v13874_v34, %v36898_v24  ;;  %v13891_v36 = vcombine.high %v32830_v21, %v32854_v23  ;;  %25450 = vmatprep.mubr.msk.f32.mxu0 %vm2946_vm1, %v37221_v19  ;;  %v32899_v12 = vrot.slane %v13875_v52, %v36898_v24  ;;  %v32902_v42 = vrot.slane %v14162_v5, %v36898_v24  ;;  %v37222_v34 = vld [vmem:[#allocation92_spill] sm:$0xff] }
 0x70e   : > { %v32905_v47 = vrot.slane %v14163_v62, %v36898_v24  ;;  %26234 = vmatprep.subr.msk.bf16.mxu0 %vm28039_vm2, %v37222_v34  ;;  %v13898_v23 = vrot.slane %v13890_v61, %v36898_v24  ;;  %v37223_v19 = vcombine.high %v37203_v44, %v37204_v57  ;;  %v13297_v5 = vcombine.high %v37213_v0, %v37212_v27  ;;  %v37225_v61 = vld [vmem:[#allocation118_spill] sm:$0xff]  ;;  %v37232_v21 = vld [vmem:[#allocation24_spill] sm:$0xff] }
 0x70f   : > { %v32912_v7 = vrot.slane %v13891_v36, %v36898_v24  ;;  %25353 = vmatmul.mubr.msk.f32.vlgmr.msra.gmra.mrb[144].mxu1 %vm2946_vm1, %v12886_v3  ;;  %v13433_v3 = vcombine.high %v37214_v33, %v32380_v26  ;;  %v37224_v36 = vld [vmem:[#allocation59_spill] sm:$0xff]  ;;  %v37228_v62 = vld [vmem:[#allocation54_spill] sm:$0xff]  ;;  %v37229_v33 = vld [vmem:[#allocation28_spill] sm:$0xff]  ;;  %v13565_v2 = vcombine.high %v31765_v10, %v31902_v11 }
 0x710   : > { %v32918_v52 = vrot.slane %v37223_v19, %v36903_v54  ;;  %v13938_v44 = vcombine.low %v32889_v16, %v13898_v23  ;;  %v13939_v57 = vcombine.high %v32889_v16, %v13898_v23  ;;  %26147 = vmatpush3.bf16.xpose.msk.msra.mxu1 %vm28039_vm2, %v26142_v9  ;;  %25359 = vmatprep.mubr.msk.f32.mxu1 %vm2946_vm1, %v12751_v63  ;;  %v37226_v9 = vld [vmem:[#allocation58_spill] sm:$0xff]  ;;  %v37227_v63 = vld [vmem:[#allocation128_spill] sm:$0xff]  ;;  %v37230_v23 = vld [vmem:[#allocation27_spill] sm:$0xff] }
 0x711   : > { %26150 = vmatprep.subr.msk.bf16.mxu1 %vm28039_vm2, %v32864_v31  ;;  %v13563_v22 = vcombine.high %v37226_v9, %v37225_v61  ;;  %v13699_v0 = vcombine.high %v37228_v62, %v37227_v63  ;;  %v32957_v26 = vpack.c.bf16 %v13433_v3, %v13297_v5  ;;  %v13701_v16 = vcombine.high %v37232_v21, %v37231_v1  ;;  %v37234_v10 = vld [vmem:[#allocation86_spill] sm:$0xff]  ;;  %v37235_v1 = vld [vmem:[#allocation97_spill] sm:$0xff]  ;;  %v37253_v5 = vld [vmem:[#allocation56_spill] sm:$0xff] }
 0x712   : > { %v12752_v19 = vcombine.low %v32860_v20, %v32918_v52  ;;  %v13567_v3 = vcombine.high %v31768_v37, %v31905_v6  ;;  %v13569_v6 = vcombine.high %v37174_v18, %v37173_v51  ;;  %v13705_v21 = vcombine.high %v37175_v32, %v32313_v25  ;;  %v37241_v37 = vld [vmem:[#allocation18_spill] sm:$0xff] }
 0x713   : > { %25451 = vmatmul.mubr.msk.f32.vlgmr.msra.gmra.mrb[194].mxu0 %vm2946_vm1, %v37233_v48  ;;  %v32967_v61 = vpack.c.bf16 %v13699_v0, %v13563_v22  ;;  %v32980_v11 = vpack.c.bf16 %v13701_v16, %v13565_v2  ;;  %v13703_v22 = vcombine.high %v32128_v4, %v32310_v46  ;;  %v37236_v46 = vld [vmem:[#allocation96_spill] sm:$0xff]  ;;  %v37237_v0 = vld [vmem:[#allocation137_spill] sm:$0xff]  ;;  %v37238_v16 = vld [vmem:[#allocation143_spill] sm:$0xff]  ;;  %v37243_v25 = vcombine.high %v37210_v13, %v32322_v29 }
 0x714   : > { %26237 = vmatpush3.bf16.xpose.msk.msra.mxu0 %vm28039_vm2, %v37222_v34  ;;  %25464 = vmatprep.mubr.msk.f32.mxu0 %vm2946_vm1, %v37234_v10  ;;  %v37239_v9 = vcombine.low %v37237_v0, %v37238_v16  ;;  %v37240_v10 = vld [vmem:[#allocation150_spill] sm:$0xff]  ;;  %v33013_v32 = vpack.c.bf16 %v13705_v21, %v13569_v6  ;;  %v13946_v34 = vrot.slane %v13938_v44, %v36903_v54  ;;  %v37246_v2 = vld [vmem:[#allocation45_spill] sm:$0xff] }
 0x715   : > { %26246 = vmatprep.subr.msk.bf16.mxu0 %vm28039_vm2, %v37235_v1  ;;  %v32997_v4 = vpack.c.bf16 %v13703_v22, %v13567_v3  ;;  %v37242_v18 = vcombine.low %v37240_v10, %v37241_v37  ;;  %v37244_v3 = vcombine.low %v32747_v56, %v32766_v39  ;;  %v37247_v13 = vcombine.high %v37237_v0, %v37238_v16  ;;  %v37250_v48 = vld [vmem:[#allocation138_spill] sm:$0xff] }
 0x716   : > { %v13778_v63 = vrot.slane %v37239_v9, %v36903_v54  ;;  %v37245_v9 = vld [vmem:[#allocation127_spill] sm:$0xff]  ;;  %v37248_v21 = vcombine.high %v37240_v10, %v37241_v37  ;;  %v37251_v37 = vld [vmem:[#allocation144_spill] sm:$0xff] }
 0x717   : > { %v13810_v51 = vrot.slane %v37242_v18, %v36903_v54  ;;  %25360 = vmatmul.mubr.msk.f32.vlgmr.msra.gmra.mrb[146].mxu1 %vm2946_vm1, %v37243_v25  ;;  %v13914_v22 = vrot.slane %v37244_v3, %v36903_v54  ;;  %v13785_v6 = vrot.slane %v37247_v13, %v36903_v54  ;;  %v13953_v25 = vrot.slane %v13939_v57, %v36903_v54 }
 0x718   : > { %26153 = vmatpush3.bf16.xpose.msk.msra.mxu1 %vm28039_vm2, %v32864_v31  ;;  %25366 = vmatprep.mubr.msk.f32.mxu1 %vm2946_vm1, %v12752_v19  ;;  %v13817_v44 = vrot.slane %v37248_v21, %v36903_v54  ;;  %v37249_v31 = vcombine.high %v32747_v56, %v32766_v39  ;;  %v37252_v10 = vcombine.low %v37250_v48, %v37251_v37  ;;  %v37254_v56 = vld [vmem:[#allocation151_spill] sm:$0xff]  ;;  %v37255_v39 = vld [vmem:[#allocation113_spill] sm:$0xff] }
 0x719   : > { %v13834_v29 = vcombine.low %v13778_v63, %v13810_v51  ;;  %26156 = vmatprep.subr.msk.bf16.mxu1 %vm28039_vm2, %v32957_v26  ;;  %v13970_v18 = vcombine.low %v13914_v22, %v13946_v34  ;;  %v13835_v3 = vcombine.high %v13778_v63, %v13810_v51  ;;  %v13971_v16 = vcombine.high %v13914_v22, %v13946_v34  ;;  %v37257_v34 = vld [vmem:[#allocation11_spill] sm:$0xff] }
 0x71a   : > { %v13921_v19 = vrot.slane %v37249_v31, %v36903_v54  ;;  %v13836_v0 = vcombine.low %v13785_v6, %v13817_v44  ;;  %v13837_v13 = vcombine.high %v13785_v6, %v13817_v44  ;;  %v13794_v21 = vrot.slane %v37252_v10, %v36903_v54  ;;  %v37260_v44 = vld [vmem:[#allocation13_spill] sm:$0xff] }
 0x71b   : > { %25465 = vmatmul.mubr.msk.f32.vlgmr.msra.gmra.mrb[196].mxu0 %vm2946_vm1, %v37253_v5  ;;  %v33048_v62 = vpack.c.bf16 %v13970_v18, %v13834_v29  ;;  %v37256_v57 = vcombine.low %v37254_v56, %v37255_v39  ;;  %v33059_v51 = vpack.c.bf16 %v13971_v16, %v13835_v3  ;;  %v37258_v5 = vcombine.low %v32755_v55, %v32769_v50 }
 0x71c   : > { %v13972_v24 = vcombine.low %v13921_v19, %v13953_v25  ;;  %v13973_v27 = vcombine.high %v13921_v19, %v13953_v25  ;;  %26249 = vmatpush3.bf16.xpose.msk.msra.mxu0 %vm28039_vm2, %v37235_v1  ;;  %25478 = vmatprep.mubr.msk.f32.mxu0 %vm2946_vm1, %v37257_v34  ;;  %v37259_v29 = vcombine.low %v32899_v12, %v32912_v7 }
 0x71d   : > { %v13826_v63 = vrot.slane %v37256_v57, %v36903_v54  ;;  %v13930_v22 = vrot.slane %v37258_v5, %v36903_v54  ;;  %26258 = vmatprep.subr.msk.bf16.mxu0 %vm28039_vm2, %v37260_v44  ;;  %v37263_v16 = vcombine.high %v37250_v48, %v37251_v37  ;;  %v37264_v57 = vcombine.high %v37254_v56, %v37255_v39  ;;  %v37268_v37 = vld [vmem:[#allocation135_spill] sm:$0xff]  ;;  %v37272_v5 = vld [vmem:[#allocation152_spill] sm:$0xff] }
 0x71e   : > { %v13962_v6 = vrot.slane %v37259_v29, %v36903_v54  ;;  %v33072_v1 = vpack.c.bf16 %v13972_v24, %v13836_v0  ;;  %v33074_v18 = vpack.c.bf16 %v13973_v27, %v13837_v13  ;;  %v37265_v24 = vcombine.low %v37224_v36, %v32327_v41 }
 0x71f   : > { %v13838_v31 = vcombine.low %v13794_v21, %v13826_v63  ;;  %v13839_v19 = vcombine.high %v13794_v21, %v13826_v63  ;;  %v13801_v10 = vrot.slane %v37263_v16, %v36903_v54  ;;  %v13833_v34 = vrot.slane %v37264_v57, %v36903_v54  ;;  %v37269_v21 = vld [vmem:[#allocation71_spill] sm:$0xff]  ;;  %v37271_v63 = vld [vmem:[#allocation148_spill] sm:$0xff] }
 0x720   : > { %37261 = vst [vmem:[#allocation52_spill] sm:$0xff] %v33072_v1  ;;  %37262 = vst [vmem:[#allocation34_spill] sm:$0xff] %v33074_v18  ;;  %v13974_v25 = vcombine.low %v13930_v22, %v13962_v6  ;;  %v13975_v3 = vcombine.high %v13930_v22, %v13962_v6  ;;  %25367 = vmatmul.mubr.msk.f32.vlgmr.msra.gmra.mrb[148].mxu1 %vm2946_vm1, %v37265_v24  ;;  %v37266_v27 = vcombine.high %v32755_v55, %v32769_v50 }
 0x721   : > { %v37267_v48 = vcombine.high %v32899_v12, %v32912_v7  ;;  %v37270_v56 = vcombine.low %v37268_v37, %v37269_v21  ;;  %v37273_v22 = vcombine.low %v37271_v63, %v37272_v5  ;;  %26159 = vmatpush3.bf16.xpose.msk.msra.mxu1 %vm28039_vm2, %v32957_v26  ;;  %v37274_v55 = vcombine.high %v32860_v20, %v32918_v52  ;;  %v37277_v26 = vld [vmem:[#allocation79_spill] sm:$0xff] }
 0x722   : > { %v13937_v0 = vrot.slane %v37266_v27, %v36903_v54  ;;  %v33111_v50 = vpack.c.bf16 %v13974_v25, %v13838_v31  ;;  %v33113_v12 = vpack.c.bf16 %v13975_v3, %v13839_v19  ;;  %v13840_v7 = vcombine.low %v13801_v10, %v13833_v34  ;;  %26168 = vmatprep.subr.msk.bf16.mxu1 %vm28039_vm2, %v32967_v61 }
 0x723   : > { %v13969_v13 = vrot.slane %v37267_v48, %v36903_v54  ;;  %v14050_v39 = vrot.slane %v37270_v56, %v36903_v54  ;;  %v14082_v29 = vrot.slane %v37273_v22, %v36903_v54  ;;  %25373 = vmatprep.mubr.msk.f32.mxu1 %vm2946_vm1, %v37274_v55  ;;  %v13841_v16 = vcombine.high %v13801_v10, %v13833_v34  ;;  %v37281_v48 = vld [vmem:[#allocation91_spill] sm:$0xff] }
 0x724   : > { %37275 = vst [vmem:[#allocation14_spill] sm:$0xff] %v33111_v50  ;;  %37276 = vst [vmem:[#allocation78_spill] sm:$0xff] %v33113_v12  ;;  %v37278_v27 = vcombine.low %v32741_v60, %v37277_v26  ;;  %v37279_v52 = vcombine.low %v32883_v58, %v32902_v42  ;;  %v37280_v25 = vcombine.high %v37268_v37, %v37269_v21  ;;  %25479 = vmatmul.mubr.msk.f32.vlgmr.msra.gmra.mrb[198].mxu0 %vm2946_vm1, %v37281_v48  ;;  %v37286_v37 = vld [vmem:[#allocation119_spill] sm:$0xff] }
 0x725   : > { %v13976_v6 = vcombine.low %v13937_v0, %v13969_v13  ;;  %v13977_v57 = vcombine.high %v13937_v0, %v13969_v13  ;;  %v14106_v24 = vcombine.low %v14050_v39, %v14082_v29  ;;  %v14107_v19 = vcombine.high %v14050_v39, %v14082_v29  ;;  %26261 = vmatpush3.bf16.xpose.msk.msra.mxu0 %vm28039_vm2, %v37260_v44  ;;  %v37298_v48 = vld [vmem:[#allocation55_spill] sm:$0xff] }
 0x726   : > { %v14186_v20 = vrot.slane %v37278_v27, %v36903_v54  ;;  %v14218_v31 = vrot.slane %v37279_v52, %v36903_v54  ;;  %v14057_v3 = vrot.slane %v37280_v25, %v36903_v54  ;;  %v37284_v0 = vcombine.high %v37271_v63, %v37272_v5  ;;  %25492 = vmatprep.mubr.msk.f32.mxu0 %vm2946_vm1, %v37286_v37  ;;  %v37288_v5 = vld [vmem:[#allocation33_spill] sm:$0xff] }
 0x727   : > { %v33132_v10 = vpack.c.bf16 %v13976_v6, %v13840_v7  ;;  %v33134_v34 = vpack.c.bf16 %v13977_v57, %v13841_v16  ;;  %v37285_v56 = vcombine.high %v32741_v60, %v37277_v26  ;;  %v37287_v29 = vcombine.high %v32883_v58, %v32902_v42  ;;  %26270 = vmatprep.subr.msk.bf16.mxu0 %vm28039_vm2, %v37288_v5  ;;  %v37289_v7 = vld [vmem:[#allocation136_spill] sm:$0xff]  ;;  %v37292_v57 = vld [vmem:[#allocation149_spill] sm:$0xff] }
 0x728   : > { %v14089_v13 = vrot.slane %v37284_v0, %v36903_v54  ;;  %v14242_v21 = vcombine.low %v14186_v20, %v14218_v31  ;;  %v14243_v22 = vcombine.high %v14186_v20, %v14218_v31  ;;  %v37290_v6 = vld [vmem:[#allocation140_spill] sm:$0xff]  ;;  %v37293_v26 = vld [vmem:[#allocation153_spill] sm:$0xff]  ;;  %v37297_v25 = vcombine.high %v37224_v36, %v32327_v41 }
 0x729   : > { %37282 = vst [vmem:[#allocation8_spill] sm:$0xff] %v33132_v10  ;;  %37283 = vst [vmem:[#allocation20_spill] sm:$0xff] %v33134_v34  ;;  %v14193_v39 = vrot.slane %v37285_v56, %v36903_v54  ;;  %v14225_v63 = vrot.slane %v37287_v29, %v36903_v54  ;;  %v37291_v44 = vcombine.low %v37289_v7, %v37290_v6  ;;  %v37299_v0 = vld [vmem:[#allocation76_spill] sm:$0xff] }
 0x72a   : > { %v14108_v60 = vcombine.low %v14057_v3, %v14089_v13  ;;  %v14109_v55 = vcombine.high %v14057_v3, %v14089_v13  ;;  %v37294_v27 = vcombine.low %v37292_v57, %v37293_v26  ;;  %v33164_v52 = vpack.c.bf16 %v14242_v21, %v14106_v24  ;;  %25374 = vmatmul.mubr.msk.f32.vlgmr.msra.gmra.mrb[150].mxu1 %vm2946_vm1, %v37297_v25 }
 0x72b   : > { %v14066_v16 = vrot.slane %v37291_v44, %v36903_v54  ;;  %v33166_v58 = vpack.c.bf16 %v14243_v22, %v14107_v19  ;;  %v14244_v42 = vcombine.low %v14193_v39, %v14225_v63  ;;  %v14245_v31 = vcombine.high %v14193_v39, %v14225_v63  ;;  %26171 = vmatpush3.bf16.xpose.msk.msra.mxu1 %vm28039_vm2, %v32967_v61 }
 0x72c   : > { %v14098_v20 = vrot.slane %v37294_v27, %v36903_v54  ;;  %37295 = vst [vmem:[#allocation47_spill] sm:$0xff] %v33164_v52  ;;  %v37300_v13 = vcombine.low %v37298_v48, %v37299_v0  ;;  %v37301_v24 = vcombine.low %v32886_v53, %v32905_v47  ;;  %v37302_v41 = vcombine.high %v37230_v23, %v37229_v33 }
 0x72d   : > { %37296 = vst [vmem:[#allocation39_spill] sm:$0xff] %v33166_v58  ;;  %v33187_v36 = vpack.c.bf16 %v14244_v42, %v14108_v60  ;;  %v33189_v39 = vpack.c.bf16 %v14245_v31, %v14109_v55  ;;  %26180 = vmatprep.subr.msk.bf16.mxu1 %vm28039_vm2, %v32980_v11  ;;  %v37305_v29 = vcombine.high %v37289_v7, %v37290_v6  ;;  %v37315_v31 = vld [vmem:[#allocation141_spill] sm:$0xff] }
 0x72e   : > { %v14110_v3 = vcombine.low %v14066_v16, %v14098_v20  ;;  %v14202_v56 = vrot.slane %v37300_v13, %v36903_v54  ;;  %v14234_v37 = vrot.slane %v37301_v24, %v36903_v54  ;;  %v14111_v19 = vcombine.high %v14066_v16, %v14098_v20  ;;  %25387 = vmatprep.mubr.msk.f32.mxu1 %vm2946_vm1, %v37302_v41  ;;  %v37309_v16 = vld [vmem:[#allocation115_spill] sm:$0xff] }
 0x72f   : > { %37303 = vst [vmem:[#allocation92_spill] sm:$0xff] %v33187_v36  ;;  %37304 = vst [vmem:[#allocation59_spill] sm:$0xff] %v33189_v39  ;;  %v14073_v61 = vrot.slane %v37305_v29, %v36903_v54  ;;  %v37306_v23 = vcombine.high %v37292_v57, %v37293_v26  ;;  %v37307_v63 = vcombine.high %v37298_v48, %v37299_v0  ;;  %25493 = vmatmul.mubr.msk.f32.vlgmr.msra.gmra.mrb[200].mxu0 %vm2946_vm1, %v37309_v16  ;;  %v37312_v26 = vld [vmem:[#allocation44_spill] sm:$0xff]  ;;  %v37318_v48 = vld [vmem:[#allocation145_spill] sm:$0xff] }
 0x730   : > { %v14246_v21 = vcombine.low %v14202_v56, %v14234_v37  ;;  %v14247_v22 = vcombine.high %v14202_v56, %v14234_v37  ;;  %v37308_v55 = vcombine.high %v32886_v53, %v32905_v47  ;;  %26273 = vmatpush3.bf16.xpose.msk.msra.mxu0 %vm28039_vm2, %v37288_v5  ;;  %25506 = vmatprep.mubr.msk.f32.mxu0 %vm2946_vm1, %v37312_v26  ;;  %v37313_v53 = vld [vmem:[#allocation93_spill] sm:$0xff]  ;;  %v37314_v47 = vld [vmem:[#allocation142_spill] sm:$0xff]  ;;  %v37320_v13 = vld [vmem:[#allocation147_spill] sm:$0xff] }
 0x731   : > { %v14105_v33 = vrot.slane %v37306_v23, %v36903_v54  ;;  %v14209_v60 = vrot.slane %v37307_v63, %v36903_v54  ;;  %26282 = vmatprep.subr.msk.bf16.mxu0 %vm28039_vm2, %v37313_v53  ;;  %v33226_v25 = vpack.c.bf16 %v37315_v31, %v37314_v47  ;;  %v37321_v56 = vld [vmem:[#allocation85_spill] sm:$0xff]  ;;  %v37323_v24 = vld [vmem:[#allocation31_spill] sm:$0xff]  ;;  %v37324_v37 = vld [vmem:[#allocation74_spill] sm:$0xff] }
 0x732   : > { %v14241_v44 = vrot.slane %v37308_v55, %v36903_v54  ;;  %v33212_v7 = vpack.c.bf16 %v14246_v21, %v14110_v3  ;;  %v33214_v6 = vpack.c.bf16 %v14247_v22, %v14111_v19  ;;  %v37317_v3 = vld [vmem:[#allocation146_spill] sm:$0xff]  ;;  %v33234_v5 = vpack.c.bf16 %v37321_v56, %v37320_v13  ;;  %v37328_v22 = vld [vmem:[#allocation105_spill] sm:$0xff]  ;;  %v37329_v29 = vld [vmem:[#allocation75_spill] sm:$0xff] }
 0x733   : > { %v14112_v27 = vcombine.low %v14073_v61, %v14105_v33  ;;  %v14113_v57 = vcombine.high %v14073_v61, %v14105_v33  ;;  %37316 = vst [vmem:[#allocation128_spill] sm:$0xff] %v33226_v25  ;;  %v33230_v0 = vpack.c.bf16 %v37318_v48, %v37317_v3  ;;  %v33238_v19 = vpack.c.bf16 %v37324_v37, %v37323_v24  ;;  %v37331_v23 = vld [vmem:[#allocation77_spill] sm:$0xff]  ;;  %v37332_v33 = vld [vmem:[#allocation82_spill] sm:$0xff]  ;;  %v37335_v55 = vld [vmem:[#allocation108_spill] sm:$0xff] }
 0x734   : > { %37310 = vst [vmem:[#allocation118_spill] sm:$0xff] %v33212_v7  ;;  %37311 = vst [vmem:[#allocation58_spill] sm:$0xff] %v33214_v6  ;;  %v14248_v20 = vcombine.low %v14209_v60, %v14241_v44  ;;  %v14249_v42 = vcombine.high %v14209_v60, %v14241_v44  ;;  %v33246_v61 = vpack.c.bf16 %v37329_v29, %v37328_v22  ;;  %v37336_v44 = vld [vmem:[#allocation116_spill] sm:$0xff]  ;;  %v37344_v31 = vld [vmem:[#allocation43_spill] sm:$0xff] }
 0x735   : > { %37319 = vst [vmem:[#allocation54_spill] sm:$0xff] %v33230_v0  ;;  %37322 = vst [vmem:[#allocation28_spill] sm:$0xff] %v33234_v5  ;;  %v33250_v63 = vpack.c.bf16 %v37332_v33, %v37331_v23  ;;  %v37334_v60 = vcombine.high %v32110_v28, %v32284_v40  ;;  %v33258_v16 = vpack.c.bf16 %v37336_v44, %v37335_v55  ;;  %v37343_v47 = vld [vmem:[#allocation48_spill] sm:$0xff]  ;;  %v37347_v40 = vld [vmem:[#allocation83_spill] sm:$0xff] }
 0x736   : > { %37325 = vst [vmem:[#allocation27_spill] sm:$0xff] %v33238_v19  ;;  %v33240_v41 = vpack.c.bf16 %v14248_v20, %v14112_v27  ;;  %v33242_v21 = vpack.c.bf16 %v14249_v42, %v14113_v57  ;;  %37330 = vst [vmem:[#allocation103_spill] sm:$0xff] %v33246_v61  ;;  %v37338_v27 = vld [vmem:[#allocation126_spill] sm:$0xff]  ;;  %v37339_v57 = vld [vmem:[#allocation17_spill] sm:$0xff]  ;;  %v33270_v3 = vpack.c.bf16 %v37344_v31, %v37343_v47 }
 0x737   : > { %37333 = vst [vmem:[#allocation86_spill] sm:$0xff] %v33250_v63  ;;  %25388 = vmatmul.mubr.msk.f32.vlgmr.msra.gmra.mrb[152].mxu1 %vm2946_vm1, %v37334_v60  ;;  %37337 = vst [vmem:[#allocation97_spill] sm:$0xff] %v33258_v16  ;;  %v33262_v26 = vpack.c.bf16 %v37339_v57, %v37338_v27  ;;  %v37341_v20 = vld [vmem:[#allocation87_spill] sm:$0xff]  ;;  %v37346_v28 = vcombine.high %v32470_v59, %v32476_v17  ;;  %v37350_v56 = vld [vmem:[#allocation117_spill] sm:$0xff]  ;;  %v37357_v22 = vcombine.high %v32578_v49, %v32584_v35 }
 0x738   : > { %37326 = vst [vmem:[#allocation129_spill] sm:$0xff] %v33240_v41  ;;  %37327 = vst [vmem:[#allocation24_spill] sm:$0xff] %v33242_v21  ;;  %v33266_v42 = vpack.c.bf16 %v37341_v20, %v32820_v38  ;;  %26183 = vmatpush3.bf16.xpose.msk.msra.mxu1 %vm28039_vm2, %v32980_v11  ;;  %v37348_v48 = vld [vmem:[#allocation107_spill] sm:$0xff]  ;;  %v37351_v38 = vld [vmem:[#allocation36_spill] sm:$0xff]  ;;  %v37356_v11 = vcombine.high %v37151_v14, %v32287_v15  ;;  %v37360_v35 = vcombine.high %v37181_v30, %v37180_v8 }
 0x739   : > { %37340 = vst [vmem:[#allocation96_spill] sm:$0xff] %v33262_v26  ;;  %37345 = vst [vmem:[#allocation143_spill] sm:$0xff] %v33270_v3  ;;  %25401 = vmatprep.mubr.msk.f32.mxu1 %vm2946_vm1, %v37346_v28  ;;  %v33281_v13 = vpack.c.bf16 %v37348_v48, %v37347_v40  ;;  %v33285_v24 = vpack.c.bf16 %v37351_v38, %v37350_v56  ;;  %26192 = vmatprep.subr.msk.bf16.mxu1 %vm28039_vm2, %v32997_v4  ;;  %v37353_v37 = vld [vmem:[#allocation10_spill] sm:$0xff]  ;;  %v37354_v59 = vld [vmem:[#allocation67_spill] sm:$0xff] }
 0x73a   : > { %37342 = vst [vmem:[#allocation137_spill] sm:$0xff] %v33266_v42  ;;  %25507 = vmatmul.mubr.msk.f32.vlgmr.msra.gmra.mrb[202].mxu0 %vm2946_vm1, %v37353_v37  ;;  %v37355_v17 = vld [vmem:[#allocation121_spill] sm:$0xff]  ;;  %v37361_v49 = vcombine.high %v37236_v46, %v32682_v43  ;;  %v37362_v14 = vld [vmem:[#allocation104_spill] sm:$0xff]  ;;  %v37364_v8 = vcombine.high %v37246_v2, %v37245_v9  ;;  %v37367_v46 = vld [vmem:[#allocation106_spill] sm:$0xff] }
 0x73b   : > { %37349 = vst [vmem:[#allocation150_spill] sm:$0xff] %v33281_v13  ;;  %37352 = vst [vmem:[#allocation18_spill] sm:$0xff] %v33285_v24  ;;  %26285 = vmatpush3.bf16.xpose.msk.msra.mxu0 %vm28039_vm2, %v37313_v53  ;;  %25520 = vmatprep.mubr.msk.f32.mxu0 %vm2946_vm1, %v37354_v59  ;;  %v37358_v53 = vld [vmem:[#allocation21_spill] sm:$0xff]  ;;  %v37365_v30 = vld [vmem:[#allocation64_spill] sm:$0xff] }
 0x73c   : > { %26294 = vmatprep.subr.msk.bf16.mxu0 %vm28039_vm2, %v37355_v17  ;;  %v37359_v15 = vld [vmem:[#allocation49_spill] sm:$0xff]  ;;  %v37371_v9 = vld [vmem:[#allocation111_spill] sm:$0xff]  ;;  %v37372_v29 = vld [vmem:[#allocation16_spill] sm:$0xff] }
 0x73d   : > { %v37366_v43 = vld [vmem:[#allocation109_spill] sm:$0xff]  ;;  %v37373_v23 = vld [vmem:[#allocation110_spill] sm:$0xff]  ;;  %v37375_v60 = vld [vmem:[#allocation40_spill] sm:$0xff] }
 0x73e   : > { %v37369_v2 = vld [vmem:[#allocation73_spill] sm:$0xff]  ;;  %v37374_v33 = vld [vmem:[#allocation114_spill] sm:$0xff]  ;;  %v37376_v55 = vld [vmem:[#allocation112_spill] sm:$0xff] }
 0x73f   : > { %25402 = vmatmul.mubr.msk.f32.vlgmr.msra.gmra.mrb[154].mxu1 %vm2946_vm1, %v37356_v11  ;;  %v37377_v44 = vld [vmem:[#allocation30_spill] sm:$0xff]  ;;  %v37378_v27 = vld [vmem:[#allocation89_spill] sm:$0xff]  ;;  %v37382_v31 = vld [vmem:[#allocation63_spill] sm:$0xff] }
 0x740   : > { %26195 = vmatpush3.bf16.xpose.msk.msra.mxu1 %vm28039_vm2, %v32997_v4  ;;  %25415 = vmatprep.mubr.msk.f32.mxu1 %vm2946_vm1, %v37357_v22  ;;  %v37363_v4 = vld [vmem:[#allocation80_spill] sm:$0xff]  ;;  %v37379_v57 = vld [vmem:[#allocation41_spill] sm:$0xff]  ;;  %v37384_v40 = vld [vmem:[#allocation130_spill] sm:$0xff] }
 0x741   : > { %26204 = vmatprep.subr.msk.bf16.mxu1 %vm28039_vm2, %v33013_v32  ;;  %v37380_v20 = vld [vmem:[#allocation5_spill] sm:$0xff]  ;;  %v37386_v56 = vld [vmem:[#allocation122_spill] sm:$0xff]  ;;  %v37387_v38 = vld [vmem:[#allocation120_spill] sm:$0xff] }
 0x742   : > { %25521 = vmatmul.mubr.msk.f32.vlgmr.msra.gmra.mrb[204].mxu0 %vm2946_vm1, %v37358_v53  ;;  %v37381_v47 = vld [vmem:[#allocation69_spill] sm:$0xff] }
 0x743   : > { %26297 = vmatpush3.bf16.xpose.msk.msra.mxu0 %vm28039_vm2, %v37355_v17  ;;  %25534 = vmatprep.mubr.msk.f32.mxu0 %vm2946_vm1, %v37359_v15  ;;  %v37383_v28 = vld [vmem:[#allocation57_spill] sm:$0xff] }
 0x744   : > { %26305 = vmatprep.subr.bf16.mxu0 %v33048_v62  ;;  %v37385_v48 = vld [vmem:[#allocation81_spill] sm:$0xff] }
 0x747   : > { %25416 = vmatmul.mubr.msk.f32.vlgmr.msra.gmra.mrb[156].mxu1 %vm2946_vm1, %v37360_v35 }
 0x748   : > { %26207 = vmatpush3.bf16.xpose.msk.msra.mxu1 %vm28039_vm2, %v33013_v32  ;;  %25429 = vmatprep.mubr.msk.f32.mxu1 %vm2946_vm1, %v37361_v49  ;;  %v37370_v32 = vld [vmem:[#allocation7_spill] sm:$0xff] }
 0x749   : > { %26216 = vmatprep.subr.msk.bf16.mxu1 %vm28039_vm2, %v37362_v14 }
 0x74a   : > { %25535 = vmatmul.mubr.msk.f32.vlgmr.msra.gmra.mrb[206].mxu0 %vm2946_vm1, %v37363_v4 }
 0x74b   : > { %26307 = vmatpush3.bf16.msra.mxu0 %v33048_v62  ;;  %v37368_v62 = vld [vmem:[#allocation29_spill] sm:$0xff] }
 0x74c   : > { %26313 = vmatprep.subr.bf16.mxu0 %v33072_v1 }
 0x74f   : > { %25430 = vmatmul.mubr.msk.f32.vlgmr.msra.gmra.mrb[158].mxu1 %vm2946_vm1, %v37364_v8 }
 0x750   : > { %26219 = vmatpush3.bf16.xpose.msk.msra.mxu1 %vm28039_vm2, %v37362_v14  ;;  %25443 = vmatprep.mubr.msk.f32.mxu1 %vm2946_vm1, %v37365_v30 }
 0x751   : > { %26228 = vmatprep.subr.msk.bf16.mxu1 %vm28039_vm2, %v37366_v43 }
 0x757   : > { %25444 = vmatmul.mubr.msk.f32.vlgmr.msra.gmra.mrb[160].mxu1 %vm2946_vm1, %v37367_v46 }
 0x758   : > { %26231 = vmatpush3.bf16.xpose.msk.msra.mxu1 %vm28039_vm2, %v37366_v43  ;;  %25457 = vmatprep.mubr.msk.f32.mxu1 %vm2946_vm1, %v37368_v62 }
 0x759   : > { %26240 = vmatprep.subr.msk.bf16.mxu1 %vm28039_vm2, %v37369_v2 }
 0x75f   : > { %25458 = vmatmul.mubr.msk.f32.vlgmr.msra.gmra.mrb[162].mxu1 %vm2946_vm1, %v37370_v32 }
 0x760   : > { %26243 = vmatpush3.bf16.xpose.msk.msra.mxu1 %vm28039_vm2, %v37369_v2  ;;  %25471 = vmatprep.mubr.msk.f32.mxu1 %vm2946_vm1, %v37371_v9 }
 0x761   : > { %26252 = vmatprep.subr.msk.bf16.mxu1 %vm28039_vm2, %v37372_v29 }
 0x767   : > { %25472 = vmatmul.mubr.msk.f32.vlgmr.msra.gmra.mrb[164].mxu1 %vm2946_vm1, %v37373_v23 }
 0x768   : > { %26255 = vmatpush3.bf16.xpose.msk.msra.mxu1 %vm28039_vm2, %v37372_v29  ;;  %25485 = vmatprep.mubr.msk.f32.mxu1 %vm2946_vm1, %v37374_v33 }
 0x769   : > { %26264 = vmatprep.subr.msk.bf16.mxu1 %vm28039_vm2, %v37375_v60 }
 0x76f   : > { %25486 = vmatmul.mubr.msk.f32.vlgmr.msra.gmra.mrb[166].mxu1 %vm2946_vm1, %v37376_v55 }
 0x770   : > { %26267 = vmatpush3.bf16.xpose.msk.msra.mxu1 %vm28039_vm2, %v37375_v60  ;;  %25499 = vmatprep.mubr.msk.f32.mxu1 %vm2946_vm1, %v37377_v44 }
 0x771   : > { %26276 = vmatprep.subr.msk.bf16.mxu1 %vm28039_vm2, %v37378_v27 }
 0x777   : > { %25500 = vmatmul.mubr.msk.f32.vlgmr.msra.gmra.mrb[168].mxu1 %vm2946_vm1, %v37379_v57 }
 0x778   : > { %26279 = vmatpush3.bf16.xpose.msk.msra.mxu1 %vm28039_vm2, %v37378_v27  ;;  %25513 = vmatprep.mubr.msk.f32.mxu1 %vm2946_vm1, %v37380_v20 }
 0x779   : > { %26288 = vmatprep.subr.msk.bf16.mxu1 %vm28039_vm2, %v37381_v47 }
 0x77f   : > { %25514 = vmatmul.mubr.msk.f32.vlgmr.msra.gmra.mrb[170].mxu1 %vm2946_vm1, %v37382_v31 }
 0x780   : > { %26291 = vmatpush3.bf16.xpose.msk.msra.mxu1 %vm28039_vm2, %v37381_v47  ;;  %25527 = vmatprep.mubr.msk.f32.mxu1 %vm2946_vm1, %v37383_v28 }
 0x781   : > { %26300 = vmatprep.subr.msk.bf16.mxu1 %vm28039_vm2, %v37384_v40 }
 0x787   : > { %25528 = vmatmul.mubr.msk.f32.vlgmr.msra.gmra.mrb[172].mxu1 %vm2946_vm1, %v37385_v48 }
 0x788   : > { %26303 = vmatpush3.bf16.xpose.msk.msra.mxu1 %vm28039_vm2, %v37384_v40  ;;  %25541 = vmatprep.mubr.msk.f32.mxu1 %vm2946_vm1, %v37386_v56 }
 0x789   : > { %26309 = vmatprep.subr.bf16.mxu1 %v33059_v51 }
 0x78f   : > { %25542 = vmatmul.mubr.msk.f32.vlgmr.msra.gmra.mrb[174].mxu1 %vm2946_vm1, %v37387_v38 }
 0x790   : > { %26311 = vmatpush3.bf16.msra.mxu1 %v33059_v51 }
 0x791   : > { %26317 = vmatprep.subr.bf16.mxu1 %v33074_v18 }
 0x7bd   : > { %v25382_v37 = vpop.f32.mrb[184].mxu0 }
 0x7be   : > { %v33426_v17 = vsel %vm28976_vm3, -inf, %v25382_v37  ;;  %v15024_v11 = vpop.f32.mrb[185].mxu0 }
 0x7bf   : > { %37389 = vst [vmem:[#allocation127_spill] sm:$0xff] %v33426_v17  ;;  %v17117_v45 = vsel %vm530_vm0, %v33426_v17, -inf  ;;  %v33442_v14 = vsel %vm28991_vm4, -inf, %v15024_v11 }
 0x7c0   : > { %17118 = vmax.xlane.f32.xlu1 %v17117_v45  ;;  %v25326_v22 = vpop.f32.mrb[136].mxu1  ;;  %37393 = vst [vmem:[#allocation144_spill] sm:$0xff] %v33442_v14  ;;  %v17114_v46 = vsel %vm530_vm0, %v33442_v14, -inf }
 0x7c1   : > { %v33432_v53 = vsel %vm28976_vm3, -inf, %v25326_v22  ;;  %v14328_v15 = vpop.f32.mrb[137].mxu1 }
 0x7c2   : > { %37390 = vst [vmem:[#allocation45_spill] sm:$0xff] %v33432_v53  ;;  %v17069_v51 = vsel %vm530_vm0, %v33432_v53, -inf  ;;  %v33438_v49 = vsel %vm28991_vm4, -inf, %v14328_v15 }
 0x7c3   : > { %37392 = vst [vmem:[#allocation138_spill] sm:$0xff] %v33438_v49  ;;  %v17066_v4 = vsel %vm530_vm0, %v33438_v49, -inf  ;;  %17070 = vmax.xlane.f32.xlu0 %v17069_v51 }
 0x7c4   : > { %17067 = vmax.xlane.f32.xlu1 %v17066_v4 }
 0x7c5   : > { %v25396_v8 = vpop.f32.mrb[186].mxu0 }
 0x7c6   : > { %v33448_v30 = vsel %vm28976_vm3, -inf, %v25396_v8  ;;  %v15198_v43 = vpop.f32.mrb[187].mxu0 }
 0x7c7   : > { %37394 = vst [vmem:[#allocation56_spill] sm:$0xff] %v33448_v30  ;;  %v17129_v62 = vsel %vm530_vm0, %v33448_v30, -inf  ;;  %v33456_v2 = vsel %vm28991_vm4, -inf, %v15198_v43  ;;  %17115 = vmax.xlane.f32.xlu0 %v17114_v46 }
 0x7c8   : > { %37395 = vst [vmem:[#allocation151_spill] sm:$0xff] %v33456_v2  ;;  %v25333_v32 = vpop.f32.mrb[138].mxu1  ;;  %v17126_v9 = vsel %vm530_vm0, %v33456_v2, -inf  ;;  %17130 = vmax.xlane.f32.xlu1 %v17129_v62 }
 0x7c9   : > { %v33462_v29 = vsel %vm28976_vm3, -inf, %v25333_v32  ;;  %v14415_v23 = vpop.f32.mrb[139].mxu1 }
 0x7ca   : > { %37396 = vst [vmem:[#allocation113_spill] sm:$0xff] %v33462_v29  ;;  %v17075_v33 = vsel %vm530_vm0, %v33462_v29, -inf  ;;  %v33468_v60 = vsel %vm28991_vm4, -inf, %v14415_v23 }
 0x7cb   : > { %37397 = vst [vmem:[#allocation11_spill] sm:$0xff] %v33468_v60  ;;  %17127 = vmax.xlane.f32.xlu0 %v17126_v9  ;;  %v17072_v57 = vsel %vm530_vm0, %v33468_v60, -inf }
 0x7cc   : > { %17076 = vmax.xlane.f32.xlu1 %v17075_v33 }
 0x7ce   : > { %v25410_v55 = vpop.f32.mrb[188].mxu0 }
 0x7cf   : > { %v33472_v44 = vsel %vm28976_vm3, -inf, %v25410_v55  ;;  %v15372_v27 = vpop.f32.mrb[189].mxu0  ;;  %17073 = vmax.xlane.f32.xlu0 %v17072_v57 }
 0x7d0   : > { %37398 = vst [vmem:[#allocation13_spill] sm:$0xff] %v33472_v44  ;;  %v17141_v20 = vsel %vm530_vm0, %v33472_v44, -inf  ;;  %v33480_v47 = vsel %vm28991_vm4, -inf, %v15372_v27 }
 0x7d1   : > { %37399 = vst [vmem:[#allocation135_spill] sm:$0xff] %v33480_v47  ;;  %v17138_v28 = vsel %vm530_vm0, %v33480_v47, -inf  ;;  %17142 = vmax.xlane.f32.xlu1 %v17141_v20 }
 0x7d2   : > { %v25340_v31 = vpop.f32.mrb[140].mxu1 }
 0x7d3   : > { %v33486_v40 = vsel %vm28976_vm3, -inf, %v25340_v31  ;;  %v14502_v48 = vpop.f32.mrb[141].mxu1  ;;  %17139 = vmax.xlane.f32.xlu0 %v17138_v28 }
 0x7d4   : > { %37400 = vst [vmem:[#allocation71_spill] sm:$0xff] %v33486_v40  ;;  %v17081_v56 = vsel %vm530_vm0, %v33486_v40, -inf  ;;  %v33492_v38 = vsel %vm28991_vm4, -inf, %v14502_v48 }
 0x7d5   : > { %37401 = vst [vmem:[#allocation148_spill] sm:$0xff] %v33492_v38  ;;  %17082 = vmax.xlane.f32.xlu1 %v17081_v56  ;;  %v17078_v22 = vsel %vm530_vm0, %v33492_v38, -inf }
 0x7d6   : > { %v25424_v37 = vpop.f32.mrb[190].mxu0 }
 0x7d7   : > { %v33496_v11 = vsel %vm28976_vm3, -inf, %v25424_v37  ;;  %v15546_v45 = vpop.f32.mrb[191].mxu0  ;;  %17079 = vmax.xlane.f32.xlu0 %v17078_v22 }
 0x7d8   : > { %37402 = vst [vmem:[#allocation152_spill] sm:$0xff] %v33496_v11  ;;  %v17153_v15 = vsel %vm530_vm0, %v33496_v11, -inf  ;;  %v33504_v51 = vsel %vm28991_vm4, -inf, %v15546_v45 }
 0x7d9   : > { %37403 = vst [vmem:[#allocation79_spill] sm:$0xff] %v33504_v51  ;;  %v17150_v8 = vsel %vm530_vm0, %v33504_v51, -inf  ;;  %17154 = vmax.xlane.f32.xlu1 %v17153_v15 }
 0x7da   : > { %v25347_v4 = vpop.f32.mrb[142].mxu1 }
 0x7db   : > { %v33510_v43 = vsel %vm28976_vm3, -inf, %v25347_v4  ;;  %v14589_v46 = vpop.f32.mrb[143].mxu1  ;;  %17151 = vmax.xlane.f32.xlu0 %v17150_v8 }
 0x7dc   : > { %37404 = vst [vmem:[#allocation91_spill] sm:$0xff] %v33510_v43  ;;  %v17087_v62 = vsel %vm530_vm0, %v33510_v43, -inf  ;;  %v33516_v32 = vsel %vm28991_vm4, -inf, %v14589_v46 }
 0x7dd   : > { %37405 = vst [vmem:[#allocation119_spill] sm:$0xff] %v33516_v32  ;;  %17088 = vmax.xlane.f32.xlu1 %v17087_v62  ;;  %v17084_v55 = vsel %vm530_vm0, %v33516_v32, -inf }
 0x7de   : > { %v33518_v9 = vpop.f32.mrb[192].mxu0 }
 0x7df   : > { %37406 = vst [vmem:[#allocation33_spill] sm:$0xff] %v33518_v9  ;;  %v33520_v23 = vpop.f32.mrb[193].mxu0  ;;  %v17165_v33 = vsel %vm530_vm0, %v33518_v9, -inf  ;;  %17085 = vmax.xlane.f32.xlu0 %v17084_v55 }
 0x7e0   : > { %37407 = vst [vmem:[#allocation136_spill] sm:$0xff] %v33520_v23  ;;  %v17162_v57 = vsel %vm530_vm0, %v33520_v23, -inf }
 0x7e1   : > { %17166 = vmax.xlane.f32.xlu1 %v17165_v33 }
 0x7e2   : > { %v25354_v27 = vpop.f32.mrb[144].mxu1 }
 0x7e3   : > { %v33530_v20 = vsel %vm28976_vm3, -inf, %v25354_v27  ;;  %v14676_v31 = vpop.f32.mrb[145].mxu1  ;;  %17163 = vmax.xlane.f32.xlu0 %v17162_v57 }
 0x7e4   : > { %37408 = vst [vmem:[#allocation140_spill] sm:$0xff] %v33530_v20  ;;  %v17093_v28 = vsel %vm530_vm0, %v33530_v20, -inf  ;;  %v33536_v48 = vsel %vm28991_vm4, -inf, %v14676_v31 }
 0x7e5   : > { %37409 = vst [vmem:[#allocation149_spill] sm:$0xff] %v33536_v48  ;;  %17094 = vmax.xlane.f32.xlu1 %v17093_v28  ;;  %v17090_v22 = vsel %vm530_vm0, %v33536_v48, -inf }
 0x7e6   : > { %v33538_v56 = vpop.f32.mrb[194].mxu0 }
 0x7e7   : > { %37410 = vst [vmem:[#allocation153_spill] sm:$0xff] %v33538_v56  ;;  %v33540_v37 = vpop.f32.mrb[195].mxu0  ;;  %v17177_v45 = vsel %vm530_vm0, %v33538_v56, -inf  ;;  %17091 = vmax.xlane.f32.xlu0 %v17090_v22 }
 0x7e8   : > { %37411 = vst [vmem:[#allocation55_spill] sm:$0xff] %v33540_v37  ;;  %v17174_v4 = vsel %vm530_vm0, %v33540_v37, -inf }
 0x7e9   : > { %17178 = vmax.xlane.f32.xlu1 %v17177_v45 }
 0x7ea   : > { %v25361_v15 = vpop.f32.mrb[146].mxu1 }
 0x7eb   : > { %v33550_v8 = vsel %vm28976_vm3, -inf, %v25361_v15  ;;  %v14763_v46 = vpop.f32.mrb[147].mxu1  ;;  %17175 = vmax.xlane.f32.xlu0 %v17174_v4 }
 0x7ec   : > { %37412 = vst [vmem:[#allocation76_spill] sm:$0xff] %v33550_v8  ;;  %v17099_v62 = vsel %vm530_vm0, %v33550_v8, -inf  ;;  %v33556_v33 = vsel %vm28991_vm4, -inf, %v14763_v46 }
 0x7ed   : > { %37413 = vst [vmem:[#allocation115_spill] sm:$0xff] %v33556_v33  ;;  %17100 = vmax.xlane.f32.xlu1 %v17099_v62  ;;  %v17096_v31 = vsel %vm530_vm0, %v33556_v33, -inf }
 0x7ee   : > { %v33558_v55 = vpop.f32.mrb[196].mxu0 }
 0x7ef   : > { %37414 = vst [vmem:[#allocation44_spill] sm:$0xff] %v33558_v55  ;;  %v33560_v27 = vpop.f32.mrb[197].mxu0  ;;  %v17189_v57 = vsel %vm530_vm0, %v33558_v55, -inf  ;;  %17097 = vmax.xlane.f32.xlu0 %v17096_v31 }
 0x7f0   : > { %37415 = vst [vmem:[#allocation93_spill] sm:$0xff] %v33560_v27  ;;  %v17186_v45 = vsel %vm530_vm0, %v33560_v27, -inf }
 0x7f1   : > { %17190 = vmax.xlane.f32.xlu1 %v17189_v57 }
 0x7f3   : > { %v25368_v28 = vpop.f32.mrb[148].mxu1  ;;  %17187 = vmax.xlane.f32.xlu0 %v17186_v45 }
 0x7f4   : > { %v33570_v22 = vsel %vm28976_vm3, -inf, %v25368_v28  ;;  %v14850_v15 = vpop.f32.mrb[149].mxu1 }
 0x7f5   : > { %37416 = vst [vmem:[#allocation142_spill] sm:$0xff] %v33570_v22  ;;  %v17105_v4 = vsel %vm530_vm0, %v33570_v22, -inf  ;;  %v33576_v46 = vsel %vm28991_vm4, -inf, %v14850_v15 }
 0x7f6   : > { %37417 = vst [vmem:[#allocation141_spill] sm:$0xff] %v33576_v46  ;;  %17106 = vmax.xlane.f32.xlu1 %v17105_v4  ;;  %v17102_v28 = vsel %vm530_vm0, %v33576_v46, -inf }
 0x7f7   : > { %v33578_v62 = vpop.f32.mrb[198].mxu0  ;;  %17103 = vmax.xlane.f32.xlu0 %v17102_v28 }
 0x7f8   : > { %37418 = vst [vmem:[#allocation146_spill] sm:$0xff] %v33578_v62  ;;  %v33580_v57 = vpop.f32.mrb[199].mxu0  ;;  %v17201_v31 = vsel %vm530_vm0, %v33578_v62, -inf }
 0x7f9   : > { %37419 = vst [vmem:[#allocation145_spill] sm:$0xff] %v33580_v57  ;;  %v17198_v13 = vsel %vm530_vm0, %v33580_v57, -inf }
 0x7fa   : > { %17202 = vmax.xlane.f32.xlu1 %v17201_v31 }
 0x7fb   : > { %17199 = vmax.xlane.f32.xlu0 %v17198_v13 }
 0x7fd   : > { %v25375_v24 = vpop.f32.mrb[150].mxu1 }
 0x7fe   : > { %v33590_v45 = vsel %vm28976_vm3, -inf, %v25375_v24  ;;  %v14937_v15 = vpop.f32.mrb[151].mxu1 }
 0x7ff   : > { %37420 = vst [vmem:[#allocation147_spill] sm:$0xff] %v33590_v45  ;;  %v17111_v4 = vsel %vm530_vm0, %v33590_v45, -inf  ;;  %v33596_v3 = vsel %vm28991_vm4, -inf, %v14937_v15 }
 0x800   : > { %37421 = vst [vmem:[#allocation85_spill] sm:$0xff] %v33596_v3  ;;  %17112 = vmax.xlane.f32.xlu1 %v17111_v4  ;;  %v17108_v24 = vsel %vm530_vm0, %v33596_v3, -inf }
 0x801   : > { %17109 = vmax.xlane.f32.xlu0 %v17108_v24 }
 0x802   : > { %v33598_v28 = vpop.f32.mrb[200].mxu0 }
 0x803   : > { %37422 = vst [vmem:[#allocation31_spill] sm:$0xff] %v33598_v28  ;;  %v33600_v31 = vpop.f32.mrb[201].mxu0  ;;  %v17213_v42 = vsel %vm530_vm0, %v33598_v28, -inf }
 0x804   : > { %37423 = vst [vmem:[#allocation74_spill] sm:$0xff] %v33600_v31  ;;  %17214 = vmax.xlane.f32.xlu1 %v17213_v42  ;;  %v17210_v16 = vsel %vm530_vm0, %v33600_v31, -inf }
 0x805   : > { %17211 = vmax.xlane.f32.xlu0 %v17210_v16 }
 0x80a   : > { %v25389_v26 = vpop.f32.mrb[152].mxu1 }
 0x80b   : > { %v33610_v13 = vsel %vm28976_vm3, -inf, %v25389_v26  ;;  %v15111_v15 = vpop.f32.mrb[153].mxu1 }
 0x80c   : > { %37424 = vst [vmem:[#allocation105_spill] sm:$0xff] %v33610_v13  ;;  %v17123_v4 = vsel %vm530_vm0, %v33610_v13, -inf  ;;  %v33616_v63 = vsel %vm28991_vm4, -inf, %v15111_v15 }
 0x80d   : > { %37425 = vst [vmem:[#allocation75_spill] sm:$0xff] %v33616_v63  ;;  %17124 = vmax.xlane.f32.xlu1 %v17123_v4  ;;  %v33618_v24 = vpop.f32.mrb[202].mxu0  ;;  %v17120_v26 = vsel %vm530_vm0, %v33616_v63, -inf }
 0x80e   : > { %37426 = vst [vmem:[#allocation77_spill] sm:$0xff] %v33618_v24  ;;  %v33620_v42 = vpop.f32.mrb[203].mxu0  ;;  %v17225_v61 = vsel %vm530_vm0, %v33618_v24, -inf  ;;  %17121 = vmax.xlane.f32.xlu0 %v17120_v26 }
 0x80f   : > { %37427 = vst [vmem:[#allocation82_spill] sm:$0xff] %v33620_v42  ;;  %v17222_v5 = vsel %vm530_vm0, %v33620_v42, -inf }
 0x811   : > { %17226 = vmax.xlane.f32.xlu1 %v17225_v61 }
 0x812   : > { %v25403_v19 = vpop.f32.mrb[154].mxu1  ;;  %17223 = vmax.xlane.f32.xlu0 %v17222_v5 }
 0x813   : > { %v33630_v16 = vsel %vm28976_vm3, -inf, %v25403_v19  ;;  %v15285_v15 = vpop.f32.mrb[155].mxu1 }
 0x814   : > { %37428 = vst [vmem:[#allocation108_spill] sm:$0xff] %v33630_v16  ;;  %v17135_v4 = vsel %vm530_vm0, %v33630_v16, -inf  ;;  %v33636_v0 = vsel %vm28991_vm4, -inf, %v15285_v15 }
 0x815   : > { %37429 = vst [vmem:[#allocation116_spill] sm:$0xff] %v33636_v0  ;;  %17136 = vmax.xlane.f32.xlu1 %v17135_v4  ;;  %v33638_v26 = vpop.f32.mrb[204].mxu0  ;;  %v17132_v19 = vsel %vm530_vm0, %v33636_v0, -inf  ;;  %v37456_v0 = vld [vmem:[#allocation9_spill] sm:$0xff] }
 0x816   : > { %37430 = vst [vmem:[#allocation126_spill] sm:$0xff] %v33638_v26  ;;  %v33640_v61 = vpop.f32.mrb[205].mxu0  ;;  %v17237_v25 = vsel %vm530_vm0, %v33638_v26, -inf  ;;  %17133 = vmax.xlane.f32.xlu0 %v17132_v19 }
 0x817   : > { %37431 = vst [vmem:[#allocation17_spill] sm:$0xff] %v33640_v61  ;;  %v17234_v21 = vsel %vm530_vm0, %v33640_v61, -inf }
 0x819   : > { %17238 = vmax.xlane.f32.xlu1 %v17237_v25 }
 0x81a   : > { %v25417_v62 = vpop.f32.mrb[156].mxu1  ;;  %17235 = vmax.xlane.f32.xlu0 %v17234_v21 }
 0x81b   : > { %v33650_v5 = vsel %vm28976_vm3, -inf, %v25417_v62  ;;  %v15459_v15 = vpop.f32.mrb[157].mxu1 }
 0x81c   : > { %37432 = vst [vmem:[#allocation87_spill] sm:$0xff] %v33650_v5  ;;  %v17147_v4 = vsel %vm530_vm0, %v33650_v5, -inf  ;;  %v33656_v26 = vsel %vm28991_vm4, -inf, %v15459_v15 }
 0x81d   : > { %37433 = vst [vmem:[#allocation48_spill] sm:$0xff] %v33656_v26  ;;  %17148 = vmax.xlane.f32.xlu1 %v17147_v4  ;;  %v33658_v19 = vpop.f32.mrb[206].mxu0  ;;  %v17144_v62 = vsel %vm530_vm0, %v33656_v26, -inf }
 0x81e   : > { %37434 = vst [vmem:[#allocation43_spill] sm:$0xff] %v33658_v19  ;;  %v33660_v25 = vpop.f32.mrb[207].mxu0  ;;  %v17249_v55 = vsel %vm530_vm0, %v33658_v19, -inf  ;;  %17145 = vmax.xlane.f32.xlu0 %v17144_v62 }
 0x81f   : > { %37435 = vst [vmem:[#allocation83_spill] sm:$0xff] %v33660_v25  ;;  %v17246_v41 = vsel %vm530_vm0, %v33660_v25, -inf }
 0x821   : > { %17250 = vmax.xlane.f32.xlu1 %v17249_v55 }
 0x822   : > { %v25431_v24 = vpop.f32.mrb[158].mxu1  ;;  %17247 = vmax.xlane.f32.xlu0 %v17246_v41 }
 0x823   : > { %v33670_v21 = vsel %vm28976_vm3, -inf, %v25431_v24  ;;  %v15633_v15 = vpop.f32.mrb[159].mxu1 }
 0x824   : > { %37436 = vst [vmem:[#allocation107_spill] sm:$0xff] %v33670_v21  ;;  %v17159_v4 = vsel %vm530_vm0, %v33670_v21, -inf  ;;  %v33676_v19 = vsel %vm28991_vm4, -inf, %v15633_v15 }
 0x825   : > { %37437 = vst [vmem:[#allocation117_spill] sm:$0xff] %v33676_v19  ;;  %17160 = vmax.xlane.f32.xlu1 %v17159_v4  ;;  %v17156_v55 = vsel %vm530_vm0, %v33676_v19, -inf }
 0x826   : > { %17157 = vmax.xlane.f32.xlu0 %v17156_v55 }
 0x82a   : > { %v33680_v62 = vpop.f32.mrb[160].mxu1 }
 0x82b   : > { %37438 = vst [vmem:[#allocation36_spill] sm:$0xff] %v33680_v62  ;;  %v33682_v6 = vpop.f32.mrb[161].mxu1  ;;  %v17171_v59 = vsel %vm530_vm0, %v33680_v62, -inf }
 0x82c   : > { %37439 = vst [vmem:[#allocation10_spill] sm:$0xff] %v33682_v6  ;;  %17172 = vmax.xlane.f32.xlu1 %v17171_v59  ;;  %v17168_v24 = vsel %vm530_vm0, %v33682_v6, -inf }
 0x82d   : > { %17169 = vmax.xlane.f32.xlu0 %v17168_v24 }
 0x832   : > { %v33688_v35 = vpop.f32.mrb[162].mxu1 }
 0x833   : > { %37440 = vst [vmem:[#allocation67_spill] sm:$0xff] %v33688_v35  ;;  %v33690_v41 = vpop.f32.mrb[163].mxu1  ;;  %v17183_v15 = vsel %vm530_vm0, %v33688_v35, -inf }
 0x834   : > { %37441 = vst [vmem:[#allocation121_spill] sm:$0xff] %v33690_v41  ;;  %17184 = vmax.xlane.f32.xlu1 %v17183_v15  ;;  %v17180_v4 = vsel %vm530_vm0, %v33690_v41, -inf }
 0x835   : > { %17181 = vmax.xlane.f32.xlu0 %v17180_v4 }
 0x83a   : > { %v33696_v55 = vpop.f32.mrb[164].mxu1 }
 0x83b   : > { %37442 = vst [vmem:[#allocation21_spill] sm:$0xff] %v33696_v55  ;;  %v33698_v7 = vpop.f32.mrb[165].mxu1  ;;  %v17195_v59 = vsel %vm530_vm0, %v33696_v55, -inf }
 0x83c   : > { %37443 = vst [vmem:[#allocation49_spill] sm:$0xff] %v33698_v7  ;;  %17196 = vmax.xlane.f32.xlu1 %v17195_v59  ;;  %v17192_v24 = vsel %vm530_vm0, %v33698_v7, -inf }
 0x83d   : > { %17193 = vmax.xlane.f32.xlu0 %v17192_v24 }
 0x842   : > { %v33704_v56 = vpop.f32.mrb[166].mxu1 }
 0x843   : > { %37444 = vst [vmem:[#allocation104_spill] sm:$0xff] %v33704_v56  ;;  %v33706_v35 = vpop.f32.mrb[167].mxu1  ;;  %v17207_v15 = vsel %vm530_vm0, %v33704_v56, -inf }
 0x844   : > { %37445 = vst [vmem:[#allocation80_spill] sm:$0xff] %v33706_v35  ;;  %17208 = vmax.xlane.f32.xlu1 %v17207_v15  ;;  %v17204_v4 = vsel %vm530_vm0, %v33706_v35, -inf }
 0x845   : > { %17205 = vmax.xlane.f32.xlu0 %v17204_v4 }
 0x84a   : > { %v33712_v41 = vpop.f32.mrb[168].mxu1 }
 0x84b   : > { %37446 = vst [vmem:[#allocation64_spill] sm:$0xff] %v33712_v41  ;;  %v33714_v55 = vpop.f32.mrb[169].mxu1  ;;  %v17219_v59 = vsel %vm530_vm0, %v33712_v41, -inf }
 0x84c   : > { %37447 = vst [vmem:[#allocation109_spill] sm:$0xff] %v33714_v55  ;;  %17220 = vmax.xlane.f32.xlu1 %v17219_v59  ;;  %v17216_v24 = vsel %vm530_vm0, %v33714_v55, -inf }
 0x84d   : > { %17217 = vmax.xlane.f32.xlu0 %v17216_v24  ;;  %v33728_v35 = vpop.xlane.xlu1 %17118 }
 0x850   : > { %v33730_v41 = vpop.xlane.xlu0 %17070 }
 0x851   : > { %v33738_v39 = vpop.xlane.xlu1 %17067 }
 0x852   : > { %v33720_v7 = vpop.f32.mrb[170].mxu1 }
 0x853   : > { %37448 = vst [vmem:[#allocation106_spill] sm:$0xff] %v33720_v7  ;;  %v33722_v56 = vpop.f32.mrb[171].mxu1  ;;  %v17231_v15 = vsel %vm530_vm0, %v33720_v7, -inf }
 0x854   : > { %37449 = vst [vmem:[#allocation29_spill] sm:$0xff] %v33722_v56  ;;  %17232 = vmax.xlane.f32.xlu1 %v17231_v15  ;;  %v17228_v4 = vsel %vm530_vm0, %v33722_v56, -inf  ;;  %v33742_v7 = vpop.xlane.xlu0 %17115 }
 0x855   : > { %17229 = vmax.xlane.f32.xlu0 %v17228_v4  ;;  %v33744_v4 = vpop.xlane.xlu1 %17130 }
 0x858   : > { %v33746_v56 = vpop.xlane.xlu0 %17127 }
 0x859   : > { %v33754_v28 = vpop.xlane.xlu1 %17076 }
 0x85a   : > { %v33732_v59 = vpop.f32.mrb[172].mxu1 }
 0x85b   : > { %37450 = vst [vmem:[#allocation73_spill] sm:$0xff] %v33732_v59  ;;  %v33734_v55 = vpop.f32.mrb[173].mxu1  ;;  %v17243_v24 = vsel %vm530_vm0, %v33732_v59, -inf }
 0x85c   : > { %37451 = vst [vmem:[#allocation7_spill] sm:$0xff] %v33734_v55  ;;  %17244 = vmax.xlane.f32.xlu1 %v17243_v24  ;;  %v17240_v15 = vsel %vm530_vm0, %v33734_v55, -inf }
 0x85d   : > { %17241 = vmax.xlane.f32.xlu0 %v17240_v15  ;;  %v33758_v15 = vpop.xlane.xlu0 %17073 }
 0x85e   : > { %v33760_v55 = vpop.xlane.xlu1 %17142 }
 0x861   : > { %v33762_v21 = vpop.xlane.xlu0 %17139 }
 0x862   : > { %v33748_v62 = vpop.f32.mrb[174].mxu1  ;;  %v33764_v36 = vpop.xlane.xlu1 %17082 }
 0x863   : > { %37452 = vst [vmem:[#allocation111_spill] sm:$0xff] %v33748_v62  ;;  %v33750_v6 = vpop.f32.mrb[175].mxu1  ;;  %v17255_v59 = vsel %vm530_vm0, %v33748_v62, -inf }
 0x864   : > { %37453 = vst [vmem:[#allocation16_spill] sm:$0xff] %v33750_v6  ;;  %17256 = vmax.xlane.f32.xlu1 %v17255_v59  ;;  %v17252_v24 = vsel %vm530_vm0, %v33750_v6, -inf }
 0x865   : > { %17253 = vmax.xlane.f32.xlu0 %v17252_v24  ;;  %v33766_v25 = vpop.xlane.xlu0 %17079 }
 0x866   : > { %v33768_v19 = vpop.xlane.xlu1 %17154  ;;  %v17258_v45 = vcombine.low %v33738_v39, %v33766_v25 }
 0x868   : > { %v17266_v27 = vrot.slane %v17258_v45, %v37456_v0 }
 0x869   : > { %v33770_v62 = vpop.xlane.xlu0 %17151 }
 0x86a   : > { %v33772_v11 = vpop.xlane.xlu1 %17088  ;;  %v17426_v50 = vcombine.low %v33762_v21, %v33770_v62 }
 0x86d   : > { %v33774_v59 = vpop.xlane.xlu0 %17085 }
 0x86e   : > { %v33776_v6 = vpop.xlane.xlu1 %17166  ;;  %v17274_v30 = vcombine.low %v33758_v15, %v33774_v59 }
 0x870   : > { %v17282_v10 = vrot.slane %v17274_v30, %v37456_v0 }
 0x871   : > { %v17164_v24 = vpop.xlane.xlu0 %17163 }
 0x872   : > { %v33778_v58 = vpop.xlane.xlu1 %17094  ;;  %v17322_v63 = vcombine.low %v17266_v27, %v17282_v10  ;;  %v17323_v29 = vcombine.high %v17266_v27, %v17282_v10  ;;  %v17395_v10 = vcombine.high %v33742_v7, %v33746_v56 }
 0x873   : > { %37454 = vst [vmem:[#allocation110_spill] sm:$0xff] %v33778_v58 }
 0x874   : > { %v17330_v30 = vrot.slane %v17322_v63, %v36903_v54 }
 0x875   : > { %v33780_v5 = vpop.xlane.xlu0 %17091 }
 0x876   : > { %v33782_v61 = vpop.xlane.xlu1 %17178 }
 0x879   : > { %v33784_v51 = vpop.xlane.xlu0 %17175 }
 0x87a   : > { %v33786_v26 = vpop.xlane.xlu1 %17100 }
 0x87d   : > { %v33788_v52 = vpop.xlane.xlu0 %17097 }
 0x87e   : > { %v33790_v44 = vpop.xlane.xlu1 %17190 }
 0x881   : > { %v33792_v42 = vpop.xlane.xlu0 %17187 }
 0x883   : > { %v33794_v16 = vpop.xlane.xlu1 %17106 }
 0x884   : > { %37455 = vst [vmem:[#allocation114_spill] sm:$0xff] %v33794_v16 }
 0x885   : > { %v33796_v47 = vpop.xlane.xlu0 %17103 }
 0x886   : > { %v17290_v2 = vcombine.low %v33780_v5, %v33796_v47 }
 0x887   : > { %v33798_v34 = vpop.xlane.xlu1 %17202 }
 0x888   : > { %v17298_v18 = vrot.slane %v17290_v2, %v37456_v0 }
 0x889   : > { %v33802_v13 = vpop.xlane.xlu0 %17199 }
 0x88d   : > { %v33806_v57 = vpop.xlane.xlu1 %17112 }
 0x88e   : > { %v17110_v22 = vpop.xlane.xlu0 %17109 }
 0x88f   : > { %v17306_v17 = vcombine.low %v33788_v52, %v17110_v22 }
 0x891   : > { %v33813_v12 = vpop.xlane.xlu1 %17214  ;;  %v17314_v8 = vrot.slane %v17306_v17, %v37456_v0 }
 0x892   : > { %v33817_v14 = vpop.xlane.xlu0 %17211 }
 0x893   : > { %37457 = vst [vmem:[#allocation40_spill] sm:$0xff] %v33817_v14  ;;  %v17354_v9 = vcombine.low %v17298_v18, %v17314_v8  ;;  %v17434_v14 = vrot.slane %v17426_v50, %v37456_v0  ;;  %v17275_v50 = vcombine.high %v33758_v15, %v33774_v59 }
 0x895   : > { %v17362_v20 = vrot.slane %v17354_v9, %v36903_v54 }
 0x897   : > { %v17386_v3 = vcombine.low %v17330_v30, %v17362_v20  ;;  %v17387_v27 = vcombine.high %v17330_v30, %v17362_v20 }
 0x899   : > { %v33825_v46 = vmax.f32 %v17386_v3, %v17164_v24  ;;  %v17394_v3 = vcombine.low %v33742_v7, %v33746_v56  ;;  %v17355_v24 = vcombine.high %v17298_v18, %v17314_v8  ;;  %v17337_v8 = vrot.slane %v17323_v29, %v36903_v54 }
 0x89a   : > { %v33819_v37 = vpop.xlane.xlu1 %17124  ;;  %v17409_v56 = vrot.slane %v17395_v10, %v37456_v0 }
 0x89b   : > { %v17122_v31 = vpop.xlane.xlu0 %17121  ;;  %18636 = vperm.xlu1 %26454, %v33825_v46   ;;  %v17402_v53 = vrot.slane %v17394_v3, %v37456_v0  ;;  %v17369_v49 = vrot.slane %v17355_v24, %v36903_v54 }
 0x89d   : > { %v17388_v16 = vcombine.low %v17337_v8, %v17369_v49  ;;  %v17389_v30 = vcombine.high %v17337_v8, %v17369_v49 }
 0x89e   : > { %v33823_v45 = vpop.xlane.xlu1 %17226 }
 0x89f   : > { %v33827_v43 = vpop.xlane.xlu0 %17223 }
 0x8a0   : > { %37458 = vst [vmem:[#allocation112_spill] sm:$0xff] %v33827_v43 }
 0x8a2   : > { %v33830_v17 = vpop.xlane.xlu1 %17136 }
 0x8a3   : > { %v17134_v2 = vpop.xlane.xlu0 %17133 }
 0x8a4   : > { %v17410_v33 = vcombine.low %v17122_v31, %v17134_v2  ;;  %v17411_v58 = vcombine.high %v17122_v31, %v17134_v2 }
 0x8a6   : > { %v33834_v40 = vpop.xlane.xlu1 %17238  ;;  %v17418_v1 = vrot.slane %v17410_v33, %v37456_v0  ;;  %v17307_v33 = vcombine.high %v33788_v52, %v17110_v22  ;;  %v17259_v22 = vcombine.high %v33738_v39, %v33766_v25 }
 0x8a7   : > { %v33832_v23 = vpop.xlane.xlu0 %17235 }
 0x8a8   : > { %37459 = vst [vmem:[#allocation30_spill] sm:$0xff] %v33832_v23  ;;  %v17458_v23 = vcombine.low %v17402_v53, %v17418_v1  ;;  %v17321_v31 = vrot.slane %v17307_v33, %v37456_v0  ;;  %v17459_v59 = vcombine.high %v17402_v53, %v17418_v1 }
 0x8aa   : > { %v33836_v9 = vpop.xlane.xlu1 %17148  ;;  %v17466_v7 = vrot.slane %v17458_v23, %v36903_v54  ;;  %v17289_v23 = vrot.slane %v17275_v50, %v37456_v0  ;;  %v17473_v8 = vrot.slane %v17459_v59, %v36903_v54 }
 0x8ab   : > { %v17146_v63 = vpop.xlane.xlu0 %17145 }
 0x8ae   : > { %v33846_v38 = vpop.xlane.xlu1 %17250 }
 0x8af   : > { %v33838_v48 = vpop.xlane.xlu0 %17247 }
 0x8b0   : > { %37460 = vst [vmem:[#allocation89_spill] sm:$0xff] %v33838_v48  ;;  %v17427_v48 = vcombine.high %v33762_v21, %v33770_v62 }
 0x8b3   : > { %v17158_v32 = vpop.xlane.xlu0 %17157 }
 0x8b4   : > { %v17442_v60 = vcombine.low %v17146_v63, %v17158_v32  ;;  %v17443_v43 = vcombine.high %v17146_v63, %v17158_v32  ;;  %v33863_v32 = vpop.xlane.xlu1 %17160 }
 0x8b6   : > { %v17450_v18 = vrot.slane %v17442_v60, %v37456_v0  ;;  %v17291_v60 = vcombine.high %v33780_v5, %v33796_v47  ;;  %v17457_v52 = vrot.slane %v17443_v43, %v37456_v0  ;;  %v17441_v47 = vrot.slane %v17427_v48, %v37456_v0 }
 0x8b7   : > { %v17425_v5 = vrot.slane %v17411_v58, %v37456_v0  ;;  %v33876_v43 = vmax.f32 %v17388_v16, %v33784_v51  ;;  %v17273_v48 = vrot.slane %v17259_v22, %v37456_v0 }
 0x8b8   : > { %v17490_v24 = vcombine.low %v17434_v14, %v17450_v18  ;;  %v17491_v21 = vcombine.high %v17434_v14, %v17450_v18  ;;  %v17305_v15 = vrot.slane %v17291_v60, %v37456_v0  ;;  %v17506_v39 = vcombine.low %v17441_v47, %v17457_v52 }
 0x8b9   : > { %v17507_v25 = vcombine.high %v17441_v47, %v17457_v52  ;;  %v17474_v16 = vcombine.low %v17409_v56, %v17425_v5  ;;  %v17475_v10 = vcombine.high %v17409_v56, %v17425_v5  ;;  %v17173_v33 = vpop.xlane.xlu1 %17172  ;;  %v17835_v1 = vcombine.high %v33825_v46, %v33876_v43 }
 0x8ba   : > { %v17170_v3 = vpop.xlane.xlu0 %17169  ;;  %v17498_v20 = vrot.slane %v17490_v24, %v36903_v54  ;;  %v17370_v63 = vcombine.low %v17305_v15, %v17321_v31  ;;  %v17371_v58 = vcombine.high %v17305_v15, %v17321_v31  ;;  %v17505_v18 = vrot.slane %v17491_v21, %v36903_v54 }
 0x8bb   : > { %v33861_v29 = vmax.f32 %v17387_v27, %v17170_v3  ;;  %v17338_v49 = vcombine.low %v17273_v48, %v17289_v23  ;;  %v17514_v24 = vrot.slane %v17506_v39, %v36903_v54  ;;  %v17521_v50 = vrot.slane %v17507_v25, %v36903_v54 }
 0x8bc   : > { %v17522_v62 = vcombine.low %v17466_v7, %v17498_v20  ;;  %v17523_v2 = vcombine.high %v17466_v7, %v17498_v20  ;;  %v17524_v60 = vcombine.low %v17473_v8, %v17505_v18  ;;  %v17525_v52 = vcombine.high %v17473_v8, %v17505_v18 }
 0x8bd   : > { %18646 = vperm.xlu1 %26454, %v33861_v29   ;;  %v17378_v7 = vrot.slane %v17370_v63, %v36903_v54  ;;  %v17385_v20 = vrot.slane %v17371_v58, %v36903_v54  ;;  %v33900_v22 = vrot.slane %v17835_v1, %v37456_v0  ;;  %v17482_v21 = vrot.slane %v17474_v16, %v36903_v54 }
 0x8be   : > { %v33881_v14 = vmax.f32 %v17522_v62, %v33776_v6  ;;  %v17339_v6 = vcombine.high %v17273_v48, %v17289_v23  ;;  %v33891_v27 = vmax.f32 %v17523_v2, %v17173_v33  ;;  %v17489_v47 = vrot.slane %v17475_v10, %v36903_v54  ;;  %v37463_v23 = vld [vmem:[#allocation89_spill] sm:$0xff] }
 0x8bf   : > { %v17346_v5 = vrot.slane %v17338_v49, %v36903_v54  ;;  %v17526_v59 = vcombine.low %v17482_v21, %v17514_v24  ;;  %v33915_v39 = vmax.f32 %v17524_v60, %v33782_v61 }
 0x8c0   : > { %18641 = vperm.xlu0 %26455, %v33881_v14   ;;  %v17353_v62 = vrot.slane %v17339_v6, %v36903_v54  ;;  %v17529_v49 = vcombine.high %v17489_v47, %v17521_v50 }
 0x8c1   : > { %v17185_v56 = vpop.xlane.xlu1 %17184  ;;  %v17390_v2 = vcombine.low %v17346_v5, %v17378_v7  ;;  %v33920_v58 = vmax.f32 %v17526_v59, %v33790_v44  ;;  %v18106_v16 = vcombine.low %v33881_v14, %v33915_v39  ;;  %v17527_v44 = vcombine.high %v17482_v21, %v17514_v24 }
 0x8c2   : > { %v17182_v51 = vpop.xlane.xlu0 %17181  ;;  %v33917_v25 = vmax.f32 %v17525_v52, %v17185_v56  ;;  %v17392_v48 = vcombine.low %v17353_v62, %v17385_v20  ;;  %v17391_v6 = vcombine.high %v17346_v5, %v17378_v7  ;;  %v17393_v60 = vcombine.high %v17353_v62, %v17385_v20 }
 0x8c3   : > { %v33887_v53 = vmax.f32 %v17389_v30, %v17182_v51  ;;  %v17528_v30 = vcombine.low %v17489_v47, %v17521_v50  ;;  %v33932_v33 = vmax.f32 %v17390_v2, %v33792_v42  ;;  %v18114_v24 = vrot.slane %v18106_v16, %v37456_v0 }
 0x8c4   : > { %18651 = vperm.xlu0 %26455, %v33891_v27   ;;  %v18122_v51 = vcombine.low %v33891_v27, %v33917_v25  ;;  %v33935_v1 = vmax.f32 %v17392_v48, %v33802_v13 }
 0x8c5   : > { %v17851_v3 = vcombine.high %v33861_v29, %v33887_v53  ;;  %v33923_v18 = vmax.f32 %v17528_v30, %v33798_v34  ;;  %v17850_v61 = vcombine.low %v33861_v29, %v33887_v53  ;;  %v17834_v34 = vcombine.low %v33825_v46, %v33876_v43 }
 0x8c6   : > { %v33942_v52 = vrot.slane %v18122_v51, %v37456_v0  ;;  %v17866_v7 = vcombine.low %v33932_v33, %v33935_v1  ;;  %v17714_v30 = vcombine.low %v33836_v9, %v33863_v32  ;;  %v17666_v51 = vcombine.low %v33728_v35, %v33744_v4 }
 0x8c7   : > { %v33903_v31 = vrot.slane %v17851_v3, %v37456_v0  ;;  %v18138_v3 = vcombine.low %v33920_v58, %v33923_v18  ;;  %v33950_v50 = vrot.slane %v17850_v61, %v37456_v0  ;;  %v33961_v21 = vrot.slane %v17834_v34, %v37456_v0 }
 0x8c8   : > { %v18170_v59 = vcombine.low %v18114_v24, %v33942_v52  ;;  %v33973_v48 = vrot.slane %v17866_v7, %v37456_v0  ;;  %v17682_v61 = vcombine.low %v33819_v37, %v33830_v17  ;;  %v17667_v34 = vcombine.high %v33728_v35, %v33744_v4 }
 0x8c9   : > { %v17197_v63 = vpop.xlane.xlu1 %17196  ;;  %v18146_v5 = vrot.slane %v18138_v3, %v37456_v0  ;;  %v17898_v2 = vcombine.low %v33961_v21, %v33950_v50  ;;  %v17674_v35 = vrot.slane %v17666_v51, %v37456_v0 }
 0x8ca   : > { %v17194_v10 = vpop.xlane.xlu0 %17193  ;;  %v33944_v29 = vmax.f32 %v17527_v44, %v17197_v63  ;;  %v17715_v44 = vcombine.high %v33836_v9, %v33863_v32 }
 0x8cb   : > { %v33952_v46 = vmax.f32 %v17391_v6, %v17194_v10  ;;  %v17698_v10 = vcombine.low %v33760_v55, %v33768_v19  ;;  %v17699_v6 = vcombine.high %v33760_v55, %v33768_v19  ;;  %v33998_v9 = vrot.slane %v17898_v2, %v36903_v54 }
 0x8cd   : > { %v17706_v7 = vrot.slane %v17698_v10, %v37456_v0  ;;  %v17681_v10 = vrot.slane %v17667_v34, %v37456_v0 }
 0x8d1   : > { %v17209_v8 = vpop.xlane.xlu1 %17208 }
 0x8d2   : > { %v33946_v42 = vmax.f32 %v17529_v49, %v17209_v8  ;;  %v17206_v13 = vpop.xlane.xlu0 %17205  ;;  %v18178_v8 = vrot.slane %v18170_v59, %v36903_v54  ;;  %v18107_v59 = vcombine.high %v33881_v14, %v33915_v39 }
 0x8d3   : > { %v33956_v56 = vmax.f32 %v17393_v60, %v17206_v13  ;;  %v17683_v60 = vcombine.high %v33819_v37, %v33830_v17  ;;  %v17722_v13 = vrot.slane %v17714_v30, %v37456_v0  ;;  %v17729_v37 = vrot.slane %v17715_v44, %v37456_v0 }
 0x8d4   : > { %v18154_v20 = vcombine.low %v33944_v29, %v33946_v42  ;;  %v18155_v19 = vcombine.high %v33944_v29, %v33946_v42  ;;  %v18139_v30 = vcombine.high %v33920_v58, %v33923_v18 }
 0x8d5   : > { %v17882_v47 = vcombine.low %v33952_v46, %v33956_v56  ;;  %v17697_v2 = vrot.slane %v17683_v60, %v37456_v0  ;;  %v17762_v51 = vcombine.low %v17706_v7, %v17722_v13  ;;  %v18121_v60 = vrot.slane %v18107_v59, %v37456_v0 }
 0x8d6   : > { %v18162_v62 = vrot.slane %v18154_v20, %v37456_v0  ;;  %v17690_v20 = vrot.slane %v17682_v61, %v37456_v0 }
 0x8d7   : > { %v33976_v63 = vrot.slane %v17882_v47, %v37456_v0  ;;  %v18123_v47 = vcombine.high %v33891_v27, %v33917_v25  ;;  %v18169_v27 = vrot.slane %v18155_v19, %v37456_v0  ;;  %v17746_v34 = vcombine.low %v17681_v10, %v17697_v2 }
 0x8d8   : > { %v18202_v16 = vcombine.low %v18146_v5, %v18162_v62  ;;  %v18203_v55 = vcombine.high %v18146_v5, %v18162_v62  ;;  %v18171_v5 = vcombine.high %v18114_v24, %v33942_v52  ;;  %v17713_v62 = vrot.slane %v17699_v6, %v37456_v0 }
 0x8d9   : > { %v17930_v49 = vcombine.low %v33973_v48, %v33976_v63  ;;  %v17730_v44 = vcombine.low %v17674_v35, %v17690_v20  ;;  %v34024_v52 = vrot.slane %v18123_v47, %v37456_v0  ;;  %v18153_v24 = vrot.slane %v18139_v30, %v37456_v0 }
 0x8da   : > { %v18210_v3 = vrot.slane %v18202_v16, %v36903_v54  ;;  %v17763_v16 = vcombine.high %v17706_v7, %v17722_v13  ;;  %v18217_v14 = vrot.slane %v18203_v55, %v36903_v54  ;;  %v17778_v15 = vcombine.low %v17713_v62, %v17729_v37 }
 0x8db   : > { %v34001_v32 = vrot.slane %v17930_v49, %v36903_v54  ;;  %v17731_v49 = vcombine.high %v17674_v35, %v17690_v20  ;;  %v18185_v6 = vrot.slane %v18171_v5, %v36903_v54  ;;  %v17747_v13 = vcombine.high %v17681_v10, %v17697_v2 }
 0x8dc   : > { %v18234_v4 = vcombine.low %v18178_v8, %v18210_v3  ;;  %v18235_v61 = vcombine.high %v18178_v8, %v18210_v3  ;;  %v17770_v8 = vrot.slane %v17762_v51, %v36903_v54  ;;  %v17221_v3 = vpop.xlane.xlu1 %17220  ;;  %v17777_v19 = vrot.slane %v17763_v16, %v36903_v54 }
 0x8dd   : > { %v17962_v17 = vcombine.low %v33998_v9, %v34001_v32  ;;  %v18218_v35 = vcombine.low %v18153_v24, %v18169_v27  ;;  %v18236_v55 = vcombine.low %v18185_v6, %v18217_v14  ;;  %v17738_v7 = vrot.slane %v17730_v44, %v36903_v54 }
 0x8de   : > { %18460 = vperm.xlu1 %26454, %v18234_v4   ;;  %v17779_v4 = vcombine.high %v17713_v62, %v17729_v37  ;;  %v17745_v20 = vrot.slane %v17731_v49, %v36903_v54  ;;  %v17786_v37 = vrot.slane %v17778_v15, %v36903_v54  ;;  %v18186_v47 = vcombine.low %v18121_v60, %v34024_v52 }
 0x8df   : > { %18380 = vperm.xlu0 %26455, %v17962_v17   ;;  %v17794_v59 = vcombine.low %v17738_v7, %v17770_v8  ;;  %v17754_v62 = vrot.slane %v17746_v34, %v36903_v54  ;;  %v17761_v2 = vrot.slane %v17747_v13, %v36903_v54  ;;  %v18237_v16 = vcombine.high %v18185_v6, %v18217_v14 }
 0x8e0   : > { %v17793_v17 = vrot.slane %v17779_v4, %v36903_v54  ;;  %v17796_v30 = vcombine.low %v17745_v20, %v17777_v19  ;;  %v17797_v51 = vcombine.high %v17745_v20, %v17777_v19  ;;  %v18226_v10 = vrot.slane %v18218_v35, %v36903_v54 }
 0x8e1   : > { %v17233_v5 = vpop.xlane.xlu1 %17232  ;;  %v17795_v49 = vcombine.high %v17738_v7, %v17770_v8  ;;  %v18194_v4 = vrot.slane %v18186_v47, %v36903_v54  ;;  %v17546_v34 = vcombine.low %v33754_v28, %v33772_v11  ;;  %v34047_v13 = vmax.f32 %v17794_v59, %v33813_v12 }
 0x8e2   : > { %18470 = vperm.xlu1 %26454, %v18235_v61   ;;  %v17798_v61 = vcombine.low %v17754_v62, %v17786_v37  ;;  %v17800_v44 = vcombine.low %v17761_v2, %v17793_v17  ;;  %v34039_v15 = vmax.f32 %v17797_v51, %v17233_v5  ;;  %v34050_v14 = vmax.f32 %v17796_v30, %v33823_v45  ;;  %v37461_v30 = vld [vmem:[#allocation114_spill] sm:$0xff] }
 0x8e3   : > { %v18219_v6 = vcombine.high %v18153_v24, %v18169_v27  ;;  %v34052_v19 = vmax.f32 %v17795_v49, %v17221_v3  ;;  %v18238_v8 = vcombine.low %v18194_v4, %v18226_v10  ;;  %v17547_v35 = vcombine.high %v33754_v28, %v33772_v11 }
 0x8e4   : > { %v34057_v7 = vmax.f32 %v17798_v61, %v33834_v40  ;;  %v34060_v47 = vmax.f32 %v17800_v44, %v33846_v38  ;;  %v17531_v12 = vcombine.high %v33730_v41, %v33764_v36  ;;  %v18187_v27 = vcombine.high %v18121_v60, %v34024_v52  ;;  %v37462_v52 = vld [vmem:[#allocation110_spill] sm:$0xff] }
 0x8e5   : > { %v18258_v45 = vcombine.low %v34052_v19, %v34039_v15  ;;  %v17554_v11 = vrot.slane %v17546_v34, %v37456_v0  ;;  %v17578_v40 = vcombine.low %v33786_v26, %v33806_v57  ;;  %v18242_v38 = vcombine.low %v34047_v13, %v34050_v14 }
 0x8e6   : > { %18480 = vperm.xlu1 %26454, %v18236_v55   ;;  %v17530_v55 = vcombine.low %v33730_v41, %v33764_v36  ;;  %v17799_v28 = vcombine.high %v17754_v62, %v17786_v37  ;;  %v17801_v3 = vcombine.high %v17761_v2, %v17793_v17  ;;  %v18239_v59 = vcombine.high %v18194_v4, %v18226_v10 }
 0x8e7   : > { %v18233_v36 = vrot.slane %v18219_v6, %v36903_v54  ;;  %v34075_v41 = vrot.slane %v17547_v35, %v37456_v0  ;;  %v17562_v60 = vcombine.low %v37462_v52, %v37461_v30  ;;  %v17579_v5 = vcombine.high %v33786_v26, %v33806_v57 }
 0x8e8   : > { %v17538_v24 = vrot.slane %v17530_v55, %v37456_v0  ;;  %v18274_v51 = vcombine.low %v34057_v7, %v34060_v47  ;;  %v34084_v61 = vrot.slane %v18258_v45, %v37456_v0  ;;  %v18201_v62 = vrot.slane %v18187_v27, %v36903_v54 }
 0x8e9   : > { %v17245_v20 = vpop.xlane.xlu1 %17244  ;;  %v17545_v2 = vrot.slane %v17531_v12, %v37456_v0  ;;  %v17563_v10 = vcombine.high %v37462_v52, %v37461_v30  ;;  %v17586_v57 = vrot.slane %v17578_v40, %v37456_v0  ;;  %v34096_v44 = vrot.slane %v18242_v38, %v37456_v0 }
 0x8ea   : > { %18490 = vperm.xlu1 %26454, %v18237_v16   ;;  %v34086_v37 = vmax.f32 %v17799_v28, %v17245_v20  ;;  %v17594_v26 = vcombine.low %v17538_v24, %v17554_v11  ;;  %v18240_v4 = vcombine.low %v18201_v62, %v18233_v36  ;;  %v17595_v55 = vcombine.high %v17538_v24, %v17554_v11 }
 0x8eb   : > { %v17570_v34 = vrot.slane %v17562_v60, %v37456_v0  ;;  %v17593_v6 = vrot.slane %v17579_v5, %v37456_v0  ;;  %v17610_v35 = vcombine.low %v17545_v2, %v34075_v41  ;;  %v18306_v20 = vcombine.low %v34096_v44, %v34084_v61 }
 0x8ec   : > { %v18282_v12 = vrot.slane %v18274_v51, %v37456_v0  ;;  %v17577_v27 = vrot.slane %v17563_v10, %v37456_v0  ;;  %v17883_v24 = vcombine.high %v33952_v46, %v33956_v56  ;;  %v17931_v11 = vcombine.high %v33973_v48, %v33976_v63 }
 0x8ed   : > { %v17626_v40 = vcombine.low %v17570_v34, %v17586_v57  ;;  %v17611_v38 = vcombine.high %v17545_v2, %v34075_v41  ;;  %v34116_v28 = vrot.slane %v17594_v26, %v36903_v54  ;;  %v17627_v30 = vcombine.high %v17570_v34, %v17586_v57 }
 0x8ee   : > { %18500 = vperm.xlu1 %26454, %v18238_v8   ;;  %v34102_v8 = vpop.xlane.xlu0 %17217  ;;  %v17643_v52 = vcombine.high %v17577_v27, %v17593_v6  ;;  %v17899_v60 = vcombine.high %v33961_v21, %v33950_v50  ;;  %v17867_v5 = vcombine.high %v33932_v33, %v33935_v1  ;;  %v17618_v48 = vrot.slane %v17610_v35, %v36903_v54 }
 0x8ef   : > { %v18314_v63 = vrot.slane %v18306_v20, %v36903_v54  ;;  %v17642_v2 = vcombine.low %v17577_v27, %v17593_v6  ;;  %v17945_v50 = vrot.slane %v17931_v11, %v36903_v54  ;;  %v17963_v57 = vcombine.high %v33998_v9, %v34001_v32 }
 0x8f0   : > { %v17913_v6 = vrot.slane %v17899_v60, %v36903_v54  ;;  %v18259_v35 = vcombine.high %v34052_v19, %v34039_v15  ;;  %v18307_v20 = vcombine.high %v34096_v44, %v34084_v61  ;;  %v17625_v32 = vrot.slane %v17611_v38, %v36903_v54 }
 0x8f1   : > { %v17257_v16 = vpop.xlane.xlu1 %17256  ;;  %v17650_v9 = vrot.slane %v17642_v2, %v36903_v54  ;;  %v18243_v27 = vcombine.high %v34047_v13, %v34050_v14 }
 0x8f2   : > { %v34088_v17 = vmax.f32 %v17801_v3, %v17257_v16  ;;  %18510 = vperm.xlu1 %26454, %v18239_v59   ;;  %v18241_v59 = vcombine.high %v18201_v62, %v18233_v36  ;;  %v17230_v51 = vpop.xlane.xlu0 %17229  ;;  %v17609_v16 = vrot.slane %v17595_v55, %v36903_v54  ;;  %v17634_v36 = vrot.slane %v17626_v40, %v36903_v54 }
 0x8f3   : > { %v34128_v62 = vrot.slane %v17883_v24, %v37456_v0  ;;  %v17881_v55 = vrot.slane %v17867_v5, %v37456_v0  ;;  %v17964_v24 = vcombine.low %v17913_v6, %v17945_v50  ;;  %v18273_v60 = vrot.slane %v18259_v35, %v37456_v0 }
 0x8f4   : > { %v18290_v49 = vcombine.low %v34086_v37, %v34088_v17  ;;  %v18291_v21 = vcombine.high %v34086_v37, %v34088_v17  ;;  %v17658_v44 = vcombine.low %v34116_v28, %v17634_v36  ;;  %v18321_v5 = vrot.slane %v18307_v20, %v36903_v54 }
 0x8f5   : > { %v18257_v2 = vrot.slane %v18243_v27, %v37456_v0  ;;  %v37464_v20 = vcombine.low %v33900_v22, %v33903_v31 }
 0x8f6   : > { %v18298_v45 = vrot.slane %v18290_v49, %v37456_v0  ;;  %18520 = vperm.xlu1 %26454, %v18240_v4   ;;  %v17641_v49 = vrot.slane %v17627_v30, %v36903_v54  ;;  %v17657_v4 = vrot.slane %v17643_v52, %v36903_v54  ;;  %v17242_v34 = vpop.xlane.xlu0 %17241  ;;  %v18305_v40 = vrot.slane %v18291_v21, %v37456_v0 }
 0x8f7   : > { %v17922_v27 = vrot.slane %v37464_v20, %v36903_v54 }
 0x8f8   : > { %v18338_v3 = vcombine.low %v18282_v12, %v18298_v45  ;;  %v18339_v10 = vcombine.high %v18282_v12, %v18298_v45  ;;  %v18275_v12 = vcombine.high %v34057_v7, %v34060_v47  ;;  %v17946_v45 = vcombine.low %v17881_v55, %v34128_v62 }
 0x8f9   : > { %v17665_v30 = vcombine.high %v17625_v32, %v17657_v4  ;;  %v17661_v21 = vcombine.high %v17609_v16, %v17641_v49 }
 0x8fa   : > { %18530 = vperm.xlu1 %26454, %v18241_v59   ;;  %v18346_v41 = vrot.slane %v18338_v3, %v36903_v54  ;;  %v18353_v61 = vrot.slane %v18339_v10, %v36903_v54  ;;  %v17660_v3 = vcombine.low %v17609_v16, %v17641_v49  ;;  %v17664_v59 = vcombine.low %v17625_v32, %v17657_v4  ;;  %v17254_v52 = vpop.xlane.xlu0 %17253 }
 0x8fb   : > { %v18289_v38 = vrot.slane %v18275_v12, %v37456_v0  ;;  %v17954_v4 = vrot.slane %v17946_v45, %v36903_v54  ;;  %v17662_v32 = vcombine.low %v17618_v48, %v17650_v9  ;;  %v17659_v12 = vcombine.high %v34116_v28, %v17634_v36 }
 0x8fc   : > { %v18370_v26 = vcombine.low %v18314_v63, %v18346_v41  ;;  %v18371_v11 = vcombine.high %v18314_v63, %v18346_v41  ;;  %v17663_v63 = vcombine.high %v17618_v48, %v17650_v9  ;;  %v17965_v41 = vcombine.high %v17913_v6, %v17945_v50  ;;  %v37465_v6 = vld [vmem:[#allocation112_spill] sm:$0xff]  ;;  %v37466_v48 = vld [vmem:[#allocation30_spill] sm:$0xff] }
 0x8fd   : > { %v18354_v10 = vcombine.low %v18289_v38, %v18305_v40  ;;  %v34161_v35 = vmax.f32 %v17664_v59, %v37463_v23  ;;  %v18322_v16 = vcombine.low %v18257_v2, %v18273_v60  ;;  %v34168_v49 = vmax.f32 %v17661_v21, %v17230_v51 }
 0x8fe   : > { %18390 = vperm.xlu1 %26454, %v17963_v57   ;;  %18465 = vperm.xlu0 %26455, %v18370_v26   ;;  %v34157_v57 = vmax.f32 %v17665_v30, %v17254_v52  ;;  %v18372_v26 = vcombine.low %v18321_v5, %v18353_v61  ;;  %v34170_v50 = vmax.f32 %v17663_v63, %v17242_v34 }
 0x8ff   : > { %v34173_v45 = vmax.f32 %v17660_v3, %v37465_v6  ;;  %v34176_v23 = vmax.f32 %v17662_v32, %v37466_v48  ;;  %v17947_v28 = vcombine.high %v17881_v55, %v34128_v62  ;;  %v34180_v36 = vmax.f32 %v17659_v12, %v34102_v8 }
 0x900   : > { %v18018_v9 = vcombine.low %v34170_v50, %v34157_v57  ;;  %v17966_v51 = vcombine.low %v17922_v27, %v17954_v4  ;;  %v18362_v34 = vrot.slane %v18354_v10, %v36903_v54  ;;  %v18330_v8 = vrot.slane %v18322_v16, %v36903_v54 }
 0x901   : > { %v18002_v3 = vcombine.low %v34176_v23, %v34161_v35  ;;  %v17986_v30 = vcombine.low %v34180_v36, %v34168_v49  ;;  %v17961_v55 = vrot.slane %v17947_v28, %v36903_v54  ;;  %v18323_v63 = vcombine.high %v18257_v2, %v18273_v60 }
 0x902   : > { %18400 = vperm.xlu1 %26454, %v17964_v24   ;;  %18475 = vperm.xlu0 %26455, %v18371_v11   ;;  %v18373_v24 = vcombine.high %v18321_v5, %v18353_v61  ;;  %v37467_v11 = vld [vmem:[#allocation40_spill] sm:$0xff]  ;;  %v18355_v61 = vcombine.high %v18289_v38, %v18305_v40  ;;  %v18026_v52 = vrot.slane %v18018_v9, %v37456_v0 }
 0x903   : > { %v34186_v59 = vmax.f32 %v17658_v44, %v37467_v11  ;;  %v17967_v44 = vcombine.high %v17922_v27, %v17954_v4  ;;  %v18374_v5 = vcombine.low %v18330_v8, %v18362_v34  ;;  %v18010_v21 = vrot.slane %v18002_v3, %v37456_v0 }
 0x904   : > { %v37468_v10 = vcombine.high %v33900_v22, %v33903_v31  ;;  %v18375_v38 = vcombine.high %v18330_v8, %v18362_v34  ;;  %v18369_v4 = vrot.slane %v18355_v61, %v36903_v54  ;;  %v18337_v60 = vrot.slane %v18323_v63, %v36903_v54 }
 0x905   : > { %v17970_v62 = vcombine.low %v34186_v59, %v34173_v45  ;;  %v18066_v12 = vcombine.low %v18010_v21, %v18026_v52  ;;  %v18019_v48 = vcombine.high %v34170_v50, %v34157_v57  ;;  %v18067_v28 = vcombine.high %v18010_v21, %v18026_v52 }
 0x906   : > { %18410 = vperm.xlu1 %26454, %v17965_v41   ;;  %18485 = vperm.xlu0 %26455, %v18372_v26   ;;  %v17994_v41 = vrot.slane %v17986_v30, %v37456_v0  ;;  %v17929_v26 = vrot.slane %v37468_v10, %v36903_v54  ;;  %v18376_v27 = vcombine.low %v18337_v60, %v18369_v4 }
 0x907   : > { %v17978_v32 = vrot.slane %v17970_v62, %v37456_v0  ;;  %v18074_v16 = vrot.slane %v18066_v12, %v36903_v54  ;;  %v18377_v31 = vcombine.high %v18337_v60, %v18369_v4  ;;  %v18003_v9 = vcombine.high %v34176_v23, %v34161_v35 }
 0x908   : > { %v17968_v40 = vcombine.low %v17929_v26, %v17961_v55  ;;  %v17969_v2 = vcombine.high %v17929_v26, %v17961_v55  ;;  %v37470_v26 = vld [vmem:[#allocation11_spill] sm:$0xff] }
 0x909   : > { %v18034_v20 = vcombine.low %v17978_v32, %v17994_v41  ;;  %v18017_v34 = vrot.slane %v18003_v9, %v37456_v0 }
 0x90a   : > { %18420 = vperm.xlu1 %26454, %v17966_v51   ;;  %18495 = vperm.xlu0 %26455, %v18373_v24   ;;  %v17987_v51 = vcombine.high %v34180_v36, %v34168_v49  ;;  %v18035_v24 = vcombine.high %v17978_v32, %v17994_v41 }
 0x90b   : > { %v18042_v22 = vrot.slane %v18034_v20, %v36903_v54 }
 0x90c   : > { %v18001_v11 = vrot.slane %v17987_v51, %v37456_v0  ;;  %v18049_v3 = vrot.slane %v18035_v24, %v36903_v54  ;;  %v37472_v24 = vld [vmem:[#allocation45_spill] sm:$0xff] }
 0x90d   : > { %v18098_v6 = vcombine.low %v18042_v22, %v18074_v16 }
 0x90e   : > { %18430 = vperm.xlu1 %26454, %v17967_v44   ;;  %18505 = vperm.xlu0 %26455, %v18374_v5  }
 0x912   : > { %18440 = vperm.xlu1 %26454, %v17968_v40   ;;  %18515 = vperm.xlu0 %26455, %v18375_v38  }
 0x916   : > { %18450 = vperm.xlu1 %26454, %v17969_v2   ;;  %18525 = vperm.xlu0 %26455, %v18376_v27  }
 0x91a   : > { %18535 = vperm.xlu0 %26455, %v18377_v31   ;;  %18385 = vperm.xlu1 %26454, %v18098_v6  }
 0x91e   : > { %18661 = vperm.xlu0 %26455, %v33915_v39   ;;  %18656 = vperm.xlu1 %26454, %v33876_v43   ;;  %v17971_v43 = vcombine.high %v34186_v59, %v34173_v45  ;;  %v18099_v39 = vcombine.high %v18042_v22, %v18074_v16 }
 0x922   : > { %18671 = vperm.xlu0 %26455, %v33917_v25   ;;  %18666 = vperm.xlu1 %26454, %v33887_v53   ;;  %v18033_v53 = vrot.slane %v18019_v48, %v37456_v0  ;;  %v18081_v25 = vrot.slane %v18067_v28, %v36903_v54  ;;  %v37471_v48 = vld [vmem:[#allocation148_spill] sm:$0xff] }
 0x924   : > { %v18100_v30 = vcombine.low %v18049_v3, %v18081_v25  ;;  %v18101_v62 = vcombine.high %v18049_v3, %v18081_v25  ;;  %v18083_v52 = vcombine.high %v18017_v34, %v18033_v53 }
 0x926   : > { %18681 = vperm.xlu0 %26455, %v33920_v58   ;;  %18676 = vperm.xlu1 %26454, %v33932_v33   ;;  %v17985_v58 = vrot.slane %v17971_v43, %v37456_v0  ;;  %v18082_v33 = vcombine.low %v18017_v34, %v18033_v53  ;;  %v18097_v21 = vrot.slane %v18083_v52, %v36903_v54  ;;  %v37542_v0 = vld [vmem:[#allocation132_spill] sm:$0xff] }
 0x928   : > { %v18050_v8 = vcombine.low %v17985_v58, %v18001_v11  ;;  %v18090_v55 = vrot.slane %v18082_v33, %v36903_v54  ;;  %v18051_v44 = vcombine.high %v17985_v58, %v18001_v11 }
 0x92a   : > { %18395 = vperm.xlu0 %26455, %v18099_v39   ;;  %18686 = vperm.xlu1 %26454, %v33952_v46   ;;  %v18058_v61 = vrot.slane %v18050_v8, %v36903_v54  ;;  %v37473_v8 = vld [vmem:[#allocation119_spill] sm:$0xff] }
 0x92c   : > { %v18102_v46 = vcombine.low %v18058_v61, %v18090_v55  ;;  %v18103_v5 = vcombine.high %v18058_v61, %v18090_v55 }
 0x92e   : > { %18405 = vperm.xlu0 %26455, %v18100_v30   ;;  %18696 = vperm.xlu1 %26454, %v33935_v1   ;;  %v18065_v1 = vrot.slane %v18051_v44, %v36903_v54  ;;  %v37475_v44 = vld [vmem:[#allocation113_spill] sm:$0xff] }
 0x92f   : > { %v37541_v54 = vld [vmem:[#allocation133_spill] sm:$0xff] }
 0x930   : > { %v18104_v63 = vcombine.low %v18065_v1, %v18097_v21 }
 0x932   : > { %18415 = vperm.xlu0 %26455, %v18101_v62   ;;  %18706 = vperm.xlu1 %26454, %v33956_v56   ;;  %v18105_v56 = vcombine.high %v18065_v1, %v18097_v21  ;;  %v37476_v21 = vld [vmem:[#allocation14_spill] sm:$0xff] }
 0x936   : > { %18425 = vperm.xlu0 %26455, %v18102_v46   ;;  %18716 = vperm.xlu1 %26454, %v34186_v59   ;;  %v37474_v46 = vld [vmem:[#allocation52_spill] sm:$0xff] }
 0x93a   : > { %18435 = vperm.xlu0 %26455, %v18103_v5   ;;  %18726 = vperm.xlu1 %26454, %v34180_v36   ;;  %v34249_v36 = vpop.permute.xlu1 %18636 }
 0x93e   : > { %18445 = vperm.xlu0 %26455, %v18104_v63   ;;  %18736 = vperm.xlu1 %26454, %v34173_v45   ;;  %v37477_v63 = vld [vmem:[#allocation149_spill] sm:$0xff] }
 0x93f   : > { %v34247_v45 = vpop.permute.xlu0 %18641 }
 0x942   : > { %18455 = vperm.xlu0 %26455, %v18105_v56   ;;  %18746 = vperm.xlu1 %26454, %v34168_v49  }
 0x943   : > { %v34254_v49 = vpop.permute.xlu0 %18651 }
 0x946   : > { %18691 = vperm.xlu0 %26455, %v33944_v29   ;;  %18756 = vperm.xlu1 %26454, %v34176_v23   ;;  %v34252_v29 = vpop.permute.xlu1 %18646 }
 0x94a   : > { %18701 = vperm.xlu0 %26455, %v33923_v18   ;;  %18766 = vperm.xlu1 %26454, %v34170_v50  }
 0x94e   : > { %18711 = vperm.xlu0 %26455, %v33946_v42   ;;  %18776 = vperm.xlu1 %26454, %v34161_v35  }
 0x952   : > { %18721 = vperm.xlu0 %26455, %v34047_v13   ;;  %18781 = vperm.xlu1 %26454, %v34060_v47   ;;  %v37469_v13 = vld [vmem:[#allocation138_spill] sm:$0xff] }
 0x956   : > { %18731 = vperm.xlu0 %26455, %v34052_v19  }
 0x95a   : > { %18741 = vperm.xlu0 %26455, %v34050_v14  }
 0x95d   : > { %v34257_v18 = vpop.permute.xlu1 %18460 }
 0x95e   : > { %18751 = vperm.xlu0 %26455, %v34039_v15   ;;  %v18381_v42 = vpop.permute.xlu0 %18380 }
 0x95f   : > { %v18538_v35 = vsub.f32 %v37469_v13, %v18381_v42 }
 0x961   : > { %v18570_v47 = vmul.f32 1.442695, %v18538_v35  ;;  %v34261_v50 = vpop.permute.xlu1 %18470 }
 0x962   : > { %18761 = vperm.xlu0 %26455, %v34057_v7  }
 0x963   : > { %26648 = vpow2.f32 %v18570_v47  ;;  %v37478_v47 = vld [vmem:[#allocation115_spill] sm:$0xff] }
 0x965   : > { %v34264_v19 = vpop.permute.xlu1 %18480 }
 0x966   : > { %18771 = vperm.xlu0 %26455, %v34086_v37  }
 0x969   : > { %v34267_v23 = vpop.permute.xlu1 %18490 }
 0x96a   : > { %18786 = vperm.xlu0 %26455, %v34157_v57  }
 0x96d   : > { %v34270_v14 = vpop.eup %26648  ;;  %v34272_v15 = vpop.permute.xlu1 %18500 }
 0x96e   : > { %18791 = vperm.xlu0 %26455, %v34088_v17   ;;  %25548 = vmatprep.mubr.msk.f32.mxu0 %vm530_vm0, %v34270_v14 }
 0x971   : > { %v34277_v59 = vpop.permute.xlu1 %18510 }
 0x975   : > { %v34279_v7 = vpop.permute.xlu1 %18520 }
 0x979   : > { %v34281_v41 = vpop.permute.xlu1 %18530 }
 0x97d   : > { %v18391_v37 = vpop.permute.xlu1 %18390  ;;  %v34283_v10 = vpop.permute.xlu0 %18465 }
 0x97e   : > { %v18540_v57 = vsub.f32 %v37470_v26, %v18391_v37  ;;  %v37479_v26 = vld [vmem:[#allocation71_spill] sm:$0xff] }
 0x980   : > { %v18574_v32 = vmul.f32 1.442695, %v18540_v57 }
 0x981   : > { %v18401_v12 = vpop.permute.xlu1 %18400  ;;  %v34286_v40 = vpop.permute.xlu0 %18475 }
 0x982   : > { %26650 = vpow2.f32 %v18574_v32  ;;  %v18542_v28 = vsub.f32 %v37471_v48, %v18401_v12 }
 0x984   : > { %v18578_v53 = vmul.f32 1.442695, %v18542_v28 }
 0x985   : > { %v18411_v17 = vpop.permute.xlu1 %18410  ;;  %v34288_v38 = vpop.permute.xlu0 %18485 }
 0x986   : > { %v18544_v62 = vsub.f32 %v37473_v8, %v18411_v17  ;;  %v37480_v17 = vld [vmem:[#allocation136_spill] sm:$0xff] }
 0x987   : > { %v18794_v48 = vsub.f32 %v37480_v17, %v34249_v36  ;;  %v37488_v17 = vld [vmem:[#allocation144_spill] sm:$0xff] }
 0x988   : > { %v18582_v1 = vmul.f32 1.442695, %v18544_v62 }
 0x989   : > { %v18421_v4 = vpop.permute.xlu1 %18420  ;;  %v34290_v20 = vpop.permute.xlu0 %18495  ;;  %v18826_v8 = vmul.f32 1.442695, %v18794_v48  ;;  %v18554_v48 = vsub.f32 %v37488_v17, %v34257_v18  ;;  %v37492_v18 = vld [vmem:[#allocation78_spill] sm:$0xff] }
 0x98a   : > { %v18546_v56 = vsub.f32 %v37477_v63, %v18421_v4  ;;  %v37481_v4 = vld [vmem:[#allocation91_spill] sm:$0xff] }
 0x98c   : > { %v34292_v60 = vpop.eup %26650  ;;  %v18586_v32 = vmul.f32 1.442695, %v18546_v56 }
 0x98d   : > { %25555 = vmatprep.mubr.msk.f32.mxu1 %vm530_vm0, %v34292_v60  ;;  %v18431_v2 = vpop.permute.xlu1 %18430  ;;  %v34296_v27 = vpop.permute.xlu0 %18505 }
 0x98e   : > { %v18548_v37 = vsub.f32 %v37478_v47, %v18431_v2 }
 0x991   : > { %v18441_v16 = vpop.permute.xlu1 %18440  ;;  %v34298_v22 = vpop.permute.xlu0 %18515 }
 0x995   : > { %v34300_v31 = vpop.permute.xlu1 %18450  ;;  %v34302_v6 = vpop.permute.xlu0 %18525 }
 0x999   : > { %v18386_v9 = vpop.permute.xlu1 %18385  ;;  %v34305_v51 = vpop.permute.xlu0 %18535 }
 0x99a   : > { %v18539_v43 = vsub.f32 %v37472_v24, %v18386_v9  ;;  %v18590_v24 = vmul.f32 1.442695, %v18548_v37 }
 0x99c   : > { %v18572_v39 = vmul.f32 1.442695, %v18539_v43 }
 0x99d   : > { %v34308_v25 = vpop.permute.xlu1 %18656  ;;  %v34310_v34 = vpop.permute.xlu0 %18661 }
 0x99e   : > { %26652 = vpow2.f32 %v18572_v39 }
 0x99f   : > { %26654 = vpow2.f32 %v18578_v53  ;;  %v37482_v53 = vld [vmem:[#allocation141_spill] sm:$0xff] }
 0x9a0   : > { %v18550_v39 = vsub.f32 %v37482_v53, %v18441_v16 }
 0x9a1   : > { %v34312_v11 = vpop.permute.xlu1 %18666  ;;  %v34314_v3 = vpop.permute.xlu0 %18671 }
 0x9a2   : > { %v18594_v56 = vmul.f32 1.442695, %v18550_v39 }
 0x9a5   : > { %v34316_v58 = vpop.permute.xlu1 %18676  ;;  %v34318_v33 = vpop.permute.xlu0 %18681 }
 0x9a8   : > { %v34320_v30 = vpop.eup %26652 }
 0x9a9   : > { %v34323_v55 = vpop.eup %26654  ;;  %v34325_v61 = vpop.permute.xlu1 %18686  ;;  %25549 = vmatmul.mubr.msk.f32.vlgmr.msra.gmra.mrb[208].mxu0 %vm530_vm0, %v34320_v30 }
 0x9aa   : > { %v18396_v52 = vpop.permute.xlu0 %18395  ;;  %26315 = vmatpush3.bf16.msra.mxu0 %v37474_v46  ;;  %25562 = vmatprep.mubr.msk.f32.mxu0 %vm530_vm0, %v34323_v55  ;;  %v37483_v46 = vld [vmem:[#allocation85_spill] sm:$0xff] }
 0x9ab   : > { %v18541_v5 = vsub.f32 %v37475_v44, %v18396_v52  ;;  %26321 = vmatprep.subr.bf16.mxu0 %v37476_v21  ;;  %v18552_v44 = vsub.f32 %v37483_v46, %v34300_v31 }
 0x9ad   : > { %v18576_v42 = vmul.f32 1.442695, %v18541_v5  ;;  %v34335_v13 = vpop.permute.xlu1 %18696  ;;  %v37484_v5 = vld [vmem:[#allocation74_spill] sm:$0xff] }
 0x9ae   : > { %v18406_v35 = vpop.permute.xlu0 %18405 }
 0x9af   : > { %v18543_v57 = vsub.f32 %v37479_v26, %v18406_v35  ;;  %26656 = vpow2.f32 %v18576_v42  ;;  %v37486_v42 = vld [vmem:[#allocation55_spill] sm:$0xff]  ;;  %v37487_v26 = vld [vmem:[#allocation33_spill] sm:$0xff] }
 0x9b0   : > { %26658 = vpow2.f32 %v18582_v1  ;;  %v37485_v1 = vld [vmem:[#allocation140_spill] sm:$0xff]  ;;  %v18798_v35 = vsub.f32 %v37486_v42, %v34308_v25 }
 0x9b1   : > { %v18580_v12 = vmul.f32 1.442695, %v18543_v57  ;;  %v34341_v28 = vpop.permute.xlu1 %18706  ;;  %v18795_v57 = vsub.f32 %v37487_v26, %v34247_v45  ;;  %v37489_v25 = vld [vmem:[#allocation76_spill] sm:$0xff]  ;;  %v37491_v45 = vld [vmem:[#allocation75_spill] sm:$0xff] }
 0x9b2   : > { %v18416_v9 = vpop.permute.xlu0 %18415  ;;  %v18834_v53 = vmul.f32 1.442695, %v18798_v35  ;;  %v37496_v35 = vld [vmem:[#allocation151_spill] sm:$0xff] }
 0x9b3   : > { %v18545_v43 = vsub.f32 %v37481_v4, %v18416_v9  ;;  %26660 = vpow2.f32 %v18580_v12  ;;  %v18598_v9 = vmul.f32 1.442695, %v18552_v44  ;;  %v37490_v4 = vld [vmem:[#allocation34_spill] sm:$0xff] }
 0x9b4   : > { %26662 = vpow2.f32 %v18586_v32 }
 0x9b5   : > { %v18584_v2 = vmul.f32 1.442695, %v18545_v43  ;;  %v18717_v62 = vpop.permute.xlu1 %18716  ;;  %26664 = vpow2.f32 %v18590_v24  ;;  %v18556_v43 = vsub.f32 %v37491_v45, %v34261_v50  ;;  %v37494_v50 = vld [vmem:[#allocation93_spill] sm:$0xff] }
 0x9b6   : > { %v18426_v52 = vpop.permute.xlu0 %18425  ;;  %v18810_v36 = vsub.f32 %v37484_v5, %v18717_v62  ;;  %v37493_v62 = vld [vmem:[#allocation127_spill] sm:$0xff] }
 0x9b7   : > { %v18547_v63 = vsub.f32 %v37485_v1, %v18426_v52  ;;  %26666 = vpow2.f32 %v18584_v2  ;;  %v18555_v52 = vsub.f32 %v37493_v62, %v34283_v10  ;;  %v18802_v1 = vsub.f32 %v37494_v50, %v34316_v58  ;;  %v37497_v58 = vld [vmem:[#allocation8_spill] sm:$0xff] }
 0x9b8   : > { %v18858_v47 = vmul.f32 1.442695, %v18810_v36  ;;  %26668 = vpow2.f32 %v18826_v8  ;;  %v18828_v8 = vmul.f32 1.442695, %v18795_v57  ;;  %v18602_v36 = vmul.f32 1.442695, %v18554_v48 }
 0x9b9   : > { %v18588_v37 = vmul.f32 1.442695, %v18547_v63  ;;  %v34351_v16 = vpop.eup %26656  ;;  %v34355_v32 = vpop.permute.xlu1 %18726  ;;  %v37495_v63 = vld [vmem:[#allocation142_spill] sm:$0xff]  ;;  %v18606_v42 = vmul.f32 1.442695, %v18556_v43  ;;  %v37498_v57 = vld [vmem:[#allocation116_spill] sm:$0xff] }
 0x9ba   : > { %v18436_v31 = vpop.permute.xlu0 %18435  ;;  %v34357_v12 = vpop.eup %26658  ;;  %26670 = vpow2.f32 %v18858_v47  ;;  %25556 = vmatmul.mubr.msk.f32.vlgmr.msra.gmra.mrb[176].mxu1 %vm530_vm0, %v34351_v16  ;;  %v18558_v47 = vsub.f32 %v37496_v35, %v34264_v19  ;;  %v37500_v19 = vld [vmem:[#allocation147_spill] sm:$0xff]  ;;  %v37501_v43 = vld [vmem:[#allocation105_spill] sm:$0xff] }
 0x9bb   : > { %v18549_v24 = vsub.f32 %v37489_v25, %v18436_v31  ;;  %26672 = vpow2.f32 %v18588_v37  ;;  %26319 = vmatpush3.bf16.msra.mxu1 %v37490_v4  ;;  %25569 = vmatprep.mubr.msk.f32.mxu1 %vm530_vm0, %v34357_v12  ;;  %v18560_v31 = vsub.f32 %v37498_v57, %v34267_v23  ;;  %v37499_v25 = vld [vmem:[#allocation145_spill] sm:$0xff] }
 0x9bc   : > { %26674 = vpow2.f32 %v18594_v56  ;;  %26325 = vmatprep.subr.bf16.mxu1 %v37492_v18 }
 0x9bd   : > { %v18592_v39 = vmul.f32 1.442695, %v18549_v24  ;;  %v34370_v2 = vpop.eup %26660  ;;  %v34374_v46 = vpop.permute.xlu1 %18736  ;;  %26676 = vpow2.f32 %v18598_v9  ;;  %v18842_v9 = vmul.f32 1.442695, %v18802_v1  ;;  %v18806_v24 = vsub.f32 %v37499_v25, %v34335_v13 }
 0x9be   : > { %v18446_v44 = vpop.permute.xlu0 %18445  ;;  %v34376_v5 = vpop.eup %26662  ;;  %25563 = vmatmul.mubr.msk.f32.vlgmr.msra.gmra.mrb[210].mxu0 %vm530_vm0, %v34370_v2  ;;  %v18610_v13 = vmul.f32 1.442695, %v18558_v47 }
 0x9bf   : > { %v18551_v56 = vsub.f32 %v37495_v63, %v18446_v44  ;;  %26678 = vpow2.f32 %v18592_v39  ;;  %26323 = vmatpush3.bf16.msra.mxu0 %v37476_v21  ;;  %25576 = vmatprep.mubr.msk.f32.mxu0 %vm530_vm0, %v34376_v5  ;;  %v34386_v10 = vpop.eup %26664  ;;  %v18604_v21 = vmul.f32 1.442695, %v18555_v52  ;;  %v37502_v39 = vld [vmem:[#allocation56_spill] sm:$0xff]  ;;  %v18850_v35 = vmul.f32 1.442695, %v18806_v24 }
 0x9c0   : > { %26680 = vpow2.f32 %v18834_v53  ;;  %26329 = vmatprep.subr.bf16.mxu0 %v37497_v58  ;;  %v18557_v53 = vsub.f32 %v37501_v43, %v34286_v40  ;;  %v37503_v52 = vld [vmem:[#allocation20_spill] sm:$0xff]  ;;  %v37504_v40 = vld [vmem:[#allocation135_spill] sm:$0xff] }
 0x9c1   : > { %v18596_v37 = vmul.f32 1.442695, %v18551_v56  ;;  %v34391_v26 = vpop.eup %26666  ;;  %26682 = vpow2.f32 %v18828_v8  ;;  %v34395_v17 = vpop.permute.xlu1 %18746  ;;  %v18559_v8 = vsub.f32 %v37502_v39, %v34288_v38  ;;  %v18562_v50 = vsub.f32 %v37504_v40, %v34272_v15  ;;  %v37505_v38 = vld [vmem:[#allocation108_spill] sm:$0xff]  ;;  %v37506_v15 = vld [vmem:[#allocation82_spill] sm:$0xff]  ;;  %v37512_v40 = vld [vmem:[#allocation87_spill] sm:$0xff] }
 0x9c2   : > { %v18456_v48 = vpop.permute.xlu0 %18455  ;;  %26684 = vpow2.f32 %v18602_v36  ;;  %25570 = vmatmul.mubr.msk.f32.vlgmr.msra.gmra.mrb[178].mxu1 %vm530_vm0, %v34391_v26  ;;  %v34402_v45 = vpop.eup %26668  ;;  %v18614_v36 = vmul.f32 1.442695, %v18560_v31  ;;  %v18608_v47 = vmul.f32 1.442695, %v18557_v53  ;;  %v37507_v31 = vld [vmem:[#allocation13_spill] sm:$0xff] }
 0x9c3   : > { %v18553_v4 = vsub.f32 %v37500_v19, %v18456_v48  ;;  %26686 = vpow2.f32 %v18596_v37  ;;  %26327 = vmatpush3.bf16.msra.mxu1 %v37492_v18  ;;  %25583 = vmatprep.mubr.msk.f32.mxu1 %vm530_vm0, %v34386_v10  ;;  %v18814_v37 = vsub.f32 %v37506_v15, %v34374_v46  ;;  %v37508_v48 = vld [vmem:[#allocation47_spill] sm:$0xff]  ;;  %v18618_v25 = vmul.f32 1.442695, %v18562_v50  ;;  %v37509_v46 = vld [vmem:[#allocation48_spill] sm:$0xff] }
 0x9c4   : > { %v34409_v23 = vpop.eup %26670  ;;  %26688 = vpow2.f32 %v18606_v42  ;;  %26333 = vmatprep.subr.bf16.mxu1 %v37503_v52  ;;  %v18561_v42 = vsub.f32 %v37505_v38, %v34290_v20  ;;  %v18612_v20 = vmul.f32 1.442695, %v18559_v8  ;;  %v18564_v24 = vsub.f32 %v37509_v46, %v34277_v59  ;;  %v37511_v8 = vld [vmem:[#allocation17_spill] sm:$0xff] }
 0x9c5   : > { %v18600_v62 = vmul.f32 1.442695, %v18553_v4  ;;  %v34414_v44 = vpop.eup %26672  ;;  %26690 = vpow2.f32 %v18604_v21  ;;  %v18757_v18 = vpop.permute.xlu1 %18756  ;;  %v19578_v63 = vsel %vm530_vm0, %v34409_v23, 0.0  ;;  %v18563_v21 = vsub.f32 %v37507_v31, %v34296_v27  ;;  %v37510_v27 = vld [vmem:[#allocation79_spill] sm:$0xff] }
 0x9c6   : > { %v34418_v1 = vpop.permute.xlu0 %18691  ;;  %v34422_v56 = vpop.eup %26674  ;;  %26692 = vpow2.f32 %v18842_v9  ;;  %25577 = vmatmul.mubr.msk.f32.vlgmr.msra.gmra.mrb[212].mxu0 %vm530_vm0, %v34414_v44  ;;  %19579 = vadd.xlane.f32.xlu0 %v19578_v63  ;;  %v19530_v4 = vsel %vm530_vm0, %v34402_v45, 0.0  ;;  %v18566_v53 = vsub.f32 %v37510_v27, %v34279_v7  ;;  %v18866_v59 = vmul.f32 1.442695, %v18814_v37  ;;  %v37513_v63 = vld [vmem:[#allocation39_spill] sm:$0xff] }
 0x9c7   : > { %26694 = vpow2.f32 %v18600_v62  ;;  %26331 = vmatpush3.bf16.msra.mxu0 %v37497_v58  ;;  %25590 = vmatprep.mubr.msk.f32.mxu0 %vm530_vm0, %v34422_v56  ;;  %v34433_v57 = vpop.eup %26676  ;;  %v18818_v62 = vsub.f32 %v37511_v8, %v18757_v18  ;;  %v18620_v7 = vmul.f32 1.442695, %v18563_v21  ;;  %v18565_v50 = vsub.f32 %v37512_v40, %v34298_v22  ;;  %v37515_v18 = vld [vmem:[#allocation152_spill] sm:$0xff]  ;;  %v37516_v22 = vld [vmem:[#allocation117_spill] sm:$0xff] }
 0x9c8   : > { %26696 = vpow2.f32 %v18610_v13  ;;  %26337 = vmatprep.subr.bf16.mxu0 %v37508_v48  ;;  %v18616_v13 = vmul.f32 1.442695, %v18561_v42  ;;  %v18622_v42 = vmul.f32 1.442695, %v18564_v24  ;;  %v18568_v31 = vsub.f32 %v37516_v22, %v34281_v41 }
 0x9c9   : > { %v34438_v9 = vpop.eup %26678  ;;  %26698 = vpow2.f32 %v18614_v36  ;;  %v34442_v58 = vpop.permute.xlu1 %18766  ;;  %v18624_v41 = vmul.f32 1.442695, %v18565_v50 }
 0x9ca   : > { %v34444_v19 = vpop.permute.xlu0 %18701  ;;  %v34448_v43 = vpop.eup %26680  ;;  %26700 = vpow2.f32 %v18850_v35  ;;  %25584 = vmatmul.mubr.msk.f32.vlgmr.msra.gmra.mrb[180].mxu1 %vm530_vm0, %v34438_v9  ;;  %19531 = vadd.xlane.f32.xlu0 %v19530_v4  ;;  %v18567_v35 = vsub.f32 %v37515_v18, %v34302_v6  ;;  %v18874_v6 = vmul.f32 1.442695, %v18818_v62  ;;  %v37518_v4 = vld [vmem:[#allocation92_spill] sm:$0xff] }
 0x9cb   : > { %v34454_v39 = vpop.eup %26682  ;;  %26702 = vpow2.f32 %v18608_v47  ;;  %26335 = vmatpush3.bf16.msra.mxu1 %v37503_v52  ;;  %25597 = vmatprep.mubr.msk.f32.mxu1 %vm530_vm0, %v34433_v57  ;;  %v19542_v15 = vsel %vm530_vm0, %v34448_v43, 0.0 }
 0x9cc   : > { %v34460_v36 = vpop.eup %26684  ;;  %26704 = vpow2.f32 %v18612_v20  ;;  %26341 = vmatprep.subr.bf16.mxu1 %v37513_v63  ;;  %v18626_v20 = vmul.f32 1.442695, %v18566_v53  ;;  %v18628_v53 = vmul.f32 1.442695, %v18567_v35 }
 0x9cd   : > { %v34465_v38 = vpop.eup %26686  ;;  %26706 = vpow2.f32 %v18618_v25  ;;  %v18777_v52 = vpop.permute.xlu1 %18776  ;;  %v37517_v25 = vld [vmem:[#allocation83_spill] sm:$0xff] }
 0x9ce   : > { %37514 = vst [vmem:[#allocation41_spill] sm:$0xff] %v34465_v38  ;;  %v34469_v47 = vpop.permute.xlu0 %18711  ;;  %v34473_v37 = vpop.eup %26688  ;;  %26708 = vpow2.f32 %v18616_v13  ;;  %25591 = vmatmul.mubr.msk.f32.vlgmr.msra.gmra.mrb[214].mxu0 %vm530_vm0, %v34465_v38  ;;  %19543 = vadd.xlane.f32.xlu0 %v19542_v15  ;;  %v18822_v46 = vsub.f32 %v37517_v25, %v18777_v52  ;;  %v37520_v13 = vld [vmem:[#allocation107_spill] sm:$0xff] }
 0x9cf   : > { %v34479_v21 = vpop.eup %26690  ;;  %26710 = vpow2.f32 %v18866_v59  ;;  %26339 = vmatpush3.bf16.msra.mxu0 %v37508_v48  ;;  %25604 = vmatprep.mubr.msk.f32.mxu0 %vm530_vm0, %v34460_v36  ;;  %v18569_v59 = vsub.f32 %v37520_v13, %v34305_v51  ;;  %v18630_v48 = vmul.f32 1.442695, %v18568_v31  ;;  %v37524_v31 = vld [vmem:[#allocation59_spill] sm:$0xff] }
 0x9d0   : > { %v34485_v24 = vpop.eup %26692  ;;  %26712 = vpow2.f32 %v18620_v7  ;;  %26345 = vmatprep.subr.bf16.mxu0 %v37518_v4  ;;  %v37521_v7 = vld [vmem:[#allocation31_spill] sm:$0xff]  ;;  %v18882_v51 = vmul.f32 1.442695, %v18822_v46  ;;  %v37525_v46 = vld [vmem:[#allocation153_spill] sm:$0xff] }
 0x9d1   : > { %v34488_v27 = vpop.eup %26694  ;;  %26714 = vpow2.f32 %v18622_v42  ;;  %v37522_v42 = vld [vmem:[#allocation10_spill] sm:$0xff]  ;;  %v19554_v35 = vsel %vm530_vm0, %v34485_v24, 0.0 }
 0x9d2   : > { %37519 = vst [vmem:[#allocation5_spill] sm:$0xff] %v34488_v27  ;;  %v18722_v8 = vpop.permute.xlu0 %18721  ;;  %v34492_v62 = vpop.eup %26696  ;;  %26716 = vpow2.f32 %v18626_v20  ;;  %25598 = vmatmul.mubr.msk.f32.vlgmr.msra.gmra.mrb[182].mxu1 %vm530_vm0, %v34488_v27  ;;  %25605 = vmatmul.mubr.msk.f32.vlgmr.msra.gmra.mrb[216].mxu0 %vm530_vm0, %v34479_v21  ;;  %v18796_v18 = vsub.f32 %v37522_v42, %v34252_v29  ;;  %v37523_v29 = vld [vmem:[#allocation36_spill] sm:$0xff] }
 0x9d3   : > { %v18811_v40 = vsub.f32 %v37521_v7, %v18722_v8  ;;  %v34499_v50 = vpop.eup %26698  ;;  %26718 = vpow2.f32 %v18874_v6  ;;  %26343 = vmatpush3.bf16.msra.mxu1 %v37513_v63  ;;  %26347 = vmatpush3.bf16.msra.mxu0 %v37518_v4  ;;  %v18797_v22 = vsub.f32 %v37523_v29, %v34254_v49  ;;  %v18632_v63 = vmul.f32 1.442695, %v18569_v59  ;;  %v37526_v4 = vld [vmem:[#allocation118_spill] sm:$0xff]  ;;  %v37531_v29 = vld [vmem:[#allocation77_spill] sm:$0xff] }
 0x9d4   : > { %v34507_v52 = vpop.eup %26700  ;;  %26720 = vpow2.f32 %v18624_v41  ;;  %19555 = vadd.xlane.f32.xlu0 %v19554_v35  ;;  %25611 = vmatprep.mubr.msk.f32.mxu1 %vm530_vm0, %v34473_v37  ;;  %v18799_v41 = vsub.f32 %v37525_v46, %v34310_v34  ;;  %v37527_v34 = vld [vmem:[#allocation121_spill] sm:$0xff]  ;;  %v37529_v35 = vld [vmem:[#allocation58_spill] sm:$0xff] }
 0x9d5   : > { %v18860_v15 = vmul.f32 1.442695, %v18811_v40  ;;  %v34511_v20 = vpop.eup %26702  ;;  %26722 = vpow2.f32 %v18628_v53  ;;  %25618 = vmatprep.mubr.msk.f32.mxu0 %vm530_vm0, %v34492_v62  ;;  %26349 = vmatprep.subr.bf16.mxu1 %v37524_v31  ;;  %v18830_v53 = vmul.f32 1.442695, %v18796_v18  ;;  %v19566_v13 = vsel %vm530_vm0, %v34507_v52, 0.0  ;;  %v37528_v40 = vld [vmem:[#allocation67_spill] sm:$0xff] }
 0x9d6   : > { %v34518_v6 = vpop.permute.xlu0 %18731  ;;  %v34520_v25 = vpop.eup %26704  ;;  %26724 = vpow2.f32 %v18630_v48  ;;  %26353 = vmatprep.subr.bf16.mxu0 %v37526_v4  ;;  %25612 = vmatmul.mubr.msk.f32.vlgmr.msra.gmra.mrb[184].mxu1 %vm530_vm0, %v34511_v20  ;;  %v18800_v8 = vsub.f32 %v37527_v34, %v34312_v11  ;;  %v18832_v7 = vmul.f32 1.442695, %v18797_v22  ;;  %v18801_v42 = vsub.f32 %v37528_v40, %v34314_v3  ;;  %v37532_v3 = vld [vmem:[#allocation44_spill] sm:$0xff] }
 0x9d7   : > { %v34527_v49 = vpop.eup %26706  ;;  %26726 = vpow2.f32 %v18882_v51  ;;  %25619 = vmatmul.mubr.msk.f32.vlgmr.msra.gmra.mrb[218].mxu0 %vm530_vm0, %v34520_v25  ;;  %26351 = vmatpush3.bf16.msra.mxu1 %v37524_v31  ;;  %v18836_v11 = vmul.f32 1.442695, %v18799_v41  ;;  %v18803_v31 = vsub.f32 %v37532_v3, %v34318_v33  ;;  %v37534_v40 = vld [vmem:[#allocation124_spill] sm:$0xff]  ;;  %v37537_v3 = vld [vmem:[#allocation21_spill] sm:$0xff] }
 0x9d8   : > { %v34534_v59 = vpop.eup %26708  ;;  %26728 = vpow2.f32 %v18860_v15  ;;  %26355 = vmatpush3.bf16.msra.mxu0 %v37526_v4  ;;  %19567 = vadd.xlane.f32.xlu0 %v19566_v13  ;;  %v37530_v15 = vld [vmem:[#allocation129_spill] sm:$0xff]  ;;  %v18838_v41 = vmul.f32 1.442695, %v18800_v8  ;;  %v18840_v33 = vmul.f32 1.442695, %v18801_v42  ;;  %v37535_v8 = vld [vmem:[#allocation123_spill] sm:$0xff] }
 0x9d9   : > { %v34539_v48 = vpop.eup %26710  ;;  %26730 = vpow2.f32 %v18632_v63  ;;  %25625 = vmatprep.mubr.msk.f32.mxu1 %vm530_vm0, %v34499_v50  ;;  %25632 = vmatprep.mubr.msk.f32.mxu0 %vm530_vm0, %v34527_v49  ;;  %v37533_v13 = vld [vmem:[#allocation49_spill] sm:$0xff] }
 0x9da   : > { %v18742_v18 = vpop.permute.xlu0 %18741  ;;  %v34547_v51 = vpop.eup %26712  ;;  %26357 = vmatprep.subr.bf16.mxu1 %v37529_v35  ;;  %26361 = vmatprep.subr.bf16.mxu0 %v37530_v15  ;;  %26732 = vpow2.f32 %v18830_v53  ;;  %v19590_v4 = vsel %vm530_vm0, %v34539_v48, 0.0  ;;  %v18804_v34 = vsub.f32 %v37533_v13, %v34325_v61  ;;  %v18844_v61 = vmul.f32 1.442695, %v18803_v31 }
 0x9db   : > { %v18815_v22 = vsub.f32 %v37531_v29, %v18742_v18  ;;  %v34552_v63 = vpop.eup %26714  ;;  %25626 = vmatmul.mubr.msk.f32.vlgmr.msra.gmra.mrb[186].mxu1 %vm530_vm0, %v34534_v59  ;;  %25633 = vmatmul.mubr.msk.f32.vlgmr.msra.gmra.mrb[220].mxu0 %vm530_vm0, %v34547_v51  ;;  %26734 = vpow2.f32 %v18832_v7  ;;  %v26368_v18 = vpack.c.bf16 %v37535_v8, %v37534_v40  ;;  %v37536_v7 = vld [vmem:[#allocation24_spill] sm:$0xff]  ;;  %v37539_v8 = vld [vmem:[#allocation131_spill] sm:$0xff] }
 0x9dc   : > { %v34560_v46 = vpop.eup %26716  ;;  %26359 = vmatpush3.bf16.msra.mxu1 %v37529_v35  ;;  %26363 = vmatpush3.bf16.msra.mxu0 %v37530_v15  ;;  %26736 = vpow2.f32 %v18836_v11  ;;  %v37538_v11 = vld [vmem:[#allocation146_spill] sm:$0xff] }
 0x9dd   : > { %v34566_v53 = vpop.eup %26718  ;;  %19591 = vadd.xlane.f32.xlu0 %v19590_v4  ;;  %25639 = vmatprep.mubr.msk.f32.mxu1 %vm530_vm0, %v34552_v63  ;;  %v18868_v29 = vmul.f32 1.442695, %v18815_v22  ;;  %v18805_v4 = vsub.f32 %v37537_v3, %v34418_v1  ;;  %26738 = vpow2.f32 %v18838_v41  ;;  %v18807_v22 = vsub.f32 %v37538_v11, %v34444_v19  ;;  %v37540_v3 = vld [vmem:[#allocation125_spill] sm:$0xff] }
 0x9de   : > { %v34574_v35 = vpop.permute.xlu0 %18751  ;;  %v34576_v15 = vpop.eup %26720  ;;  %25646 = vmatprep.mubr.msk.f32.mxu0 %vm530_vm0, %v34560_v46  ;;  %26365 = vmatprep.subr.bf16.mxu1 %v37536_v7  ;;  %v19602_v31 = vsel %vm530_vm0, %v34566_v53, 0.0  ;;  %26740 = vpow2.f32 %v18840_v33  ;;  %v18846_v1 = vmul.f32 1.442695, %v18804_v34  ;;  %v26372_v41 = vpack.c.bf16 %v37540_v3, %v37539_v8  ;;  %v37548_v3 = vld [vmem:[#allocation109_spill] sm:$0xff] }
 0x9df   : > { %v34581_v42 = vpop.eup %26722  ;;  %26369 = vmatprep.subr.bf16.mxu0 %v26368_v18  ;;  %25640 = vmatmul.mubr.msk.f32.vlgmr.msra.gmra.mrb[188].mxu1 %vm530_vm0, %v34576_v15  ;;  %v26376_v19 = vpack.c.bf16 %v37542_v0, %v37541_v54  ;;  %26742 = vpow2.f32 %v18868_v29  ;;  %v18848_v34 = vmul.f32 1.442695, %v18805_v4  ;;  %v37544_v54 = vld [vmem:[#allocation126_spill] sm:$0xff]  ;;  %v37546_v29 = vld [vmem:[#allocation139_spill] sm:$0xff] }
 0x9e0   : > { %v34587_v13 = vpop.eup %26724  ;;  %25647 = vmatmul.mubr.msk.f32.vlgmr.msra.gmra.mrb[222].mxu0 %vm530_vm0, %v34581_v42  ;;  %26367 = vmatpush3.bf16.msra.mxu1 %v37536_v7  ;;  %v37543_v7 = vld [vmem:[#allocation80_spill] sm:$0xff]  ;;  %26744 = vpow2.f32 %v18844_v61  ;;  %v37547_v61 = vld [vmem:[#allocation134_spill] sm:$0xff] }
 0x9e1   : > { %v34596_v40 = vpop.eup %26726  ;;  %26371 = vmatpush3.bf16.msra.mxu0 %v26368_v18  ;;  %19603 = vadd.xlane.f32.xlu0 %v19602_v31  ;;  %v18808_v38 = vsub.f32 %v37543_v7, %v34341_v28  ;;  %v18852_v18 = vmul.f32 1.442695, %v18807_v22  ;;  %v37545_v31 = vld [vmem:[#allocation104_spill] sm:$0xff]  ;;  %26746 = vpow2.f32 %v18846_v1  ;;  %v26380_v4 = vpack.c.bf16 %v37547_v61, %v37546_v29  ;;  %v18782_v1 = vpop.permute.xlu1 %18781 }
 0x9e2   : > { %v18762_v11 = vpop.permute.xlu0 %18761  ;;  %v34602_v27 = vpop.eup %26728  ;;  %25653 = vmatprep.mubr.msk.f32.mxu1 %vm530_vm0, %v34587_v13  ;;  %25660 = vmatprep.mubr.msk.f32.mxu0 %vm530_vm0, %v34402_v45  ;;  %v18809_v8 = vsub.f32 %v37545_v31, %v34469_v47  ;;  %v19614_v45 = vsel %vm530_vm0, %v34596_v40, 0.0  ;;  %26748 = vpow2.f32 %v18848_v34  ;;  %v37549_v31 = vld [vmem:[#allocation128_spill] sm:$0xff] }
 0x9e3   : > { %v34610_v33 = vpop.eup %26730  ;;  %26373 = vmatprep.subr.bf16.mxu1 %v26372_v41  ;;  %26377 = vmatprep.subr.bf16.mxu0 %v26376_v19  ;;  %v18819_v0 = vsub.f32 %v37544_v54, %v18762_v11  ;;  %v19581_v22 = vsel %vm530_vm0, %v34602_v27, 0.0  ;;  %v18854_v47 = vmul.f32 1.442695, %v18808_v38  ;;  %v18812_v11 = vsub.f32 %v37548_v3, %v34355_v32  ;;  %v37550_v32 = vld [vmem:[#allocation64_spill] sm:$0xff] }
 0x9e4   : > { %25654 = vmatmul.mubr.msk.f32.vlgmr.msra.gmra.mrb[190].mxu1 %vm530_vm0, %v34610_v33  ;;  %25661 = vmatmul.mubr.msk.f32.vlgmr.msra.gmra.mrb[224].mxu0 %vm530_vm0, %v34454_v39  ;;  %v26733_v28 = vpop.eup %26732  ;;  %26750 = vpow2.f32 %v18852_v18  ;;  %v18856_v38 = vmul.f32 1.442695, %v18809_v8  ;;  %v37554_v3 = vld [vmem:[#allocation28_spill] sm:$0xff] }
 0x9e5   : > { %26375 = vmatpush3.bf16.msra.mxu1 %v26372_v41  ;;  %26379 = vmatpush3.bf16.msra.mxu0 %v26376_v19  ;;  %v34628_v7 = vpop.eup %26734  ;;  %v18876_v41 = vmul.f32 1.442695, %v18819_v0  ;;  %26752 = vpow2.f32 %v18854_v47  ;;  %v18862_v34 = vmul.f32 1.442695, %v18812_v11  ;;  %v37551_v0 = vld [vmem:[#allocation43_spill] sm:$0xff]  ;;  %v19536_v18 = vsel %vm530_vm0, %v26733_v28, 0.0 }
 0x9e6   : > { %19615 = vadd.xlane.f32.xlu0 %v19614_v45  ;;  %25667 = vmatprep.mubr.msk.f32.mxu1 %vm530_vm0, %v26733_v28  ;;  %v34632_v19 = vpop.permute.xlu0 %18771  ;;  %v34634_v54 = vpop.eup %26736  ;;  %v18813_v45 = vsub.f32 %v37550_v32, %v34518_v6  ;;  %v18823_v29 = vsub.f32 %v37551_v0, %v18782_v1  ;;  %v37552_v6 = vld [vmem:[#allocation29_spill] sm:$0xff]  ;;  %v37555_v1 = vld [vmem:[#allocation106_spill] sm:$0xff]  ;;  %v37558_v0 = vld [vmem:[#allocation103_spill] sm:$0xff] }
 0x9e7   : > { %25674 = vmatprep.mubr.msk.f32.mxu0 %vm530_vm0, %v34448_v43  ;;  %26381 = vmatprep.subr.bf16.mxu1 %v26380_v4  ;;  %v26739_v43 = vpop.eup %26738  ;;  %v18816_v61 = vsub.f32 %v37552_v6, %v34395_v17  ;;  %26754 = vpow2.f32 %v18876_v41  ;;  %v18817_v41 = vsub.f32 %v37555_v1, %v34574_v35  ;;  %v37559_v6 = vld [vmem:[#allocation73_spill] sm:$0xff] }
 0x9e8   : > { %26385 = vmatprep.subr.bf16.mxu0 %v37549_v31  ;;  %19582 = vadd.xlane.f32.xlu1 %v19581_v22  ;;  %v34646_v8 = vpop.eup %26740  ;;  %26756 = vpow2.f32 %v18856_v38  ;;  %v18864_v28 = vmul.f32 1.442695, %v18813_v45  ;;  %v18884_v11 = vmul.f32 1.442695, %v18823_v29  ;;  %v37556_v45 = vld [vmem:[#allocation7_spill] sm:$0xff] }
 0x9e9   : > { %25668 = vmatmul.mubr.msk.f32.vlgmr.msra.gmra.mrb[192].mxu1 %vm530_vm0, %v34628_v7  ;;  %25675 = vmatmul.mubr.msk.f32.vlgmr.msra.gmra.mrb[226].mxu0 %vm530_vm0, %v34634_v54  ;;  %v34651_v22 = vpop.eup %26742  ;;  %26758 = vpow2.f32 %v18862_v34  ;;  %v18820_v34 = vsub.f32 %v37556_v45, %v34442_v58 }
 0x9ea   : > { %26383 = vmatpush3.bf16.msra.mxu1 %v26380_v4  ;;  %26387 = vmatpush3.bf16.msra.mxu0 %v37549_v31  ;;  %v37553_v4 = vld [vmem:[#allocation54_spill] sm:$0xff]  ;;  %v34656_v47 = vpop.eup %26744  ;;  %v18787_v17 = vpop.permute.xlu0 %18786  ;;  %v18870_v31 = vmul.f32 1.442695, %v18816_v61  ;;  %v19593_v32 = vsel %vm530_vm0, %v34651_v22, 0.0  ;;  %26760 = vpow2.f32 %v18864_v28  ;;  %v18821_v61 = vsub.f32 %v37559_v6, %v34632_v19 }
 0x9eb   : > { %19537 = vadd.xlane.f32.xlu0 %v19536_v18  ;;  %25681 = vmatprep.mubr.msk.f32.mxu1 %vm530_vm0, %v26739_v43  ;;  %v26747_v38 = vpop.eup %26746  ;;  %26762 = vpow2.f32 %v18884_v11  ;;  %v18872_v18 = vmul.f32 1.442695, %v18817_v41  ;;  %v18878_v28 = vmul.f32 1.442695, %v18820_v34 }
 0x9ec   : > { %25688 = vmatprep.mubr.msk.f32.mxu0 %vm530_vm0, %v34485_v24  ;;  %26389 = vmatprep.subr.bf16.mxu1 %v37553_v4  ;;  %v19548_v24 = vsel %vm530_vm0, %v26739_v43, 0.0  ;;  %v34675_v35 = vpop.eup %26748  ;;  %v37557_v43 = vld [vmem:[#allocation27_spill] sm:$0xff]  ;;  %26764 = vpow2.f32 %v18870_v31  ;;  %v18880_v41 = vmul.f32 1.442695, %v18821_v61 }
 0x9ed   : > { %26393 = vmatprep.subr.bf16.mxu0 %v37554_v3  ;;  %25682 = vmatmul.mubr.msk.f32.vlgmr.msra.gmra.mrb[194].mxu1 %vm530_vm0, %v34646_v8  ;;  %26766 = vpow2.f32 %v18872_v18  ;;  %v37565_v18 = vld [vmem:[#allocation137_spill] sm:$0xff] }
 0x9ee   : > { %25689 = vmatmul.mubr.msk.f32.vlgmr.msra.gmra.mrb[228].mxu0 %vm530_vm0, %v34656_v47  ;;  %26391 = vmatpush3.bf16.msra.mxu1 %v37553_v4  ;;  %v34679_v29 = vpop.eup %26750  ;;  %v18792_v58 = vpop.permute.xlu0 %18791  ;;  %26768 = vpow2.f32 %v18878_v28 }
 0x9ef   : > { %26395 = vmatpush3.bf16.msra.mxu0 %v37554_v3  ;;  %19549 = vadd.xlane.f32.xlu0 %v19548_v24  ;;  %v26753_v4 = vpop.eup %26752  ;;  %v37560_v3 = vld [vmem:[#allocation16_spill] sm:$0xff]  ;;  %v37561_v24 = vld [vmem:[#allocation111_spill] sm:$0xff]  ;;  %26770 = vpow2.f32 %v18880_v41 }
 0x9f0   : > { %25695 = vmatprep.mubr.msk.f32.mxu1 %vm530_vm0, %v26747_v38  ;;  %25702 = vmatprep.mubr.msk.f32.mxu0 %vm530_vm0, %v34507_v52  ;;  %v19560_v52 = vsel %vm530_vm0, %v26747_v38, 0.0  ;;  %v18824_v11 = vsub.f32 %v37560_v3, %v18787_v17  ;;  %v18825_v31 = vsub.f32 %v37561_v24, %v18792_v58  ;;  %v37562_v38 = vld [vmem:[#allocation86_spill] sm:$0xff]  ;;  %v37566_v58 = vld [vmem:[#allocation143_spill] sm:$0xff]  ;;  %v18950_v24 = vsel %vm530_vm0, %v34492_v62, 0.0 }
 0x9f1   : > { %26397 = vmatprep.subr.bf16.mxu1 %v37557_v43  ;;  %26401 = vmatprep.subr.bf16.mxu0 %v37558_v0  ;;  %v26755_v19 = vpop.eup %26754  ;;  %v19569_v62 = vsel %vm530_vm0, %v34679_v29, 0.0 }
 0x9f2   : > { %19594 = vadd.xlane.f32.xlu1 %v19593_v32  ;;  %25696 = vmatmul.mubr.msk.f32.vlgmr.msra.gmra.mrb[196].mxu1 %vm530_vm0, %v34675_v35  ;;  %v34694_v1 = vpop.eup %26756  ;;  %v37563_v32 = vld [vmem:[#allocation97_spill] sm:$0xff]  ;;  %v18886_v45 = vmul.f32 1.442695, %v18824_v11  ;;  %v19605_v34 = vsel %vm530_vm0, %v26755_v19, 0.0  ;;  %v37568_v11 = vld [vmem:[#allocation18_spill] sm:$0xff] }
 0x9f3   : > { %25703 = vmatmul.mubr.msk.f32.vlgmr.msra.gmra.mrb[230].mxu0 %vm530_vm0, %v34679_v29  ;;  %26399 = vmatpush3.bf16.msra.mxu1 %v37557_v43  ;;  %v26759_v17 = vpop.eup %26758  ;;  %v18888_v43 = vmul.f32 1.442695, %v18825_v31  ;;  %v18956_v31 = vsel %vm530_vm0, %v34499_v50, 0.0  ;;  %v19551_v50 = vsel %vm530_vm0, %v34646_v8, 0.0  ;;  %v18980_v29 = vsel %vm530_vm0, %v34587_v13, 0.0 }
 0x9f4   : > { %26403 = vmatpush3.bf16.msra.mxu0 %v37558_v0  ;;  %19561 = vadd.xlane.f32.xlu0 %v19560_v52  ;;  %v34711_v0 = vpop.eup %26760  ;;  %26772 = vpow2.f32 %v18886_v45  ;;  %v18896_v8 = vsel %vm530_vm0, %v34292_v60, 0.0  ;;  %v18890_v13 = vsel %vm530_vm0, %v34270_v14, 0.0  ;;  %v18914_v60 = vsel %vm530_vm0, %v34376_v5, 0.0 }
 0x9f5   : > { %25709 = vmatprep.mubr.msk.f32.mxu1 %vm530_vm0, %v26753_v4  ;;  %25716 = vmatprep.mubr.msk.f32.mxu0 %vm530_vm0, %v34409_v23  ;;  %v19572_v23 = vsel %vm530_vm0, %v26753_v4, 0.0  ;;  %v26763_v6 = vpop.eup %26762  ;;  %26774 = vpow2.f32 %v18888_v43  ;;  %v37567_v4 = vld [vmem:[#allocation150_spill] sm:$0xff]  ;;  %v18941_v14 = vsel %vm530_vm0, %v34479_v21, 0.0  ;;  %v18947_v45 = vsel %vm530_vm0, %v34511_v20, 0.0 }
 0x9f6   : > { %26405 = vmatprep.subr.bf16.mxu1 %v37562_v38  ;;  %26409 = vmatprep.subr.bf16.mxu0 %v37563_v32  ;;  %v34718_v61 = vpop.eup %26764  ;;  %v18932_v5 = vsel %vm530_vm0, %v34433_v57, 0.0  ;;  %v18965_v57 = vsel %vm530_vm0, %v34547_v51, 0.0  ;;  %v18983_v51 = vsel %vm530_vm0, %v34610_v33, 0.0  ;;  %v18911_v33 = vsel %vm530_vm0, %v34391_v26, 0.0 }
 0x9f7   : > { %25710 = vmatmul.mubr.msk.f32.vlgmr.msra.gmra.mrb[198].mxu1 %vm530_vm0, %v34694_v1  ;;  %25717 = vmatmul.mubr.msk.f32.vlgmr.msra.gmra.mrb[232].mxu0 %vm530_vm0, %v34602_v27  ;;  %v37564_v27 = vld [vmem:[#allocation96_spill] sm:$0xff]  ;;  %v26767_v52 = vpop.eup %26766  ;;  %v19596_v21 = vsel %vm530_vm0, %v34718_v61, 0.0 }
 0x9f8   : > { %26407 = vmatpush3.bf16.msra.mxu1 %v37562_v38  ;;  %26411 = vmatpush3.bf16.msra.mxu0 %v37563_v32  ;;  %v34732_v28 = vpop.eup %26768  ;;  %v19557_v38 = vsel %vm530_vm0, %v34656_v47, 0.0  ;;  %v18974_v47 = vsel %vm530_vm0, %v34560_v46, 0.0  ;;  %v19587_v46 = vsel %vm530_vm0, %v34711_v0, 0.0  ;;  %v19599_v32 = vsel %vm530_vm0, %v26767_v52, 0.0 }
 0x9f9   : > { %19573 = vadd.xlane.f32.xlu0 %v19572_v23  ;;  %25723 = vmatprep.mubr.msk.f32.mxu1 %vm530_vm0, %v26759_v17  ;;  %v26771_v3 = vpop.eup %26770  ;;  %v19608_v20 = vsel %vm530_vm0, %v34732_v28, 0.0  ;;  %v18971_v23 = vsel %vm530_vm0, %v34576_v15, 0.0 }
 0x9fa   : > { %25730 = vmatprep.mubr.msk.f32.mxu0 %vm530_vm0, %v34539_v48  ;;  %26413 = vmatprep.subr.bf16.mxu1 %v37564_v27  ;;  %v19584_v48 = vsel %vm530_vm0, %v26759_v17, 0.0  ;;  %v19611_v17 = vsel %vm530_vm0, %v26771_v3, 0.0 }
 0x9fb   : > { %26417 = vmatprep.subr.bf16.mxu0 %v37565_v18  ;;  %19606 = vadd.xlane.f32.xlu1 %v19605_v34  ;;  %v18977_v34 = vsel %vm530_vm0, %v34581_v42, 0.0  ;;  %v18905_v42 = vsel %vm530_vm0, %v34370_v2, 0.0  ;;  %v37573_v2 = vld [vmem:[#allocation41_spill] sm:$0xff] }
 0x9fc   : > { %25724 = vmatmul.mubr.msk.f32.vlgmr.msra.gmra.mrb[200].mxu1 %vm530_vm0, %v34711_v0  ;;  %25731 = vmatmul.mubr.msk.f32.vlgmr.msra.gmra.mrb[234].mxu0 %vm530_vm0, %v34651_v22  ;;  %v19617_v22 = vsel %vm530_vm0, %v26763_v6, 0.0 }
 0x9fd   : > { %26415 = vmatpush3.bf16.msra.mxu1 %v37564_v27  ;;  %26419 = vmatpush3.bf16.msra.mxu0 %v37565_v18  ;;  %v18899_v27 = vsel %vm530_vm0, %v34351_v16, 0.0  ;;  %v18923_v16 = vsel %vm530_vm0, %v34438_v9, 0.0 }
 0x9fe   : > { %19585 = vadd.xlane.f32.xlu0 %v19584_v48  ;;  %25737 = vmatprep.mubr.msk.f32.mxu1 %vm530_vm0, %v34718_v61  ;;  %v34746_v41 = vpop.eup %26772 }
 0x9ff   : > { %25744 = vmatprep.mubr.msk.f32.mxu0 %vm530_vm0, %v34566_v53  ;;  %26421 = vmatprep.subr.bf16.mxu1 %v37566_v58  ;;  %v18938_v53 = vsel %vm530_vm0, %v34460_v36, 0.0  ;;  %v18944_v36 = vsel %vm530_vm0, %v34473_v37, 0.0  ;;  %v19545_v37 = vsel %vm530_vm0, %v34634_v54, 0.0  ;;  %v18968_v54 = vsel %vm530_vm0, %v34552_v63, 0.0 }
 0xa00   : > { %26425 = vmatprep.subr.bf16.mxu0 %v37567_v4  ;;  %19618 = vadd.xlane.f32.xlu1 %v19617_v22  ;;  %v19575_v63 = vsel %vm530_vm0, %v34694_v1, 0.0  ;;  %v18908_v1 = vsel %vm530_vm0, %v34357_v12, 0.0  ;;  %v18926_v12 = vsel %vm530_vm0, %v34422_v56, 0.0  ;;  %v18959_v56 = vsel %vm530_vm0, %v34534_v59, 0.0  ;;  %v37575_v22 = vld [vmem:[#allocation5_spill] sm:$0xff] }
 0xa01   : > { %25738 = vmatmul.mubr.msk.f32.vlgmr.msra.gmra.mrb[202].mxu1 %vm530_vm0, %v26767_v52  ;;  %25745 = vmatmul.mubr.msk.f32.vlgmr.msra.gmra.mrb[236].mxu0 %vm530_vm0, %v26755_v19  ;;  %v19533_v19 = vsel %vm530_vm0, %v34454_v39, 0.0  ;;  %v19539_v39 = vsel %vm530_vm0, %v34628_v7, 0.0  ;;  %v18962_v7 = vsel %vm530_vm0, %v34527_v49, 0.0  ;;  %v19563_v49 = vsel %vm530_vm0, %v34675_v35, 0.0 }
 0xa02   : > { %26423 = vmatpush3.bf16.msra.mxu1 %v37566_v58  ;;  %26427 = vmatpush3.bf16.msra.mxu0 %v37567_v4  ;;  %v18902_v35 = vsel %vm530_vm0, %v34323_v55, 0.0  ;;  %v18920_v55 = vsel %vm530_vm0, %v34386_v10, 0.0  ;;  %v18953_v10 = vsel %vm530_vm0, %v34520_v25, 0.0  ;;  %v18893_v25 = vsel %vm530_vm0, %v34320_v30, 0.0 }
 0xa03   : > { %18939 = vadd.xlane.f32.xlu0 %v18938_v53  ;;  %25751 = vmatprep.mubr.msk.f32.mxu1 %vm530_vm0, %v34732_v28  ;;  %v19620_v59 = vsel %vm530_vm0, %v34746_v41, 0.0  ;;  %v18929_v58 = vsel %vm530_vm0, %v37573_v2, 0.0  ;;  %v18935_v52 = vsel %vm530_vm0, %v37575_v22, 0.0 }
 0xa04   : > { %25758 = vmatprep.mubr.msk.f32.mxu0 %vm530_vm0, %v34596_v40  ;;  %26429 = vmatprep.subr.bf16.mxu1 %v37568_v11  ;;  %v34754_v40 = vpop.eup %26774 }
 0xa05   : > { %19534 = vadd.xlane.f32.xlu1 %v19533_v19  ;;  %25752 = vmatmul.mubr.msk.f32.vlgmr.msra.gmra.mrb[204].mxu1 %vm530_vm0, %v26771_v3  ;;  %v19623_v30 = vsel %vm530_vm0, %v34754_v40, 0.0 }
 0xa06   : > { %25759 = vmatmul.mubr.msk.f32.vlgmr.msra.gmra.mrb[238].mxu0 %vm530_vm0, %v26763_v6  ;;  %26431 = vmatpush3.bf16.msra.mxu1 %v37568_v11  ;;  %v18917_v6 = vsel %vm530_vm0, %v34414_v44, 0.0 }
 0xa07   : > { %18945 = vadd.xlane.f32.xlu0 %v18944_v36  ;;  %25765 = vmatprep.mubr.msk.f32.mxu1 %vm530_vm0, %v34746_v41 }
 0xa09   : > { %19540 = vadd.xlane.f32.xlu1 %v19539_v39  ;;  %25766 = vmatmul.mubr.msk.f32.vlgmr.msra.gmra.mrb[206].mxu1 %vm530_vm0, %v34754_v40 }
 0xa0b   : > { %18951 = vadd.xlane.f32.xlu0 %v18950_v24 }
 0xa0d   : > { %19546 = vadd.xlane.f32.xlu1 %v19545_v37 }
 0xa0f   : > { %18957 = vadd.xlane.f32.xlu0 %v18956_v31 }
 0xa11   : > { %19558 = vadd.xlane.f32.xlu1 %v19557_v38 }
 0xa13   : > { %18963 = vadd.xlane.f32.xlu0 %v18962_v7 }
 0xa15   : > { %19570 = vadd.xlane.f32.xlu1 %v19569_v62 }
 0xa17   : > { %18969 = vadd.xlane.f32.xlu0 %v18968_v54 }
 0xa19   : > { %19552 = vadd.xlane.f32.xlu1 %v19551_v50 }
 0xa1b   : > { %18975 = vadd.xlane.f32.xlu0 %v18974_v47 }
 0xa1d   : > { %19564 = vadd.xlane.f32.xlu1 %v19563_v49 }
 0xa1f   : > { %18981 = vadd.xlane.f32.xlu0 %v18980_v29 }
 0xa21   : > { %19576 = vadd.xlane.f32.xlu1 %v19575_v63 }
 0xa23   : > { %18897 = vadd.xlane.f32.xlu0 %v18896_v8 }
 0xa25   : > { %19588 = vadd.xlane.f32.xlu1 %v19587_v46 }
 0xa27   : > { %18903 = vadd.xlane.f32.xlu0 %v18902_v35 }
 0xa29   : > { %18891 = vadd.xlane.f32.xlu1 %v18890_v13 }
 0xa2b   : > { %18909 = vadd.xlane.f32.xlu0 %v18908_v1 }
 0xa2d   : > { %19600 = vadd.xlane.f32.xlu1 %v19599_v32 }
 0xa2f   : > { %18915 = vadd.xlane.f32.xlu0 %v18914_v60 }
 0xa31   : > { %19612 = vadd.xlane.f32.xlu1 %v19611_v17  ;;  %v37584_v17 = vld [vmem:[#allocation9_spill] sm:$0xff] }
 0xa33   : > { %18921 = vadd.xlane.f32.xlu0 %v18920_v55 }
 0xa35   : > { %18942 = vadd.xlane.f32.xlu1 %v18941_v14 }
 0xa37   : > { %18927 = vadd.xlane.f32.xlu0 %v18926_v12 }
 0xa39   : > { %18948 = vadd.xlane.f32.xlu1 %v18947_v45 }
 0xa3b   : > { %18933 = vadd.xlane.f32.xlu0 %v18932_v5 }
 0xa3d   : > { %18954 = vadd.xlane.f32.xlu1 %v18953_v10 }
 0xa3f   : > { %19597 = vadd.xlane.f32.xlu0 %v19596_v21 }
 0xa41   : > { %18960 = vadd.xlane.f32.xlu1 %v18959_v56 }
 0xa43   : > { %19609 = vadd.xlane.f32.xlu0 %v19608_v20 }
 0xa45   : > { %18966 = vadd.xlane.f32.xlu1 %v18965_v57 }
 0xa47   : > { %18894 = vadd.xlane.f32.xlu0 %v18893_v25 }
 0xa49   : > { %18972 = vadd.xlane.f32.xlu1 %v18971_v23 }
 0xa4b   : > { %19621 = vadd.xlane.f32.xlu0 %v19620_v59 }
 0xa4d   : > { %18978 = vadd.xlane.f32.xlu1 %v18977_v34 }
 0xa51   : > { %18984 = vadd.xlane.f32.xlu1 %v18983_v51 }
 0xa53   : > { %v34828_v43 = vpop.xlane.xlu0 %19579 }
 0xa54   : > { %37569 = vst [vmem:[#allocation69_spill] sm:$0xff] %v34828_v43 }
 0xa55   : > { %19624 = vadd.xlane.f32.xlu1 %v19623_v30  ;;  %v37589_v30 = vld [vmem:[#allocation26_spill] sm:$0xff] }
 0xa57   : > { %v34832_v15 = vpop.xlane.xlu0 %19531 }
 0xa59   : > { %18900 = vadd.xlane.f32.xlu1 %v18899_v27 }
 0xa5b   : > { %v34836_v0 = vpop.xlane.xlu0 %19543 }
 0xa5d   : > { %18906 = vadd.xlane.f32.xlu1 %v18905_v42 }
 0xa61   : > { %18912 = vadd.xlane.f32.xlu1 %v18911_v33  ;;  %v34842_v18 = vpop.xlane.xlu0 %19555 }
 0xa62   : > { %37570 = vst [vmem:[#allocation63_spill] sm:$0xff] %v34842_v18 }
 0xa65   : > { %18918 = vadd.xlane.f32.xlu1 %v18917_v6  ;;  %v34846_v61 = vpop.xlane.xlu0 %19567 }
 0xa66   : > { %37571 = vst [vmem:[#allocation57_spill] sm:$0xff] %v34846_v61 }
 0xa69   : > { %18924 = vadd.xlane.f32.xlu1 %v18923_v16 }
 0xa6a   : > { %v34850_v48 = vpop.xlane.xlu0 %19591 }
 0xa6b   : > { %37572 = vst [vmem:[#allocation130_spill] sm:$0xff] %v34850_v48 }
 0xa6d   : > { %18930 = vadd.xlane.f32.xlu1 %v18929_v58 }
 0xa6e   : > { %v34854_v26 = vpop.xlane.xlu0 %19603 }
 0xa6f   : > { %37574 = vst [vmem:[#allocation81_spill] sm:$0xff] %v34854_v26 }
 0xa71   : > { %18936 = vadd.xlane.f32.xlu1 %v18935_v52 }
 0xa73   : > { %v34858_v44 = vpop.xlane.xlu0 %19615 }
 0xa74   : > { %37576 = vst [vmem:[#allocation122_spill] sm:$0xff] %v34858_v44 }
 0xa75   : > { %v34864_v3 = vpop.xlane.xlu1 %19582 }
 0xa76   : > { %37577 = vst [vmem:[#allocation120_spill] sm:$0xff] %v34864_v3 }
 0xa78   : > { %v34860_v4 = vpop.xlane.xlu0 %19537 }
 0xa7c   : > { %v34862_v28 = vpop.xlane.xlu0 %19549  ;;  %v25550_v9 = vpop.f32.mrb[208].mxu0 }
 0xa7d   : > { %v19762_v53 = vpop.f32.mrb[209].mxu0 }
 0xa7f   : > { %v34868_v19 = vpop.xlane.xlu1 %19594 }
 0xa80   : > { %37579 = vst [vmem:[#allocation19_spill] sm:$0xff] %v34868_v19 }
 0xa81   : > { %v34866_v11 = vpop.xlane.xlu0 %19561 }
 0xa82   : > { %37578 = vst [vmem:[#allocation15_spill] sm:$0xff] %v34866_v11 }
 0xa86   : > { %v34870_v41 = vpop.xlane.xlu0 %19573 }
 0xa87   : > { %37580 = vst [vmem:[#allocation114_spill] sm:$0xff] %v34870_v41 }
 0xa88   : > { %v34872_v36 = vpop.xlane.xlu1 %19606 }
 0xa89   : > { %37581 = vst [vmem:[#allocation110_spill] sm:$0xff] %v34872_v36 }
 0xa8b   : > { %v34874_v40 = vpop.xlane.xlu0 %19585 }
 0xa8c   : > { %37582 = vst [vmem:[#allocation89_spill] sm:$0xff] %v34874_v40 }
 0xa8d   : > { %v34876_v39 = vpop.xlane.xlu1 %19618  ;;  %v25557_v24 = vpop.f32.mrb[176].mxu1 }
 0xa8e   : > { %37583 = vst [vmem:[#allocation112_spill] sm:$0xff] %v34876_v39  ;;  %v19843_v37 = vpop.f32.mrb[177].mxu1 }
 0xa90   : > { %v18940_v31 = vpop.xlane.xlu0 %18939 }
 0xa91   : > { %v25564_v38 = vpop.f32.mrb[210].mxu0 }
 0xa92   : > { %v34878_v7 = vpop.xlane.xlu1 %19534  ;;  %v21258_v62 = vcombine.low %v25550_v9, %v25564_v38  ;;  %v21259_v54 = vcombine.high %v25550_v9, %v25564_v38  ;;  %v19924_v50 = vpop.f32.mrb[211].mxu0 }
 0xa93   : > { %v20986_v47 = vcombine.low %v19762_v53, %v19924_v50  ;;  %v20987_v49 = vcombine.high %v19762_v53, %v19924_v50 }
 0xa94   : > { %v18946_v29 = vpop.xlane.xlu0 %18945  ;;  %v34883_v55 = vrot.slane %v21258_v62, %v37584_v17  ;;  %v34886_v14 = vrot.slane %v21259_v54, %v37584_v17 }
 0xa95   : > { %v25571_v63 = vpop.f32.mrb[178].mxu1  ;;  %v34895_v5 = vrot.slane %v20986_v47, %v37584_v17  ;;  %v34898_v10 = vrot.slane %v20987_v49, %v37584_v17 }
 0xa96   : > { %v34880_v8 = vpop.xlane.xlu1 %19540  ;;  %v21274_v46 = vcombine.low %v25557_v24, %v25571_v63  ;;  %v21275_v35 = vcombine.high %v25557_v24, %v25571_v63  ;;  %v20005_v13 = vpop.f32.mrb[179].mxu1 }
 0xa97   : > { %v21002_v1 = vcombine.low %v19843_v37, %v20005_v13  ;;  %v21003_v32 = vcombine.high %v19843_v37, %v20005_v13 }
 0xa98   : > { %v18952_v60 = vpop.xlane.xlu0 %18951  ;;  %v34889_v12 = vrot.slane %v21274_v46, %v37584_v17  ;;  %v34892_v45 = vrot.slane %v21275_v35, %v37584_v17 }
 0xa99   : > { %v34901_v21 = vrot.slane %v21002_v1, %v37584_v17  ;;  %v34904_v56 = vrot.slane %v21003_v32, %v37584_v17  ;;  %v25578_v20 = vpop.f32.mrb[212].mxu0  ;;  %v19122_v9 = vcombine.low %v18940_v31, %v18952_v60  ;;  %v19123_v24 = vcombine.high %v18940_v31, %v18952_v60 }
 0xa9a   : > { %v34906_v57 = vpop.xlane.xlu1 %19546  ;;  %v20086_v51 = vpop.f32.mrb[213].mxu0 }
 0xa9b   : > { %v19130_v35 = vrot.slane %v19122_v9, %v37584_v17  ;;  %v34935_v32 = vrot.slane %v19123_v24, %v37584_v17 }
 0xa9c   : > { %v18958_v42 = vpop.xlane.xlu0 %18957 }
 0xa9d   : > { %v25585_v16 = vpop.f32.mrb[180].mxu1  ;;  %v19138_v22 = vcombine.low %v18946_v29, %v18958_v42  ;;  %v19139_v37 = vcombine.high %v18946_v29, %v18958_v42 }
 0xa9e   : > { %v34924_v2 = vpop.xlane.xlu1 %19558  ;;  %v20167_v58 = vpop.f32.mrb[181].mxu1 }
 0xa9f   : > { %v19146_v47 = vrot.slane %v19138_v22, %v37584_v17  ;;  %v34938_v31 = vrot.slane %v19139_v37, %v37584_v17 }
 0xaa0   : > { %v34926_v52 = vpop.xlane.xlu0 %18963 }
 0xaa1   : > { %v25592_v53 = vpop.f32.mrb[214].mxu0  ;;  %v19186_v22 = vcombine.low %v19130_v35, %v19146_v47 }
 0xaa2   : > { %v34928_v38 = vpop.xlane.xlu1 %19570  ;;  %v21290_v62 = vcombine.low %v25578_v20, %v25592_v53  ;;  %v21291_v54 = vcombine.high %v25578_v20, %v25592_v53  ;;  %v20248_v50 = vpop.f32.mrb[215].mxu0  ;;  %v19187_v53 = vcombine.high %v19130_v35, %v19146_v47 }
 0xaa3   : > { %v21018_v63 = vcombine.low %v20086_v51, %v20248_v50  ;;  %v21019_v46 = vcombine.high %v20086_v51, %v20248_v50  ;;  %v19194_v44 = vrot.slane %v19186_v22, %v37589_v30 }
 0xaa4   : > { %v18970_v49 = vpop.xlane.xlu0 %18969  ;;  %v34945_v59 = vrot.slane %v21290_v62, %v37584_v17  ;;  %v34948_v24 = vrot.slane %v21291_v54, %v37584_v17  ;;  %v34998_v26 = vrot.slane %v19187_v53, %v37589_v30 }
 0xaa5   : > { %v25599_v13 = vpop.f32.mrb[182].mxu1  ;;  %v34932_v1 = vpop.f32.mrb[216].mxu0 }
 0xaa6   : > { %v34940_v29 = vpop.xlane.xlu1 %19552  ;;  %v21306_v60 = vcombine.low %v25585_v16, %v25599_v13  ;;  %v21307_v20 = vcombine.high %v25585_v16, %v25599_v13  ;;  %v20329_v42 = vpop.f32.mrb[183].mxu1  ;;  %37585 = vst [vmem:[#allocation30_spill] sm:$0xff] %v34945_v59  ;;  %37586 = vst [vmem:[#allocation40_spill] sm:$0xff] %v34948_v24  ;;  %v34957_v16 = vrot.slane %v21018_v63, %v37584_v17 }
 0xaa7   : > { %v21034_v34 = vcombine.low %v20167_v58, %v20329_v42  ;;  %v21035_v51 = vcombine.high %v20167_v58, %v20329_v42  ;;  %v34942_v50 = vpop.f32.mrb[217].mxu0  ;;  %v34960_v58 = vrot.slane %v21019_v46, %v37584_v17  ;;  %v19202_v46 = vcombine.low %v34935_v32, %v34938_v31 }
 0xaa8   : > { %v18976_v9 = vpop.xlane.xlu0 %18975  ;;  %v34951_v37 = vrot.slane %v21306_v60, %v37584_v17  ;;  %v34954_v23 = vrot.slane %v21307_v20, %v37584_v17  ;;  %v19203_v63 = vcombine.high %v34935_v32, %v34938_v31 }
 0xaa9   : > { %v34963_v47 = vrot.slane %v21034_v34, %v37584_v17  ;;  %v34966_v62 = vrot.slane %v21035_v51, %v37584_v17  ;;  %v25613_v54 = vpop.f32.mrb[184].mxu1  ;;  %v19154_v20 = vcombine.low %v34926_v52, %v18976_v9  ;;  %v19155_v42 = vcombine.high %v34926_v52, %v18976_v9 }
 0xaaa   : > { %37587 = vst [vmem:[#allocation138_spill] sm:$0xff] %v34951_v37  ;;  %37588 = vst [vmem:[#allocation11_spill] sm:$0xff] %v34954_v23  ;;  %v34968_v35 = vpop.xlane.xlu1 %19564  ;;  %v25620_v34 = vpop.f32.mrb[218].mxu0 }
 0xaab   : > { %v20491_v25 = vpop.f32.mrb[185].mxu1  ;;  %v34984_v6 = vpop.f32.mrb[219].mxu0  ;;  %v21394_v33 = vcombine.low %v34932_v1, %v25620_v34  ;;  %v21395_v52 = vcombine.high %v34932_v1, %v25620_v34  ;;  %v19169_v34 = vrot.slane %v19155_v42, %v37584_v17 }
 0xaac   : > { %v18982_v60 = vpop.xlane.xlu0 %18981  ;;  %v21122_v51 = vcombine.low %v34942_v50, %v34984_v6  ;;  %v21123_v13 = vcombine.high %v34942_v50, %v34984_v6 }
 0xaad   : > { %v19170_v9 = vcombine.low %v18970_v49, %v18982_v60  ;;  %v19171_v27 = vcombine.high %v18970_v49, %v18982_v60  ;;  %v19162_v60 = vrot.slane %v19154_v20, %v37584_v17  ;;  %v35017_v42 = vrot.slane %v21394_v33, %v37584_v17 }
 0xaae   : > { %v35004_v1 = vpop.xlane.xlu1 %19576  ;;  %v25627_v49 = vpop.f32.mrb[186].mxu1  ;;  %v35058_v23 = vrot.slane %v21122_v51, %v37584_v17  ;;  %v35074_v51 = vrot.slane %v21123_v13, %v37584_v17 }
 0xaaf   : > { %v19178_v6 = vrot.slane %v19170_v9, %v37584_v17  ;;  %v19185_v22 = vrot.slane %v19171_v27, %v37584_v17  ;;  %v35010_v50 = vpop.f32.mrb[220].mxu0  ;;  %v20653_v53 = vpop.f32.mrb[187].mxu1  ;;  %v21410_v40 = vcombine.low %v25613_v54, %v25627_v49  ;;  %v21411_v43 = vcombine.high %v25613_v54, %v25627_v49 }
 0xab0   : > { %v35012_v48 = vpop.xlane.xlu0 %18897  ;;  %v21138_v39 = vcombine.low %v20491_v25, %v20653_v53  ;;  %v21139_v32 = vcombine.high %v20491_v25, %v20653_v53  ;;  %v35014_v31 = vpop.f32.mrb[221].mxu0  ;;  %v35022_v27 = vrot.slane %v21395_v52, %v37584_v17  ;;  %v19210_v49 = vrot.slane %v19202_v46, %v37589_v30 }
 0xab1   : > { %v19218_v36 = vcombine.low %v19162_v60, %v19178_v6  ;;  %v19219_v19 = vcombine.high %v19162_v60, %v19178_v6  ;;  %v19234_v20 = vcombine.low %v19169_v34, %v19185_v22  ;;  %v19235_v9 = vcombine.high %v19169_v34, %v19185_v22 }
 0xab2   : > { %v35019_v3 = vpop.xlane.xlu1 %19588  ;;  %37591 = vst [vmem:[#allocation45_spill] sm:$0xff] %v35022_v27  ;;  %v35025_v41 = vrot.slane %v21410_v40, %v37584_v17  ;;  %v35028_v54 = vrot.slane %v21411_v43, %v37584_v17  ;;  %v35030_v25 = vpop.f32.mrb[188].mxu1  ;;  %v35054_v61 = vrot.slane %v21138_v39, %v37584_v17  ;;  %v35063_v46 = vrot.slane %v21139_v32, %v37584_v17 }
 0xab3   : > { %37590 = vst [vmem:[#allocation148_spill] sm:$0xff] %v35019_v3  ;;  %v19226_v60 = vrot.slane %v19218_v36, %v37589_v30  ;;  %v19233_v33 = vrot.slane %v19219_v19, %v37589_v30  ;;  %v19242_v34 = vrot.slane %v19234_v20, %v37589_v30  ;;  %v35036_v6 = vpop.f32.mrb[222].mxu0  ;;  %v35038_v52 = vpop.f32.mrb[189].mxu1  ;;  %v19249_v43 = vrot.slane %v19235_v9, %v37589_v30 }
 0xab4   : > { %37592 = vst [vmem:[#allocation119_spill] sm:$0xff] %v35028_v54  ;;  %v35040_v22 = vpop.xlane.xlu0 %18903  ;;  %v35050_v36 = vpop.f32.mrb[223].mxu0  ;;  %v19217_v9 = vrot.slane %v19203_v63, %v37589_v30 }
 0xab5   : > { %v19250_v53 = vcombine.low %v19194_v44, %v19226_v60  ;;  %v19251_v20 = vcombine.high %v19194_v44, %v19226_v60  ;;  %v19252_v3 = vcombine.low %v34998_v26, %v19233_v33  ;;  %v19253_v19 = vcombine.high %v34998_v26, %v19233_v33 }
 0xab6   : > { %v35060_v40 = vpop.xlane.xlu1 %18891  ;;  %v19254_v24 = vcombine.low %v19210_v49, %v19242_v34  ;;  %v37594_v26 = vcombine.low %v34895_v5, %v34901_v21  ;;  %v19255_v33 = vcombine.high %v19210_v49, %v19242_v34  ;;  %v19256_v49 = vcombine.low %v19217_v9, %v19249_v43 }
 0xab7   : > { %v19627_v44 = vadd.f32 %v34878_v7, %v19250_v53  ;;  %v19629_v60 = vadd.f32 %v34880_v8, %v19251_v20  ;;  %v35068_v11 = vpop.f32.mrb[190].mxu1  ;;  %v35070_v39 = vpop.f32.mrb[224].mxu0  ;;  %v37595_v7 = vcombine.high %v34895_v5, %v34901_v21  ;;  %v19631_v63 = vadd.f32 %v34906_v57, %v19252_v3 }
 0xab8   : > { %37593 = vst [vmem:[#allocation52_spill] sm:$0xff] %v35070_v39  ;;  %v18910_v54 = vpop.xlane.xlu0 %18909  ;;  %v35076_v27 = vpop.f32.mrb[191].mxu1  ;;  %v35082_v32 = vrot.slane %v37594_v26, %v37589_v30  ;;  %v19257_v3 = vcombine.high %v19217_v9, %v19249_v43  ;;  %v19633_v57 = vadd.f32 %v34940_v29, %v19253_v19  ;;  %v19635_v34 = vadd.f32 %v34924_v2, %v19254_v24 }
 0xab9   : > { %v35088_v8 = vrot.slane %v37595_v7, %v37589_v30  ;;  %26776 = vrcp.f32 %v19627_v44  ;;  %v35093_v53 = vpop.f32.mrb[225].mxu0  ;;  %v18986_v44 = vcombine.low %v35060_v40, %v35040_v22  ;;  %v21426_v7 = vcombine.low %v35010_v50, %v35036_v6 }
 0xaba   : > { %26778 = vrcp.f32 %v19629_v60  ;;  %v35101_v21 = vpop.xlane.xlu1 %19600  ;;  %v19002_v60 = vcombine.low %v35012_v48, %v18910_v54  ;;  %v21427_v26 = vcombine.high %v35010_v50, %v35036_v6  ;;  %v19637_v43 = vadd.f32 %v34968_v35, %v19255_v33 }
 0xabb   : > { %37596 = vst [vmem:[#allocation113_spill] sm:$0xff] %v35101_v21  ;;  %v19003_v29 = vcombine.high %v35012_v48, %v18910_v54  ;;  %v21154_v2 = vcombine.low %v35014_v31, %v35050_v36  ;;  %v21155_v24 = vcombine.high %v35014_v31, %v35050_v36  ;;  %26780 = vrcp.f32 %v19631_v63 }
 0xabc   : > { %v35112_v5 = vpop.xlane.xlu0 %18915  ;;  %v35114_v20 = vpop.f32.mrb[192].mxu1  ;;  %v37598_v50 = vcombine.low %v34957_v16, %v34963_v47  ;;  %v37599_v48 = vcombine.low %v34898_v10, %v34904_v56  ;;  %v37600_v31 = vcombine.high %v34898_v10, %v34904_v56  ;;  %v19639_v33 = vadd.f32 %v34928_v38, %v19256_v49 }
 0xabd   : > { %v35122_v19 = vpop.f32.mrb[226].mxu0  ;;  %v21683_v9 = vpop.f32.mrb[193].mxu1  ;;  %v35144_v63 = vadd.f32 %v35004_v1, %v19257_v3  ;;  %26782 = vrcp.f32 %v19633_v57  ;;  %v35155_v10 = vrot.slane %v18986_v44, %v37584_v17  ;;  %v35158_v56 = vrot.slane %v19002_v60, %v37584_v17 }
 0xabe   : > { %v35124_v13 = vpop.xlane.xlu1 %19612  ;;  %v21090_v6 = vrot.slane %v37598_v50, %v37589_v30  ;;  %v21764_v35 = vpop.f32.mrb[227].mxu0  ;;  %v35134_v54 = vrot.slane %v37599_v48, %v37589_v30  ;;  %v35140_v36 = vrot.slane %v37600_v31, %v37589_v30  ;;  %v37601_v50 = vcombine.high %v34957_v16, %v34963_v47 }
 0xabf   : > { %37597 = vst [vmem:[#allocation14_spill] sm:$0xff] %v35124_v13  ;;  %26784 = vrcp.f32 %v19635_v34  ;;  %v35165_v49 = vrot.slane %v19003_v29, %v37584_v17  ;;  %v21442_v16 = vcombine.low %v35030_v25, %v35068_v11  ;;  %v21443_v47 = vcombine.high %v35030_v25, %v35068_v11 }
 0xac0   : > { %v35150_v13 = vrot.slane %v37601_v50, %v37589_v30  ;;  %v35160_v38 = vpop.xlane.xlu0 %18921  ;;  %v35162_v1 = vpop.f32.mrb[194].mxu1  ;;  %26786 = vrcp.f32 %v19637_v43  ;;  %v35174_v34 = vrot.slane %v21426_v7, %v37584_v17  ;;  %v35177_v44 = vrot.slane %v21427_v26, %v37584_v17 }
 0xac1   : > { %v35171_v3 = vpop.f32.mrb[228].mxu0  ;;  %v21845_v57 = vpop.f32.mrb[195].mxu1  ;;  %v21170_v60 = vcombine.low %v35038_v52, %v35076_v27  ;;  %v21171_v43 = vcombine.high %v35038_v52, %v35076_v27  ;;  %v21162_v25 = vrot.slane %v21154_v2, %v37584_v17  ;;  %v35189_v50 = vrot.slane %v21442_v16, %v37584_v17 }
 0xac2   : > { %37602 = vst [vmem:[#allocation149_spill] sm:$0xff] %v35177_v44  ;;  %v35183_v29 = vpop.xlane.xlu1 %18942  ;;  %v35185_v31 = vpop.f32.mrb[229].mxu0  ;;  %v35192_v7 = vrot.slane %v21443_v47, %v37584_v17  ;;  %v21114_v26 = vcombine.low %v35082_v32, %v21090_v6  ;;  %v35196_v21 = vrot.slane %v21155_v24, %v37584_v17  ;;  %v21115_v39 = vcombine.high %v35082_v32, %v21090_v6 }
 0xac3   : > { %v26777_v11 = vpop.eup %26776  ;;  %37603 = vst [vmem:[#allocation115_spill] sm:$0xff] %v35189_v50  ;;  %v21178_v27 = vrot.slane %v21170_v60, %v37584_v17  ;;  %v35200_v52 = vrot.slane %v21171_v43, %v37584_v17  ;;  %26788 = vrcp.f32 %v19639_v33 }
 0xac4   : > { %37604 = vst [vmem:[#allocation71_spill] sm:$0xff] %v35192_v7  ;;  %v26779_v48 = vpop.eup %26778  ;;  %22865 = vperm.xlu1 %26454, %v26777_v11   ;;  %v35203_v2 = vpop.xlane.xlu0 %18927  ;;  %v35222_v24 = vadd.f32 %v35093_v53, %v21114_v26  ;;  %v35224_v47 = vadd.f32 %v21683_v9, %v21115_v39  ;;  %v37610_v39 = vcombine.high %v35058_v23, %v35054_v61  ;;  %26790 = vrcp.f32 %v35144_v63 }
 0xac5   : > { %22875 = vperm.xlu0 %26455, %v26779_v48   ;;  %v25697_v43 = vpop.f32.mrb[196].mxu1  ;;  %v21218_v18 = vcombine.low %v21162_v25, %v21178_v27  ;;  %v21219_v37 = vcombine.high %v21162_v25, %v21178_v27  ;;  %v21234_v32 = vcombine.low %v35196_v21, %v35200_v52  ;;  %v21235_v6 = vcombine.high %v35196_v21, %v35200_v52  ;;  %v26781_v60 = vpop.eup %26780 }
 0xac6   : > { %v35217_v11 = vpop.xlane.xlu1 %18948  ;;  %v35219_v16 = vpop.f32.mrb[230].mxu0  ;;  %37605 = vst [vmem:[#allocation136_spill] sm:$0xff] %v35222_v24  ;;  %37606 = vst [vmem:[#allocation91_spill] sm:$0xff] %v35224_v47  ;;  %v21116_v48 = vcombine.low %v35088_v8, %v35150_v13  ;;  %v37607_v21 = vcombine.low %v35058_v23, %v35054_v61  ;;  %v21201_v53 = vrot.slane %v37610_v39, %v37589_v30 }
 0xac7   : > { %v22007_v25 = vpop.f32.mrb[197].mxu1  ;;  %v35228_v27 = vpop.f32.mrb[231].mxu0  ;;  %v35237_v33 = vrot.slane %v21218_v18, %v37589_v30  ;;  %v21233_v9 = vrot.slane %v21219_v37, %v37589_v30  ;;  %v37612_v24 = vcombine.low %v35074_v51, %v35063_v46  ;;  %v21117_v18 = vcombine.high %v35088_v8, %v35150_v13 }
 0xac8   : > { %v35234_v52 = vrot.slane %v37607_v21, %v37589_v30  ;;  %v26783_v26 = vpop.eup %26782  ;;  %v35244_v47 = vadd.f32 %v21764_v35, %v21116_v48  ;;  %v21242_v21 = vrot.slane %v21234_v32, %v37589_v30  ;;  %v18934_v44 = vpop.xlane.xlu0 %18933  ;;  %v19018_v37 = vcombine.low %v35112_v5, %v35203_v2 }
 0xac9   : > { %37609 = vst [vmem:[#allocation85_spill] sm:$0xff] %v35237_v33  ;;  %v21210_v7 = vrot.slane %v37612_v24, %v37589_v30  ;;  %22885 = vperm.xlu0 %26455, %v26781_v60   ;;  %v26785_v59 = vpop.eup %26784  ;;  %v21252_v23 = vcombine.low %v21201_v53, %v21233_v9  ;;  %v21253_v35 = vcombine.high %v21201_v53, %v21233_v9 }
 0xaca   : > { %37608 = vst [vmem:[#allocation141_spill] sm:$0xff] %v35234_v52  ;;  %37611 = vst [vmem:[#allocation74_spill] sm:$0xff] %v35244_v47  ;;  %v21251_v61 = vcombine.high %v35234_v52, %v35237_v33  ;;  %v35257_v48 = vpop.xlane.xlu1 %18954  ;;  %v35259_v39 = vpop.f32.mrb[198].mxu1  ;;  %v19050_v32 = vcombine.low %v35155_v10, %v35158_v56  ;;  %v35263_v13 = vadd.f32 %v21845_v57, %v21117_v18 }
 0xacb   : > { %v26787_v24 = vpop.eup %26786  ;;  %v21254_v8 = vcombine.low %v21210_v7, %v21242_v21  ;;  %v37614_v60 = vcombine.low %v34960_v58, %v34966_v62  ;;  %v35269_v52 = vpop.f32.mrb[232].mxu0  ;;  %v35277_v9 = vadd.f32 %v35122_v19, %v21252_v23  ;;  %v19019_v50 = vcombine.high %v35112_v5, %v35203_v2 }
 0xacc   : > { %37613 = vst [vmem:[#allocation140_spill] sm:$0xff] %v35263_v13  ;;  %v35271_v33 = vpop.f32.mrb[199].mxu1  ;;  %v35274_v53 = vadd.f32 %v35114_v20, %v21251_v61  ;;  %v35282_v57 = vadd.f32 %v35162_v1, %v21253_v35  ;;  %v35284_v18 = vpop.f32.mrb[233].mxu0  ;;  %v19034_v61 = vcombine.low %v35160_v38, %v18934_v44  ;;  %v19026_v19 = vrot.slane %v19018_v37, %v37584_v17 }
 0xacd   : > { %v21106_v47 = vrot.slane %v37614_v60, %v37589_v30  ;;  %v19051_v60 = vcombine.high %v35155_v10, %v35158_v56  ;;  %v35289_v13 = vadd.f32 %v35171_v3, %v21254_v8  ;;  %22895 = vperm.xlu0 %26455, %v26783_v26   ;;  %v19035_v5 = vcombine.high %v35160_v38, %v18934_v44  ;;  %v26789_v35 = vpop.eup %26788 }
 0xace   : > { %v21255_v2 = vcombine.high %v21210_v7, %v21242_v21  ;;  %v37615_v1 = vcombine.high %v35074_v51, %v35063_v46  ;;  %v35301_v10 = vpop.xlane.xlu1 %18960  ;;  %v19042_v3 = vrot.slane %v19034_v61, %v37584_v17  ;;  %v35308_v26 = vrot.slane %v21235_v6, %v37589_v30 }
 0xacf   : > { %v21118_v20 = vcombine.low %v35134_v54, %v21106_v47  ;;  %v21119_v37 = vcombine.high %v35134_v54, %v21106_v47  ;;  %v35311_v38 = vpop.f32.mrb[200].mxu1  ;;  %v35313_v44 = vpop.f32.mrb[234].mxu0  ;;  %v19033_v46 = vrot.slane %v19019_v50, %v37584_v17  ;;  %v19049_v51 = vrot.slane %v19035_v5, %v37584_v17 }
 0xad0   : > { %v35299_v23 = vrot.slane %v37615_v1, %v37589_v30  ;;  %v35317_v7 = vadd.f32 %v25697_v43, %v21255_v2  ;;  %v35325_v6 = vpop.f32.mrb[201].mxu1  ;;  %v19082_v54 = vcombine.low %v19026_v19, %v19042_v3  ;;  %v19083_v47 = vcombine.high %v19026_v19, %v19042_v3  ;;  %v35331_v50 = vpop.f32.mrb[235].mxu0 }
 0xad1   : > { %v35304_v56 = vadd.f32 %v35185_v31, %v21118_v20  ;;  %v37618_v31 = vcombine.high %v34960_v58, %v34966_v62  ;;  %v35329_v20 = vadd.f32 %v22007_v25, %v21119_v37  ;;  %22905 = vperm.xlu0 %26455, %v26785_v59   ;;  %v37620_v58 = vcombine.high %v35060_v40, %v35040_v22 }
 0xad2   : > { %37617 = vst [vmem:[#allocation33_spill] sm:$0xff] %v35317_v7  ;;  %v21256_v8 = vcombine.low %v35299_v23, %v35308_v26  ;;  %v19058_v43 = vrot.slane %v19050_v32, %v37589_v30  ;;  %v35341_v19 = vpop.xlane.xlu1 %18966  ;;  %v19090_v25 = vrot.slane %v19082_v54, %v37589_v30  ;;  %v19097_v59 = vrot.slane %v19083_v47, %v37589_v30 }
 0xad3   : > { %37616 = vst [vmem:[#allocation55_spill] sm:$0xff] %v35304_v56  ;;  %v35323_v21 = vrot.slane %v37618_v31, %v37589_v30  ;;  %37619 = vst [vmem:[#allocation144_spill] sm:$0xff] %v35329_v20  ;;  %v19001_v62 = vrot.slane %v37620_v58, %v37584_v17  ;;  %v19098_v5 = vcombine.low %v19033_v46, %v19049_v51 }
 0xad4   : > { %v35346_v2 = vadd.f32 %v35219_v16, %v21256_v8  ;;  %v19065_v63 = vrot.slane %v19051_v60, %v37589_v30  ;;  %v35353_v32 = vpop.f32.mrb[202].mxu1  ;;  %v19099_v3 = vcombine.high %v19033_v46, %v19049_v51  ;;  %v19114_v37 = vcombine.low %v19058_v43, %v19090_v25  ;;  %v35356_v54 = vpop.f32.mrb[236].mxu0 }
 0xad5   : > { %v21120_v61 = vcombine.low %v35140_v36, %v35323_v21  ;;  %v19066_v22 = vcombine.low %v19001_v62, %v35165_v49  ;;  %v19067_v1 = vcombine.high %v19001_v62, %v35165_v49  ;;  %v19115_v31 = vcombine.high %v19058_v43, %v19090_v25  ;;  %22915 = vperm.xlu0 %26455, %v26787_v24   ;;  %v35358_v47 = vpop.f32.mrb[203].mxu1  ;;  %v35366_v58 = vpop.f32.mrb[237].mxu0 }
 0xad6   : > { %37621 = vst [vmem:[#allocation76_spill] sm:$0xff] %v35346_v2  ;;  %v19394_v16 = vcombine.low %v35183_v29, %v35257_v48  ;;  %v19116_v60 = vcombine.low %v19065_v63, %v19097_v59  ;;  %v35364_v8 = vpop.xlane.xlu1 %18972  ;;  %v35369_v49 = vrot.slane %v19098_v5, %v37589_v30  ;;  %v19117_v46 = vcombine.high %v19065_v63, %v19097_v59  ;;  %v37636_v2 = vld [vmem:[#allocation63_spill] sm:$0xff] }
 0xad7   : > { %v35351_v40 = vadd.f32 %v35228_v27, %v21120_v61  ;;  %v19410_v27 = vcombine.low %v35217_v11, %v35301_v10  ;;  %v19626_v24 = vadd.f32 %v34832_v15, %v19114_v37  ;;  %v19628_v51 = vadd.f32 %v34860_v4, %v19115_v31 }
 0xad8   : > { %v37623_v62 = vcombine.low %v34883_v55, %v34889_v12  ;;  %v37624_v61 = vcombine.high %v34883_v55, %v34889_v12  ;;  %v37625_v5 = vcombine.low %v34886_v14, %v34892_v45  ;;  %v35389_v15 = vpop.f32.mrb[204].mxu1  ;;  %v37626_v4 = vcombine.high %v34886_v14, %v34892_v45 }
 0xad9   : > { %37622 = vst [vmem:[#allocation34_spill] sm:$0xff] %v35351_v40  ;;  %v19074_v37 = vrot.slane %v19066_v22, %v37589_v30  ;;  %v35399_v55 = vrot.slane %v19067_v1, %v37589_v30  ;;  %v35402_v12 = vrot.slane %v19099_v3, %v37589_v30  ;;  %26792 = vrcp.f32 %v19626_v24  ;;  %22925 = vperm.xlu0 %26455, %v26789_v35   ;;  %v35404_v31 = vpop.f32.mrb[238].mxu0 }
 0xada   : > { %v21330_v43 = vrot.slane %v37623_v62, %v37589_v30  ;;  %v35381_v25 = vrot.slane %v37624_v61, %v37589_v30  ;;  %v35387_v59 = vrot.slane %v37625_v5, %v37589_v30  ;;  %v35395_v63 = vrot.slane %v37626_v4, %v37589_v30  ;;  %v35406_v62 = vpop.f32.mrb[205].mxu1  ;;  %v35414_v22 = vpop.xlane.xlu1 %18978 }
 0xadb   : > { %v35409_v61 = vrot.slane %v19394_v16, %v37584_v17  ;;  %v19630_v14 = vadd.f32 %v34836_v0, %v19116_v60  ;;  %26794 = vrcp.f32 %v19628_v51  ;;  %v21257_v45 = vcombine.high %v35299_v23, %v35308_v26  ;;  %v35416_v1 = vpop.f32.mrb[239].mxu0  ;;  %v26791_v16 = vpop.eup %26790  ;;  %v37629_v60 = vld [vmem:[#allocation115_spill] sm:$0xff] }
 0xadc   : > { %v19118_v3 = vcombine.low %v19074_v37, %v35369_v49  ;;  %v19119_v35 = vcombine.high %v19074_v37, %v35369_v49  ;;  %v19632_v24 = vadd.f32 %v34862_v28, %v19117_v46  ;;  %v35422_v5 = vrot.slane %v19410_v27, %v37584_v17  ;;  %v35437_v49 = vpop.f32.mrb[206].mxu1  ;;  %v37632_v46 = vld [vmem:[#allocation138_spill] sm:$0xff] }
 0xadd   : > { %v35425_v0 = vadd.f32 %v35259_v39, %v21257_v45  ;;  %v37628_v23 = vcombine.low %v35017_v42, %v35025_v41  ;;  %v37630_v51 = vcombine.low %v35174_v34, %v37629_v60  ;;  %v21121_v28 = vcombine.high %v35140_v36, %v35323_v21  ;;  %v37631_v39 = vld [vmem:[#allocation30_spill] sm:$0xff]  ;;  %22935 = vperm.xlu0 %26455, %v26791_v16   ;;  %v35453_v21 = vpop.f32.mrb[207].mxu1 }
 0xade   : > { %v19120_v27 = vcombine.low %v35399_v55, %v35402_v12  ;;  %v37633_v37 = vcombine.low %v37631_v39, %v37632_v46  ;;  %26796 = vrcp.f32 %v19630_v14  ;;  %v19634_v7 = vadd.f32 %v37636_v2, %v19118_v3 }
 0xadf   : > { %37627 = vst [vmem:[#allocation75_spill] sm:$0xff] %v35425_v0  ;;  %v21466_v26 = vrot.slane %v37628_v23, %v37589_v30  ;;  %v21498_v4 = vrot.slane %v37630_v51, %v37589_v30  ;;  %v37634_v23 = vcombine.high %v35017_v42, %v35025_v41  ;;  %v37635_v51 = vcombine.high %v35174_v34, %v37629_v60  ;;  %v37641_v60 = vld [vmem:[#allocation149_spill] sm:$0xff] }
 0xae0   : > { %v21362_v45 = vrot.slane %v37633_v37, %v37589_v30  ;;  %v35456_v56 = vadd.f32 %v35271_v33, %v21121_v28  ;;  %v35458_v37 = vpop.xlane.xlu1 %18984  ;;  %26798 = vrcp.f32 %v19632_v24  ;;  %v37637_v33 = vcombine.high %v37631_v39, %v37632_v46 }
 0xae1   : > { %v21473_v40 = vrot.slane %v37634_v23, %v37589_v30  ;;  %v21505_v36 = vrot.slane %v37635_v51, %v37589_v30  ;;  %v21522_v20 = vcombine.low %v21466_v26, %v21498_v4  ;;  %v21523_v0 = vcombine.high %v21466_v26, %v21498_v4  ;;  %v37642_v4 = vld [vmem:[#allocation71_spill] sm:$0xff] }
 0xae2   : > { %v21386_v41 = vcombine.low %v21330_v43, %v21362_v45  ;;  %v21387_v23 = vcombine.high %v21330_v43, %v21362_v45  ;;  %v21369_v14 = vrot.slane %v37637_v33, %v37589_v30  ;;  %v37643_v28 = vcombine.low %v37641_v60, %v37642_v4 }
 0xae3   : > { %v21524_v42 = vcombine.low %v21473_v40, %v21505_v36  ;;  %v35462_v34 = vadd.f32 %v35269_v52, %v21522_v20  ;;  %v35465_v16 = vadd.f32 %v35311_v38, %v21523_v0  ;;  %v21525_v3 = vcombine.high %v21473_v40, %v21505_v36  ;;  %v37638_v38 = vld [vmem:[#allocation45_spill] sm:$0xff]  ;;  %v37639_v20 = vld [vmem:[#allocation119_spill] sm:$0xff]  ;;  %v26793_v46 = vpop.eup %26792  ;;  %v37645_v36 = vld [vmem:[#allocation40_spill] sm:$0xff] }
 0xae4   : > { %v35472_v26 = vadd.f32 %v35284_v18, %v21386_v41  ;;  %v35478_v43 = vadd.f32 %v35325_v6, %v21387_v23  ;;  %v21388_v52 = vcombine.low %v35381_v25, %v21369_v14  ;;  %v37640_v24 = vcombine.low %v37638_v38, %v37639_v20  ;;  %v37644_v40 = vld [vmem:[#allocation15_spill] sm:$0xff]  ;;  %22860 = vperm.xlu0 %26455, %v26793_v46  }
 0xae5   : > { %v35475_v2 = vadd.f32 %v35313_v44, %v21524_v42  ;;  %v21514_v18 = vrot.slane %v37643_v28, %v37589_v30  ;;  %v21389_v39 = vcombine.high %v35381_v25, %v21369_v14  ;;  %v35490_v44 = vpop.xlane.xlu1 %19624  ;;  %v19121_v6 = vcombine.high %v35399_v55, %v35402_v12  ;;  %v37646_v41 = vld [vmem:[#allocation11_spill] sm:$0xff]  ;;  %v26795_v33 = vpop.eup %26794 }
 0xae6   : > { %v21482_v0 = vrot.slane %v37640_v24, %v37589_v30  ;;  %v19636_v45 = vadd.f32 %v37644_v40, %v19119_v35  ;;  %v35496_v51 = vadd.f32 %v35353_v32, %v21525_v3  ;;  %v37647_v42 = vcombine.low %v37645_v36, %v37646_v41  ;;  %22870 = vperm.xlu1 %26454, %v26795_v33  }
 0xae7   : > { %v35503_v24 = vadd.f32 %v35331_v50, %v21388_v52  ;;  %v35506_v14 = vadd.f32 %v35358_v47, %v21389_v39  ;;  %26800 = vrcp.f32 %v19634_v7  ;;  %v19426_v32 = vcombine.low %v35341_v19, %v35414_v22 }
 0xae8   : > { %v21378_v23 = vrot.slane %v37647_v42, %v37589_v30  ;;  %v21526_v25 = vcombine.low %v21482_v0, %v21514_v18  ;;  %v21527_v28 = vcombine.high %v21482_v0, %v21514_v18  ;;  %v37648_v12 = vcombine.high %v37638_v38, %v37639_v20  ;;  %v37650_v18 = vld [vmem:[#allocation57_spill] sm:$0xff]  ;;  %v26797_v46 = vpop.eup %26796 }
 0xae9   : > { %v37649_v7 = vcombine.high %v37641_v60, %v37642_v4  ;;  %v35526_v0 = vpop.xlane.xlu1 %18900  ;;  %v19638_v39 = vadd.f32 %v37650_v18, %v19120_v27  ;;  %v19442_v20 = vcombine.low %v35364_v8, %v35458_v37  ;;  %v19458_v60 = vcombine.low %v35409_v61, %v35422_v5 }
 0xaea   : > { %v21390_v55 = vcombine.low %v35387_v59, %v21378_v23  ;;  %v21489_v35 = vrot.slane %v37648_v12, %v37589_v30  ;;  %v35516_v50 = vadd.f32 %v35356_v54, %v21526_v25  ;;  %v35519_v47 = vadd.f32 %v35389_v15, %v21527_v28  ;;  %22880 = vperm.xlu1 %26454, %v26797_v46   ;;  %v37652_v25 = vld [vmem:[#allocation85_spill] sm:$0xff] }
 0xaeb   : > { %v21521_v3 = vrot.slane %v37649_v7, %v37589_v30  ;;  %v21391_v52 = vcombine.high %v35387_v59, %v21378_v23  ;;  %v37651_v54 = vcombine.high %v37645_v36, %v37646_v41  ;;  %v19450_v42 = vrot.slane %v19442_v20, %v37584_v17  ;;  %v26799_v41 = vpop.eup %26798  ;;  %v37653_v28 = vld [vmem:[#allocation141_spill] sm:$0xff] }
 0xaec   : > { %v35530_v38 = vadd.f32 %v35366_v58, %v21390_v55  ;;  %v19434_v58 = vrot.slane %v19426_v32, %v37584_v17  ;;  %26802 = vrcp.f32 %v19636_v45  ;;  %v21250_v55 = vcombine.low %v37653_v28, %v37652_v25 }
 0xaed   : > { %v21385_v15 = vrot.slane %v37651_v54, %v37589_v30  ;;  %v21528_v59 = vcombine.low %v21489_v35, %v21521_v3  ;;  %v35541_v4 = vadd.f32 %v35406_v62, %v21391_v52  ;;  %v21529_v27 = vcombine.high %v21489_v35, %v21521_v3  ;;  %v35553_v62 = vpop.xlane.xlu1 %18906 }
 0xaee   : > { %v19490_v12 = vcombine.low %v19434_v58, %v19450_v42  ;;  %v19491_v35 = vcombine.high %v19434_v58, %v19450_v42  ;;  %v19466_v7 = vrot.slane %v19458_v60, %v37589_v30  ;;  %22890 = vperm.xlu1 %26454, %v26799_v41   ;;  %26804 = vrcp.f32 %v19638_v39 }
 0xaef   : > { %v21392_v40 = vcombine.low %v35395_v63, %v21385_v15  ;;  %v21393_v36 = vcombine.high %v35395_v63, %v21385_v15  ;;  %v35548_v23 = vadd.f32 %v35404_v31, %v21528_v59  ;;  %v35551_v33 = vadd.f32 %v35437_v49, %v21529_v27  ;;  %v37657_v27 = vld [vmem:[#allocation148_spill] sm:$0xff] }
 0xaf0   : > { %v19443_v63 = vcombine.high %v35364_v8, %v35458_v37  ;;  %v19411_v31 = vcombine.high %v35217_v11, %v35301_v10  ;;  %v19459_v49 = vcombine.high %v35409_v61, %v35422_v5  ;;  %v19498_v3 = vrot.slane %v19490_v12, %v37589_v30  ;;  %v37654_v8 = vld [vmem:[#allocation52_spill] sm:$0xff]  ;;  %v37655_v10 = vld [vmem:[#allocation114_spill] sm:$0xff]  ;;  %v35579_v61 = vpop.xlane.xlu0 %19597 }
 0xaf1   : > { %v35558_v32 = vadd.f32 %v35416_v1, %v21392_v40  ;;  %v35567_v45 = vadd.f32 %v35453_v21, %v21393_v36  ;;  %v19427_v1 = vcombine.high %v35341_v19, %v35414_v22  ;;  %v35574_v37 = vadd.f32 %v37654_v8, %v21250_v55  ;;  %v35581_v5 = vpop.xlane.xlu1 %18912  ;;  %v26801_v21 = vpop.eup %26800  ;;  %v37658_v55 = vld [vmem:[#allocation19_spill] sm:$0xff]  ;;  %v37659_v8 = vld [vmem:[#allocation113_spill] sm:$0xff] }
 0xaf2   : > { %v19395_v11 = vcombine.high %v35183_v29, %v35257_v48  ;;  %v19640_v52 = vadd.f32 %v37655_v10, %v19121_v6  ;;  %v19457_v18 = vrot.slane %v19443_v63, %v37584_v17  ;;  %v19505_v19 = vrot.slane %v19491_v35, %v37589_v30  ;;  %v37656_v48 = vld [vmem:[#allocation120_spill] sm:$0xff]  ;;  %22900 = vperm.xlu1 %26454, %v26801_v21  }
 0xaf3   : > { %v19522_v22 = vcombine.low %v19466_v7, %v19498_v3  ;;  %v19523_v54 = vcombine.high %v19466_v7, %v19498_v3  ;;  %v19425_v15 = vrot.slane %v19411_v31, %v37584_v17  ;;  %v19473_v20 = vrot.slane %v19459_v49, %v37589_v30 }
 0xaf4   : > { %v19441_v29 = vrot.slane %v19427_v1, %v37584_v17  ;;  %v19409_v39 = vrot.slane %v19395_v11, %v37584_v17  ;;  %26806 = vrcp.f32 %v19640_v52  ;;  %v35593_v42 = vpop.xlane.xlu0 %19609  ;;  %v19274_v31 = vcombine.low %v35526_v0, %v35581_v5 }
 0xaf5   : > { %v19643_v6 = vadd.f32 %v37656_v48, %v19522_v22  ;;  %v35590_v46 = vpop.xlane.xlu1 %18918  ;;  %v19524_v59 = vcombine.low %v19473_v20, %v19505_v19  ;;  %v19645_v58 = vadd.f32 %v37657_v27, %v19523_v54  ;;  %v19525_v28 = vcombine.high %v19473_v20, %v19505_v19 }
 0xaf6   : > { %v19506_v60 = vcombine.low %v19441_v29, %v19457_v18  ;;  %v26803_v40 = vpop.eup %26802  ;;  %v19474_v36 = vcombine.low %v19409_v39, %v19425_v15  ;;  %v19507_v7 = vcombine.high %v19441_v29, %v19457_v18  ;;  %v19475_v21 = vcombine.high %v19409_v39, %v19425_v15  ;;  %v37660_v29 = vld [vmem:[#allocation110_spill] sm:$0xff] }
 0xaf7   : > { %26808 = vrcp.f32 %v19643_v6  ;;  %22910 = vperm.xlu1 %26454, %v26803_v40   ;;  %v19647_v63 = vadd.f32 %v37658_v55, %v19524_v59  ;;  %v19649_v11 = vadd.f32 %v37659_v8, %v19525_v28  ;;  %v19282_v22 = vrot.slane %v19274_v31, %v37584_v17 }
 0xaf8   : > { %v19514_v25 = vrot.slane %v19506_v60, %v37589_v30  ;;  %26810 = vrcp.f32 %v19645_v58  ;;  %v26805_v12 = vpop.eup %26804  ;;  %v19482_v35 = vrot.slane %v19474_v36, %v37589_v30  ;;  %v18895_v49 = vpop.xlane.xlu0 %18894  ;;  %v19521_v48 = vrot.slane %v19507_v7, %v37589_v30  ;;  %v37661_v36 = vld [vmem:[#allocation14_spill] sm:$0xff] }
 0xaf9   : > { %v18925_v41 = vpop.xlane.xlu1 %18924  ;;  %26812 = vrcp.f32 %v19647_v63  ;;  %v19258_v10 = vcombine.low %v18895_v49, %v35553_v62  ;;  %v19489_v27 = vrot.slane %v19475_v21, %v37589_v30 }
 0xafa   : > { %v19526_v3 = vcombine.low %v19482_v35, %v19514_v25  ;;  %v19527_v20 = vcombine.high %v19482_v35, %v19514_v25  ;;  %26814 = vrcp.f32 %v19649_v11  ;;  %v19275_v35 = vcombine.high %v35526_v0, %v35581_v5 }
 0xafb   : > { %22920 = vperm.xlu1 %26454, %v26805_v12   ;;  %v19266_v60 = vrot.slane %v19258_v10, %v37584_v17  ;;  %v19528_v28 = vcombine.low %v19489_v27, %v19521_v48  ;;  %v19529_v10 = vcombine.high %v19489_v27, %v19521_v48 }
 0xafc   : > { %v19651_v6 = vadd.f32 %v37660_v29, %v19526_v3  ;;  %v19653_v25 = vadd.f32 %v37661_v36, %v19527_v20  ;;  %v19289_v20 = vrot.slane %v19275_v35, %v37584_v17 }
 0xafd   : > { %v18931_v1 = vpop.xlane.xlu1 %18930  ;;  %v19322_v39 = vcombine.low %v19266_v60, %v19282_v22  ;;  %v19323_v7 = vcombine.high %v19266_v60, %v19282_v22  ;;  %v19657_v29 = vadd.f32 %v35490_v44, %v19529_v10  ;;  %v37664_v60 = vld [vmem:[#allocation89_spill] sm:$0xff] }
 0xafe   : > { %v26807_v52 = vpop.eup %26806  ;;  %v19290_v54 = vcombine.low %v35590_v46, %v18931_v1  ;;  %26816 = vrcp.f32 %v19651_v6  ;;  %v19291_v8 = vcombine.high %v35590_v46, %v18931_v1 }
 0xaff   : > { %22930 = vperm.xlu1 %26454, %v26807_v52   ;;  %v19330_v3 = vrot.slane %v19322_v39, %v37589_v30  ;;  %26818 = vrcp.f32 %v19653_v25  ;;  %v37662_v52 = vld [vmem:[#allocation112_spill] sm:$0xff]  ;;  %v19337_v46 = vrot.slane %v19323_v7, %v37589_v30 }
 0xb00   : > { %v19298_v58 = vrot.slane %v19290_v54, %v37584_v17  ;;  %v19655_v21 = vadd.f32 %v37662_v52, %v19528_v28  ;;  %v19305_v1 = vrot.slane %v19291_v8, %v37584_v17 }
 0xb01   : > { %v26809_v19 = vpop.eup %26808  ;;  %v18937_v18 = vpop.xlane.xlu1 %18936 }
 0xb02   : > { %22945 = vperm.xlu0 %26455, %v26809_v19   ;;  %v19306_v59 = vcombine.low %v18925_v41, %v18937_v18  ;;  %v26811_v15 = vpop.eup %26810  ;;  %v19307_v55 = vcombine.high %v18925_v41, %v18937_v18  ;;  %v19259_v19 = vcombine.high %v18895_v49, %v35553_v62  ;;  %v37663_v18 = vld [vmem:[#allocation69_spill] sm:$0xff]  ;;  %26820 = vrcp.f32 %v19655_v21 }
 0xb03   : > { %v26813_v31 = vpop.eup %26812 }
 0xb04   : > { %v19314_v40 = vrot.slane %v19306_v59, %v37584_v17  ;;  %v19321_v41 = vrot.slane %v19307_v55, %v37584_v17  ;;  %v26815_v22 = vpop.eup %26814  ;;  %v19273_v62 = vrot.slane %v19259_v19, %v37584_v17 }
 0xb06   : > { %22955 = vperm.xlu0 %26455, %v26811_v15   ;;  %v19354_v63 = vcombine.low %v19298_v58, %v19314_v40  ;;  %v19355_v12 = vcombine.high %v19298_v58, %v19314_v40  ;;  %v19370_v49 = vcombine.low %v19305_v1, %v19321_v41  ;;  %v19338_v15 = vcombine.low %v19273_v62, %v19289_v20  ;;  %v37665_v40 = vld [vmem:[#allocation130_spill] sm:$0xff] }
 0xb07   : > { %v19371_v17 = vcombine.high %v19305_v1, %v19321_v41  ;;  %v19339_v35 = vcombine.high %v19273_v62, %v19289_v20 }
 0xb08   : > { %v19362_v11 = vrot.slane %v19354_v63, %v37589_v30  ;;  %v19369_v54 = vrot.slane %v19355_v12, %v37589_v30  ;;  %v26817_v27 = vpop.eup %26816  ;;  %v19378_v39 = vrot.slane %v19370_v49, %v37589_v30  ;;  %v19346_v44 = vrot.slane %v19338_v15, %v37589_v30 }
 0xb09   : > { %v26819_v25 = vpop.eup %26818  ;;  %v19353_v52 = vrot.slane %v19339_v35, %v37589_v30 }
 0xb0a   : > { %22965 = vperm.xlu0 %26455, %v26813_v31   ;;  %v19386_v0 = vcombine.low %v19330_v3, %v19362_v11  ;;  %v19387_v5 = vcombine.high %v19330_v3, %v19362_v11  ;;  %v19388_v6 = vcombine.low %v19337_v46, %v19369_v54  ;;  %v19389_v58 = vcombine.high %v19337_v46, %v19369_v54  ;;  %v37666_v3 = vld [vmem:[#allocation81_spill] sm:$0xff]  ;;  %v37667_v54 = vld [vmem:[#allocation122_spill] sm:$0xff] }
 0xb0b   : > { %v19390_v28 = vcombine.low %v19346_v44, %v19378_v39  ;;  %v19385_v31 = vrot.slane %v19371_v17, %v37589_v30  ;;  %v19391_v7 = vcombine.high %v19346_v44, %v19378_v39  ;;  %v37669_v39 = vld [vmem:[#allocation12_spill] sm:$0xff] }
 0xb0c   : > { %v19642_v48 = vadd.f32 %v37663_v18, %v19386_v0  ;;  %v19644_v59 = vadd.f32 %v37664_v60, %v19387_v5  ;;  %v19646_v36 = vadd.f32 %v37665_v40, %v19388_v6  ;;  %v19648_v55 = vadd.f32 %v35579_v61, %v19389_v58  ;;  %v26821_v63 = vpop.eup %26820  ;;  %v26872_v58 = vld [vmem:[%s27066_s22 + $0x8] sm:$0xff] }
 0xb0d   : > { %v19650_v8 = vadd.f32 %v37666_v3, %v19390_v28  ;;  %v19392_v21 = vcombine.low %v19353_v52, %v19385_v31  ;;  %v19652_v61 = vadd.f32 %v35593_v42, %v19391_v7  ;;  %v19393_v41 = vcombine.high %v19353_v52, %v19385_v31  ;;  %v37670_v28 = vld [vmem:[#allocation88_spill] sm:$0xff]  ;;  %v37671_v7 = vld [vmem:[#allocation53_spill] sm:$0xff] }
 0xb0e   : > { %22975 = vperm.xlu0 %26455, %v26815_v22   ;;  %26822 = vrcp.f32 %v19642_v48  ;;  %v19622_v22 = vpop.xlane.xlu0 %19621  ;;  %v35636_v18 = vstv %s23548_s24 }
 0xb0f   : > { %26824 = vrcp.f32 %v19657_v29  ;;  %v19654_v0 = vadd.f32 %v37667_v54, %v19392_v21  ;;  %v19656_v20 = vadd.f32 %v19622_v22, %v19393_v41  ;;  %v26876_v54 = vld [vmem:[%s27066_s22 + $0x48] sm:$0xff] }
 0xb10   : > { %26826 = vrcp.f32 %v19644_v59  ;;  %v37668_v59 = vld [vmem:[#allocation84_spill] sm:$0xff] }
 0xb11   : > { %26828 = vrcp.f32 %v19646_v36  ;;  %v26873_v36 = vld [vmem:[%s27066_s22 + $0x18] sm:$0xff] }
 0xb12   : > { %22985 = vperm.xlu0 %26455, %v26817_v27   ;;  %26830 = vrcp.f32 %v19648_v55 }
 0xb13   : > { %26832 = vrcp.f32 %v19650_v8 }
 0xb14   : > { %26834 = vrcp.f32 %v19652_v61 }
 0xb15   : > { %26836 = vrcp.f32 %v19654_v0 }
 0xb16   : > { %22995 = vperm.xlu0 %26455, %v26819_v25   ;;  %26838 = vrcp.f32 %v19656_v20 }
 0xb18   : > { %v26823_v12 = vpop.eup %26822 }
 0xb19   : > { %22940 = vperm.xlu1 %26454, %v26823_v12   ;;  %v26825_v11 = vpop.eup %26824  ;;  %v26874_v12 = vld [vmem:[%s27066_s22 + $0x28] sm:$0xff] }
 0xb1a   : > { %23005 = vperm.xlu0 %26455, %v26821_v63   ;;  %v26827_v10 = vpop.eup %26826 }
 0xb1b   : > { %v26829_v19 = vpop.eup %26828 }
 0xb1c   : > { %v26831_v5 = vpop.eup %26830 }
 0xb1d   : > { %22950 = vperm.xlu1 %26454, %v26827_v10   ;;  %v26833_v46 = vpop.eup %26832 }
 0xb1e   : > { %23015 = vperm.xlu0 %26455, %v26825_v11   ;;  %v26835_v30 = vpop.eup %26834  ;;  %v26875_v11 = vld [vmem:[%s27066_s22 + $0x38] sm:$0xff] }
 0xb1f   : > { %v26837_v1 = vpop.eup %26836 }
 0xb20   : > { %v26839_v42 = vpop.eup %26838 }
 0xb21   : > { %22960 = vperm.xlu1 %26454, %v26829_v19   ;;  %v37673_v19 = vld [vmem:[#allocation33_spill] sm:$0xff] }
 0xb25   : > { %22970 = vperm.xlu1 %26454, %v26831_v5  }
 0xb29   : > { %22980 = vperm.xlu1 %26454, %v26833_v46   ;;  %v37675_v46 = vld [vmem:[#allocation76_spill] sm:$0xff] }
 0xb2d   : > { %22990 = vperm.xlu1 %26454, %v26835_v30  }
 0xb31   : > { %23000 = vperm.xlu1 %26454, %v26837_v1   ;;  %v26877_v1 = vld [vmem:[%s27066_s22 + $0x58] sm:$0xff] }
 0xb35   : > { %23010 = vperm.xlu1 %26454, %v26839_v42  }
 0xb43   : > { %v22866_v48 = vpop.permute.xlu1 %22865 }
 0xb44   : > { %v23019_v29 = vmul.f32 %v22866_v48, %v35574_v37  ;;  %v22876_v62 = vpop.permute.xlu0 %22875 }
 0xb45   : > { %v23021_v49 = vmul.f32 %v22876_v62, %v35274_v53  ;;  %v37676_v62 = vld [vmem:[#allocation99_spill] sm:$0xff] }
 0xb46   : > { %v23052_v6 = vmul.f32 %v35636_v18, %v23019_v29 }
 0xb47   : > { %v23054_v60 = vmul.f32 %v35636_v18, %v23021_v49 }
 0xb48   : > { %v23084_v27 = vadd.f32 %v23052_v6, %v37668_v59  ;;  %v22886_v15 = vpop.permute.xlu0 %22885  ;;  %v37677_v6 = vld [vmem:[#allocation75_spill] sm:$0xff]  ;;  %v26878_v59 = vld [vmem:[%s27066_s22 + $0x68] sm:$0xff] }
 0xb49   : > { %v23086_v37 = vadd.f32 %v23054_v60, %v37669_v39  ;;  %v23023_v53 = vmul.f32 %v22886_v15, %v35277_v9  ;;  %v37678_v39 = vld [vmem:[#allocation46_spill] sm:$0xff] }
 0xb4a   : > { %v23116_v40 = vadd.f32 %v26872_v58, %v23084_v27 }
 0xb4b   : > { %v23118_v25 = vadd.f32 %v26873_v36, %v23086_v37  ;;  %v23056_v44 = vmul.f32 %v35636_v18, %v23023_v53  ;;  %v26879_v53 = vld [vmem:[%s27066_s22 + $0x78] sm:$0xff] }
 0xb4c   : > { %23148 = vst.msk [vmem:[%s35648_s27 + $0x8] sm:$0xff] %vm530_vm0, %v23116_v40  ;;  %v22896_v17 = vpop.permute.xlu0 %22895 }
 0xb4d   : > { %23150 = vst.msk [vmem:[%s35648_s27 + $0x18] sm:$0xff] %vm530_vm0, %v23118_v25  ;;  %v23088_v55 = vadd.f32 %v23056_v44, %v37670_v28  ;;  %v23025_v63 = vmul.f32 %v22896_v17, %v35282_v57  ;;  %v37672_v57 = vld [vmem:[#allocation94_spill] sm:$0xff]  ;;  %v37679_v25 = vld [vmem:[#allocation136_spill] sm:$0xff]  ;;  %v37680_v17 = vld [vmem:[#allocation91_spill] sm:$0xff] }
 0xb4f   : > { %v23120_v9 = vadd.f32 %v26874_v12, %v23088_v55  ;;  %v23058_v35 = vmul.f32 %v35636_v18, %v23025_v63  ;;  %v37681_v12 = vld [vmem:[#allocation23_spill] sm:$0xff] }
 0xb50   : > { %v22906_v31 = vpop.permute.xlu0 %22905 }
 0xb51   : > { %23152 = vst.msk [vmem:[%s35648_s27 + $0x28] sm:$0xff] %vm530_vm0, %v23120_v9  ;;  %v23090_v3 = vadd.f32 %v23058_v35, %v37671_v7  ;;  %v23027_v8 = vmul.f32 %v22906_v31, %v35289_v13  ;;  %v37674_v13 = vld [vmem:[#allocation100_spill] sm:$0xff]  ;;  %v37682_v31 = vld [vmem:[#allocation90_spill] sm:$0xff] }
 0xb53   : > { %v23122_v10 = vadd.f32 %v26875_v11, %v23090_v3  ;;  %v23060_v52 = vmul.f32 %v35636_v18, %v23027_v8  ;;  %v37683_v3 = vld [vmem:[#allocation74_spill] sm:$0xff]  ;;  %v26880_v11 = vld [vmem:[%s27066_s22] sm:$0xff] }
 0xb54   : > { %v22916_v21 = vpop.permute.xlu0 %22915 }
 0xb55   : > { %23154 = vst.msk [vmem:[%s35648_s27 + $0x38] sm:$0xff] %vm530_vm0, %v23122_v10  ;;  %v23092_v61 = vadd.f32 %v23060_v52, %v37672_v57  ;;  %v23029_v41 = vmul.f32 %v22916_v21, %v37673_v19  ;;  %v26881_v52 = vld [vmem:[%s27066_s22 + $0x10] sm:$0xff]  ;;  %v37684_v19 = vld [vmem:[#allocation22_spill] sm:$0xff] }
 0xb57   : > { %v23124_v0 = vadd.f32 %v26876_v54, %v23092_v61  ;;  %v23062_v5 = vmul.f32 %v35636_v18, %v23029_v41  ;;  %v37685_v54 = vld [vmem:[#allocation140_spill] sm:$0xff] }
 0xb58   : > { %v22926_v22 = vpop.permute.xlu0 %22925 }
 0xb59   : > { %23156 = vst.msk [vmem:[%s35648_s27 + $0x48] sm:$0xff] %vm530_vm0, %v23124_v0  ;;  %v23094_v20 = vadd.f32 %v23062_v5, %v37674_v13  ;;  %v23031_v30 = vmul.f32 %v22926_v22, %v37675_v46  ;;  %v26882_v5 = vld [vmem:[%s27066_s22 + $0x20] sm:$0xff]  ;;  %v37686_v46 = vld [vmem:[#allocation35_spill] sm:$0xff] }
 0xb5b   : > { %v23126_v42 = vadd.f32 %v26877_v1, %v23094_v20  ;;  %v23064_v48 = vmul.f32 %v35636_v18, %v23031_v30  ;;  %v37687_v1 = vld [vmem:[#allocation55_spill] sm:$0xff] }
 0xb5c   : > { %v22936_v29 = vpop.permute.xlu0 %22935 }
 0xb5d   : > { %23158 = vst.msk [vmem:[%s35648_s27 + $0x58] sm:$0xff] %vm530_vm0, %v23126_v42  ;;  %v23096_v49 = vadd.f32 %v23064_v48, %v37676_v62  ;;  %v23033_v60 = vmul.f32 %v22936_v29, %v37677_v6  ;;  %v26883_v48 = vld [vmem:[%s27066_s22 + $0x30] sm:$0xff] }
 0xb5e   : > { %v37688_v6 = vld [vmem:[#allocation95_spill] sm:$0xff] }
 0xb5f   : > { %v23128_v27 = vadd.f32 %v26878_v59, %v23096_v49  ;;  %v23066_v15 = vmul.f32 %v35636_v18, %v23033_v60  ;;  %v37689_v59 = vld [vmem:[#allocation144_spill] sm:$0xff] }
 0xb61   : > { %23160 = vst.msk [vmem:[%s35648_s27 + $0x68] sm:$0xff] %vm530_vm0, %v23128_v27  ;;  %v23098_v37 = vadd.f32 %v23066_v15, %v37678_v39  ;;  %v26884_v15 = vld [vmem:[%s27066_s22 + $0x40] sm:$0xff] }
 0xb63   : > { %v23130_v58 = vadd.f32 %v26879_v53, %v23098_v37  ;;  %v22861_v40 = vpop.permute.xlu0 %22860 }
 0xb64   : > { %v23018_v44 = vmul.f32 %v22861_v40, %v37679_v25 }
 0xb65   : > { %v22871_v36 = vpop.permute.xlu1 %22870  ;;  %23162 = vst.msk [vmem:[%s35648_s27 + $0x78] sm:$0xff] %vm530_vm0, %v23130_v58  ;;  %v37690_v58 = vld [vmem:[#allocation62_spill] sm:$0xff] }
 0xb66   : > { %v23020_v28 = vmul.f32 %v22871_v36, %v37680_v17  ;;  %v23051_v55 = vmul.f32 %v35636_v18, %v23018_v44  ;;  %v37691_v36 = vld [vmem:[#allocation34_spill] sm:$0xff]  ;;  %v26885_v44 = vld [vmem:[%s27066_s22 + $0x50] sm:$0xff] }
 0xb68   : > { %v23053_v63 = vmul.f32 %v35636_v18, %v23020_v28  ;;  %v23083_v9 = vadd.f32 %v23051_v55, %v37681_v12 }
 0xb69   : > { %v22881_v35 = vpop.permute.xlu1 %22880 }
 0xb6a   : > { %v23085_v7 = vadd.f32 %v23053_v63, %v37682_v31  ;;  %v23022_v8 = vmul.f32 %v22881_v35, %v37683_v3  ;;  %v23115_v10 = vadd.f32 %v26880_v11, %v23083_v9  ;;  %v37692_v63 = vld [vmem:[#allocation25_spill] sm:$0xff] }
 0xb6c   : > { %v23117_v21 = vadd.f32 %v26881_v52, %v23085_v7  ;;  %v23055_v57 = vmul.f32 %v35636_v18, %v23022_v8  ;;  %23147 = vst.msk [vmem:[%s35648_s27] sm:$0xff] %vm530_vm0, %v23115_v10  ;;  %v26886_v7 = vld [vmem:[%s27066_s22 + $0x60] sm:$0xff] }
 0xb6d   : > { %v22891_v61 = vpop.permute.xlu1 %22890  ;;  %v37693_v10 = vld [vmem:[#allocation37_spill] sm:$0xff] }
 0xb6e   : > { %23149 = vst.msk [vmem:[%s35648_s27 + $0x10] sm:$0xff] %vm530_vm0, %v23117_v21  ;;  %v23087_v41 = vadd.f32 %v23055_v57, %v37684_v19  ;;  %v23024_v0 = vmul.f32 %v22891_v61, %v37685_v54  ;;  %v37694_v57 = vld [vmem:[#allocation98_spill] sm:$0xff]  ;;  %v26887_v19 = vld [vmem:[%s27066_s22 + $0x70] sm:$0xff] }
 0xb70   : > { %v23119_v22 = vadd.f32 %v26882_v5, %v23087_v41  ;;  %v23057_v13 = vmul.f32 %v35636_v18, %v23024_v0  ;;  %v26888_v41 = vld [vmem:[%s27066_s22 + $0x88] sm:$0xff] }
 0xb71   : > { %v22901_v20 = vpop.permute.xlu1 %22900 }
 0xb72   : > { %23151 = vst.msk [vmem:[%s35648_s27 + $0x20] sm:$0xff] %vm530_vm0, %v23119_v22  ;;  %v23089_v30 = vadd.f32 %v23057_v13, %v37686_v46  ;;  %v23026_v42 = vmul.f32 %v22901_v20, %v37687_v1  ;;  %v37695_v22 = vld [vmem:[#allocation61_spill] sm:$0xff]  ;;  %v26889_v46 = vld [vmem:[%s27066_s22 + $0x98] sm:$0xff] }
 0xb74   : > { %v23121_v29 = vadd.f32 %v26883_v48, %v23089_v30  ;;  %v23059_v62 = vmul.f32 %v35636_v18, %v23026_v42  ;;  %v37696_v42 = vld [vmem:[#allocation51_spill] sm:$0xff] }
 0xb76   : > { %v22911_v49 = vpop.permute.xlu1 %22910  ;;  %23153 = vst.msk [vmem:[%s35648_s27 + $0x30] sm:$0xff] %vm530_vm0, %v23121_v29  ;;  %v23091_v60 = vadd.f32 %v23059_v62, %v37688_v6  ;;  %v26890_v62 = vld [vmem:[%s27066_s22 + $0xa8] sm:$0xff] }
 0xb77   : > { %v23028_v27 = vmul.f32 %v22911_v49, %v37689_v59 }
 0xb78   : > { %v23123_v39 = vadd.f32 %v26884_v15, %v23091_v60  ;;  %v26891_v15 = vld [vmem:[%s27066_s22 + $0xb8] sm:$0xff] }
 0xb79   : > { %v23061_v37 = vmul.f32 %v35636_v18, %v23028_v27 }
 0xb7a   : > { %v22921_v53 = vpop.permute.xlu1 %22920  ;;  %23155 = vst.msk [vmem:[%s35648_s27 + $0x40] sm:$0xff] %vm530_vm0, %v23123_v39 }
 0xb7b   : > { %v23093_v40 = vadd.f32 %v23061_v37, %v37690_v58  ;;  %v23030_v25 = vmul.f32 %v22921_v53, %v37691_v36  ;;  %v26892_v36 = vld [vmem:[%s27066_s22 + $0xc8] sm:$0xff] }
 0xb7d   : > { %v23125_v17 = vadd.f32 %v26885_v44, %v23093_v40  ;;  %v23063_v28 = vmul.f32 %v35636_v18, %v23030_v25 }
 0xb7e   : > { %v22931_v55 = vpop.permute.xlu1 %22930 }
 0xb7f   : > { %23157 = vst.msk [vmem:[%s35648_s27 + $0x50] sm:$0xff] %vm530_vm0, %v23125_v17  ;;  %v23095_v12 = vadd.f32 %v23063_v28, %v37692_v63  ;;  %v23032_v35 = vmul.f32 %v22931_v55, %v35456_v56 }
 0xb81   : > { %v22946_v9 = vpop.permute.xlu0 %22945  ;;  %v23127_v3 = vadd.f32 %v26886_v7, %v23095_v12  ;;  %v23065_v8 = vmul.f32 %v35636_v18, %v23032_v35 }
 0xb82   : > { %v23035_v31 = vmul.f32 %v22946_v9, %v35462_v34  ;;  %v26893_v9 = vld [vmem:[%s27066_s22 + $0xd8] sm:$0xff] }
 0xb83   : > { %23159 = vst.msk [vmem:[%s35648_s27 + $0x60] sm:$0xff] %vm530_vm0, %v23127_v3  ;;  %v23097_v52 = vadd.f32 %v23065_v8, %v37693_v10  ;;  %v37700_v8 = vld [vmem:[#allocation65_spill] sm:$0xff]  ;;  %v37701_v10 = vld [vmem:[#allocation50_spill] sm:$0xff] }
 0xb84   : > { %v23068_v11 = vmul.f32 %v35636_v18, %v23035_v31 }
 0xb85   : > { %v22956_v21 = vpop.permute.xlu0 %22955  ;;  %v23129_v34 = vadd.f32 %v26887_v19, %v23097_v52 }
 0xb86   : > { %v23100_v61 = vadd.f32 %v23068_v11, %v37694_v57  ;;  %v23037_v56 = vmul.f32 %v22956_v21, %v35465_v16  ;;  %v26894_v21 = vld [vmem:[%s27066_s22 + $0xe8] sm:$0xff] }
 0xb87   : > { %23161 = vst.msk [vmem:[%s35648_s27 + $0x70] sm:$0xff] %vm530_vm0, %v23129_v34 }
 0xb88   : > { %v23132_v54 = vadd.f32 %v26888_v41, %v23100_v61  ;;  %v23070_v0 = vmul.f32 %v35636_v18, %v23037_v56  ;;  %v26895_v56 = vld [vmem:[%s27066_s22 + $0x80] sm:$0xff] }
 0xb89   : > { %v22966_v5 = vpop.permute.xlu0 %22965 }
 0xb8a   : > { %23164 = vst.msk [vmem:[%s35648_s27 + $0x88] sm:$0xff] %vm530_vm0, %v23132_v54  ;;  %v23102_v13 = vadd.f32 %v23070_v0, %v37695_v22  ;;  %v23039_v20 = vmul.f32 %v22966_v5, %v35475_v2  ;;  %v37697_v2 = vld [vmem:[#allocation70_spill] sm:$0xff]  ;;  %v37703_v0 = vld [vmem:[#allocation32_spill] sm:$0xff] }
 0xb8b   : > { %v26896_v22 = vld [vmem:[%s27066_s22 + $0xf8] sm:$0xff] }
 0xb8c   : > { %v23134_v16 = vadd.f32 %v26889_v46, %v23102_v13  ;;  %v23072_v30 = vmul.f32 %v35636_v18, %v23039_v20  ;;  %v26897_v20 = vld [vmem:[%s27066_s22 + $0x90] sm:$0xff] }
 0xb8d   : > { %v22976_v1 = vpop.permute.xlu0 %22975 }
 0xb8e   : > { %23166 = vst.msk [vmem:[%s35648_s27 + $0x98] sm:$0xff] %vm530_vm0, %v23134_v16  ;;  %v23104_v48 = vadd.f32 %v23072_v30, %v37696_v42  ;;  %v23041_v29 = vmul.f32 %v22976_v1, %v35496_v51  ;;  %v37698_v51 = vld [vmem:[#allocation42_spill] sm:$0xff] }
 0xb8f   : > { %v37704_v1 = vld [vmem:[#allocation38_spill] sm:$0xff] }
 0xb90   : > { %v23136_v49 = vadd.f32 %v26890_v62, %v23104_v48  ;;  %v23074_v6 = vmul.f32 %v35636_v18, %v23041_v29  ;;  %v26898_v29 = vld [vmem:[%s27066_s22 + $0xa0] sm:$0xff] }
 0xb91   : > { %v22986_v60 = vpop.permute.xlu0 %22985 }
 0xb92   : > { %23168 = vst.msk [vmem:[%s35648_s27 + $0xa8] sm:$0xff] %vm530_vm0, %v23136_v49  ;;  %v23106_v59 = vadd.f32 %v23074_v6, %v37697_v2  ;;  %v23043_v27 = vmul.f32 %v22986_v60, %v35516_v50  ;;  %v37699_v50 = vld [vmem:[#allocation101_spill] sm:$0xff]  ;;  %v37705_v6 = vld [vmem:[#allocation60_spill] sm:$0xff] }
 0xb94   : > { %v23138_v39 = vadd.f32 %v26891_v15, %v23106_v59  ;;  %v23076_v37 = vmul.f32 %v35636_v18, %v23043_v27  ;;  %v26899_v59 = vld [vmem:[%s27066_s22 + $0xb0] sm:$0xff] }
 0xb95   : > { %v22996_v53 = vpop.permute.xlu0 %22995 }
 0xb96   : > { %23170 = vst.msk [vmem:[%s35648_s27 + $0xb8] sm:$0xff] %vm530_vm0, %v23138_v39  ;;  %v23108_v58 = vadd.f32 %v23076_v37, %v37698_v51  ;;  %v23045_v40 = vmul.f32 %v22996_v53, %v35519_v47  ;;  %v26900_v51 = vld [vmem:[%s27066_s22 + $0xc0] sm:$0xff] }
 0xb98   : > { %v23140_v25 = vadd.f32 %v26892_v36, %v23108_v58  ;;  %v23078_v44 = vmul.f32 %v35636_v18, %v23045_v40  ;;  %v22941_v28 = vpop.permute.xlu1 %22940 }
 0xb99   : > { %v23006_v17 = vpop.permute.xlu0 %23005  ;;  %v23034_v12 = vmul.f32 %v22941_v28, %v35472_v26 }
 0xb9a   : > { %23172 = vst.msk [vmem:[%s35648_s27 + $0xc8] sm:$0xff] %vm530_vm0, %v23140_v25  ;;  %v23110_v55 = vadd.f32 %v23078_v44, %v37699_v50  ;;  %v23047_v63 = vmul.f32 %v23006_v17, %v35548_v23  ;;  %v26901_v17 = vld [vmem:[%s27066_s22 + $0xd0] sm:$0xff] }
 0xb9b   : > { %v23067_v31 = vmul.f32 %v35636_v18, %v23034_v12 }
 0xb9c   : > { %v23142_v35 = vadd.f32 %v26893_v9, %v23110_v55  ;;  %v23080_v47 = vmul.f32 %v35636_v18, %v23047_v63  ;;  %v22951_v3 = vpop.permute.xlu1 %22950  ;;  %v26902_v9 = vld [vmem:[%s27066_s22 + $0xe0] sm:$0xff] }
 0xb9d   : > { %v23016_v7 = vpop.permute.xlu0 %23015  ;;  %v23099_v52 = vadd.f32 %v23067_v31, %v37701_v10  ;;  %v23036_v26 = vmul.f32 %v22951_v3, %v35478_v43  ;;  %v37709_v31 = vld [vmem:[#allocation68_spill] sm:$0xff] }
 0xb9e   : > { %23174 = vst.msk [vmem:[%s35648_s27 + $0xd8] sm:$0xff] %vm530_vm0, %v23142_v35  ;;  %v23112_v11 = vadd.f32 %v23080_v47, %v37700_v8  ;;  %v23049_v23 = vmul.f32 %v23016_v7, %v35551_v33  ;;  %v37702_v33 = vld [vmem:[#allocation66_spill] sm:$0xff] }
 0xb9f   : > { %v23131_v19 = vadd.f32 %v26895_v56, %v23099_v52  ;;  %v23069_v34 = vmul.f32 %v35636_v18, %v23036_v26 }
 0xba0   : > { %v23144_v57 = vadd.f32 %v26894_v21, %v23112_v11  ;;  %v23082_v61 = vmul.f32 %v35636_v18, %v23049_v23  ;;  %v22961_v41 = vpop.permute.xlu1 %22960 }
 0xba1   : > { %23163 = vst.msk [vmem:[%s35648_s27 + $0x80] sm:$0xff] %vm530_vm0, %v23131_v19  ;;  %v23101_v43 = vadd.f32 %v23069_v34, %v37703_v0  ;;  %v23038_v5 = vmul.f32 %v22961_v41, %v35503_v24 }
 0xba2   : > { %23176 = vst.msk [vmem:[%s35648_s27 + $0xe8] sm:$0xff] %vm530_vm0, %v23144_v57  ;;  %v23114_v54 = vadd.f32 %v23082_v61, %v37702_v33 }
 0xba3   : > { %v23133_v46 = vadd.f32 %v26897_v20, %v23101_v43  ;;  %v23071_v16 = vmul.f32 %v35636_v18, %v23038_v5 }
 0xba4   : > { %v23146_v13 = vadd.f32 %v26896_v22, %v23114_v54  ;;  %v22971_v30 = vpop.permute.xlu1 %22970 }
 0xba5   : > { %23165 = vst.msk [vmem:[%s35648_s27 + $0x90] sm:$0xff] %vm530_vm0, %v23133_v46  ;;  %v23103_v42 = vadd.f32 %v23071_v16, %v37704_v1  ;;  %v23040_v48 = vmul.f32 %v22971_v30, %v35506_v14  ;;  %v37706_v14 = vld [vmem:[#allocation6_spill] sm:$0xff] }
 0xba6   : > { %23178 = vst.msk [vmem:[%s35648_s27 + $0xf8] sm:$0xff] %vm530_vm0, %v23146_v13 }
 0xba7   : > { %v23135_v24 = vadd.f32 %v26898_v29, %v23103_v42  ;;  %v23073_v62 = vmul.f32 %v35636_v18, %v23040_v48 }
 0xba8   : > { %v22981_v49 = vpop.permute.xlu1 %22980 }
 0xba9   : > { %23167 = vst.msk [vmem:[%s35648_s27 + $0xa0] sm:$0xff] %vm530_vm0, %v23135_v24  ;;  %v23105_v60 = vadd.f32 %v23073_v62, %v37705_v6  ;;  %v23042_v2 = vmul.f32 %v22981_v49, %v35530_v38  ;;  %v37707_v38 = vld [vmem:[#allocation102_spill] sm:$0xff] }
 0xbab   : > { %v23137_v27 = vadd.f32 %v26899_v59, %v23105_v60  ;;  %v23075_v15 = vmul.f32 %v35636_v18, %v23042_v2 }
 0xbac   : > { %v22991_v39 = vpop.permute.xlu1 %22990 }
 0xbad   : > { %23169 = vst.msk [vmem:[%s35648_s27 + $0xb0] sm:$0xff] %vm530_vm0, %v23137_v27  ;;  %v23107_v37 = vadd.f32 %v23075_v15, %v37706_v14  ;;  %v23044_v53 = vmul.f32 %v22991_v39, %v35541_v4  ;;  %v37708_v4 = vld [vmem:[#allocation72_spill] sm:$0xff] }
 0xbaf   : > { %v23139_v58 = vadd.f32 %v26900_v51, %v23107_v37  ;;  %v23077_v40 = vmul.f32 %v35636_v18, %v23044_v53 }
 0xbb0   : > { %v23001_v36 = vpop.permute.xlu1 %23000 }
 0xbb1   : > { %23171 = vst.msk [vmem:[%s35648_s27 + $0xc0] sm:$0xff] %vm530_vm0, %v23139_v58  ;;  %v23109_v25 = vadd.f32 %v23077_v40, %v37707_v38  ;;  %v23046_v44 = vmul.f32 %v23001_v36, %v35558_v32  ;;  %v26903_v32 = vld [vmem:[%s27066_s22 + $0xf0] sm:$0xff] }
 0xbb3   : > { %v23141_v28 = vadd.f32 %v26901_v17, %v23109_v25  ;;  %v23079_v50 = vmul.f32 %v35636_v18, %v23046_v44 }
 0xbb4   : > { %v23011_v55 = vpop.permute.xlu1 %23010 }
 0xbb5   : > { %23173 = vst.msk [vmem:[%s35648_s27 + $0xd0] sm:$0xff] %vm530_vm0, %v23141_v28  ;;  %v23111_v63 = vadd.f32 %v23079_v50, %v37708_v4  ;;  %v23048_v12 = vmul.f32 %v23011_v55, %v35567_v45 }
 0xbb7   : > { %v23143_v35 = vadd.f32 %v26902_v9, %v23111_v63  ;;  %v23081_v47 = vmul.f32 %v35636_v18, %v23048_v12 }
 0xbb9   : > { %23175 = vst.msk [vmem:[%s35648_s27 + $0xe0] sm:$0xff] %vm530_vm0, %v23143_v35  ;;  %v23113_v7 = vadd.f32 %v23081_v47, %v37709_v31 }
 0xbbb   : > { %v23145_v3 = vadd.f32 %v26903_v32, %v23113_v7 }
 0xbbd   : > { %23177 = vst.msk [vmem:[%s35648_s27 + $0xf0] sm:$0xff] %vm530_vm0, %v23145_v3 }
 0xbbe PF: > { %s25_s29 = sadd.s32 1, %s26929_s29  }
 0xbbf   : > { %p22_p1 = scmp.ge.s32.totalorder %s25_s29, 4  }
 0xbc1   :  { %24 = sbr.rel (!%p22_p1) target bundleno = 1 (0x1), region = 111 }
 0xbc8   :  { %23200 = vsyncpa [#allocation3], 1 }
 0xbc9   :  { %23202 = vsyncpa [#allocation3 + $0x1], 1 }

</bundles_post_ra>
